<compile_context>
chip_gen: v7x
topology: tpu7x:2x2x1
jax: 0.10.0
libtpu: 0.0.40
codegen_flags: <defaults>
</compile_context>

<pallas_src>
import functools

import jax
import jax.numpy as jnp
from jax.experimental import pallas as pl
from jax.experimental.pallas import tpu as pltpu


# ---------------------------------------------------------------------------
# Fused (matmul + bias + activation) Pallas kernel.
# ---------------------------------------------------------------------------
def _fused_matmul_kernel(a_ref, w_ref, b_ref, o_ref, *, activation):
    y = jnp.dot(a_ref[...], w_ref[...], preferred_element_type=jnp.float32)
    y = y + b_ref[...]                       # (1, N) f32 bias broadcast
    if activation == "tanh":
        y = jnp.tanh(y)
    elif activation == "sigmoid":
        y = jax.nn.sigmoid(y)
    o_ref[...] = y.astype(o_ref.dtype)


def fused_matmul(a, w, b, *, activation="none", out_dtype=jnp.bfloat16):
    """act(a @ w + b), f32 MXU accumulation, no padding copies.

    a: (M, K) bf16 activations / im2col patches.
    w: (K, N) bf16 pre-transposed weights (exact shapes).
    b: (1, N) f32 bias.
    """
    M, K = a.shape
    Kw, N = w.shape
    assert K == Kw, (K, Kw)

    # 2 even M steps for the larger conv matmuls (megacore balance on v7x,
    # only 1-2 steps of per-step overhead on single-TC v5e/v6e); otherwise a
    # single whole-M step.  All shapes here keep TM a multiple of 16.
    grid_m = 2 if (M >= 256 and M % 16 == 0) else 1
    tm = M // grid_m

    return pl.pallas_call(
        functools.partial(_fused_matmul_kernel, activation=activation),
        out_shape=jax.ShapeDtypeStruct((M, N), out_dtype),
        grid=(grid_m,),
        in_specs=[
            pl.BlockSpec((tm, K), lambda i: (i, 0)),   # whole-K block
            pl.BlockSpec((K, N), lambda i: (0, 0)),    # resident weights
            pl.BlockSpec((1, N), lambda i: (0, 0)),    # resident bias
        ],
        out_specs=pl.BlockSpec((tm, N), lambda i: (i, 0)),
        compiler_params=pltpu.CompilerParams(
            dimension_semantics=("parallel",),
        ),
    )(a, w, b)


# ---------------------------------------------------------------------------
# Layer helpers (NHWC, bf16 activations).
# ---------------------------------------------------------------------------
def conv2d_nhwc(x, layer, kh, kw, *, pad=0, activation="none",
                out_dtype=jnp.bfloat16):
    """Stride-1 conv via channel-last bf16 im2col + fused Pallas matmul."""
    if pad:
        x = jnp.pad(x, ((0, 0), (pad, pad), (pad, pad), (0, 0)))
    x = x.astype(jnp.bfloat16)               # bf16 BEFORE building patches
    B, H, W, C = x.shape
    Ho, Wo = H - kh + 1, W - kw + 1
    # K ordering (dh, dw, c): channels stay lane-contiguous, no transposes.
    taps = [x[:, dh:dh + Ho, dw:dw + Wo, :]
            for dh in range(kh) for dw in range(kw)]
    patches = jnp.concatenate(taps, axis=-1).reshape(B * Ho * Wo, kh * kw * C)
    y = fused_matmul(patches, layer["w"], layer["b"],
                     activation=activation, out_dtype=out_dtype)
    return y.reshape(B, Ho, Wo, -1)


def maxpool2x2_nhwc(x):
    """MaxPool2d((2,2),(2,2)), floor mode, NHWC, bf16."""
    B, H, W, C = x.shape
    Hc, Wc = H // 2, W // 2
    x = x[:, :Hc * 2, :Wc * 2, :]
    return x.reshape(B, Hc, 2, Wc, 2, C).max(axis=(2, 4))


# ---------------------------------------------------------------------------
# Parameters (PyTorch-default uniform init; stored once in kernel layout).
# ---------------------------------------------------------------------------
def _prep_conv(w, b):
    # w: (Cout, Cin, kh, kw) -> (kh*kw*Cin, Cout) bf16, K ordered (kh, kw, c).
    cout = w.shape[0]
    w_km = jnp.transpose(w, (2, 3, 1, 0)).reshape(-1, cout)
    return {"w": w_km.astype(jnp.bfloat16),
            "b": b.astype(jnp.float32).reshape(1, cout)}


def _prep_linear(w, b):
    # w: (out, in) -> (in, out) bf16.  The "in" axis is interpreted in
    # (h, w, c) order here (random init, so the permutation is immaterial).
    return {"w": jnp.transpose(w).astype(jnp.bfloat16),
            "b": b.astype(jnp.float32).reshape(1, -1)}


def _uniform(key, shape, bound):
    return jax.random.uniform(key, shape, jnp.float32, -bound, bound)


def init_params(key):
    ks = jax.random.split(key, 14)

    def conv_init(kw_, kb_, cout, cin, kh, kwid):
        bound = 1.0 / float(cin * kh * kwid) ** 0.5
        return _uniform(kw_, (cout, cin, kh, kwid), bound), _uniform(kb_, (cout,), bound)

    def lin_init(kw_, kb_, out_f, in_f):
        bound = 1.0 / float(in_f) ** 0.5
        return _uniform(kw_, (out_f, in_f), bound), _uniform(kb_, (out_f,), bound)

    p = {}
    w, b = conv_init(ks[0], ks[1], 16, 5, 5, 5);      p["cnn_conv1"] = _prep_conv(w, b)
    w, b = conv_init(ks[2], ks[3], 32, 16, 5, 5);     p["cnn_conv2"] = _prep_conv(w, b)
    w, b = conv_init(ks[4], ks[5], 32, 32, 5, 5);     p["cnn_conv3"] = _prep_conv(w, b)
    w, b = conv_init(ks[6], ks[7], 3, 32, 5, 5);      p["sp_conv_att"] = _prep_conv(w, b)
    w, b = lin_init(ks[8], ks[9], 128, 32 * 10 * 8);  p["fc"] = _prep_linear(w, b)
    w, b = conv_init(ks[10], ks[11], 1, 128, 1, 1)    # fc6 = Conv2d(128, 1, (1,1))
    p["fc6_w"], p["fc6_b"] = w.reshape(1, 128), b
    w, b = lin_init(ks[12], ks[13], 150, 128)         # clfy = Linear(128, 150)
    p["clfy_w"], p["clfy_b"] = w, b
    # TODO(synk): self.sp_conv is defined in the module but never used in
    # forward(); it is intentionally omitted.
    return p


# ---------------------------------------------------------------------------
# Forward (eval mode).
# ---------------------------------------------------------------------------
def forward(x, p):
    # Module interface is NCHW; go NHWC + bf16 once and stay there.
    x = jnp.transpose(x, (0, 2, 3, 1)).astype(jnp.bfloat16)
    B = x.shape[0]

    h = conv2d_nhwc(x, p["cnn_conv1"], 5, 5, pad=4, activation="tanh")
    h = maxpool2x2_nhwc(h)
    h = conv2d_nhwc(h, p["cnn_conv2"], 5, 5, pad=4, activation="tanh")
    h = maxpool2x2_nhwc(h)
    h = conv2d_nhwc(h, p["cnn_conv3"], 5, 5, pad=4, activation="tanh")
    sp_cnn = maxpool2x2_nhwc(h)                                   # (B, 10, 8, 32)

    # Spatial attention maps: same-padded 5x5 conv 32->3, sigmoid fused.
    sp_sig = conv2d_nhwc(sp_cnn, p["sp_conv_att"], 5, 5, pad=2,
                         activation="sigmoid")                    # (B, 10, 8, 3)

    # fc = Linear(2560, 128) on cnn and the three attended features, batched
    # into one Pallas matmul (dropouts are identity in eval mode).
    feats = [sp_cnn.reshape(B, -1)]
    for i in range(3):
        feats.append((sp_cnn * sp_sig[..., i:i + 1]).reshape(B, -1))
    fc_in = jnp.concatenate(feats, axis=0)                        # (4B, 2560) bf16
    fc_out = fused_matmul(fc_in, p["fc"]["w"], p["fc"]["b"],
                          out_dtype=jnp.float32)                  # (4B, 128) f32
    cnn_feat = fc_out[:B]
    sa_feats = [fc_out[B * (i + 1):B * (i + 2)] for i in range(3)]

    # fc6 1x1 conv on (1,128,1,B) == per-row linear 128 -> 1, then attention mm.
    hidden = cnn_feat @ p["fc6_w"].T + p["fc6_b"]                 # (B, 1)
    score = jax.nn.sigmoid(hidden)
    att_score = (cnn_feat.T @ score).T                            # (1, 128)

    combs = []
    for i in range(3):
        cf = jnp.concatenate([cnn_feat, sa_feats[i] + att_score], axis=0)
        cf = jnp.mean(cf, axis=0, keepdims=True)                  # (1, 128)
        cf = cf / jnp.maximum(jnp.linalg.norm(cf, axis=1, keepdims=True), 1e-12)
        combs.append(cf)
    comb_features = combs[0] + combs[1] + combs[2]                # (1, 128)

    classified = comb_features @ p["clfy_w"].T + p["clfy_b"]      # (1, 150)
    lsmax = jax.nn.log_softmax(classified, axis=1)
    return comb_features, lsmax


if __name__ == "__main__":
    key = jax.random.PRNGKey(0)
    pkey, xkey = jax.random.split(key)
    params = init_params(pkey)
    # Smallest NCHW input consistent with fc = Linear(32*10*8, 128): (B,5,52,36).
    x = jax.random.normal(xkey, (2, 5, 52, 36), jnp.float32)
    comb, lsmax = jax.jit(forward)(x, params)
    jax.block_until_ready((comb, lsmax))
    assert comb.shape == (1, 128) and lsmax.shape == (1, 150)
    assert bool(jnp.all(jnp.isfinite(comb))) and bool(jnp.all(jnp.isfinite(lsmax)))
    print("KERNEL_OK")
</pallas_src>

<mosaic_0001>
module attributes {stable_mosaic.version = 11 : i64} {
  func.func @_fused_matmul_kernel(%arg0: i32, %arg1: memref<2240x125xbf16, #tpu.memory_space<vmem>>, %arg2: memref<125x16xbf16, #tpu.memory_space<vmem>>, %arg3: memref<1x16xf32, #tpu.memory_space<vmem>>, %arg4: memref<2240x16xbf16, #tpu.memory_space<vmem>>) attributes {dimension_semantics = [#tpu.dimension_semantics<parallel>], iteration_bounds = array<i64: 2>, scalar_prefetch = 0 : i64, scratch_operands = 0 : i64, tpu.core_type = #tpu.core_type<tc>, window_params = [{transform_indices = @transform_0, window_bounds = array<i64: 2240, 125>}, {pipeline_mode = #tpu.pipeline_mode<synchronous>, transform_indices = @transform_1, window_bounds = array<i64: 125, 16>}, {pipeline_mode = #tpu.pipeline_mode<synchronous>, transform_indices = @transform_2, window_bounds = array<i64: 1, 16>}, {transform_indices = @transform_3, window_bounds = array<i64: 2240, 16>}]} {
    %c0 = arith.constant 0 : index
    %c0_0 = arith.constant 0 : index
    %0 = vector.load %arg1[%c0, %c0_0] : memref<2240x125xbf16, #tpu.memory_space<vmem>>, vector<2240x125xbf16>
    %c0_1 = arith.constant 0 : index
    %c0_2 = arith.constant 0 : index
    %1 = vector.load %arg2[%c0_1, %c0_2] : memref<125x16xbf16, #tpu.memory_space<vmem>>, vector<125x16xbf16>
    %cst = arith.constant dense<0.000000e+00> : vector<2240x16xf32>
    %2 = tpu.matmul %0, %1, %cst {dimension_numbers = #tpu.dot_dimension_numbers<[1], [0], [0], [1], [0, 0, 1, 1], [], []>} : vector<2240x125xbf16>, vector<125x16xbf16>, vector<2240x16xf32> -> vector<2240x16xf32>
    %c0_3 = arith.constant 0 : index
    %c0_4 = arith.constant 0 : index
    %3 = vector.load %arg3[%c0_3, %c0_4] : memref<1x16xf32, #tpu.memory_space<vmem>>, vector<1x16xf32>
    %4 = vector.broadcast %3 : vector<1x16xf32> to vector<2240x16xf32>
    %5 = arith.addf %2, %4 : vector<2240x16xf32>
    %6 = math.tanh %5 : vector<2240x16xf32>
    %7 = arith.truncf %6 : vector<2240x16xf32> to vector<2240x16xbf16>
    %c0_5 = arith.constant 0 : index
    %c0_6 = arith.constant 0 : index
    %8 = vector.load %arg4[%c0_5, %c0_6] : memref<2240x16xbf16, #tpu.memory_space<vmem>>, vector<2240x16xbf16>
    tpu.vector_store %arg4[%c0_5, %c0_6], %7 {strides = array<i32>} : memref<2240x16xbf16, #tpu.memory_space<vmem>>, vector<2240x16xbf16>,
    return
  }
  func.func @transform_0(%arg0: i32) -> (i32, i32) {
    %c0_i32 = arith.constant 0 : i32
    %c0_i32_0 = arith.constant 0 : i32
    return %arg0, %c0_i32 : i32, i32
  }
  func.func @transform_1(%arg0: i32) -> (i32, i32) {
    %c0_i32 = arith.constant 0 : i32
    %c0_i32_0 = arith.constant 0 : i32
    %c0_i32_1 = arith.constant 0 : i32
    return %c0_i32, %c0_i32_0 : i32, i32
  }
  func.func @transform_2(%arg0: i32) -> (i32, i32) {
    %c0_i32 = arith.constant 0 : i32
    %c0_i32_0 = arith.constant 0 : i32
    %c0_i32_1 = arith.constant 0 : i32
    return %c0_i32, %c0_i32_0 : i32, i32
  }
  func.func @transform_3(%arg0: i32) -> (i32, i32) {
    %c0_i32 = arith.constant 0 : i32
    %c0_i32_0 = arith.constant 0 : i32
    return %arg0, %c0_i32 : i32, i32
  }
}

module attributes {stable_mosaic.version = 11 : i64} {
  func.func @_fused_matmul_kernel(%arg0: i32, %arg1: memref<768x400xbf16, #tpu.memory_space<vmem>>, %arg2: memref<400x32xbf16, #tpu.memory_space<vmem>>, %arg3: memref<1x32xf32, #tpu.memory_space<vmem>>, %arg4: memref<768x32xbf16, #tpu.memory_space<vmem>>) attributes {dimension_semantics = [#tpu.dimension_semantics<parallel>], iteration_bounds = array<i64: 2>, scalar_prefetch = 0 : i64, scratch_operands = 0 : i64, tpu.core_type = #tpu.core_type<tc>, window_params = [{transform_indices = @transform_0, window_bounds = array<i64: 768, 400>}, {pipeline_mode = #tpu.pipeline_mode<synchronous>, transform_indices = @transform_1, window_bounds = array<i64: 400, 32>}, {pipeline_mode = #tpu.pipeline_mode<synchronous>, transform_indices = @transform_2, window_bounds = array<i64: 1, 32>}, {transform_indices = @transform_3, window_bounds = array<i64: 768, 32>}]} {
    %c0 = arith.constant 0 : index
    %c0_0 = arith.constant 0 : index
    %0 = vector.load %arg1[%c0, %c0_0] : memref<768x400xbf16, #tpu.memory_space<vmem>>, vector<768x400xbf16>
    %c0_1 = arith.constant 0 : index
    %c0_2 = arith.constant 0 : index
    %1 = vector.load %arg2[%c0_1, %c0_2] : memref<400x32xbf16, #tpu.memory_space<vmem>>, vector<400x32xbf16>
    %cst = arith.constant dense<0.000000e+00> : vector<768x32xf32>
    %2 = tpu.matmul %0, %1, %cst {dimension_numbers = #tpu.dot_dimension_numbers<[1], [0], [0], [1], [0, 0, 1, 1], [], []>} : vector<768x400xbf16>, vector<400x32xbf16>, vector<768x32xf32> -> vector<768x32xf32>
    %c0_3 = arith.constant 0 : index
    %c0_4 = arith.constant 0 : index
    %3 = vector.load %arg3[%c0_3, %c0_4] : memref<1x32xf32, #tpu.memory_space<vmem>>, vector<1x32xf32>
    %4 = vector.broadcast %3 : vector<1x32xf32> to vector<768x32xf32>
    %5 = arith.addf %2, %4 : vector<768x32xf32>
    %6 = math.tanh %5 : vector<768x32xf32>
    %7 = arith.truncf %6 : vector<768x32xf32> to vector<768x32xbf16>
    %c0_5 = arith.constant 0 : index
    %c0_6 = arith.constant 0 : index
    %8 = vector.load %arg4[%c0_5, %c0_6] : memref<768x32xbf16, #tpu.memory_space<vmem>>, vector<768x32xbf16>
    tpu.vector_store %arg4[%c0_5, %c0_6], %7 {strides = array<i32>} : memref<768x32xbf16, #tpu.memory_space<vmem>>, vector<768x32xbf16>,
    return
  }
  func.func @transform_0(%arg0: i32) -> (i32, i32) {
    %c0_i32 = arith.constant 0 : i32
    %c0_i32_0 = arith.constant 0 : i32
    return %arg0, %c0_i32 : i32, i32
  }
  func.func @transform_1(%arg0: i32) -> (i32, i32) {
    %c0_i32 = arith.constant 0 : i32
    %c0_i32_0 = arith.constant 0 : i32
    %c0_i32_1 = arith.constant 0 : i32
    return %c0_i32, %c0_i32_0 : i32, i32
  }
  func.func @transform_2(%arg0: i32) -> (i32, i32) {
    %c0_i32 = arith.constant 0 : i32
    %c0_i32_0 = arith.constant 0 : i32
    %c0_i32_1 = arith.constant 0 : i32
    return %c0_i32, %c0_i32_0 : i32, i32
  }
  func.func @transform_3(%arg0: i32) -> (i32, i32) {
    %c0_i32 = arith.constant 0 : i32
    %c0_i32_0 = arith.constant 0 : i32
    return %arg0, %c0_i32 : i32, i32
  }
}

module attributes {stable_mosaic.version = 11 : i64} {
  func.func @_fused_matmul_kernel(%arg0: i32, %arg1: memref<320x800xbf16, #tpu.memory_space<vmem>>, %arg2: memref<800x32xbf16, #tpu.memory_space<vmem>>, %arg3: memref<1x32xf32, #tpu.memory_space<vmem>>, %arg4: memref<320x32xbf16, #tpu.memory_space<vmem>>) attributes {dimension_semantics = [#tpu.dimension_semantics<parallel>], iteration_bounds = array<i64: 2>, scalar_prefetch = 0 : i64, scratch_operands = 0 : i64, tpu.core_type = #tpu.core_type<tc>, window_params = [{transform_indices = @transform_0, window_bounds = array<i64: 320, 800>}, {pipeline_mode = #tpu.pipeline_mode<synchronous>, transform_indices = @transform_1, window_bounds = array<i64: 800, 32>}, {pipeline_mode = #tpu.pipeline_mode<synchronous>, transform_indices = @transform_2, window_bounds = array<i64: 1, 32>}, {transform_indices = @transform_3, window_bounds = array<i64: 320, 32>}]} {
    %c0 = arith.constant 0 : index
    %c0_0 = arith.constant 0 : index
    %0 = vector.load %arg1[%c0, %c0_0] : memref<320x800xbf16, #tpu.memory_space<vmem>>, vector<320x800xbf16>
    %c0_1 = arith.constant 0 : index
    %c0_2 = arith.constant 0 : index
    %1 = vector.load %arg2[%c0_1, %c0_2] : memref<800x32xbf16, #tpu.memory_space<vmem>>, vector<800x32xbf16>
    %cst = arith.constant dense<0.000000e+00> : vector<320x32xf32>
    %2 = tpu.matmul %0, %1, %cst {dimension_numbers = #tpu.dot_dimension_numbers<[1], [0], [0], [1], [0, 0, 1, 1], [], []>} : vector<320x800xbf16>, vector<800x32xbf16>, vector<320x32xf32> -> vector<320x32xf32>
    %c0_3 = arith.constant 0 : index
    %c0_4 = arith.constant 0 : index
    %3 = vector.load %arg3[%c0_3, %c0_4] : memref<1x32xf32, #tpu.memory_space<vmem>>, vector<1x32xf32>
    %4 = vector.broadcast %3 : vector<1x32xf32> to vector<320x32xf32>
    %5 = arith.addf %2, %4 : vector<320x32xf32>
    %6 = math.tanh %5 : vector<320x32xf32>
    %7 = arith.truncf %6 : vector<320x32xf32> to vector<320x32xbf16>
    %c0_5 = arith.constant 0 : index
    %c0_6 = arith.constant 0 : index
    %8 = vector.load %arg4[%c0_5, %c0_6] : memref<320x32xbf16, #tpu.memory_space<vmem>>, vector<320x32xbf16>
    tpu.vector_store %arg4[%c0_5, %c0_6], %7 {strides = array<i32>} : memref<320x32xbf16, #tpu.memory_space<vmem>>, vector<320x32xbf16>,
    return
  }
  func.func @transform_0(%arg0: i32) -> (i32, i32) {
    %c0_i32 = arith.constant 0 : i32
    %c0_i32_0 = arith.constant 0 : i32
    return %arg0, %c0_i32 : i32, i32
  }
  func.func @transform_1(%arg0: i32) -> (i32, i32) {
    %c0_i32 = arith.constant 0 : i32
    %c0_i32_0 = arith.constant 0 : i32
    %c0_i32_1 = arith.constant 0 : i32
    return %c0_i32, %c0_i32_0 : i32, i32
  }
  func.func @transform_2(%arg0: i32) -> (i32, i32) {
    %c0_i32 = arith.constant 0 : i32
    %c0_i32_0 = arith.constant 0 : i32
    %c0_i32_1 = arith.constant 0 : i32
    return %c0_i32, %c0_i32_0 : i32, i32
  }
  func.func @transform_3(%arg0: i32) -> (i32, i32) {
    %c0_i32 = arith.constant 0 : i32
    %c0_i32_0 = arith.constant 0 : i32
    return %arg0, %c0_i32 : i32, i32
  }
}

module attributes {stable_mosaic.version = 11 : i64} {
  func.func @_fused_matmul_kernel(%arg0: i32, %arg1: memref<160x800xbf16, #tpu.memory_space<vmem>>, %arg2: memref<800x3xbf16, #tpu.memory_space<vmem>>, %arg3: memref<1x3xf32, #tpu.memory_space<vmem>>, %arg4: memref<160x3xbf16, #tpu.memory_space<vmem>>) attributes {dimension_semantics = [#tpu.dimension_semantics<parallel>], iteration_bounds = array<i64: 1>, scalar_prefetch = 0 : i64, scratch_operands = 0 : i64, tpu.core_type = #tpu.core_type<tc>, window_params = [{transform_indices = @transform_0, window_bounds = array<i64: 160, 800>}, {pipeline_mode = #tpu.pipeline_mode<synchronous>, transform_indices = @transform_1, window_bounds = array<i64: 800, 3>}, {pipeline_mode = #tpu.pipeline_mode<synchronous>, transform_indices = @transform_2, window_bounds = array<i64: 1, 3>}, {transform_indices = @transform_3, window_bounds = array<i64: 160, 3>}]} {
    %c0 = arith.constant 0 : index
    %c0_0 = arith.constant 0 : index
    %0 = vector.load %arg1[%c0, %c0_0] : memref<160x800xbf16, #tpu.memory_space<vmem>>, vector<160x800xbf16>
    %c0_1 = arith.constant 0 : index
    %c0_2 = arith.constant 0 : index
    %1 = vector.load %arg2[%c0_1, %c0_2] : memref<800x3xbf16, #tpu.memory_space<vmem>>, vector<800x3xbf16>
    %cst = arith.constant dense<0.000000e+00> : vector<160x3xf32>
    %2 = tpu.matmul %0, %1, %cst {dimension_numbers = #tpu.dot_dimension_numbers<[1], [0], [0], [1], [0, 0, 1, 1], [], []>} : vector<160x800xbf16>, vector<800x3xbf16>, vector<160x3xf32> -> vector<160x3xf32>
    %c0_3 = arith.constant 0 : index
    %c0_4 = arith.constant 0 : index
    %3 = vector.load %arg3[%c0_3, %c0_4] : memref<1x3xf32, #tpu.memory_space<vmem>>, vector<1x3xf32>
    %4 = vector.broadcast %3 : vector<1x3xf32> to vector<160x3xf32>
    %5 = arith.addf %2, %4 : vector<160x3xf32>
    %6 = arith.negf %5 : vector<160x3xf32>
    %7 = math.exp %6 : vector<160x3xf32>
    %cst_5 = arith.constant 1.000000e+00 : f32
    %8 = vector.broadcast %cst_5 : f32 to vector<160x3xf32>
    %9 = arith.addf %8, %7 : vector<160x3xf32>
    %10 = arith.divf %8, %9 : vector<160x3xf32>
    %11 = arith.truncf %10 : vector<160x3xf32> to vector<160x3xbf16>
    %c0_6 = arith.constant 0 : index
    %c0_7 = arith.constant 0 : index
    %12 = vector.load %arg4[%c0_6, %c0_7] : memref<160x3xbf16, #tpu.memory_space<vmem>>, vector<160x3xbf16>
    tpu.vector_store %arg4[%c0_6, %c0_7], %11 {strides = array<i32>} : memref<160x3xbf16, #tpu.memory_space<vmem>>, vector<160x3xbf16>,
    return
  }
  func.func @transform_0(%arg0: i32) -> (i32, i32) {
    %c0_i32 = arith.constant 0 : i32
    %c0_i32_0 = arith.constant 0 : i32
    return %arg0, %c0_i32 : i32, i32
  }
  func.func @transform_1(%arg0: i32) -> (i32, i32) {
    %c0_i32 = arith.constant 0 : i32
    %c0_i32_0 = arith.constant 0 : i32
    %c0_i32_1 = arith.constant 0 : i32
    return %c0_i32, %c0_i32_0 : i32, i32
  }
  func.func @transform_2(%arg0: i32) -> (i32, i32) {
    %c0_i32 = arith.constant 0 : i32
    %c0_i32_0 = arith.constant 0 : i32
    %c0_i32_1 = arith.constant 0 : i32
    return %c0_i32, %c0_i32_0 : i32, i32
  }
  func.func @transform_3(%arg0: i32) -> (i32, i32) {
    %c0_i32 = arith.constant 0 : i32
    %c0_i32_0 = arith.constant 0 : i32
    return %arg0, %c0_i32 : i32, i32
  }
}

module attributes {stable_mosaic.version = 11 : i64} {
  func.func @_fused_matmul_kernel(%arg0: i32, %arg1: memref<8x2560xbf16, #tpu.memory_space<vmem>>, %arg2: memref<2560x128xbf16, #tpu.memory_space<vmem>>, %arg3: memref<1x128xf32, #tpu.memory_space<vmem>>, %arg4: memref<8x128xf32, #tpu.memory_space<vmem>>) attributes {dimension_semantics = [#tpu.dimension_semantics<parallel>], iteration_bounds = array<i64: 1>, scalar_prefetch = 0 : i64, scratch_operands = 0 : i64, tpu.core_type = #tpu.core_type<tc>, window_params = [{transform_indices = @transform_0, window_bounds = array<i64: 8, 2560>}, {pipeline_mode = #tpu.pipeline_mode<synchronous>, transform_indices = @transform_1, window_bounds = array<i64: 2560, 128>}, {pipeline_mode = #tpu.pipeline_mode<synchronous>, transform_indices = @transform_2, window_bounds = array<i64: 1, 128>}, {transform_indices = @transform_3, window_bounds = array<i64: 8, 128>}]} {
    %c0 = arith.constant 0 : index
    %c0_0 = arith.constant 0 : index
    %0 = vector.load %arg1[%c0, %c0_0] : memref<8x2560xbf16, #tpu.memory_space<vmem>>, vector<8x2560xbf16>
    %c0_1 = arith.constant 0 : index
    %c0_2 = arith.constant 0 : index
    %1 = vector.load %arg2[%c0_1, %c0_2] : memref<2560x128xbf16, #tpu.memory_space<vmem>>, vector<2560x128xbf16>
    %cst = arith.constant dense<0.000000e+00> : vector<8x128xf32>
    %2 = tpu.matmul %0, %1, %cst {dimension_numbers = #tpu.dot_dimension_numbers<[1], [0], [0], [1], [0, 0, 1, 1], [], []>} : vector<8x2560xbf16>, vector<2560x128xbf16>, vector<8x128xf32> -> vector<8x128xf32>
    %c0_3 = arith.constant 0 : index
    %c0_4 = arith.constant 0 : index
    %3 = vector.load %arg3[%c0_3, %c0_4] : memref<1x128xf32, #tpu.memory_space<vmem>>, vector<1x128xf32>
    %4 = vector.broadcast %3 : vector<1x128xf32> to vector<8x128xf32>
    %5 = arith.addf %2, %4 : vector<8x128xf32>
    %c0_5 = arith.constant 0 : index
    %c0_6 = arith.constant 0 : index
    %6 = vector.load %arg4[%c0_5, %c0_6] : memref<8x128xf32, #tpu.memory_space<vmem>>, vector<8x128xf32>
    tpu.vector_store %arg4[%c0_5, %c0_6], %5 {strides = array<i32>} : memref<8x128xf32, #tpu.memory_space<vmem>>, vector<8x128xf32>,
    return
  }
  func.func @transform_0(%arg0: i32) -> (i32, i32) {
    %c0_i32 = arith.constant 0 : i32
    %c0_i32_0 = arith.constant 0 : i32
    return %arg0, %c0_i32 : i32, i32
  }
  func.func @transform_1(%arg0: i32) -> (i32, i32) {
    %c0_i32 = arith.constant 0 : i32
    %c0_i32_0 = arith.constant 0 : i32
    %c0_i32_1 = arith.constant 0 : i32
    return %c0_i32, %c0_i32_0 : i32, i32
  }
  func.func @transform_2(%arg0: i32) -> (i32, i32) {
    %c0_i32 = arith.constant 0 : i32
    %c0_i32_0 = arith.constant 0 : i32
    %c0_i32_1 = arith.constant 0 : i32
    return %c0_i32, %c0_i32_0 : i32, i32
  }
  func.func @transform_3(%arg0: i32) -> (i32, i32) {
    %c0_i32 = arith.constant 0 : i32
    %c0_i32_0 = arith.constant 0 : i32
    return %arg0, %c0_i32 : i32, i32
  }
}

</mosaic_0001>

<bundles_post_ra>
// kernel: forward.5
= control target key start
LH: loop header
LB: loop body
LE: loop exit
PB: predicated region body
PF: predicated region fallthrough
CT: control target
= control target key end

     0   :  { %s6610_s12 = smov 0   ;;  %s7802_s0 = inlined_call_operand.vmem [shape: bf16[4480,125], index: 0, kind: input, shape index: {}]   ;;  %s7803_s1 = inlined_call_operand.vmem [shape: bf16[125,16], index: 1, kind: input, shape index: {}]   ;;  %s7804_s2 = inlined_call_operand.vmem [shape: f32[1,16], index: 2, kind: input, shape index: {}]   ;;  %s7805_s3 = inlined_call_operand.vmem [shape: bf16[4480,16], index: 3, kind: output, shape index: {}]  }
   0x1 LB: > { %s4543_s13 = sadd.s32 4294967295, %s6587_s12   ;;  %p4547_p0 = scmp.ge.s32.totalorder %s6587_s12, 1  ;;  %s6587_s12 = sphi %s6610_s12, %s13_s12  }
   0x2   : > { %p138_p1 = scmp.lt.s32.totalorder %s6587_s12, 3 }
   0x4   : > { %p139_p2 = pnand %p4547_p0, %p138_p1 }
   0x5   : > { %v5870_v0 = vld [vmem:[%s7803_s1] sm:$0xff] (!%p139_p2)   ;;  %v5871_v1 = vld [vmem:[%s7803_s1 + $0x8] sm:$0xff] (!%p139_p2)   ;;  %v5872_v2 = vld [vmem:[%s7803_s1 + $0x10] sm:$0xff] (!%p139_p2)   ;;  %s162_s20 = smul.u32 (!%p139_p2), 280, %s4543_s13  ;;  %vm1646_vm0 = vcmask (!%p139_p2), 1045504   ;;  %vm1225_vm1 = vcmask (!%p139_p2), 1022976  }
   0x6   : > { %142 = sbr.rel (%p139_p2) target bundleno = 548 (0x224), region = 32  ;;  %5549 = vmatprep.subr.bf16.mxu0 (!%p139_p2), %v5870_v0  ;;  %5845 = vmatprep.subr.bf16.mxu1 (!%p139_p2), %v5870_v0  ;;  %v5873_v3 = vld [vmem:[%s7803_s1 + $0x18] sm:$0xff] (!%p139_p2)   ;;  %v5874_v4 = vld [vmem:[%s7803_s1 + $0x20] sm:$0xff] (!%p139_p2)   ;;  %v5875_v7 = vld [vmem:[%s7803_s1 + $0x28] sm:$0xff] (!%p139_p2)   ;;  %vm1647_vm2 = vcmask (!%p139_p2), 1046528   ;;  %v6589_v8 = vmov (!%p139_p2), 65535  }
   0x7   : > { %5550 = vmatpush3.bf16.msra.mxu0 (!%p139_p2), %v5870_v0  ;;  %5853 = vmatpush3.bf16.msra.mxu1 (!%p139_p2), %v5870_v0  ;;  %p163_p3 = scmp.lt.s32.totalorder (!%p139_p2), %s162_s20, 559  ;;  %v1648_v9 = vsel (!%p139_p2), %vm1646_vm0, 4294967295, %v6589_v8  ;;  %v5876_v10 = vld [vmem:[%s7803_s1 + $0x30] sm:$0xff] (!%p139_p2)   ;;  %v5877_v11 = vld [vmem:[%s7803_s1 + $0x38] sm:$0x7f] (!%p139_p2)   ;;  %vm4206_vm3 = vcmask (!%p139_p2), 125952  }
   0x8   : > { %5551 = vmatprep.subr.bf16.mxu0 (!%p139_p2), %v5871_v1  ;;  %5846 = vmatprep.subr.bf16.mxu1 (!%p139_p2), %v5871_v1  ;;  %v1649_v12 = vsel (!%p139_p2), %vm1647_vm2, %v1648_v9, 0 }
   0x9   : > { %v1651_v13 = vand.u32 (!%p139_p2), %v5877_v11, %v1649_v12 }
   0xb   : > { %5552 = vmatpush3.bf16.msra.mxu0 (!%p139_p2), %v5871_v1  ;;  %5854 = vmatpush3.bf16.msra.mxu1 (!%p139_p2), %v5871_v1 }
   0xc   : > { %5553 = vmatprep.subr.bf16.mxu0 (!%p139_p2), %v5872_v2  ;;  %5847 = vmatprep.subr.bf16.mxu1 (!%p139_p2), %v5872_v2 }
   0xd   : > { %s7807_s20 = smov (!%p163_p3, %s162_s20), 559 }
   0xe   : > { %s4548_s25 = sshll.u32 %s7807_s20, 2 }
   0xf   : > { %5554 = vmatpush3.bf16.msra.mxu0 %v5872_v2  ;;  %5855 = vmatpush3.bf16.msra.mxu1 %v5872_v2  ;;  %s6641_s28 = scalar_lea.vmem %s7802_s0, %s4548_s25  ;;  %s6908_s13 = scalar_lea.vmem %s7805_s3, %s4548_s25 }
  0x10   : > { %5555 = vmatprep.subr.bf16.mxu0 %v5873_v3  ;;  %5848 = vmatprep.subr.bf16.mxu1 %v5873_v3  ;;  %v5878_v5 = vld [vmem:[%s6641_s28] sm:$0xff]   ;;  %v5879_v6 = vld [vmem:[%s6641_s28 + $0x230] sm:$0xff]   ;;  %v5880_v14 = vld [vmem:[%s6641_s28 + $0x8] sm:$0xff]  }
  0x11   : > { %5565 = vmatprep.mubr.msk.bf16.mxu0 %vm1225_vm1, %v5878_v5  ;;  %5705 = vmatprep.mubr.msk.bf16.mxu1 %vm1225_vm1, %v5879_v6  ;;  %v5881_v15 = vld [vmem:[%s6641_s28 + $0x238] sm:$0xff]   ;;  %v5882_v16 = vld [vmem:[%s6641_s28 + $0x10] sm:$0xff]   ;;  %v5883_v17 = vld [vmem:[%s6641_s28 + $0x240] sm:$0xff]  }
  0x12   : > { %v5884_v18 = vld [vmem:[%s6641_s28 + $0x18] sm:$0xff]   ;;  %v5885_v19 = vld [vmem:[%s6641_s28 + $0x248] sm:$0xff]   ;;  %v5886_v20 = vld [vmem:[%s6641_s28 + $0x20] sm:$0xff]  }
  0x13   : > { %5556 = vmatpush3.bf16.msra.mxu0 %v5873_v3  ;;  %5856 = vmatpush3.bf16.msra.mxu1 %v5873_v3  ;;  %v5887_v21 = vld [vmem:[%s6641_s28 + $0x250] sm:$0xff]   ;;  %v5888_v22 = vld [vmem:[%s6641_s28 + $0x28] sm:$0xff]   ;;  %v5889_v23 = vld [vmem:[%s6641_s28 + $0x258] sm:$0xff]  }
  0x14   : > { %5557 = vmatprep.subr.bf16.mxu0 %v5874_v4  ;;  %5849 = vmatprep.subr.bf16.mxu1 %v5874_v4  ;;  %v5890_v24 = vld [vmem:[%s6641_s28 + $0x30] sm:$0xff]   ;;  %v5891_v25 = vld [vmem:[%s6641_s28 + $0x260] sm:$0xff]   ;;  %v5892_v26 = vld [vmem:[%s6641_s28 + $0x38] sm:$0xff]  }
  0x15   : > { %v5893_v27 = vld [vmem:[%s6641_s28 + $0x268] sm:$0xff]   ;;  %v5894_v28 = vld [vmem:[%s6641_s28 + $0x40] sm:$0xff]   ;;  %v5895_v29 = vld [vmem:[%s6641_s28 + $0x270] sm:$0xff]  }
  0x16   : > { %v5896_v30 = vld [vmem:[%s6641_s28 + $0x48] sm:$0xff]   ;;  %v5897_v31 = vld [vmem:[%s6641_s28 + $0x278] sm:$0xff]   ;;  %v5898_v32 = vld [vmem:[%s6641_s28 + $0x50] sm:$0xff]  }
  0x17   : > { %5558 = vmatpush3.bf16.msra.mxu0 %v5874_v4  ;;  %5857 = vmatpush3.bf16.msra.mxu1 %v5874_v4  ;;  %v5899_v33 = vld [vmem:[%s6641_s28 + $0x280] sm:$0xff]   ;;  %v5900_v34 = vld [vmem:[%s6641_s28 + $0x58] sm:$0xff]   ;;  %v5901_v35 = vld [vmem:[%s6641_s28 + $0x288] sm:$0xff]  }
  0x18   : > { %5559 = vmatprep.subr.bf16.mxu0 %v5875_v7  ;;  %5850 = vmatprep.subr.bf16.mxu1 %v5875_v7  ;;  %v5902_v36 = vld [vmem:[%s6641_s28 + $0x60] sm:$0xff]   ;;  %v5903_v37 = vld [vmem:[%s6641_s28 + $0x290] sm:$0xff]   ;;  %v5904_v38 = vld [vmem:[%s6641_s28 + $0x68] sm:$0xff]  }
  0x19   : > { %v5905_v39 = vld [vmem:[%s6641_s28 + $0x298] sm:$0xff]   ;;  %v5906_v40 = vld [vmem:[%s6641_s28 + $0x70] sm:$0xff]   ;;  %v5907_v41 = vld [vmem:[%s6641_s28 + $0x2a0] sm:$0xff]  }
  0x1a   : > { %v5908_v42 = vld [vmem:[%s6641_s28 + $0x78] sm:$0xff]   ;;  %v5909_v43 = vld [vmem:[%s6641_s28 + $0x2a8] sm:$0xff]   ;;  %v5910_v44 = vld [vmem:[%s6641_s28 + $0x80] sm:$0xff]  }
  0x1b   : > { %5560 = vmatpush3.bf16.msra.mxu0 %v5875_v7  ;;  %5858 = vmatpush3.bf16.msra.mxu1 %v5875_v7  ;;  %v5911_v45 = vld [vmem:[%s6641_s28 + $0x2b0] sm:$0xff]   ;;  %v5912_v46 = vld [vmem:[%s6641_s28 + $0x88] sm:$0xff]   ;;  %v5913_v47 = vld [vmem:[%s6641_s28 + $0x2b8] sm:$0xff]  }
  0x1c   : > { %5561 = vmatprep.subr.bf16.mxu0 %v5876_v10  ;;  %5851 = vmatprep.subr.bf16.mxu1 %v5876_v10  ;;  %v5914_v48 = vld [vmem:[%s6641_s28 + $0x90] sm:$0xff]   ;;  %v5915_v49 = vld [vmem:[%s6641_s28 + $0x2c0] sm:$0xff]   ;;  %v5916_v50 = vld [vmem:[%s6641_s28 + $0x98] sm:$0xff]  }
  0x1d   : > { %v5917_v51 = vld [vmem:[%s6641_s28 + $0x2c8] sm:$0xff]   ;;  %v5918_v52 = vld [vmem:[%s6641_s28 + $0xa0] sm:$0xff]   ;;  %v5919_v53 = vld [vmem:[%s6641_s28 + $0x2d0] sm:$0xff]  }
  0x1e   : > { %v5920_v54 = vld [vmem:[%s6641_s28 + $0xa8] sm:$0xff]   ;;  %v5921_v55 = vld [vmem:[%s6641_s28 + $0x2d8] sm:$0xff]   ;;  %v5922_v56 = vld [vmem:[%s6641_s28 + $0xb0] sm:$0xff]  }
  0x1f   : > { %5562 = vmatpush3.bf16.msra.mxu0 %v5876_v10  ;;  %5859 = vmatpush3.bf16.msra.mxu1 %v5876_v10  ;;  %v5923_v57 = vld [vmem:[%s6641_s28 + $0x2e0] sm:$0xff]   ;;  %v5924_v58 = vld [vmem:[%s6641_s28 + $0xb8] sm:$0xff]   ;;  %v5925_v59 = vld [vmem:[%s6641_s28 + $0x2e8] sm:$0xff]  }
  0x20   : > { %5563 = vmatprep.subr.bf16.mxu0 %v1651_v13  ;;  %5852 = vmatprep.subr.bf16.mxu1 %v1651_v13  ;;  %v5926_v60 = vld [vmem:[%s6641_s28 + $0xc0] sm:$0xff]   ;;  %v5927_v61 = vld [vmem:[%s6641_s28 + $0x2f0] sm:$0xff]   ;;  %v5928_v62 = vld [vmem:[%s6641_s28 + $0xc8] sm:$0xff]  }
  0x21   : > { %v5929_v63 = vld [vmem:[%s6641_s28 + $0x2f8] sm:$0xff]   ;;  %v5930_v0 = vld [vmem:[%s6641_s28 + $0xd0] sm:$0xff]   ;;  %v5931_v1 = vld [vmem:[%s6641_s28 + $0x300] sm:$0xff]  }
  0x22   : > { %v5932_v2 = vld [vmem:[%s6641_s28 + $0xd8] sm:$0xff]   ;;  %v5933_v3 = vld [vmem:[%s6641_s28 + $0x308] sm:$0xff]   ;;  %v5934_v4 = vld [vmem:[%s6641_s28 + $0xe0] sm:$0xff]  }
  0x23   : > { %5564 = vmatpush3.bf16.msra.mxu0 %v1651_v13  ;;  %5860 = vmatpush3.bf16.msra.mxu1 %v1651_v13  ;;  %v5935_v5 = vld [vmem:[%s6641_s28 + $0x310] sm:$0xff]   ;;  %v5936_v6 = vld [vmem:[%s6641_s28 + $0xe8] sm:$0xff]   ;;  %v5937_v7 = vld [vmem:[%s6641_s28 + $0x318] sm:$0xff]  }
  0x24   : > { %v5938_v8 = vld [vmem:[%s6641_s28 + $0xf0] sm:$0xff]   ;;  %v5939_v9 = vld [vmem:[%s6641_s28 + $0x320] sm:$0xff]   ;;  %v5940_v10 = vld [vmem:[%s6641_s28 + $0xf8] sm:$0xff]  }
  0x25   : > { %v5941_v11 = vld [vmem:[%s6641_s28 + $0x328] sm:$0xff]   ;;  %v5942_v12 = vld [vmem:[%s6641_s28 + $0x100] sm:$0xff]   ;;  %v5943_v13 = vld [vmem:[%s6641_s28 + $0x330] sm:$0xff]  }
  0x26   : > { %5566 = vmatmul.mubr.msk.bf16.vlgmr.msra.gmra.mrb[0].mxu0 %vm1225_vm1, %v5880_v14  ;;  %5706 = vmatmul.mubr.msk.bf16.vlgmr.msra.gmra.mrb[0].mxu1 %vm1225_vm1, %v5881_v15  ;;  %v5944_v14 = vld [vmem:[%s6641_s28 + $0x108] sm:$0xff]   ;;  %v5945_v15 = vld [vmem:[%s6641_s28 + $0x338] sm:$0xff]  }
  0x27   : > { %5569 = vmatprep.mubr.msk.bf16.mxu0 %vm1225_vm1, %v5882_v16  ;;  %5709 = vmatprep.mubr.msk.bf16.mxu1 %vm1225_vm1, %v5883_v17  ;;  %v5946_v16 = vld [vmem:[%s6641_s28 + $0x110] sm:$0xff]   ;;  %v5947_v17 = vld [vmem:[%s6641_s28 + $0x340] sm:$0xff]  }
  0x2e   : > { %5570 = vmatmul.mubr.msk.bf16.gmra.mrb[4].mxu0 %vm1225_vm1, %v5884_v18  ;;  %5710 = vmatmul.mubr.msk.bf16.gmra.mrb[4].mxu1 %vm1225_vm1, %v5885_v19  ;;  %v5948_v18 = vld [vmem:[%s6641_s28 + $0x118] sm:$0xff]   ;;  %v5949_v19 = vld [vmem:[%s6641_s28 + $0x348] sm:$0xff]  }
  0x2f   : > { %5573 = vmatprep.mubr.msk.bf16.mxu0 %vm1225_vm1, %v5886_v20  ;;  %5713 = vmatprep.mubr.msk.bf16.mxu1 %vm1225_vm1, %v5887_v21  ;;  %v5950_v20 = vld [vmem:[%s6641_s28 + $0x120] sm:$0xff]   ;;  %v5951_v21 = vld [vmem:[%s6641_s28 + $0x350] sm:$0xff]  }
  0x36   : > { %5574 = vmatmul.mubr.msk.bf16.gmra.mrb[8].mxu0 %vm1225_vm1, %v5888_v22  ;;  %5714 = vmatmul.mubr.msk.bf16.gmra.mrb[8].mxu1 %vm1225_vm1, %v5889_v23  ;;  %v5952_v22 = vld [vmem:[%s6641_s28 + $0x128] sm:$0xff]   ;;  %v5953_v23 = vld [vmem:[%s6641_s28 + $0x358] sm:$0xff]  }
  0x37   : > { %5577 = vmatprep.mubr.msk.bf16.mxu0 %vm1225_vm1, %v5890_v24  ;;  %5717 = vmatprep.mubr.msk.bf16.mxu1 %vm1225_vm1, %v5891_v25  ;;  %v5954_v24 = vld [vmem:[%s6641_s28 + $0x130] sm:$0xff]   ;;  %v5955_v25 = vld [vmem:[%s6641_s28 + $0x360] sm:$0xff]  }
  0x3e   : > { %5578 = vmatmul.mubr.msk.bf16.gmra.mrb[12].mxu0 %vm1225_vm1, %v5892_v26  ;;  %5718 = vmatmul.mubr.msk.bf16.gmra.mrb[12].mxu1 %vm1225_vm1, %v5893_v27  ;;  %v5956_v26 = vld [vmem:[%s6641_s28 + $0x138] sm:$0xff]   ;;  %v5957_v27 = vld [vmem:[%s6641_s28 + $0x368] sm:$0xff]  }
  0x3f   : > { %5581 = vmatprep.mubr.msk.bf16.mxu0 %vm1225_vm1, %v5894_v28  ;;  %5721 = vmatprep.mubr.msk.bf16.mxu1 %vm1225_vm1, %v5895_v29  ;;  %v5958_v28 = vld [vmem:[%s6641_s28 + $0x140] sm:$0xff]   ;;  %v5959_v29 = vld [vmem:[%s6641_s28 + $0x370] sm:$0xff]  }
  0x46   : > { %5582 = vmatmul.mubr.msk.bf16.gmra.mrb[16].mxu0 %vm1225_vm1, %v5896_v30  ;;  %5722 = vmatmul.mubr.msk.bf16.gmra.mrb[16].mxu1 %vm1225_vm1, %v5897_v31  ;;  %v5960_v30 = vld [vmem:[%s6641_s28 + $0x148] sm:$0xff]   ;;  %v5961_v31 = vld [vmem:[%s6641_s28 + $0x378] sm:$0xff]  }
  0x47   : > { %5585 = vmatprep.mubr.msk.bf16.mxu0 %vm1225_vm1, %v5898_v32  ;;  %5725 = vmatprep.mubr.msk.bf16.mxu1 %vm1225_vm1, %v5899_v33  ;;  %v5962_v32 = vld [vmem:[%s6641_s28 + $0x150] sm:$0xff]   ;;  %v5963_v33 = vld [vmem:[%s6641_s28 + $0x380] sm:$0xff]  }
  0x4e   : > { %5586 = vmatmul.mubr.msk.bf16.gmra.mrb[20].mxu0 %vm1225_vm1, %v5900_v34  ;;  %5726 = vmatmul.mubr.msk.bf16.gmra.mrb[20].mxu1 %vm1225_vm1, %v5901_v35  ;;  %v5964_v34 = vld [vmem:[%s6641_s28 + $0x158] sm:$0xff]   ;;  %v5965_v35 = vld [vmem:[%s6641_s28 + $0x388] sm:$0xff]  }
  0x4f   : > { %5589 = vmatprep.mubr.msk.bf16.mxu0 %vm1225_vm1, %v5902_v36  ;;  %5729 = vmatprep.mubr.msk.bf16.mxu1 %vm1225_vm1, %v5903_v37  ;;  %v5966_v36 = vld [vmem:[%s6641_s28 + $0x160] sm:$0xff]   ;;  %v5967_v37 = vld [vmem:[%s6641_s28 + $0x390] sm:$0xff]  }
  0x56   : > { %5590 = vmatmul.mubr.msk.bf16.gmra.mrb[24].mxu0 %vm1225_vm1, %v5904_v38  ;;  %5730 = vmatmul.mubr.msk.bf16.gmra.mrb[24].mxu1 %vm1225_vm1, %v5905_v39  ;;  %v5968_v38 = vld [vmem:[%s6641_s28 + $0x168] sm:$0xff]   ;;  %v5969_v39 = vld [vmem:[%s6641_s28 + $0x398] sm:$0xff]  }
  0x57   : > { %5593 = vmatprep.mubr.msk.bf16.mxu0 %vm1225_vm1, %v5906_v40  ;;  %5733 = vmatprep.mubr.msk.bf16.mxu1 %vm1225_vm1, %v5907_v41  ;;  %v5970_v40 = vld [vmem:[%s6641_s28 + $0x170] sm:$0xff]   ;;  %v5971_v41 = vld [vmem:[%s6641_s28 + $0x3a0] sm:$0xff]  }
  0x5e   : > { %5594 = vmatmul.mubr.msk.bf16.gmra.mrb[28].mxu0 %vm1225_vm1, %v5908_v42  ;;  %5734 = vmatmul.mubr.msk.bf16.gmra.mrb[28].mxu1 %vm1225_vm1, %v5909_v43  ;;  %v5972_v42 = vld [vmem:[%s6641_s28 + $0x178] sm:$0xff]   ;;  %v5973_v43 = vld [vmem:[%s6641_s28 + $0x3a8] sm:$0xff]  }
  0x5f   : > { %5597 = vmatprep.mubr.msk.bf16.mxu0 %vm1225_vm1, %v5910_v44  ;;  %5737 = vmatprep.mubr.msk.bf16.mxu1 %vm1225_vm1, %v5911_v45  ;;  %v5974_v44 = vld [vmem:[%s6641_s28 + $0x180] sm:$0xff]   ;;  %v5975_v45 = vld [vmem:[%s6641_s28 + $0x3b0] sm:$0xff]  }
  0x66   : > { %5598 = vmatmul.mubr.msk.bf16.gmra.mrb[32].mxu0 %vm1225_vm1, %v5912_v46  ;;  %5738 = vmatmul.mubr.msk.bf16.gmra.mrb[32].mxu1 %vm1225_vm1, %v5913_v47  ;;  %v5976_v46 = vld [vmem:[%s6641_s28 + $0x188] sm:$0xff]   ;;  %v5977_v47 = vld [vmem:[%s6641_s28 + $0x3b8] sm:$0xff]  }
  0x67   : > { %5601 = vmatprep.mubr.msk.bf16.mxu0 %vm1225_vm1, %v5914_v48  ;;  %5741 = vmatprep.mubr.msk.bf16.mxu1 %vm1225_vm1, %v5915_v49  ;;  %v5978_v48 = vld [vmem:[%s6641_s28 + $0x190] sm:$0xff]   ;;  %v5979_v49 = vld [vmem:[%s6641_s28 + $0x3c0] sm:$0xff]  }
  0x6e   : > { %5602 = vmatmul.mubr.msk.bf16.gmra.mrb[36].mxu0 %vm1225_vm1, %v5916_v50  ;;  %5742 = vmatmul.mubr.msk.bf16.gmra.mrb[36].mxu1 %vm1225_vm1, %v5917_v51  ;;  %v5980_v50 = vld [vmem:[%s6641_s28 + $0x198] sm:$0xff]   ;;  %v5981_v51 = vld [vmem:[%s6641_s28 + $0x3c8] sm:$0xff]  }
  0x6f   : > { %5605 = vmatprep.mubr.msk.bf16.mxu0 %vm1225_vm1, %v5918_v52  ;;  %5745 = vmatprep.mubr.msk.bf16.mxu1 %vm1225_vm1, %v5919_v53  ;;  %v5982_v52 = vld [vmem:[%s6641_s28 + $0x1a0] sm:$0xff]   ;;  %v5983_v53 = vld [vmem:[%s6641_s28 + $0x3d0] sm:$0xff]  }
  0x76   : > { %5606 = vmatmul.mubr.msk.bf16.gmra.mrb[40].mxu0 %vm1225_vm1, %v5920_v54  ;;  %5746 = vmatmul.mubr.msk.bf16.gmra.mrb[40].mxu1 %vm1225_vm1, %v5921_v55  ;;  %v5984_v54 = vld [vmem:[%s6641_s28 + $0x1a8] sm:$0xff]   ;;  %v5985_v55 = vld [vmem:[%s6641_s28 + $0x3d8] sm:$0xff]  }
  0x77   : > { %5609 = vmatprep.mubr.msk.bf16.mxu0 %vm1225_vm1, %v5922_v56  ;;  %5749 = vmatprep.mubr.msk.bf16.mxu1 %vm1225_vm1, %v5923_v57  ;;  %v5986_v56 = vld [vmem:[%s6641_s28 + $0x1b0] sm:$0xff]   ;;  %v5987_v57 = vld [vmem:[%s6641_s28 + $0x3e0] sm:$0xff]  }
  0x7e   : > { %5610 = vmatmul.mubr.msk.bf16.gmra.mrb[44].mxu0 %vm1225_vm1, %v5924_v58  ;;  %5750 = vmatmul.mubr.msk.bf16.gmra.mrb[44].mxu1 %vm1225_vm1, %v5925_v59  ;;  %v6873_v58 = vld [vmem:[%s7804_s2] ss:$0 sm:$0xff] }
  0x7f   : > { %5613 = vmatprep.mubr.msk.bf16.mxu0 %vm1225_vm1, %v5926_v60  ;;  %5753 = vmatprep.mubr.msk.bf16.mxu1 %vm1225_vm1, %v5927_v61 }
  0x86   : > { %5614 = vmatmul.mubr.msk.bf16.gmra.mrb[48].mxu0 %vm1225_vm1, %v5928_v62  ;;  %5754 = vmatmul.mubr.msk.bf16.gmra.mrb[48].mxu1 %vm1225_vm1, %v5929_v63 }
  0x87   : > { %5617 = vmatprep.mubr.msk.bf16.mxu0 %vm1225_vm1, %v5930_v0  ;;  %5757 = vmatprep.mubr.msk.bf16.mxu1 %vm1225_vm1, %v5931_v1  ;;  %v5988_v1 = vld [vmem:[%s6641_s28 + $0x1b8] sm:$0xff]  }
  0x8e   : > { %5618 = vmatmul.mubr.msk.bf16.gmra.mrb[52].mxu0 %vm1225_vm1, %v5932_v2  ;;  %5758 = vmatmul.mubr.msk.bf16.gmra.mrb[52].mxu1 %vm1225_vm1, %v5933_v3  ;;  %v5989_v2 = vld [vmem:[%s6641_s28 + $0x3e8] sm:$0xff]  }
  0x8f   : > { %5621 = vmatprep.mubr.msk.bf16.mxu0 %vm1225_vm1, %v5934_v4  ;;  %5761 = vmatprep.mubr.msk.bf16.mxu1 %vm1225_vm1, %v5935_v5 }
  0x96   : > { %5622 = vmatmul.mubr.msk.bf16.gmra.mrb[56].mxu0 %vm1225_vm1, %v5936_v6  ;;  %5762 = vmatmul.mubr.msk.bf16.gmra.mrb[56].mxu1 %vm1225_vm1, %v5937_v7  ;;  %v5990_v7 = vld [vmem:[%s6641_s28 + $0x1c0] sm:$0xff]  }
  0x97   : > { %5625 = vmatprep.mubr.msk.bf16.mxu0 %vm1225_vm1, %v5938_v8  ;;  %5765 = vmatprep.mubr.msk.bf16.mxu1 %vm1225_vm1, %v5939_v9  ;;  %v5991_v8 = vld [vmem:[%s6641_s28 + $0x3f0] sm:$0xff]  }
  0x9e   : > { %5626 = vmatmul.mubr.msk.bf16.gmra.mrb[60].mxu0 %vm1225_vm1, %v5940_v10  ;;  %5766 = vmatmul.mubr.msk.bf16.gmra.mrb[60].mxu1 %vm1225_vm1, %v5941_v11 }
  0x9f   : > { %5629 = vmatprep.mubr.msk.bf16.mxu0 %vm1225_vm1, %v5942_v12  ;;  %5769 = vmatprep.mubr.msk.bf16.mxu1 %vm1225_vm1, %v5943_v13 }
  0xa6   : > { %5630 = vmatmul.mubr.msk.bf16.gmra.mrb[64].mxu0 %vm1225_vm1, %v5944_v14  ;;  %5770 = vmatmul.mubr.msk.bf16.gmra.mrb[64].mxu1 %vm1225_vm1, %v5945_v15 }
  0xa7   : > { %5633 = vmatprep.mubr.msk.bf16.mxu0 %vm1225_vm1, %v5946_v16  ;;  %5773 = vmatprep.mubr.msk.bf16.mxu1 %vm1225_vm1, %v5947_v17 }
  0xae   : > { %5634 = vmatmul.mubr.msk.bf16.gmra.mrb[68].mxu0 %vm1225_vm1, %v5948_v18  ;;  %5774 = vmatmul.mubr.msk.bf16.gmra.mrb[68].mxu1 %vm1225_vm1, %v5949_v19 }
  0xaf   : > { %5637 = vmatprep.mubr.msk.bf16.mxu0 %vm1225_vm1, %v5950_v20  ;;  %5777 = vmatprep.mubr.msk.bf16.mxu1 %vm1225_vm1, %v5951_v21  ;;  %v5992_v21 = vld [vmem:[%s6641_s28 + $0x1c8] sm:$0xff]  }
  0xb6   : > { %5638 = vmatmul.mubr.msk.bf16.gmra.mrb[72].mxu0 %vm1225_vm1, %v5952_v22  ;;  %5778 = vmatmul.mubr.msk.bf16.gmra.mrb[72].mxu1 %vm1225_vm1, %v5953_v23  ;;  %v5993_v22 = vld [vmem:[%s6641_s28 + $0x3f8] sm:$0xff]  }
  0xb7   : > { %5641 = vmatprep.mubr.msk.bf16.mxu0 %vm1225_vm1, %v5954_v24  ;;  %5781 = vmatprep.mubr.msk.bf16.mxu1 %vm1225_vm1, %v5955_v25 }
  0xbe   : > { %5642 = vmatmul.mubr.msk.bf16.gmra.mrb[76].mxu0 %vm1225_vm1, %v5956_v26  ;;  %5782 = vmatmul.mubr.msk.bf16.gmra.mrb[76].mxu1 %vm1225_vm1, %v5957_v27  ;;  %v5994_v27 = vld [vmem:[%s6641_s28 + $0x1d0] sm:$0xff]  }
  0xbf   : > { %5645 = vmatprep.mubr.msk.bf16.mxu0 %vm1225_vm1, %v5958_v28  ;;  %5785 = vmatprep.mubr.msk.bf16.mxu1 %vm1225_vm1, %v5959_v29  ;;  %v5995_v28 = vld [vmem:[%s6641_s28 + $0x400] sm:$0xff]  }
  0xc6   : > { %5646 = vmatmul.mubr.msk.bf16.gmra.mrb[80].mxu0 %vm1225_vm1, %v5960_v30  ;;  %5786 = vmatmul.mubr.msk.bf16.gmra.mrb[80].mxu1 %vm1225_vm1, %v5961_v31 }
  0xc7   : > { %5649 = vmatprep.mubr.msk.bf16.mxu0 %vm1225_vm1, %v5962_v32  ;;  %5789 = vmatprep.mubr.msk.bf16.mxu1 %vm1225_vm1, %v5963_v33 }
  0xce   : > { %5650 = vmatmul.mubr.msk.bf16.gmra.mrb[84].mxu0 %vm1225_vm1, %v5964_v34  ;;  %5790 = vmatmul.mubr.msk.bf16.gmra.mrb[84].mxu1 %vm1225_vm1, %v5965_v35 }
  0xcf   : > { %5653 = vmatprep.mubr.msk.bf16.mxu0 %vm1225_vm1, %v5966_v36  ;;  %5793 = vmatprep.mubr.msk.bf16.mxu1 %vm1225_vm1, %v5967_v37 }
  0xd6   : > { %5654 = vmatmul.mubr.msk.bf16.gmra.mrb[88].mxu0 %vm1225_vm1, %v5968_v38  ;;  %5794 = vmatmul.mubr.msk.bf16.gmra.mrb[88].mxu1 %vm1225_vm1, %v5969_v39 }
  0xd7   : > { %5657 = vmatprep.mubr.msk.bf16.mxu0 %vm1225_vm1, %v5970_v40  ;;  %5797 = vmatprep.mubr.msk.bf16.mxu1 %vm1225_vm1, %v5971_v41 }
  0xde   : > { %5658 = vmatmul.mubr.msk.bf16.gmra.mrb[92].mxu0 %vm1225_vm1, %v5972_v42  ;;  %5798 = vmatmul.mubr.msk.bf16.gmra.mrb[92].mxu1 %vm1225_vm1, %v5973_v43 }
  0xdf   : > { %5661 = vmatprep.mubr.msk.bf16.mxu0 %vm1225_vm1, %v5974_v44  ;;  %5801 = vmatprep.mubr.msk.bf16.mxu1 %vm1225_vm1, %v5975_v45 }
  0xe6   : > { %5662 = vmatmul.mubr.msk.bf16.gmra.mrb[96].mxu0 %vm1225_vm1, %v5976_v46  ;;  %5802 = vmatmul.mubr.msk.bf16.gmra.mrb[96].mxu1 %vm1225_vm1, %v5977_v47 }
  0xe7   : > { %5665 = vmatprep.mubr.msk.bf16.mxu0 %vm1225_vm1, %v5978_v48  ;;  %5805 = vmatprep.mubr.msk.bf16.mxu1 %vm1225_vm1, %v5979_v49 }
  0xee   : > { %5666 = vmatmul.mubr.msk.bf16.gmra.mrb[100].mxu0 %vm1225_vm1, %v5980_v50  ;;  %5806 = vmatmul.mubr.msk.bf16.gmra.mrb[100].mxu1 %vm1225_vm1, %v5981_v51  ;;  %v5996_v50 = vld [vmem:[%s6641_s28 + $0x1d8] sm:$0xff]   ;;  %v5997_v51 = vld [vmem:[%s6641_s28 + $0x408] sm:$0xff]  }
  0xef   : > { %5669 = vmatprep.mubr.msk.bf16.mxu0 %vm1225_vm1, %v5982_v52  ;;  %5809 = vmatprep.mubr.msk.bf16.mxu1 %vm1225_vm1, %v5983_v53 }
  0xf6   : > { %5670 = vmatmul.mubr.msk.bf16.gmra.mrb[104].mxu0 %vm1225_vm1, %v5984_v54  ;;  %5810 = vmatmul.mubr.msk.bf16.gmra.mrb[104].mxu1 %vm1225_vm1, %v5985_v55 }
  0xf7   : > { %5673 = vmatprep.mubr.msk.bf16.mxu0 %vm1225_vm1, %v5986_v56  ;;  %5813 = vmatprep.mubr.msk.bf16.mxu1 %vm1225_vm1, %v5987_v57 }
  0xf9   : > { %v5567_v59 = vpop.f32.mrb[0].mxu0  ;;  %v5707_v60 = vpop.f32.mrb[0].mxu1 }
  0xfa   : > { %v1696_v61 = vadd.f32 %v5567_v59, %v6873_v58  ;;  %v2256_v62 = vadd.f32 %v5707_v60, %v6873_v58  ;;  %v1687_v63 = vpop.f32.mrb[1].mxu0  ;;  %v2247_v0 = vpop.f32.mrb[1].mxu1  ;;  %v5998_v59 = vld [vmem:[%s6641_s28 + $0x1e0] sm:$0xff]   ;;  %v5999_v60 = vld [vmem:[%s6641_s28 + $0x410] sm:$0xff]  }
  0xfb   : > { %v1688_v3 = vadd.f32 %v6873_v58, %v1687_v63  ;;  %v2248_v4 = vadd.f32 %v6873_v58, %v2247_v0  ;;  %v5568_v5 = vpop.f32.mrb[2].mxu0  ;;  %v5708_v6 = vpop.f32.mrb[2].mxu1 }
  0xfc   : > { %6018 = vtanh.f32 %v1696_v61  ;;  %v1699_v9 = vadd.f32 %v5568_v5, %v6873_v58  ;;  %v1690_v10 = vpop.f32.mrb[3].mxu0  ;;  %v2250_v11 = vpop.f32.mrb[3].mxu1  ;;  %v2259_v12 = vadd.f32 %v5708_v6, %v6873_v58 }
  0xfd   : > { %6020 = vtanh.f32 %v2256_v62  ;;  %v1691_v13 = vadd.f32 %v6873_v58, %v1690_v10  ;;  %v2251_v14 = vadd.f32 %v6873_v58, %v2250_v11 }
  0xfe   : > { %6022 = vtanh.f32 %v1688_v3  ;;  %5674 = vmatmul.mubr.msk.bf16.gmra.mrb[108].mxu0 %vm1225_vm1, %v5988_v1  ;;  %5814 = vmatmul.mubr.msk.bf16.gmra.mrb[108].mxu1 %vm1225_vm1, %v5989_v2 }
  0xff   : > { %6024 = vtanh.f32 %v2248_v4  ;;  %5677 = vmatprep.mubr.msk.bf16.mxu0 %vm1225_vm1, %v5990_v7  ;;  %5817 = vmatprep.mubr.msk.bf16.mxu1 %vm1225_vm1, %v5991_v8 }
 0x100   : > { %6026 = vtanh.f32 %v1699_v9 }
 0x101   : > { %6028 = vtanh.f32 %v2259_v12  ;;  %v5571_v15 = vpop.f32.mrb[4].mxu0  ;;  %v5711_v16 = vpop.f32.mrb[4].mxu1 }
 0x102   : > { %6030 = vtanh.f32 %v1691_v13  ;;  %v1712_v17 = vadd.f32 %v5571_v15, %v6873_v58  ;;  %v2272_v18 = vadd.f32 %v5711_v16, %v6873_v58  ;;  %v1703_v19 = vpop.f32.mrb[5].mxu0  ;;  %v2263_v20 = vpop.f32.mrb[5].mxu1 }
 0x103   : > { %6032 = vtanh.f32 %v2251_v14  ;;  %v1704_v23 = vadd.f32 %v6873_v58, %v1703_v19  ;;  %v2264_v24 = vadd.f32 %v6873_v58, %v2263_v20  ;;  %v5572_v25 = vpop.f32.mrb[6].mxu0  ;;  %v5712_v26 = vpop.f32.mrb[6].mxu1 }
 0x104   : > { %6034 = vtanh.f32 %v1712_v17  ;;  %v1715_v29 = vadd.f32 %v5572_v25, %v6873_v58  ;;  %v1706_v30 = vpop.f32.mrb[7].mxu0  ;;  %v2266_v31 = vpop.f32.mrb[7].mxu1  ;;  %v2275_v32 = vadd.f32 %v5712_v26, %v6873_v58 }
 0x105   : > { %6036 = vtanh.f32 %v2272_v18  ;;  %v1707_v34 = vadd.f32 %v6873_v58, %v1706_v30  ;;  %v2267_v37 = vadd.f32 %v6873_v58, %v2266_v31  ;;  %v6002_v31 = vld [vmem:[%s6641_s28 + $0x1f0] sm:$0xff]  }
 0x106   : > { %v6019_v33 = vpop.eup %6018  ;;  %6038 = vtanh.f32 %v1704_v23  ;;  %5678 = vmatmul.mubr.msk.bf16.gmra.mrb[112].mxu0 %vm1225_vm1, %v5992_v21  ;;  %5818 = vmatmul.mubr.msk.bf16.gmra.mrb[112].mxu1 %vm1225_vm1, %v5993_v22  ;;  %v6000_v23 = vld [vmem:[%s6641_s28 + $0x1e8] sm:$0xff]  }
 0x107   : > { %v6021_v35 = vpop.eup %6020  ;;  %v5123_v36 = vpack.c.bf16 %v6019_v33, %v6019_v33  ;;  %6040 = vtanh.f32 %v2264_v24  ;;  %5681 = vmatprep.mubr.msk.bf16.mxu0 %vm1225_vm1, %v5994_v27  ;;  %5821 = vmatprep.mubr.msk.bf16.mxu1 %vm1225_vm1, %v5995_v28  ;;  %v6001_v24 = vld [vmem:[%s6641_s28 + $0x418] sm:$0xff]  }
 0x108   : > { %v6023_v38 = vpop.eup %6022  ;;  %v5263_v39 = vpack.c.bf16 %v6021_v35, %v6021_v35  ;;  %6042 = vtanh.f32 %v1715_v29 }
 0x109   : > { %v6025_v40 = vpop.eup %6024  ;;  %4209 = vst.msk [vmem:[%s6908_s13 + $0x8] sm:$0xf] %vm4206_vm3, %v5123_v36  ;;  %v5121_v41 = vpack.c.bf16 %v6023_v38, %v6023_v38  ;;  %6044 = vtanh.f32 %v2275_v32  ;;  %v5575_v42 = vpop.f32.mrb[8].mxu0  ;;  %v6003_v32 = vld [vmem:[%s6641_s28 + $0x420] sm:$0xff]  }
 0x10a   : > { %v5715_v43 = vpop.f32.mrb[8].mxu1  ;;  %v6027_v44 = vpop.eup %6026  ;;  %4349 = vst.msk [vmem:[%s6908_s13 + $0x238] sm:$0xf] %vm4206_vm3, %v5263_v39  ;;  %v5261_v45 = vpack.c.bf16 %v6025_v40, %v6025_v40  ;;  %6046 = vtanh.f32 %v1707_v34  ;;  %v1728_v46 = vadd.f32 %v5575_v42, %v6873_v58 }
 0x10b   : > { %v2288_v47 = vadd.f32 %v5715_v43, %v6873_v58  ;;  %v1719_v48 = vpop.f32.mrb[9].mxu0  ;;  %v2279_v49 = vpop.f32.mrb[9].mxu1  ;;  %4207 = vst.msk [vmem:[%s6908_s13] sm:$0xf] %vm4206_vm3, %v5121_v41  ;;  %v5124_v53 = vpack.c.bf16 %v6027_v44, %v6027_v44  ;;  %6048 = vtanh.f32 %v2267_v37 }
 0x10c   : > { %v6029_v52 = vpop.eup %6028  ;;  %v1720_v54 = vadd.f32 %v6873_v58, %v1719_v48  ;;  %v2280_v55 = vadd.f32 %v6873_v58, %v2279_v49  ;;  %v5576_v56 = vpop.f32.mrb[10].mxu0  ;;  %4347 = vst.msk [vmem:[%s6908_s13 + $0x230] sm:$0xf] %vm4206_vm3, %v5261_v45  ;;  %6050 = vtanh.f32 %v1728_v46 }
 0x10d   : > { %v5716_v57 = vpop.f32.mrb[10].mxu1  ;;  %v6031_v61 = vpop.eup %6030  ;;  %v5264_v62 = vpack.c.bf16 %v6029_v52, %v6029_v52  ;;  %v1731_v63 = vadd.f32 %v5576_v56, %v6873_v58  ;;  %4210 = vst.msk [vmem:[%s6908_s13 + $0xc] sm:$0xf] %vm4206_vm3, %v5124_v53  ;;  %6052 = vtanh.f32 %v2288_v47 }
 0x10e   : > { %v1722_v0 = vpop.f32.mrb[11].mxu0  ;;  %v2282_v1 = vpop.f32.mrb[11].mxu1  ;;  %v5122_v3 = vpack.c.bf16 %v6031_v61, %v6031_v61  ;;  %v2291_v4 = vadd.f32 %v5716_v57, %v6873_v58  ;;  %6054 = vtanh.f32 %v1720_v54  ;;  %5682 = vmatmul.mubr.msk.bf16.gmra.mrb[116].mxu0 %vm1225_vm1, %v5996_v50  ;;  %5822 = vmatmul.mubr.msk.bf16.gmra.mrb[116].mxu1 %vm1225_vm1, %v5997_v51  ;;  %v6005_v61 = vld [vmem:[%s6641_s28 + $0x428] sm:$0xff]  }
 0x10f   : > { %v6033_v2 = vpop.eup %6032  ;;  %4350 = vst.msk [vmem:[%s6908_s13 + $0x23c] sm:$0xf] %vm4206_vm3, %v5264_v62  ;;  %v1723_v7 = vadd.f32 %v6873_v58, %v1722_v0  ;;  %6056 = vtanh.f32 %v2280_v55  ;;  %v2283_v10 = vadd.f32 %v6873_v58, %v2282_v1  ;;  %5685 = vmatprep.mubr.msk.bf16.mxu0 %vm1225_vm1, %v5998_v59  ;;  %5825 = vmatprep.mubr.msk.bf16.mxu1 %vm1225_vm1, %v5999_v60  ;;  %v6004_v60 = vld [vmem:[%s6641_s28 + $0x1f8] sm:$0xff]  }
 0x110   : > { %v6035_v5 = vpop.eup %6034  ;;  %v5262_v6 = vpack.c.bf16 %v6033_v2, %v6033_v2  ;;  %4208 = vst.msk [vmem:[%s6908_s13 + $0x4] sm:$0xf] %vm4206_vm3, %v5122_v3  ;;  %6058 = vtanh.f32 %v1731_v63 }
 0x111   : > { %v6037_v8 = vpop.eup %6036  ;;  %v5127_v9 = vpack.c.bf16 %v6035_v5, %v6035_v5  ;;  %6060 = vtanh.f32 %v2291_v4  ;;  %v5579_v15 = vpop.f32.mrb[12].mxu0  ;;  %v6006_v4 = vld [vmem:[%s6641_s28 + $0x200] sm:$0xff]   ;;  %v6007_v5 = vld [vmem:[%s6641_s28 + $0x430] sm:$0xff]  }
 0x112   : > { %v6039_v11 = vpop.eup %6038  ;;  %4348 = vst.msk [vmem:[%s6908_s13 + $0x234] sm:$0xf] %vm4206_vm3, %v5262_v6  ;;  %v5267_v12 = vpack.c.bf16 %v6037_v8, %v6037_v8  ;;  %v5719_v16 = vpop.f32.mrb[12].mxu1  ;;  %6062 = vtanh.f32 %v1723_v7  ;;  %v1744_v19 = vadd.f32 %v5579_v15, %v6873_v58 }
 0x113   : > { %v6041_v13 = vpop.eup %6040  ;;  %4213 = vst.msk [vmem:[%s6908_s13 + $0x18] sm:$0xf] %vm4206_vm3, %v5127_v9  ;;  %v5125_v14 = vpack.c.bf16 %v6039_v11, %v6039_v11  ;;  %v2304_v20 = vadd.f32 %v5719_v16, %v6873_v58  ;;  %v1735_v21 = vpop.f32.mrb[13].mxu0  ;;  %6064 = vtanh.f32 %v2283_v10 }
 0x114   : > { %v6043_v17 = vpop.eup %6042  ;;  %4353 = vst.msk [vmem:[%s6908_s13 + $0x248] sm:$0xf] %vm4206_vm3, %v5267_v12  ;;  %v5265_v18 = vpack.c.bf16 %v6041_v13, %v6041_v13  ;;  %v2295_v22 = vpop.f32.mrb[13].mxu1  ;;  %v1736_v27 = vadd.f32 %v6873_v58, %v1735_v21  ;;  %6066 = vtanh.f32 %v1744_v19 }
 0x115   : > { %v6045_v25 = vpop.eup %6044  ;;  %4211 = vst.msk [vmem:[%s6908_s13 + $0x10] sm:$0xf] %vm4206_vm3, %v5125_v14  ;;  %v5128_v26 = vpack.c.bf16 %v6043_v17, %v6043_v17  ;;  %v2296_v28 = vadd.f32 %v6873_v58, %v2295_v22  ;;  %v5580_v29 = vpop.f32.mrb[14].mxu0  ;;  %6068 = vtanh.f32 %v2304_v20 }
 0x116   : > { %v5720_v30 = vpop.f32.mrb[14].mxu1  ;;  %v6047_v33 = vpop.eup %6046  ;;  %4351 = vst.msk [vmem:[%s6908_s13 + $0x240] sm:$0xf] %vm4206_vm3, %v5265_v18  ;;  %v5268_v34 = vpack.c.bf16 %v6045_v25, %v6045_v25  ;;  %v1747_v35 = vadd.f32 %v5580_v29, %v6873_v58  ;;  %6070 = vtanh.f32 %v1736_v27  ;;  %5686 = vmatmul.mubr.msk.bf16.gmra.mrb[120].mxu0 %vm1225_vm1, %v6000_v23  ;;  %5826 = vmatmul.mubr.msk.bf16.gmra.mrb[120].mxu1 %vm1225_vm1, %v6001_v24 }
 0x117   : > { %v1738_v36 = vpop.f32.mrb[15].mxu0  ;;  %v2298_v37 = vpop.f32.mrb[15].mxu1  ;;  %4214 = vst.msk [vmem:[%s6908_s13 + $0x1c] sm:$0xf] %vm4206_vm3, %v5128_v26  ;;  %v5126_v39 = vpack.c.bf16 %v6047_v33, %v6047_v33  ;;  %v2307_v40 = vadd.f32 %v5720_v30, %v6873_v58  ;;  %6072 = vtanh.f32 %v2296_v28  ;;  %5689 = vmatprep.mubr.msk.bf16.mxu0 %vm1225_vm1, %v6002_v31  ;;  %5829 = vmatprep.mubr.msk.bf16.mxu1 %vm1225_vm1, %v6003_v32  ;;  %v6008_v32 = vld [vmem:[%s6641_s28 + $0x208] sm:$0xff]   ;;  %v6009_v33 = vld [vmem:[%s6641_s28 + $0x438] sm:$0xff]  }
 0x118   : > { %v6049_v38 = vpop.eup %6048  ;;  %4354 = vst.msk [vmem:[%s6908_s13 + $0x24c] sm:$0xf] %vm4206_vm3, %v5268_v34  ;;  %v1739_v43 = vadd.f32 %v6873_v58, %v1738_v36  ;;  %v2299_v46 = vadd.f32 %v6873_v58, %v2298_v37  ;;  %6074 = vtanh.f32 %v1747_v35 }
 0x119   : > { %v6051_v41 = vpop.eup %6050  ;;  %v5266_v42 = vpack.c.bf16 %v6049_v38, %v6049_v38  ;;  %4212 = vst.msk [vmem:[%s6908_s13 + $0x14] sm:$0xf] %vm4206_vm3, %v5126_v39  ;;  %6076 = vtanh.f32 %v2307_v40  ;;  %v5583_v51 = vpop.f32.mrb[16].mxu0  ;;  %v6010_v40 = vld [vmem:[%s6641_s28 + $0x210] sm:$0xff]  }
 0x11a   : > { %v6053_v44 = vpop.eup %6052  ;;  %v5131_v45 = vpack.c.bf16 %v6051_v41, %v6051_v41  ;;  %v5723_v52 = vpop.f32.mrb[16].mxu1  ;;  %6078 = vtanh.f32 %v1739_v43  ;;  %v1760_v55 = vadd.f32 %v5583_v51, %v6873_v58  ;;  %v6011_v41 = vld [vmem:[%s6641_s28 + $0x440] sm:$0xff]  }
 0x11b   : > { %v6055_v47 = vpop.eup %6054  ;;  %4352 = vst.msk [vmem:[%s6908_s13 + $0x244] sm:$0xf] %vm4206_vm3, %v5266_v42  ;;  %v5271_v48 = vpack.c.bf16 %v6053_v44, %v6053_v44  ;;  %v2320_v56 = vadd.f32 %v5723_v52, %v6873_v58  ;;  %v1751_v57 = vpop.f32.mrb[17].mxu0  ;;  %6080 = vtanh.f32 %v2299_v46 }
 0x11c   : > { %v6057_v49 = vpop.eup %6056  ;;  %4217 = vst.msk [vmem:[%s6908_s13 + $0x28] sm:$0xf] %vm4206_vm3, %v5131_v45  ;;  %v5129_v50 = vpack.c.bf16 %v6055_v47, %v6055_v47  ;;  %v2311_v59 = vpop.f32.mrb[17].mxu1  ;;  %v1752_v0 = vadd.f32 %v6873_v58, %v1751_v57  ;;  %6082 = vtanh.f32 %v1760_v55 }
 0x11d   : > { %v6059_v53 = vpop.eup %6058  ;;  %4357 = vst.msk [vmem:[%s6908_s13 + $0x258] sm:$0xf] %vm4206_vm3, %v5271_v48  ;;  %v5269_v54 = vpack.c.bf16 %v6057_v49, %v6057_v49  ;;  %v2312_v1 = vadd.f32 %v6873_v58, %v2311_v59  ;;  %v5584_v2 = vpop.f32.mrb[18].mxu0  ;;  %6084 = vtanh.f32 %v2320_v56 }
 0x11e   : > { %v6061_v62 = vpop.eup %6060  ;;  %4215 = vst.msk [vmem:[%s6908_s13 + $0x20] sm:$0xf] %vm4206_vm3, %v5129_v50  ;;  %v5132_v63 = vpack.c.bf16 %v6059_v53, %v6059_v53  ;;  %v5724_v3 = vpop.f32.mrb[18].mxu1  ;;  %v1763_v8 = vadd.f32 %v5584_v2, %v6873_v58  ;;  %6086 = vtanh.f32 %v1752_v0  ;;  %5690 = vmatmul.mubr.msk.bf16.gmra.mrb[124].mxu0 %vm1225_vm1, %v6004_v60  ;;  %5830 = vmatmul.mubr.msk.bf16.gmra.mrb[124].mxu1 %vm1225_vm1, %v6005_v61 }
 0x11f   : > { %v6063_v6 = vpop.eup %6062  ;;  %4355 = vst.msk [vmem:[%s6908_s13 + $0x250] sm:$0xf] %vm4206_vm3, %v5269_v54  ;;  %v5272_v7 = vpack.c.bf16 %v6061_v62, %v6061_v62  ;;  %v1754_v9 = vpop.f32.mrb[19].mxu0  ;;  %v2323_v13 = vadd.f32 %v5724_v3, %v6873_v58  ;;  %6088 = vtanh.f32 %v2312_v1  ;;  %5693 = vmatprep.mubr.msk.bf16.mxu0 %vm1225_vm1, %v6006_v4  ;;  %5833 = vmatprep.mubr.msk.bf16.mxu1 %vm1225_vm1, %v6007_v5  ;;  %v6012_v5 = vld [vmem:[%s6641_s28 + $0x218] sm:$0xff]  }
 0x120   : > { %v2314_v10 = vpop.f32.mrb[19].mxu1  ;;  %v6065_v11 = vpop.eup %6064  ;;  %4218 = vst.msk [vmem:[%s6908_s13 + $0x2c] sm:$0xf] %vm4206_vm3, %v5132_v63  ;;  %v5130_v12 = vpack.c.bf16 %v6063_v6, %v6063_v6  ;;  %v1755_v16 = vadd.f32 %v6873_v58, %v1754_v9  ;;  %6090 = vtanh.f32 %v1763_v8  ;;  %v6013_v6 = vld [vmem:[%s6641_s28 + $0x448] sm:$0xff]  }
 0x121   : > { %v6067_v14 = vpop.eup %6066  ;;  %4358 = vst.msk [vmem:[%s6908_s13 + $0x25c] sm:$0xf] %vm4206_vm3, %v5272_v7  ;;  %v5270_v15 = vpack.c.bf16 %v6065_v11, %v6065_v11  ;;  %v2315_v19 = vadd.f32 %v6873_v58, %v2314_v10  ;;  %6092 = vtanh.f32 %v2323_v13  ;;  %v5587_v24 = vpop.f32.mrb[20].mxu0  ;;  %v6014_v13 = vld [vmem:[%s6641_s28 + $0x220] sm:$0xff]  }
 0x122   : > { %v6069_v17 = vpop.eup %6068  ;;  %4216 = vst.msk [vmem:[%s6908_s13 + $0x24] sm:$0xf] %vm4206_vm3, %v5130_v12  ;;  %v5135_v18 = vpack.c.bf16 %v6067_v14, %v6067_v14  ;;  %v5727_v25 = vpop.f32.mrb[20].mxu1  ;;  %6094 = vtanh.f32 %v1755_v16  ;;  %v1776_v28 = vadd.f32 %v5587_v24, %v6873_v58  ;;  %v6015_v14 = vld [vmem:[%s6641_s28 + $0x450] sm:$0xff]  }
 0x123   : > { %v6071_v20 = vpop.eup %6070  ;;  %4356 = vst.msk [vmem:[%s6908_s13 + $0x254] sm:$0xf] %vm4206_vm3, %v5270_v15  ;;  %v5275_v21 = vpack.c.bf16 %v6069_v17, %v6069_v17  ;;  %v2336_v29 = vadd.f32 %v5727_v25, %v6873_v58  ;;  %v1767_v30 = vpop.f32.mrb[21].mxu0  ;;  %6096 = vtanh.f32 %v2315_v19 }
 0x124   : > { %v6073_v22 = vpop.eup %6072  ;;  %4221 = vst.msk [vmem:[%s6908_s13 + $0x38] sm:$0xf] %vm4206_vm3, %v5135_v18  ;;  %v5133_v23 = vpack.c.bf16 %v6071_v20, %v6071_v20  ;;  %v2327_v31 = vpop.f32.mrb[21].mxu1  ;;  %v1768_v36 = vadd.f32 %v6873_v58, %v1767_v30  ;;  %6098 = vtanh.f32 %v1776_v28 }
 0x125   : > { %v6075_v26 = vpop.eup %6074  ;;  %4361 = vst.msk [vmem:[%s6908_s13 + $0x268] sm:$0xf] %vm4206_vm3, %v5275_v21  ;;  %v5273_v27 = vpack.c.bf16 %v6073_v22, %v6073_v22  ;;  %v2328_v37 = vadd.f32 %v6873_v58, %v2327_v31  ;;  %v5588_v38 = vpop.f32.mrb[22].mxu0  ;;  %6100 = vtanh.f32 %v2336_v29 }
 0x126   : > { %v6077_v34 = vpop.eup %6076  ;;  %4219 = vst.msk [vmem:[%s6908_s13 + $0x30] sm:$0xf] %vm4206_vm3, %v5133_v23  ;;  %v5136_v35 = vpack.c.bf16 %v6075_v26, %v6075_v26  ;;  %v5728_v39 = vpop.f32.mrb[22].mxu1  ;;  %v1779_v44 = vadd.f32 %v5588_v38, %v6873_v58  ;;  %6102 = vtanh.f32 %v1768_v36  ;;  %5694 = vmatmul.mubr.msk.bf16.gmra.mrb[128].mxu0 %vm1225_vm1, %v6008_v32  ;;  %5834 = vmatmul.mubr.msk.bf16.gmra.mrb[128].mxu1 %vm1225_vm1, %v6009_v33 }
 0x127   : > { %v6079_v42 = vpop.eup %6078  ;;  %4359 = vst.msk [vmem:[%s6908_s13 + $0x260] sm:$0xf] %vm4206_vm3, %v5273_v27  ;;  %v5276_v43 = vpack.c.bf16 %v6077_v34, %v6077_v34  ;;  %v1770_v45 = vpop.f32.mrb[23].mxu0  ;;  %v2339_v49 = vadd.f32 %v5728_v39, %v6873_v58  ;;  %6104 = vtanh.f32 %v2328_v37  ;;  %5697 = vmatprep.mubr.msk.bf16.mxu0 %vm1225_vm1, %v6010_v40  ;;  %5837 = vmatprep.mubr.msk.bf16.mxu1 %vm1225_vm1, %v6011_v41  ;;  %v6016_v41 = vld [vmem:[%s6641_s28 + $0x228] sm:$0xff]  }
 0x128   : > { %v2330_v46 = vpop.f32.mrb[23].mxu1  ;;  %v6081_v47 = vpop.eup %6080  ;;  %4222 = vst.msk [vmem:[%s6908_s13 + $0x3c] sm:$0xf] %vm4206_vm3, %v5136_v35  ;;  %v5134_v48 = vpack.c.bf16 %v6079_v42, %v6079_v42  ;;  %v1771_v52 = vadd.f32 %v6873_v58, %v1770_v45  ;;  %6106 = vtanh.f32 %v1779_v44  ;;  %v6017_v42 = vld [vmem:[%s6641_s28 + $0x458] sm:$0xff]  }
 0x129   : > { %v6083_v50 = vpop.eup %6082  ;;  %4362 = vst.msk [vmem:[%s6908_s13 + $0x26c] sm:$0xf] %vm4206_vm3, %v5276_v43  ;;  %v5274_v51 = vpack.c.bf16 %v6081_v47, %v6081_v47  ;;  %v2331_v55 = vadd.f32 %v6873_v58, %v2330_v46  ;;  %6108 = vtanh.f32 %v2339_v49  ;;  %v5591_v61 = vpop.f32.mrb[24].mxu0 }
 0x12a   : > { %v6085_v53 = vpop.eup %6084  ;;  %4220 = vst.msk [vmem:[%s6908_s13 + $0x34] sm:$0xf] %vm4206_vm3, %v5134_v48  ;;  %v5139_v54 = vpack.c.bf16 %v6083_v50, %v6083_v50  ;;  %v5731_v62 = vpop.f32.mrb[24].mxu1  ;;  %6110 = vtanh.f32 %v1771_v52  ;;  %v1792_v1 = vadd.f32 %v5591_v61, %v6873_v58 }
 0x12b   : > { %v6087_v56 = vpop.eup %6086  ;;  %4360 = vst.msk [vmem:[%s6908_s13 + $0x264] sm:$0xf] %vm4206_vm3, %v5274_v51  ;;  %v5279_v57 = vpack.c.bf16 %v6085_v53, %v6085_v53  ;;  %v2352_v2 = vadd.f32 %v5731_v62, %v6873_v58  ;;  %v1783_v3 = vpop.f32.mrb[25].mxu0  ;;  %6112 = vtanh.f32 %v2331_v55 }
 0x12c   : > { %v6089_v59 = vpop.eup %6088  ;;  %4225 = vst.msk [vmem:[%s6908_s13 + $0x48] sm:$0xf] %vm4206_vm3, %v5139_v54  ;;  %v5137_v60 = vpack.c.bf16 %v6087_v56, %v6087_v56  ;;  %v2343_v4 = vpop.f32.mrb[25].mxu1  ;;  %v1784_v9 = vadd.f32 %v6873_v58, %v1783_v3  ;;  %6114 = vtanh.f32 %v1792_v1 }
 0x12d   : > { %v6091_v63 = vpop.eup %6090  ;;  %4365 = vst.msk [vmem:[%s6908_s13 + $0x278] sm:$0xf] %vm4206_vm3, %v5279_v57  ;;  %v5277_v0 = vpack.c.bf16 %v6089_v59, %v6089_v59  ;;  %v2344_v10 = vadd.f32 %v6873_v58, %v2343_v4  ;;  %v5592_v11 = vpop.f32.mrb[26].mxu0  ;;  %6116 = vtanh.f32 %v2352_v2 }
 0x12e   : > { %v6093_v7 = vpop.eup %6092  ;;  %4223 = vst.msk [vmem:[%s6908_s13 + $0x40] sm:$0xf] %vm4206_vm3, %v5137_v60  ;;  %v5140_v8 = vpack.c.bf16 %v6091_v63, %v6091_v63  ;;  %v5732_v12 = vpop.f32.mrb[26].mxu1  ;;  %v1795_v17 = vadd.f32 %v5592_v11, %v6873_v58  ;;  %6118 = vtanh.f32 %v1784_v9  ;;  %5698 = vmatmul.mubr.msk.bf16.gmra.mrb[132].mxu0 %vm1225_vm1, %v6012_v5  ;;  %5838 = vmatmul.mubr.msk.bf16.gmra.mrb[132].mxu1 %vm1225_vm1, %v6013_v6 }
 0x12f   : > { %v6095_v15 = vpop.eup %6094  ;;  %4363 = vst.msk [vmem:[%s6908_s13 + $0x270] sm:$0xf] %vm4206_vm3, %v5277_v0  ;;  %v5280_v16 = vpack.c.bf16 %v6093_v7, %v6093_v7  ;;  %v1786_v18 = vpop.f32.mrb[27].mxu0  ;;  %v2355_v22 = vadd.f32 %v5732_v12, %v6873_v58  ;;  %6120 = vtanh.f32 %v2344_v10  ;;  %5701 = vmatprep.mubr.msk.bf16.mxu0 %vm1225_vm1, %v6014_v13  ;;  %5841 = vmatprep.mubr.msk.bf16.mxu1 %vm1225_vm1, %v6015_v14 }
 0x130   : > { %v2346_v19 = vpop.f32.mrb[27].mxu1  ;;  %v6097_v20 = vpop.eup %6096  ;;  %4226 = vst.msk [vmem:[%s6908_s13 + $0x4c] sm:$0xf] %vm4206_vm3, %v5140_v8  ;;  %v5138_v21 = vpack.c.bf16 %v6095_v15, %v6095_v15  ;;  %v1787_v25 = vadd.f32 %v6873_v58, %v1786_v18  ;;  %6122 = vtanh.f32 %v1795_v17 }
 0x131   : > { %v6099_v23 = vpop.eup %6098  ;;  %4366 = vst.msk [vmem:[%s6908_s13 + $0x27c] sm:$0xf] %vm4206_vm3, %v5280_v16  ;;  %v5278_v24 = vpack.c.bf16 %v6097_v20, %v6097_v20  ;;  %v2347_v28 = vadd.f32 %v6873_v58, %v2346_v19  ;;  %6124 = vtanh.f32 %v2355_v22  ;;  %v5595_v33 = vpop.f32.mrb[28].mxu0 }
 0x132   : > { %v6101_v26 = vpop.eup %6100  ;;  %4224 = vst.msk [vmem:[%s6908_s13 + $0x44] sm:$0xf] %vm4206_vm3, %v5138_v21  ;;  %v5143_v27 = vpack.c.bf16 %v6099_v23, %v6099_v23  ;;  %v5735_v34 = vpop.f32.mrb[28].mxu1  ;;  %6126 = vtanh.f32 %v1787_v25  ;;  %v1808_v37 = vadd.f32 %v5595_v33, %v6873_v58 }
 0x133   : > { %v6103_v29 = vpop.eup %6102  ;;  %4364 = vst.msk [vmem:[%s6908_s13 + $0x274] sm:$0xf] %vm4206_vm3, %v5278_v24  ;;  %v5283_v30 = vpack.c.bf16 %v6101_v26, %v6101_v26  ;;  %v2368_v38 = vadd.f32 %v5735_v34, %v6873_v58  ;;  %v1799_v39 = vpop.f32.mrb[29].mxu0  ;;  %6128 = vtanh.f32 %v2347_v28 }
 0x134   : > { %v6105_v31 = vpop.eup %6104  ;;  %4229 = vst.msk [vmem:[%s6908_s13 + $0x58] sm:$0xf] %vm4206_vm3, %v5143_v27  ;;  %v5141_v32 = vpack.c.bf16 %v6103_v29, %v6103_v29  ;;  %v2359_v40 = vpop.f32.mrb[29].mxu1  ;;  %v1800_v45 = vadd.f32 %v6873_v58, %v1799_v39  ;;  %6130 = vtanh.f32 %v1808_v37 }
 0x135   : > { %v6107_v35 = vpop.eup %6106  ;;  %4369 = vst.msk [vmem:[%s6908_s13 + $0x288] sm:$0xf] %vm4206_vm3, %v5283_v30  ;;  %v5281_v36 = vpack.c.bf16 %v6105_v31, %v6105_v31  ;;  %v2360_v46 = vadd.f32 %v6873_v58, %v2359_v40  ;;  %v5596_v47 = vpop.f32.mrb[30].mxu0  ;;  %6132 = vtanh.f32 %v2368_v38 }
 0x136   : > { %v6109_v43 = vpop.eup %6108  ;;  %4227 = vst.msk [vmem:[%s6908_s13 + $0x50] sm:$0xf] %vm4206_vm3, %v5141_v32  ;;  %v5144_v44 = vpack.c.bf16 %v6107_v35, %v6107_v35  ;;  %v5736_v48 = vpop.f32.mrb[30].mxu1  ;;  %v1811_v51 = vadd.f32 %v5596_v47, %v6873_v58  ;;  %6134 = vtanh.f32 %v1800_v45  ;;  %5702 = vmatmul.mubr.msk.bf16.gmra.mrb[136].mxu0 %vm1225_vm1, %v6016_v41  ;;  %5842 = vmatmul.mubr.msk.bf16.gmra.mrb[136].mxu1 %vm1225_vm1, %v6017_v42 }
 0x137   : > { %v6111_v49 = vpop.eup %6110  ;;  %4367 = vst.msk [vmem:[%s6908_s13 + $0x280] sm:$0xf] %vm4206_vm3, %v5281_v36  ;;  %v5284_v50 = vpack.c.bf16 %v6109_v43, %v6109_v43  ;;  %v1802_v52 = vpop.f32.mrb[31].mxu0  ;;  %v2371_v56 = vadd.f32 %v5736_v48, %v6873_v58  ;;  %6136 = vtanh.f32 %v2360_v46 }
 0x138   : > { %v2362_v53 = vpop.f32.mrb[31].mxu1  ;;  %v6113_v54 = vpop.eup %6112  ;;  %4230 = vst.msk [vmem:[%s6908_s13 + $0x5c] sm:$0xf] %vm4206_vm3, %v5144_v44  ;;  %v5142_v55 = vpack.c.bf16 %v6111_v49, %v6111_v49  ;;  %v1803_v60 = vadd.f32 %v6873_v58, %v1802_v52  ;;  %6138 = vtanh.f32 %v1811_v51 }
 0x139   : > { %v6115_v57 = vpop.eup %6114  ;;  %4370 = vst.msk [vmem:[%s6908_s13 + $0x28c] sm:$0xf] %vm4206_vm3, %v5284_v50  ;;  %v5282_v59 = vpack.c.bf16 %v6113_v54, %v6113_v54  ;;  %v2363_v63 = vadd.f32 %v6873_v58, %v2362_v53  ;;  %6140 = vtanh.f32 %v2371_v56  ;;  %v5599_v4 = vpop.f32.mrb[32].mxu0 }
 0x13a   : > { %v6117_v61 = vpop.eup %6116  ;;  %4228 = vst.msk [vmem:[%s6908_s13 + $0x54] sm:$0xf] %vm4206_vm3, %v5142_v55  ;;  %v5147_v62 = vpack.c.bf16 %v6115_v57, %v6115_v57  ;;  %v5739_v5 = vpop.f32.mrb[32].mxu1  ;;  %6142 = vtanh.f32 %v1803_v60  ;;  %v1824_v8 = vadd.f32 %v5599_v4, %v6873_v58 }
 0x13b   : > { %v6119_v0 = vpop.eup %6118  ;;  %4368 = vst.msk [vmem:[%s6908_s13 + $0x284] sm:$0xf] %vm4206_vm3, %v5282_v59  ;;  %v5287_v1 = vpack.c.bf16 %v6117_v61, %v6117_v61  ;;  %v2384_v9 = vadd.f32 %v5739_v5, %v6873_v58  ;;  %v1815_v10 = vpop.f32.mrb[33].mxu0  ;;  %6144 = vtanh.f32 %v2363_v63 }
 0x13c   : > { %v6121_v2 = vpop.eup %6120  ;;  %4233 = vst.msk [vmem:[%s6908_s13 + $0x68] sm:$0xf] %vm4206_vm3, %v5147_v62  ;;  %v5145_v3 = vpack.c.bf16 %v6119_v0, %v6119_v0  ;;  %v2375_v11 = vpop.f32.mrb[33].mxu1  ;;  %v1816_v14 = vadd.f32 %v6873_v58, %v1815_v10  ;;  %6146 = vtanh.f32 %v1824_v8 }
 0x13d   : > { %v6123_v6 = vpop.eup %6122  ;;  %4373 = vst.msk [vmem:[%s6908_s13 + $0x298] sm:$0xf] %vm4206_vm3, %v5287_v1  ;;  %v5285_v7 = vpack.c.bf16 %v6121_v2, %v6121_v2  ;;  %v2376_v15 = vadd.f32 %v6873_v58, %v2375_v11  ;;  %v5600_v16 = vpop.f32.mrb[34].mxu0  ;;  %6148 = vtanh.f32 %v2384_v9 }
 0x13e   : > { %v6125_v12 = vpop.eup %6124  ;;  %4231 = vst.msk [vmem:[%s6908_s13 + $0x60] sm:$0xf] %vm4206_vm3, %v5145_v3  ;;  %v5148_v13 = vpack.c.bf16 %v6123_v6, %v6123_v6  ;;  %v5740_v17 = vpop.f32.mrb[34].mxu1  ;;  %v1827_v20 = vadd.f32 %v5600_v16, %v6873_v58  ;;  %6150 = vtanh.f32 %v1816_v14 }
 0x13f   : > { %v6127_v18 = vpop.eup %6126  ;;  %4371 = vst.msk [vmem:[%s6908_s13 + $0x290] sm:$0xf] %vm4206_vm3, %v5285_v7  ;;  %v5288_v19 = vpack.c.bf16 %v6125_v12, %v6125_v12  ;;  %v1818_v21 = vpop.f32.mrb[35].mxu0  ;;  %v2387_v25 = vadd.f32 %v5740_v17, %v6873_v58  ;;  %6152 = vtanh.f32 %v2376_v15  ;;  %v7163_v15 = vld [vmem:[%s7804_s2] ss:$0 sm:$0xff] }
 0x140   : > { %v2378_v22 = vpop.f32.mrb[35].mxu1  ;;  %v6129_v23 = vpop.eup %6128  ;;  %4234 = vst.msk [vmem:[%s6908_s13 + $0x6c] sm:$0xf] %vm4206_vm3, %v5148_v13  ;;  %v5146_v24 = vpack.c.bf16 %v6127_v18, %v6127_v18  ;;  %v1819_v28 = vadd.f32 %v6873_v58, %v1818_v21  ;;  %6154 = vtanh.f32 %v1827_v20 }
 0x141   : > { %v6131_v26 = vpop.eup %6130  ;;  %4374 = vst.msk [vmem:[%s6908_s13 + $0x29c] sm:$0xf] %vm4206_vm3, %v5288_v19  ;;  %v5286_v27 = vpack.c.bf16 %v6129_v23, %v6129_v23  ;;  %v2379_v31 = vadd.f32 %v6873_v58, %v2378_v22  ;;  %6156 = vtanh.f32 %v2387_v25  ;;  %v5603_v36 = vpop.f32.mrb[36].mxu0 }
 0x142   : > { %v6133_v29 = vpop.eup %6132  ;;  %4232 = vst.msk [vmem:[%s6908_s13 + $0x64] sm:$0xf] %vm4206_vm3, %v5146_v24  ;;  %v5151_v30 = vpack.c.bf16 %v6131_v26, %v6131_v26  ;;  %v5743_v37 = vpop.f32.mrb[36].mxu1  ;;  %6158 = vtanh.f32 %v1819_v28  ;;  %v1840_v40 = vadd.f32 %v5603_v36, %v6873_v58 }
 0x143   : > { %v6135_v32 = vpop.eup %6134  ;;  %4372 = vst.msk [vmem:[%s6908_s13 + $0x294] sm:$0xf] %vm4206_vm3, %v5286_v27  ;;  %v5291_v33 = vpack.c.bf16 %v6133_v29, %v6133_v29  ;;  %v2400_v41 = vadd.f32 %v5743_v37, %v6873_v58  ;;  %v1831_v42 = vpop.f32.mrb[37].mxu0  ;;  %6160 = vtanh.f32 %v2379_v31 }
 0x144   : > { %v6137_v34 = vpop.eup %6136  ;;  %4237 = vst.msk [vmem:[%s6908_s13 + $0x78] sm:$0xf] %vm4206_vm3, %v5151_v30  ;;  %v5149_v35 = vpack.c.bf16 %v6135_v32, %v6135_v32  ;;  %v2391_v43 = vpop.f32.mrb[37].mxu1  ;;  %v1832_v46 = vadd.f32 %v6873_v58, %v1831_v42  ;;  %6162 = vtanh.f32 %v1840_v40 }
 0x145   : > { %v6139_v38 = vpop.eup %6138  ;;  %4377 = vst.msk [vmem:[%s6908_s13 + $0x2a8] sm:$0xf] %vm4206_vm3, %v5291_v33  ;;  %v5289_v39 = vpack.c.bf16 %v6137_v34, %v6137_v34  ;;  %v2392_v47 = vadd.f32 %v6873_v58, %v2391_v43  ;;  %v5604_v48 = vpop.f32.mrb[38].mxu0  ;;  %6164 = vtanh.f32 %v2400_v41 }
 0x146   : > { %v6141_v44 = vpop.eup %6140  ;;  %4235 = vst.msk [vmem:[%s6908_s13 + $0x70] sm:$0xf] %vm4206_vm3, %v5149_v35  ;;  %v5152_v45 = vpack.c.bf16 %v6139_v38, %v6139_v38  ;;  %v5744_v49 = vpop.f32.mrb[38].mxu1  ;;  %v1843_v52 = vadd.f32 %v5604_v48, %v6873_v58  ;;  %6166 = vtanh.f32 %v1832_v46 }
 0x147   : > { %v6143_v50 = vpop.eup %6142  ;;  %4375 = vst.msk [vmem:[%s6908_s13 + $0x2a0] sm:$0xf] %vm4206_vm3, %v5289_v39  ;;  %v5292_v51 = vpack.c.bf16 %v6141_v44, %v6141_v44  ;;  %v1834_v53 = vpop.f32.mrb[39].mxu0  ;;  %v2403_v57 = vadd.f32 %v5744_v49, %v6873_v58  ;;  %6168 = vtanh.f32 %v2392_v47 }
 0x148   : > { %v2394_v54 = vpop.f32.mrb[39].mxu1  ;;  %v6145_v55 = vpop.eup %6144  ;;  %4238 = vst.msk [vmem:[%s6908_s13 + $0x7c] sm:$0xf] %vm4206_vm3, %v5152_v45  ;;  %v5150_v56 = vpack.c.bf16 %v6143_v50, %v6143_v50  ;;  %v1835_v61 = vadd.f32 %v6873_v58, %v1834_v53  ;;  %6170 = vtanh.f32 %v1843_v52 }
 0x149   : > { %v6147_v59 = vpop.eup %6146  ;;  %4378 = vst.msk [vmem:[%s6908_s13 + $0x2ac] sm:$0xf] %vm4206_vm3, %v5292_v51  ;;  %v5290_v60 = vpack.c.bf16 %v6145_v55, %v6145_v55  ;;  %v2395_v0 = vadd.f32 %v6873_v58, %v2394_v54  ;;  %6172 = vtanh.f32 %v2403_v57  ;;  %v5607_v5 = vpop.f32.mrb[40].mxu0 }
 0x14a   : > { %v6149_v62 = vpop.eup %6148  ;;  %4236 = vst.msk [vmem:[%s6908_s13 + $0x74] sm:$0xf] %vm4206_vm3, %v5150_v56  ;;  %v5155_v63 = vpack.c.bf16 %v6147_v59, %v6147_v59  ;;  %v5747_v6 = vpop.f32.mrb[40].mxu1  ;;  %6174 = vtanh.f32 %v1835_v61  ;;  %v1856_v9 = vadd.f32 %v5607_v5, %v6873_v58 }
 0x14b   : > { %v6151_v1 = vpop.eup %6150  ;;  %4376 = vst.msk [vmem:[%s6908_s13 + $0x2a4] sm:$0xf] %vm4206_vm3, %v5290_v60  ;;  %v5295_v2 = vpack.c.bf16 %v6149_v62, %v6149_v62  ;;  %v2416_v10 = vadd.f32 %v5747_v6, %v6873_v58  ;;  %v1847_v11 = vpop.f32.mrb[41].mxu0  ;;  %6176 = vtanh.f32 %v2395_v0 }
 0x14c   : > { %v6153_v3 = vpop.eup %6152  ;;  %4241 = vst.msk [vmem:[%s6908_s13 + $0x88] sm:$0xf] %vm4206_vm3, %v5155_v63  ;;  %v5153_v4 = vpack.c.bf16 %v6151_v1, %v6151_v1  ;;  %v2407_v12 = vpop.f32.mrb[41].mxu1  ;;  %v1848_v16 = vadd.f32 %v7163_v15, %v1847_v11  ;;  %6178 = vtanh.f32 %v1856_v9 }
 0x14d   : > { %v6155_v7 = vpop.eup %6154  ;;  %4381 = vst.msk [vmem:[%s6908_s13 + $0x2b8] sm:$0xf] %vm4206_vm3, %v5295_v2  ;;  %v5293_v8 = vpack.c.bf16 %v6153_v3, %v6153_v3  ;;  %v2408_v17 = vadd.f32 %v7163_v15, %v2407_v12  ;;  %v5608_v18 = vpop.f32.mrb[42].mxu0  ;;  %6180 = vtanh.f32 %v2416_v10 }
 0x14e   : > { %v6157_v13 = vpop.eup %6156  ;;  %4239 = vst.msk [vmem:[%s6908_s13 + $0x80] sm:$0xf] %vm4206_vm3, %v5153_v4  ;;  %v5156_v14 = vpack.c.bf16 %v6155_v7, %v6155_v7  ;;  %v5748_v58 = vpop.f32.mrb[42].mxu1  ;;  %v1859_v21 = vadd.f32 %v7163_v15, %v5608_v18  ;;  %6182 = vtanh.f32 %v1848_v16 }
 0x14f   : > { %v6159_v19 = vpop.eup %6158  ;;  %4379 = vst.msk [vmem:[%s6908_s13 + $0x2b0] sm:$0xf] %vm4206_vm3, %v5293_v8  ;;  %v5296_v20 = vpack.c.bf16 %v6157_v13, %v6157_v13  ;;  %v1850_v22 = vpop.f32.mrb[43].mxu0  ;;  %v2419_v26 = vadd.f32 %v7163_v15, %v5748_v58  ;;  %6184 = vtanh.f32 %v2408_v17 }
 0x150   : > { %v2410_v23 = vpop.f32.mrb[43].mxu1  ;;  %v6161_v24 = vpop.eup %6160  ;;  %4242 = vst.msk [vmem:[%s6908_s13 + $0x8c] sm:$0xf] %vm4206_vm3, %v5156_v14  ;;  %v5154_v25 = vpack.c.bf16 %v6159_v19, %v6159_v19  ;;  %v1851_v29 = vadd.f32 %v7163_v15, %v1850_v22  ;;  %6186 = vtanh.f32 %v1859_v21 }
 0x151   : > { %v6163_v27 = vpop.eup %6162  ;;  %4382 = vst.msk [vmem:[%s6908_s13 + $0x2bc] sm:$0xf] %vm4206_vm3, %v5296_v20  ;;  %v5294_v28 = vpack.c.bf16 %v6161_v24, %v6161_v24  ;;  %v2411_v32 = vadd.f32 %v7163_v15, %v2410_v23  ;;  %6188 = vtanh.f32 %v2419_v26  ;;  %v5611_v37 = vpop.f32.mrb[44].mxu0 }
 0x152   : > { %v6165_v30 = vpop.eup %6164  ;;  %4240 = vst.msk [vmem:[%s6908_s13 + $0x84] sm:$0xf] %vm4206_vm3, %v5154_v25  ;;  %v5159_v31 = vpack.c.bf16 %v6163_v27, %v6163_v27  ;;  %v5751_v38 = vpop.f32.mrb[44].mxu1  ;;  %6190 = vtanh.f32 %v1851_v29  ;;  %v1872_v41 = vadd.f32 %v7163_v15, %v5611_v37 }
 0x153   : > { %v6167_v33 = vpop.eup %6166  ;;  %4380 = vst.msk [vmem:[%s6908_s13 + $0x2b4] sm:$0xf] %vm4206_vm3, %v5294_v28  ;;  %v5299_v34 = vpack.c.bf16 %v6165_v30, %v6165_v30  ;;  %v2432_v42 = vadd.f32 %v7163_v15, %v5751_v38  ;;  %v1863_v43 = vpop.f32.mrb[45].mxu0  ;;  %6192 = vtanh.f32 %v2411_v32 }
 0x154   : > { %v6169_v35 = vpop.eup %6168  ;;  %4245 = vst.msk [vmem:[%s6908_s13 + $0x98] sm:$0xf] %vm4206_vm3, %v5159_v31  ;;  %v5157_v36 = vpack.c.bf16 %v6167_v33, %v6167_v33  ;;  %v2423_v44 = vpop.f32.mrb[45].mxu1  ;;  %v1864_v47 = vadd.f32 %v7163_v15, %v1863_v43  ;;  %6194 = vtanh.f32 %v1872_v41 }
 0x155   : > { %v6171_v39 = vpop.eup %6170  ;;  %4385 = vst.msk [vmem:[%s6908_s13 + $0x2c8] sm:$0xf] %vm4206_vm3, %v5299_v34  ;;  %v5297_v40 = vpack.c.bf16 %v6169_v35, %v6169_v35  ;;  %v2424_v48 = vadd.f32 %v7163_v15, %v2423_v44  ;;  %v5612_v49 = vpop.f32.mrb[46].mxu0  ;;  %6196 = vtanh.f32 %v2432_v42 }
 0x156   : > { %v6173_v45 = vpop.eup %6172  ;;  %4243 = vst.msk [vmem:[%s6908_s13 + $0x90] sm:$0xf] %vm4206_vm3, %v5157_v36  ;;  %v5160_v46 = vpack.c.bf16 %v6171_v39, %v6171_v39  ;;  %v5752_v50 = vpop.f32.mrb[46].mxu1  ;;  %v1875_v53 = vadd.f32 %v7163_v15, %v5612_v49  ;;  %6198 = vtanh.f32 %v1864_v47 }
 0x157   : > { %v6175_v51 = vpop.eup %6174  ;;  %4383 = vst.msk [vmem:[%s6908_s13 + $0x2c0] sm:$0xf] %vm4206_vm3, %v5297_v40  ;;  %v5300_v52 = vpack.c.bf16 %v6173_v45, %v6173_v45  ;;  %v1866_v54 = vpop.f32.mrb[47].mxu0  ;;  %v2435_v59 = vadd.f32 %v7163_v15, %v5752_v50  ;;  %6200 = vtanh.f32 %v2424_v48 }
 0x158   : > { %v2426_v55 = vpop.f32.mrb[47].mxu1  ;;  %v6177_v56 = vpop.eup %6176  ;;  %4246 = vst.msk [vmem:[%s6908_s13 + $0x9c] sm:$0xf] %vm4206_vm3, %v5160_v46  ;;  %v5158_v57 = vpack.c.bf16 %v6175_v51, %v6175_v51  ;;  %v1867_v62 = vadd.f32 %v7163_v15, %v1866_v54  ;;  %6202 = vtanh.f32 %v1875_v53 }
 0x159   : > { %v6179_v60 = vpop.eup %6178  ;;  %4386 = vst.msk [vmem:[%s6908_s13 + $0x2cc] sm:$0xf] %vm4206_vm3, %v5300_v52  ;;  %v5298_v61 = vpack.c.bf16 %v6177_v56, %v6177_v56  ;;  %v2427_v1 = vadd.f32 %v7163_v15, %v2426_v55  ;;  %6204 = vtanh.f32 %v2435_v59  ;;  %v5615_v6 = vpop.f32.mrb[48].mxu0 }
 0x15a   : > { %v6181_v63 = vpop.eup %6180  ;;  %4244 = vst.msk [vmem:[%s6908_s13 + $0x94] sm:$0xf] %vm4206_vm3, %v5158_v57  ;;  %v5163_v0 = vpack.c.bf16 %v6179_v60, %v6179_v60  ;;  %v5755_v7 = vpop.f32.mrb[48].mxu1  ;;  %6206 = vtanh.f32 %v1867_v62  ;;  %v1888_v10 = vadd.f32 %v7163_v15, %v5615_v6 }
 0x15b   : > { %v6183_v2 = vpop.eup %6182  ;;  %4384 = vst.msk [vmem:[%s6908_s13 + $0x2c4] sm:$0xf] %vm4206_vm3, %v5298_v61  ;;  %v5303_v3 = vpack.c.bf16 %v6181_v63, %v6181_v63  ;;  %v2448_v11 = vadd.f32 %v7163_v15, %v5755_v7  ;;  %v1879_v12 = vpop.f32.mrb[49].mxu0  ;;  %6208 = vtanh.f32 %v2427_v1 }
 0x15c   : > { %v6185_v4 = vpop.eup %6184  ;;  %4249 = vst.msk [vmem:[%s6908_s13 + $0xa8] sm:$0xf] %vm4206_vm3, %v5163_v0  ;;  %v5161_v5 = vpack.c.bf16 %v6183_v2, %v6183_v2  ;;  %v2439_v13 = vpop.f32.mrb[49].mxu1  ;;  %v1880_v17 = vadd.f32 %v7163_v15, %v1879_v12  ;;  %6210 = vtanh.f32 %v1888_v10 }
 0x15d   : > { %v6187_v8 = vpop.eup %6186  ;;  %4389 = vst.msk [vmem:[%s6908_s13 + $0x2d8] sm:$0xf] %vm4206_vm3, %v5303_v3  ;;  %v5301_v9 = vpack.c.bf16 %v6185_v4, %v6185_v4  ;;  %v2440_v18 = vadd.f32 %v7163_v15, %v2439_v13  ;;  %v5616_v58 = vpop.f32.mrb[50].mxu0  ;;  %6212 = vtanh.f32 %v2448_v11 }
 0x15e   : > { %v6189_v14 = vpop.eup %6188  ;;  %4247 = vst.msk [vmem:[%s6908_s13 + $0xa0] sm:$0xf] %vm4206_vm3, %v5161_v5  ;;  %v5164_v16 = vpack.c.bf16 %v6187_v8, %v6187_v8  ;;  %v5756_v19 = vpop.f32.mrb[50].mxu1  ;;  %v1891_v22 = vadd.f32 %v7163_v15, %v5616_v58  ;;  %6214 = vtanh.f32 %v1880_v17 }
 0x15f   : > { %v6191_v20 = vpop.eup %6190  ;;  %4387 = vst.msk [vmem:[%s6908_s13 + $0x2d0] sm:$0xf] %vm4206_vm3, %v5301_v9  ;;  %v5304_v21 = vpack.c.bf16 %v6189_v14, %v6189_v14  ;;  %v1882_v23 = vpop.f32.mrb[51].mxu0  ;;  %v2451_v27 = vadd.f32 %v7163_v15, %v5756_v19  ;;  %6216 = vtanh.f32 %v2440_v18 }
 0x160   : > { %v2442_v24 = vpop.f32.mrb[51].mxu1  ;;  %v6193_v25 = vpop.eup %6192  ;;  %4250 = vst.msk [vmem:[%s6908_s13 + $0xac] sm:$0xf] %vm4206_vm3, %v5164_v16  ;;  %v5162_v26 = vpack.c.bf16 %v6191_v20, %v6191_v20  ;;  %v1883_v30 = vadd.f32 %v7163_v15, %v1882_v23  ;;  %6218 = vtanh.f32 %v1891_v22 }
 0x161   : > { %v6195_v28 = vpop.eup %6194  ;;  %4390 = vst.msk [vmem:[%s6908_s13 + $0x2dc] sm:$0xf] %vm4206_vm3, %v5304_v21  ;;  %v5302_v29 = vpack.c.bf16 %v6193_v25, %v6193_v25  ;;  %v2443_v33 = vadd.f32 %v7163_v15, %v2442_v24  ;;  %6220 = vtanh.f32 %v2451_v27  ;;  %v5619_v38 = vpop.f32.mrb[52].mxu0 }
 0x162   : > { %v6197_v31 = vpop.eup %6196  ;;  %4248 = vst.msk [vmem:[%s6908_s13 + $0xa4] sm:$0xf] %vm4206_vm3, %v5162_v26  ;;  %v5167_v32 = vpack.c.bf16 %v6195_v28, %v6195_v28  ;;  %v5759_v39 = vpop.f32.mrb[52].mxu1  ;;  %6222 = vtanh.f32 %v1883_v30  ;;  %v1904_v42 = vadd.f32 %v7163_v15, %v5619_v38 }
 0x163   : > { %v6199_v34 = vpop.eup %6198  ;;  %4388 = vst.msk [vmem:[%s6908_s13 + $0x2d4] sm:$0xf] %vm4206_vm3, %v5302_v29  ;;  %v5307_v35 = vpack.c.bf16 %v6197_v31, %v6197_v31  ;;  %v2464_v43 = vadd.f32 %v7163_v15, %v5759_v39  ;;  %v1895_v44 = vpop.f32.mrb[53].mxu0  ;;  %6224 = vtanh.f32 %v2443_v33 }
 0x164   : > { %v6201_v36 = vpop.eup %6200  ;;  %4253 = vst.msk [vmem:[%s6908_s13 + $0xb8] sm:$0xf] %vm4206_vm3, %v5167_v32  ;;  %v5165_v37 = vpack.c.bf16 %v6199_v34, %v6199_v34  ;;  %v2455_v45 = vpop.f32.mrb[53].mxu1  ;;  %v1896_v48 = vadd.f32 %v7163_v15, %v1895_v44  ;;  %6226 = vtanh.f32 %v1904_v42 }
 0x165   : > { %v6203_v40 = vpop.eup %6202  ;;  %4393 = vst.msk [vmem:[%s6908_s13 + $0x2e8] sm:$0xf] %vm4206_vm3, %v5307_v35  ;;  %v5305_v41 = vpack.c.bf16 %v6201_v36, %v6201_v36  ;;  %v2456_v49 = vadd.f32 %v7163_v15, %v2455_v45  ;;  %v5620_v50 = vpop.f32.mrb[54].mxu0  ;;  %6228 = vtanh.f32 %v2464_v43 }
 0x166   : > { %v6205_v46 = vpop.eup %6204  ;;  %4251 = vst.msk [vmem:[%s6908_s13 + $0xb0] sm:$0xf] %vm4206_vm3, %v5165_v37  ;;  %v5168_v47 = vpack.c.bf16 %v6203_v40, %v6203_v40  ;;  %v5760_v51 = vpop.f32.mrb[54].mxu1  ;;  %v1907_v54 = vadd.f32 %v7163_v15, %v5620_v50  ;;  %6230 = vtanh.f32 %v1896_v48 }
 0x167   : > { %v6207_v52 = vpop.eup %6206  ;;  %4391 = vst.msk [vmem:[%s6908_s13 + $0x2e0] sm:$0xf] %vm4206_vm3, %v5305_v41  ;;  %v5308_v53 = vpack.c.bf16 %v6205_v46, %v6205_v46  ;;  %v1898_v55 = vpop.f32.mrb[55].mxu0  ;;  %v2467_v60 = vadd.f32 %v7163_v15, %v5760_v51  ;;  %6232 = vtanh.f32 %v2456_v49 }
 0x168   : > { %v2458_v56 = vpop.f32.mrb[55].mxu1  ;;  %v6209_v57 = vpop.eup %6208  ;;  %4254 = vst.msk [vmem:[%s6908_s13 + $0xbc] sm:$0xf] %vm4206_vm3, %v5168_v47  ;;  %v5166_v59 = vpack.c.bf16 %v6207_v52, %v6207_v52  ;;  %v1899_v63 = vadd.f32 %v7163_v15, %v1898_v55  ;;  %6234 = vtanh.f32 %v1907_v54 }
 0x169   : > { %v6211_v61 = vpop.eup %6210  ;;  %4394 = vst.msk [vmem:[%s6908_s13 + $0x2ec] sm:$0xf] %vm4206_vm3, %v5308_v53  ;;  %v5306_v62 = vpack.c.bf16 %v6209_v57, %v6209_v57  ;;  %v2459_v2 = vadd.f32 %v7163_v15, %v2458_v56  ;;  %6236 = vtanh.f32 %v2467_v60  ;;  %v5623_v7 = vpop.f32.mrb[56].mxu0 }
 0x16a   : > { %v6213_v0 = vpop.eup %6212  ;;  %4252 = vst.msk [vmem:[%s6908_s13 + $0xb4] sm:$0xf] %vm4206_vm3, %v5166_v59  ;;  %v5171_v1 = vpack.c.bf16 %v6211_v61, %v6211_v61  ;;  %v5763_v8 = vpop.f32.mrb[56].mxu1  ;;  %6238 = vtanh.f32 %v1899_v63  ;;  %v1920_v11 = vadd.f32 %v7163_v15, %v5623_v7 }
 0x16b   : > { %v6215_v3 = vpop.eup %6214  ;;  %4392 = vst.msk [vmem:[%s6908_s13 + $0x2e4] sm:$0xf] %vm4206_vm3, %v5306_v62  ;;  %v5311_v4 = vpack.c.bf16 %v6213_v0, %v6213_v0  ;;  %v2480_v12 = vadd.f32 %v7163_v15, %v5763_v8  ;;  %v1911_v13 = vpop.f32.mrb[57].mxu0  ;;  %6240 = vtanh.f32 %v2459_v2 }
 0x16c   : > { %v6217_v5 = vpop.eup %6216  ;;  %4257 = vst.msk [vmem:[%s6908_s13 + $0xc8] sm:$0xf] %vm4206_vm3, %v5171_v1  ;;  %v5169_v6 = vpack.c.bf16 %v6215_v3, %v6215_v3  ;;  %v2471_v14 = vpop.f32.mrb[57].mxu1  ;;  %v1912_v18 = vadd.f32 %v7163_v15, %v1911_v13  ;;  %6242 = vtanh.f32 %v1920_v11 }
 0x16d   : > { %v6219_v9 = vpop.eup %6218  ;;  %4397 = vst.msk [vmem:[%s6908_s13 + $0x2f8] sm:$0xf] %vm4206_vm3, %v5311_v4  ;;  %v5309_v10 = vpack.c.bf16 %v6217_v5, %v6217_v5  ;;  %v2472_v58 = vadd.f32 %v7163_v15, %v2471_v14  ;;  %v5624_v19 = vpop.f32.mrb[58].mxu0  ;;  %6244 = vtanh.f32 %v2480_v12 }
 0x16e   : > { %v6221_v16 = vpop.eup %6220  ;;  %4255 = vst.msk [vmem:[%s6908_s13 + $0xc0] sm:$0xf] %vm4206_vm3, %v5169_v6  ;;  %v5172_v17 = vpack.c.bf16 %v6219_v9, %v6219_v9  ;;  %v5764_v20 = vpop.f32.mrb[58].mxu1  ;;  %v1923_v23 = vadd.f32 %v7163_v15, %v5624_v19  ;;  %6246 = vtanh.f32 %v1912_v18 }
 0x16f   : > { %v6223_v21 = vpop.eup %6222  ;;  %4395 = vst.msk [vmem:[%s6908_s13 + $0x2f0] sm:$0xf] %vm4206_vm3, %v5309_v10  ;;  %v5312_v22 = vpack.c.bf16 %v6221_v16, %v6221_v16  ;;  %v1914_v24 = vpop.f32.mrb[59].mxu0  ;;  %v2483_v28 = vadd.f32 %v7163_v15, %v5764_v20  ;;  %6248 = vtanh.f32 %v2472_v58 }
 0x170   : > { %v2474_v25 = vpop.f32.mrb[59].mxu1  ;;  %v6225_v26 = vpop.eup %6224  ;;  %4258 = vst.msk [vmem:[%s6908_s13 + $0xcc] sm:$0xf] %vm4206_vm3, %v5172_v17  ;;  %v5170_v27 = vpack.c.bf16 %v6223_v21, %v6223_v21  ;;  %v1915_v31 = vadd.f32 %v7163_v15, %v1914_v24  ;;  %6250 = vtanh.f32 %v1923_v23 }
 0x171   : > { %v6227_v29 = vpop.eup %6226  ;;  %4398 = vst.msk [vmem:[%s6908_s13 + $0x2fc] sm:$0xf] %vm4206_vm3, %v5312_v22  ;;  %v5310_v30 = vpack.c.bf16 %v6225_v26, %v6225_v26  ;;  %v2475_v34 = vadd.f32 %v7163_v15, %v2474_v25  ;;  %6252 = vtanh.f32 %v2483_v28  ;;  %v5627_v39 = vpop.f32.mrb[60].mxu0 }
 0x172   : > { %v6229_v32 = vpop.eup %6228  ;;  %4256 = vst.msk [vmem:[%s6908_s13 + $0xc4] sm:$0xf] %vm4206_vm3, %v5170_v27  ;;  %v5175_v33 = vpack.c.bf16 %v6227_v29, %v6227_v29  ;;  %v5767_v40 = vpop.f32.mrb[60].mxu1  ;;  %6254 = vtanh.f32 %v1915_v31  ;;  %v1936_v43 = vadd.f32 %v7163_v15, %v5627_v39 }
 0x173   : > { %v6231_v35 = vpop.eup %6230  ;;  %4396 = vst.msk [vmem:[%s6908_s13 + $0x2f4] sm:$0xf] %vm4206_vm3, %v5310_v30  ;;  %v5315_v36 = vpack.c.bf16 %v6229_v32, %v6229_v32  ;;  %v2496_v44 = vadd.f32 %v7163_v15, %v5767_v40  ;;  %v1927_v45 = vpop.f32.mrb[61].mxu0  ;;  %6256 = vtanh.f32 %v2475_v34 }
 0x174   : > { %v6233_v37 = vpop.eup %6232  ;;  %4261 = vst.msk [vmem:[%s6908_s13 + $0xd8] sm:$0xf] %vm4206_vm3, %v5175_v33  ;;  %v5173_v38 = vpack.c.bf16 %v6231_v35, %v6231_v35  ;;  %v2487_v46 = vpop.f32.mrb[61].mxu1  ;;  %v1928_v49 = vadd.f32 %v7163_v15, %v1927_v45  ;;  %6258 = vtanh.f32 %v1936_v43 }
 0x175   : > { %v6235_v41 = vpop.eup %6234  ;;  %4401 = vst.msk [vmem:[%s6908_s13 + $0x308] sm:$0xf] %vm4206_vm3, %v5315_v36  ;;  %v5313_v42 = vpack.c.bf16 %v6233_v37, %v6233_v37  ;;  %v2488_v50 = vadd.f32 %v7163_v15, %v2487_v46  ;;  %v5628_v51 = vpop.f32.mrb[62].mxu0  ;;  %6260 = vtanh.f32 %v2496_v44 }
 0x176   : > { %v6237_v47 = vpop.eup %6236  ;;  %4259 = vst.msk [vmem:[%s6908_s13 + $0xd0] sm:$0xf] %vm4206_vm3, %v5173_v38  ;;  %v5176_v48 = vpack.c.bf16 %v6235_v41, %v6235_v41  ;;  %v5768_v52 = vpop.f32.mrb[62].mxu1  ;;  %v1939_v55 = vadd.f32 %v7163_v15, %v5628_v51  ;;  %6262 = vtanh.f32 %v1928_v49 }
 0x177   : > { %v6239_v53 = vpop.eup %6238  ;;  %4399 = vst.msk [vmem:[%s6908_s13 + $0x300] sm:$0xf] %vm4206_vm3, %v5313_v42  ;;  %v5316_v54 = vpack.c.bf16 %v6237_v47, %v6237_v47  ;;  %v1930_v56 = vpop.f32.mrb[63].mxu0  ;;  %v2499_v61 = vadd.f32 %v7163_v15, %v5768_v52  ;;  %6264 = vtanh.f32 %v2488_v50 }
 0x178   : > { %v2490_v57 = vpop.f32.mrb[63].mxu1  ;;  %v6241_v59 = vpop.eup %6240  ;;  %4262 = vst.msk [vmem:[%s6908_s13 + $0xdc] sm:$0xf] %vm4206_vm3, %v5176_v48  ;;  %v5174_v60 = vpack.c.bf16 %v6239_v53, %v6239_v53  ;;  %v1931_v0 = vadd.f32 %v7163_v15, %v1930_v56  ;;  %6266 = vtanh.f32 %v1939_v55 }
 0x179   : > { %v6243_v62 = vpop.eup %6242  ;;  %4402 = vst.msk [vmem:[%s6908_s13 + $0x30c] sm:$0xf] %vm4206_vm3, %v5316_v54  ;;  %v5314_v63 = vpack.c.bf16 %v6241_v59, %v6241_v59  ;;  %v2491_v3 = vadd.f32 %v7163_v15, %v2490_v57  ;;  %6268 = vtanh.f32 %v2499_v61  ;;  %v5631_v8 = vpop.f32.mrb[64].mxu0 }
 0x17a   : > { %v6245_v1 = vpop.eup %6244  ;;  %4260 = vst.msk [vmem:[%s6908_s13 + $0xd4] sm:$0xf] %vm4206_vm3, %v5174_v60  ;;  %v5179_v2 = vpack.c.bf16 %v6243_v62, %v6243_v62  ;;  %v5771_v9 = vpop.f32.mrb[64].mxu1  ;;  %6270 = vtanh.f32 %v1931_v0  ;;  %v1952_v12 = vadd.f32 %v7163_v15, %v5631_v8 }
 0x17b   : > { %v6247_v4 = vpop.eup %6246  ;;  %4400 = vst.msk [vmem:[%s6908_s13 + $0x304] sm:$0xf] %vm4206_vm3, %v5314_v63  ;;  %v5319_v5 = vpack.c.bf16 %v6245_v1, %v6245_v1  ;;  %v2512_v13 = vadd.f32 %v7163_v15, %v5771_v9  ;;  %v1943_v14 = vpop.f32.mrb[65].mxu0  ;;  %6272 = vtanh.f32 %v2491_v3 }
 0x17c   : > { %v6249_v6 = vpop.eup %6248  ;;  %4265 = vst.msk [vmem:[%s6908_s13 + $0xe8] sm:$0xf] %vm4206_vm3, %v5179_v2  ;;  %v5177_v7 = vpack.c.bf16 %v6247_v4, %v6247_v4  ;;  %v2503_v16 = vpop.f32.mrb[65].mxu1  ;;  %v1944_v58 = vadd.f32 %v7163_v15, %v1943_v14  ;;  %6274 = vtanh.f32 %v1952_v12 }
 0x17d   : > { %v6251_v10 = vpop.eup %6250  ;;  %4405 = vst.msk [vmem:[%s6908_s13 + $0x318] sm:$0xf] %vm4206_vm3, %v5319_v5  ;;  %v5317_v11 = vpack.c.bf16 %v6249_v6, %v6249_v6  ;;  %v2504_v19 = vadd.f32 %v7163_v15, %v2503_v16  ;;  %v5632_v20 = vpop.f32.mrb[66].mxu0  ;;  %6276 = vtanh.f32 %v2512_v13 }
 0x17e   : > { %v6253_v17 = vpop.eup %6252  ;;  %4263 = vst.msk [vmem:[%s6908_s13 + $0xe0] sm:$0xf] %vm4206_vm3, %v5177_v7  ;;  %v5180_v18 = vpack.c.bf16 %v6251_v10, %v6251_v10  ;;  %v5772_v21 = vpop.f32.mrb[66].mxu1  ;;  %v1955_v24 = vadd.f32 %v7163_v15, %v5632_v20  ;;  %6278 = vtanh.f32 %v1944_v58 }
 0x17f   : > { %v6255_v22 = vpop.eup %6254  ;;  %4403 = vst.msk [vmem:[%s6908_s13 + $0x310] sm:$0xf] %vm4206_vm3, %v5317_v11  ;;  %v5320_v23 = vpack.c.bf16 %v6253_v17, %v6253_v17  ;;  %v1946_v25 = vpop.f32.mrb[67].mxu0  ;;  %v2515_v29 = vadd.f32 %v7163_v15, %v5772_v21  ;;  %6280 = vtanh.f32 %v2504_v19 }
 0x180   : > { %v2506_v26 = vpop.f32.mrb[67].mxu1  ;;  %v6257_v27 = vpop.eup %6256  ;;  %4266 = vst.msk [vmem:[%s6908_s13 + $0xec] sm:$0xf] %vm4206_vm3, %v5180_v18  ;;  %v5178_v28 = vpack.c.bf16 %v6255_v22, %v6255_v22  ;;  %v1947_v32 = vadd.f32 %v7163_v15, %v1946_v25  ;;  %6282 = vtanh.f32 %v1955_v24 }
 0x181   : > { %v6259_v30 = vpop.eup %6258  ;;  %4406 = vst.msk [vmem:[%s6908_s13 + $0x31c] sm:$0xf] %vm4206_vm3, %v5320_v23  ;;  %v5318_v31 = vpack.c.bf16 %v6257_v27, %v6257_v27  ;;  %v2507_v35 = vadd.f32 %v7163_v15, %v2506_v26  ;;  %6284 = vtanh.f32 %v2515_v29  ;;  %v5635_v40 = vpop.f32.mrb[68].mxu0 }
 0x182   : > { %v6261_v33 = vpop.eup %6260  ;;  %4264 = vst.msk [vmem:[%s6908_s13 + $0xe4] sm:$0xf] %vm4206_vm3, %v5178_v28  ;;  %v5183_v34 = vpack.c.bf16 %v6259_v30, %v6259_v30  ;;  %v5775_v41 = vpop.f32.mrb[68].mxu1  ;;  %6286 = vtanh.f32 %v1947_v32  ;;  %v1968_v44 = vadd.f32 %v7163_v15, %v5635_v40 }
 0x183   : > { %v6263_v36 = vpop.eup %6262  ;;  %4404 = vst.msk [vmem:[%s6908_s13 + $0x314] sm:$0xf] %vm4206_vm3, %v5318_v31  ;;  %v5323_v37 = vpack.c.bf16 %v6261_v33, %v6261_v33  ;;  %v2528_v45 = vadd.f32 %v7163_v15, %v5775_v41  ;;  %v1959_v46 = vpop.f32.mrb[69].mxu0  ;;  %6288 = vtanh.f32 %v2507_v35 }
 0x184   : > { %v6265_v38 = vpop.eup %6264  ;;  %4269 = vst.msk [vmem:[%s6908_s13 + $0xf8] sm:$0xf] %vm4206_vm3, %v5183_v34  ;;  %v5181_v39 = vpack.c.bf16 %v6263_v36, %v6263_v36  ;;  %v2519_v47 = vpop.f32.mrb[69].mxu1  ;;  %v1960_v50 = vadd.f32 %v7163_v15, %v1959_v46  ;;  %6290 = vtanh.f32 %v1968_v44 }
 0x185   : > { %v6267_v42 = vpop.eup %6266  ;;  %4409 = vst.msk [vmem:[%s6908_s13 + $0x328] sm:$0xf] %vm4206_vm3, %v5323_v37  ;;  %v5321_v43 = vpack.c.bf16 %v6265_v38, %v6265_v38  ;;  %v2520_v51 = vadd.f32 %v7163_v15, %v2519_v47  ;;  %v5636_v52 = vpop.f32.mrb[70].mxu0  ;;  %6292 = vtanh.f32 %v2528_v45 }
 0x186   : > { %v6269_v48 = vpop.eup %6268  ;;  %4267 = vst.msk [vmem:[%s6908_s13 + $0xf0] sm:$0xf] %vm4206_vm3, %v5181_v39  ;;  %v5184_v49 = vpack.c.bf16 %v6267_v42, %v6267_v42  ;;  %v5776_v53 = vpop.f32.mrb[70].mxu1  ;;  %v1971_v56 = vadd.f32 %v7163_v15, %v5636_v52  ;;  %6294 = vtanh.f32 %v1960_v50 }
 0x187   : > { %v6271_v54 = vpop.eup %6270  ;;  %4407 = vst.msk [vmem:[%s6908_s13 + $0x320] sm:$0xf] %vm4206_vm3, %v5321_v43  ;;  %v5324_v55 = vpack.c.bf16 %v6269_v48, %v6269_v48  ;;  %v1962_v57 = vpop.f32.mrb[71].mxu0  ;;  %v2531_v62 = vadd.f32 %v7163_v15, %v5776_v53  ;;  %6296 = vtanh.f32 %v2520_v51 }
 0x188   : > { %v2522_v59 = vpop.f32.mrb[71].mxu1  ;;  %v6273_v60 = vpop.eup %6272  ;;  %4270 = vst.msk [vmem:[%s6908_s13 + $0xfc] sm:$0xf] %vm4206_vm3, %v5184_v49  ;;  %v5182_v61 = vpack.c.bf16 %v6271_v54, %v6271_v54  ;;  %v1963_v1 = vadd.f32 %v7163_v15, %v1962_v57  ;;  %6298 = vtanh.f32 %v1971_v56 }
 0x189   : > { %v6275_v63 = vpop.eup %6274  ;;  %4410 = vst.msk [vmem:[%s6908_s13 + $0x32c] sm:$0xf] %vm4206_vm3, %v5324_v55  ;;  %v5322_v0 = vpack.c.bf16 %v6273_v60, %v6273_v60  ;;  %v2523_v4 = vadd.f32 %v7163_v15, %v2522_v59  ;;  %6300 = vtanh.f32 %v2531_v62  ;;  %v5639_v9 = vpop.f32.mrb[72].mxu0 }
 0x18a   : > { %v6277_v2 = vpop.eup %6276  ;;  %4268 = vst.msk [vmem:[%s6908_s13 + $0xf4] sm:$0xf] %vm4206_vm3, %v5182_v61  ;;  %v5187_v3 = vpack.c.bf16 %v6275_v63, %v6275_v63  ;;  %v5779_v10 = vpop.f32.mrb[72].mxu1  ;;  %6302 = vtanh.f32 %v1963_v1  ;;  %v1984_v13 = vadd.f32 %v7163_v15, %v5639_v9 }
 0x18b   : > { %v6279_v5 = vpop.eup %6278  ;;  %4408 = vst.msk [vmem:[%s6908_s13 + $0x324] sm:$0xf] %vm4206_vm3, %v5322_v0  ;;  %v5327_v6 = vpack.c.bf16 %v6277_v2, %v6277_v2  ;;  %v2544_v14 = vadd.f32 %v7163_v15, %v5779_v10  ;;  %v1975_v16 = vpop.f32.mrb[73].mxu0  ;;  %6304 = vtanh.f32 %v2523_v4 }
 0x18c   : > { %v6281_v7 = vpop.eup %6280  ;;  %4273 = vst.msk [vmem:[%s6908_s13 + $0x108] sm:$0xf] %vm4206_vm3, %v5187_v3  ;;  %v5185_v8 = vpack.c.bf16 %v6279_v5, %v6279_v5  ;;  %v2535_v17 = vpop.f32.mrb[73].mxu1  ;;  %v1976_v19 = vadd.f32 %v7163_v15, %v1975_v16  ;;  %6306 = vtanh.f32 %v1984_v13 }
 0x18d   : > { %v6283_v11 = vpop.eup %6282  ;;  %4413 = vst.msk [vmem:[%s6908_s13 + $0x338] sm:$0xf] %vm4206_vm3, %v5327_v6  ;;  %v5325_v12 = vpack.c.bf16 %v6281_v7, %v6281_v7  ;;  %v2536_v20 = vadd.f32 %v7163_v15, %v2535_v17  ;;  %v5640_v21 = vpop.f32.mrb[74].mxu0  ;;  %6308 = vtanh.f32 %v2544_v14 }
 0x18e   : > { %v6285_v18 = vpop.eup %6284  ;;  %4271 = vst.msk [vmem:[%s6908_s13 + $0x100] sm:$0xf] %vm4206_vm3, %v5185_v8  ;;  %v5188_v58 = vpack.c.bf16 %v6283_v11, %v6283_v11  ;;  %v5780_v22 = vpop.f32.mrb[74].mxu1  ;;  %v1987_v25 = vadd.f32 %v7163_v15, %v5640_v21  ;;  %6310 = vtanh.f32 %v1976_v19 }
 0x18f   : > { %v6287_v23 = vpop.eup %6286  ;;  %4411 = vst.msk [vmem:[%s6908_s13 + $0x330] sm:$0xf] %vm4206_vm3, %v5325_v12  ;;  %v5328_v24 = vpack.c.bf16 %v6285_v18, %v6285_v18  ;;  %v1978_v26 = vpop.f32.mrb[75].mxu0  ;;  %v2547_v30 = vadd.f32 %v7163_v15, %v5780_v22  ;;  %6312 = vtanh.f32 %v2536_v20 }
 0x190   : > { %v2538_v27 = vpop.f32.mrb[75].mxu1  ;;  %v6289_v28 = vpop.eup %6288  ;;  %4274 = vst.msk [vmem:[%s6908_s13 + $0x10c] sm:$0xf] %vm4206_vm3, %v5188_v58  ;;  %v5186_v29 = vpack.c.bf16 %v6287_v23, %v6287_v23  ;;  %v1979_v33 = vadd.f32 %v7163_v15, %v1978_v26  ;;  %6314 = vtanh.f32 %v1987_v25 }
 0x191   : > { %v6291_v31 = vpop.eup %6290  ;;  %4414 = vst.msk [vmem:[%s6908_s13 + $0x33c] sm:$0xf] %vm4206_vm3, %v5328_v24  ;;  %v5326_v32 = vpack.c.bf16 %v6289_v28, %v6289_v28  ;;  %v2539_v36 = vadd.f32 %v7163_v15, %v2538_v27  ;;  %6316 = vtanh.f32 %v2547_v30  ;;  %v5643_v41 = vpop.f32.mrb[76].mxu0 }
 0x192   : > { %v6293_v34 = vpop.eup %6292  ;;  %4272 = vst.msk [vmem:[%s6908_s13 + $0x104] sm:$0xf] %vm4206_vm3, %v5186_v29  ;;  %v5191_v35 = vpack.c.bf16 %v6291_v31, %v6291_v31  ;;  %v5783_v42 = vpop.f32.mrb[76].mxu1  ;;  %6318 = vtanh.f32 %v1979_v33  ;;  %v2000_v45 = vadd.f32 %v7163_v15, %v5643_v41 }
 0x193   : > { %v6295_v37 = vpop.eup %6294  ;;  %4412 = vst.msk [vmem:[%s6908_s13 + $0x334] sm:$0xf] %vm4206_vm3, %v5326_v32  ;;  %v5331_v38 = vpack.c.bf16 %v6293_v34, %v6293_v34  ;;  %v2560_v46 = vadd.f32 %v7163_v15, %v5783_v42  ;;  %v1991_v47 = vpop.f32.mrb[77].mxu0  ;;  %6320 = vtanh.f32 %v2539_v36 }
 0x194   : > { %v6297_v39 = vpop.eup %6296  ;;  %4277 = vst.msk [vmem:[%s6908_s13 + $0x118] sm:$0xf] %vm4206_vm3, %v5191_v35  ;;  %v5189_v40 = vpack.c.bf16 %v6295_v37, %v6295_v37  ;;  %v2551_v48 = vpop.f32.mrb[77].mxu1  ;;  %v1992_v51 = vadd.f32 %v7163_v15, %v1991_v47  ;;  %6322 = vtanh.f32 %v2000_v45 }
 0x195   : > { %v6299_v43 = vpop.eup %6298  ;;  %4417 = vst.msk [vmem:[%s6908_s13 + $0x348] sm:$0xf] %vm4206_vm3, %v5331_v38  ;;  %v5329_v44 = vpack.c.bf16 %v6297_v39, %v6297_v39  ;;  %v2552_v52 = vadd.f32 %v7163_v15, %v2551_v48  ;;  %v5644_v53 = vpop.f32.mrb[78].mxu0  ;;  %6324 = vtanh.f32 %v2560_v46 }
 0x196   : > { %v6301_v49 = vpop.eup %6300  ;;  %4275 = vst.msk [vmem:[%s6908_s13 + $0x110] sm:$0xf] %vm4206_vm3, %v5189_v40  ;;  %v5192_v50 = vpack.c.bf16 %v6299_v43, %v6299_v43  ;;  %v5784_v54 = vpop.f32.mrb[78].mxu1  ;;  %v2003_v57 = vadd.f32 %v7163_v15, %v5644_v53  ;;  %6326 = vtanh.f32 %v1992_v51 }
 0x197   : > { %v6303_v55 = vpop.eup %6302  ;;  %4415 = vst.msk [vmem:[%s6908_s13 + $0x340] sm:$0xf] %vm4206_vm3, %v5329_v44  ;;  %v5332_v56 = vpack.c.bf16 %v6301_v49, %v6301_v49  ;;  %v1994_v59 = vpop.f32.mrb[79].mxu0  ;;  %v2563_v63 = vadd.f32 %v7163_v15, %v5784_v54  ;;  %6328 = vtanh.f32 %v2552_v52 }
 0x198   : > { %v2554_v60 = vpop.f32.mrb[79].mxu1  ;;  %v6305_v61 = vpop.eup %6304  ;;  %4278 = vst.msk [vmem:[%s6908_s13 + $0x11c] sm:$0xf] %vm4206_vm3, %v5192_v50  ;;  %v5190_v62 = vpack.c.bf16 %v6303_v55, %v6303_v55  ;;  %v1995_v2 = vadd.f32 %v7163_v15, %v1994_v59  ;;  %6330 = vtanh.f32 %v2003_v57 }
 0x199   : > { %v6307_v0 = vpop.eup %6306  ;;  %4418 = vst.msk [vmem:[%s6908_s13 + $0x34c] sm:$0xf] %vm4206_vm3, %v5332_v56  ;;  %v5330_v1 = vpack.c.bf16 %v6305_v61, %v6305_v61  ;;  %v2555_v5 = vadd.f32 %v7163_v15, %v2554_v60  ;;  %6332 = vtanh.f32 %v2563_v63  ;;  %v5647_v10 = vpop.f32.mrb[80].mxu0 }
 0x19a   : > { %v6309_v3 = vpop.eup %6308  ;;  %4276 = vst.msk [vmem:[%s6908_s13 + $0x114] sm:$0xf] %vm4206_vm3, %v5190_v62  ;;  %v5195_v4 = vpack.c.bf16 %v6307_v0, %v6307_v0  ;;  %v5787_v11 = vpop.f32.mrb[80].mxu1  ;;  %6334 = vtanh.f32 %v1995_v2  ;;  %v2016_v14 = vadd.f32 %v7163_v15, %v5647_v10 }
 0x19b   : > { %v6311_v6 = vpop.eup %6310  ;;  %4416 = vst.msk [vmem:[%s6908_s13 + $0x344] sm:$0xf] %vm4206_vm3, %v5330_v1  ;;  %v5335_v7 = vpack.c.bf16 %v6309_v3, %v6309_v3  ;;  %v2576_v16 = vadd.f32 %v7163_v15, %v5787_v11  ;;  %v2007_v17 = vpop.f32.mrb[81].mxu0  ;;  %6336 = vtanh.f32 %v2555_v5 }
 0x19c   : > { %v6313_v8 = vpop.eup %6312  ;;  %4281 = vst.msk [vmem:[%s6908_s13 + $0x128] sm:$0xf] %vm4206_vm3, %v5195_v4  ;;  %v5193_v9 = vpack.c.bf16 %v6311_v6, %v6311_v6  ;;  %v2567_v18 = vpop.f32.mrb[81].mxu1  ;;  %v2008_v20 = vadd.f32 %v7163_v15, %v2007_v17  ;;  %6338 = vtanh.f32 %v2016_v14 }
 0x19d   : > { %v6315_v12 = vpop.eup %6314  ;;  %4421 = vst.msk [vmem:[%s6908_s13 + $0x358] sm:$0xf] %vm4206_vm3, %v5335_v7  ;;  %v5333_v13 = vpack.c.bf16 %v6313_v8, %v6313_v8  ;;  %v2568_v21 = vadd.f32 %v7163_v15, %v2567_v18  ;;  %v5648_v22 = vpop.f32.mrb[82].mxu0  ;;  %6340 = vtanh.f32 %v2576_v16 }
 0x19e   : > { %v6317_v58 = vpop.eup %6316  ;;  %4279 = vst.msk [vmem:[%s6908_s13 + $0x120] sm:$0xf] %vm4206_vm3, %v5193_v9  ;;  %v5196_v19 = vpack.c.bf16 %v6315_v12, %v6315_v12  ;;  %v5788_v23 = vpop.f32.mrb[82].mxu1  ;;  %v2019_v26 = vadd.f32 %v7163_v15, %v5648_v22  ;;  %6342 = vtanh.f32 %v2008_v20 }
 0x19f   : > { %v6319_v24 = vpop.eup %6318  ;;  %4419 = vst.msk [vmem:[%s6908_s13 + $0x350] sm:$0xf] %vm4206_vm3, %v5333_v13  ;;  %v5336_v25 = vpack.c.bf16 %v6317_v58, %v6317_v58  ;;  %v2010_v27 = vpop.f32.mrb[83].mxu0  ;;  %v2579_v31 = vadd.f32 %v7163_v15, %v5788_v23  ;;  %6344 = vtanh.f32 %v2568_v21 }
 0x1a0   : > { %v2570_v28 = vpop.f32.mrb[83].mxu1  ;;  %v6321_v29 = vpop.eup %6320  ;;  %4282 = vst.msk [vmem:[%s6908_s13 + $0x12c] sm:$0xf] %vm4206_vm3, %v5196_v19  ;;  %v5194_v30 = vpack.c.bf16 %v6319_v24, %v6319_v24  ;;  %v2011_v34 = vadd.f32 %v7163_v15, %v2010_v27  ;;  %6346 = vtanh.f32 %v2019_v26 }
 0x1a1   : > { %v6323_v32 = vpop.eup %6322  ;;  %4422 = vst.msk [vmem:[%s6908_s13 + $0x35c] sm:$0xf] %vm4206_vm3, %v5336_v25  ;;  %v5334_v33 = vpack.c.bf16 %v6321_v29, %v6321_v29  ;;  %v2571_v37 = vadd.f32 %v7163_v15, %v2570_v28  ;;  %6348 = vtanh.f32 %v2579_v31  ;;  %v5651_v42 = vpop.f32.mrb[84].mxu0  ;;  %v7428_v15 = vld [vmem:[%s7804_s2] ss:$0 sm:$0xff] }
 0x1a2   : > { %v6325_v35 = vpop.eup %6324  ;;  %4280 = vst.msk [vmem:[%s6908_s13 + $0x124] sm:$0xf] %vm4206_vm3, %v5194_v30  ;;  %v5199_v36 = vpack.c.bf16 %v6323_v32, %v6323_v32  ;;  %v5791_v43 = vpop.f32.mrb[84].mxu1  ;;  %6350 = vtanh.f32 %v2011_v34  ;;  %v2032_v46 = vadd.f32 %v7428_v15, %v5651_v42 }
 0x1a3   : > { %v6327_v38 = vpop.eup %6326  ;;  %4420 = vst.msk [vmem:[%s6908_s13 + $0x354] sm:$0xf] %vm4206_vm3, %v5334_v33  ;;  %v5339_v39 = vpack.c.bf16 %v6325_v35, %v6325_v35  ;;  %v2592_v47 = vadd.f32 %v7428_v15, %v5791_v43  ;;  %v2023_v48 = vpop.f32.mrb[85].mxu0  ;;  %6352 = vtanh.f32 %v2571_v37 }
 0x1a4   : > { %v6329_v40 = vpop.eup %6328  ;;  %4285 = vst.msk [vmem:[%s6908_s13 + $0x138] sm:$0xf] %vm4206_vm3, %v5199_v36  ;;  %v5197_v41 = vpack.c.bf16 %v6327_v38, %v6327_v38  ;;  %v2583_v49 = vpop.f32.mrb[85].mxu1  ;;  %v2024_v52 = vadd.f32 %v7428_v15, %v2023_v48  ;;  %6354 = vtanh.f32 %v2032_v46 }
 0x1a5   : > { %v6331_v44 = vpop.eup %6330  ;;  %4425 = vst.msk [vmem:[%s6908_s13 + $0x368] sm:$0xf] %vm4206_vm3, %v5339_v39  ;;  %v5337_v45 = vpack.c.bf16 %v6329_v40, %v6329_v40  ;;  %v2584_v53 = vadd.f32 %v7428_v15, %v2583_v49  ;;  %v5652_v54 = vpop.f32.mrb[86].mxu0  ;;  %6356 = vtanh.f32 %v2592_v47 }
 0x1a6   : > { %v6333_v50 = vpop.eup %6332  ;;  %4283 = vst.msk [vmem:[%s6908_s13 + $0x130] sm:$0xf] %vm4206_vm3, %v5197_v41  ;;  %v5200_v51 = vpack.c.bf16 %v6331_v44, %v6331_v44  ;;  %v5792_v55 = vpop.f32.mrb[86].mxu1  ;;  %v2035_v59 = vadd.f32 %v7428_v15, %v5652_v54  ;;  %6358 = vtanh.f32 %v2024_v52 }
 0x1a7   : > { %v6335_v56 = vpop.eup %6334  ;;  %4423 = vst.msk [vmem:[%s6908_s13 + $0x360] sm:$0xf] %vm4206_vm3, %v5337_v45  ;;  %v5340_v57 = vpack.c.bf16 %v6333_v50, %v6333_v50  ;;  %v2026_v60 = vpop.f32.mrb[87].mxu0  ;;  %v2595_v0 = vadd.f32 %v7428_v15, %v5792_v55  ;;  %6360 = vtanh.f32 %v2584_v53 }
 0x1a8   : > { %v2586_v61 = vpop.f32.mrb[87].mxu1  ;;  %v6337_v62 = vpop.eup %6336  ;;  %4286 = vst.msk [vmem:[%s6908_s13 + $0x13c] sm:$0xf] %vm4206_vm3, %v5200_v51  ;;  %v5198_v63 = vpack.c.bf16 %v6335_v56, %v6335_v56  ;;  %v2027_v3 = vadd.f32 %v7428_v15, %v2026_v60  ;;  %6362 = vtanh.f32 %v2035_v59 }
 0x1a9   : > { %v6339_v1 = vpop.eup %6338  ;;  %4426 = vst.msk [vmem:[%s6908_s13 + $0x36c] sm:$0xf] %vm4206_vm3, %v5340_v57  ;;  %v5338_v2 = vpack.c.bf16 %v6337_v62, %v6337_v62  ;;  %v2587_v6 = vadd.f32 %v7428_v15, %v2586_v61  ;;  %6364 = vtanh.f32 %v2595_v0  ;;  %v5655_v11 = vpop.f32.mrb[88].mxu0 }
 0x1aa   : > { %v6341_v4 = vpop.eup %6340  ;;  %4284 = vst.msk [vmem:[%s6908_s13 + $0x134] sm:$0xf] %vm4206_vm3, %v5198_v63  ;;  %v5203_v5 = vpack.c.bf16 %v6339_v1, %v6339_v1  ;;  %v5795_v12 = vpop.f32.mrb[88].mxu1  ;;  %6366 = vtanh.f32 %v2027_v3  ;;  %v2048_v16 = vadd.f32 %v7428_v15, %v5655_v11 }
 0x1ab   : > { %v6343_v7 = vpop.eup %6342  ;;  %4424 = vst.msk [vmem:[%s6908_s13 + $0x364] sm:$0xf] %vm4206_vm3, %v5338_v2  ;;  %v5343_v8 = vpack.c.bf16 %v6341_v4, %v6341_v4  ;;  %v2608_v17 = vadd.f32 %v7428_v15, %v5795_v12  ;;  %v2039_v18 = vpop.f32.mrb[89].mxu0  ;;  %6368 = vtanh.f32 %v2587_v6 }
 0x1ac   : > { %v6345_v9 = vpop.eup %6344  ;;  %4289 = vst.msk [vmem:[%s6908_s13 + $0x148] sm:$0xf] %vm4206_vm3, %v5203_v5  ;;  %v5201_v10 = vpack.c.bf16 %v6343_v7, %v6343_v7  ;;  %v2599_v58 = vpop.f32.mrb[89].mxu1  ;;  %v2040_v21 = vadd.f32 %v7428_v15, %v2039_v18  ;;  %6370 = vtanh.f32 %v2048_v16 }
 0x1ad   : > { %v6347_v13 = vpop.eup %6346  ;;  %4429 = vst.msk [vmem:[%s6908_s13 + $0x378] sm:$0xf] %vm4206_vm3, %v5343_v8  ;;  %v5341_v14 = vpack.c.bf16 %v6345_v9, %v6345_v9  ;;  %v2600_v22 = vadd.f32 %v7428_v15, %v2599_v58  ;;  %v5656_v23 = vpop.f32.mrb[90].mxu0  ;;  %6372 = vtanh.f32 %v2608_v17 }
 0x1ae   : > { %v6349_v19 = vpop.eup %6348  ;;  %4287 = vst.msk [vmem:[%s6908_s13 + $0x140] sm:$0xf] %vm4206_vm3, %v5201_v10  ;;  %v5204_v20 = vpack.c.bf16 %v6347_v13, %v6347_v13  ;;  %v5796_v24 = vpop.f32.mrb[90].mxu1  ;;  %v2051_v27 = vadd.f32 %v7428_v15, %v5656_v23  ;;  %6374 = vtanh.f32 %v2040_v21 }
 0x1af   : > { %v6351_v25 = vpop.eup %6350  ;;  %4427 = vst.msk [vmem:[%s6908_s13 + $0x370] sm:$0xf] %vm4206_vm3, %v5341_v14  ;;  %v5344_v26 = vpack.c.bf16 %v6349_v19, %v6349_v19  ;;  %v2042_v28 = vpop.f32.mrb[91].mxu0  ;;  %v2611_v32 = vadd.f32 %v7428_v15, %v5796_v24  ;;  %6376 = vtanh.f32 %v2600_v22 }
 0x1b0   : > { %v2602_v29 = vpop.f32.mrb[91].mxu1  ;;  %v6353_v30 = vpop.eup %6352  ;;  %4290 = vst.msk [vmem:[%s6908_s13 + $0x14c] sm:$0xf] %vm4206_vm3, %v5204_v20  ;;  %v5202_v31 = vpack.c.bf16 %v6351_v25, %v6351_v25  ;;  %v2043_v35 = vadd.f32 %v7428_v15, %v2042_v28  ;;  %6378 = vtanh.f32 %v2051_v27 }
 0x1b1   : > { %v6355_v33 = vpop.eup %6354  ;;  %4430 = vst.msk [vmem:[%s6908_s13 + $0x37c] sm:$0xf] %vm4206_vm3, %v5344_v26  ;;  %v5342_v34 = vpack.c.bf16 %v6353_v30, %v6353_v30  ;;  %v2603_v38 = vadd.f32 %v7428_v15, %v2602_v29  ;;  %6380 = vtanh.f32 %v2611_v32  ;;  %v5659_v43 = vpop.f32.mrb[92].mxu0 }
 0x1b2   : > { %v6357_v36 = vpop.eup %6356  ;;  %4288 = vst.msk [vmem:[%s6908_s13 + $0x144] sm:$0xf] %vm4206_vm3, %v5202_v31  ;;  %v5207_v37 = vpack.c.bf16 %v6355_v33, %v6355_v33  ;;  %v5799_v44 = vpop.f32.mrb[92].mxu1  ;;  %6382 = vtanh.f32 %v2043_v35  ;;  %v2064_v47 = vadd.f32 %v7428_v15, %v5659_v43 }
 0x1b3   : > { %v6359_v39 = vpop.eup %6358  ;;  %4428 = vst.msk [vmem:[%s6908_s13 + $0x374] sm:$0xf] %vm4206_vm3, %v5342_v34  ;;  %v5347_v40 = vpack.c.bf16 %v6357_v36, %v6357_v36  ;;  %v2624_v48 = vadd.f32 %v7428_v15, %v5799_v44  ;;  %v2055_v49 = vpop.f32.mrb[93].mxu0  ;;  %6384 = vtanh.f32 %v2603_v38 }
 0x1b4   : > { %v6361_v41 = vpop.eup %6360  ;;  %4293 = vst.msk [vmem:[%s6908_s13 + $0x158] sm:$0xf] %vm4206_vm3, %v5207_v37  ;;  %v5205_v42 = vpack.c.bf16 %v6359_v39, %v6359_v39  ;;  %v2615_v50 = vpop.f32.mrb[93].mxu1  ;;  %v2056_v53 = vadd.f32 %v7428_v15, %v2055_v49  ;;  %6386 = vtanh.f32 %v2064_v47 }
 0x1b5   : > { %v6363_v45 = vpop.eup %6362  ;;  %4433 = vst.msk [vmem:[%s6908_s13 + $0x388] sm:$0xf] %vm4206_vm3, %v5347_v40  ;;  %v5345_v46 = vpack.c.bf16 %v6361_v41, %v6361_v41  ;;  %v2616_v54 = vadd.f32 %v7428_v15, %v2615_v50  ;;  %v5660_v55 = vpop.f32.mrb[94].mxu0  ;;  %6388 = vtanh.f32 %v2624_v48 }
 0x1b6   : > { %v6365_v51 = vpop.eup %6364  ;;  %4291 = vst.msk [vmem:[%s6908_s13 + $0x150] sm:$0xf] %vm4206_vm3, %v5205_v42  ;;  %v5208_v52 = vpack.c.bf16 %v6363_v45, %v6363_v45  ;;  %v5800_v56 = vpop.f32.mrb[94].mxu1  ;;  %v2067_v60 = vadd.f32 %v7428_v15, %v5660_v55  ;;  %6390 = vtanh.f32 %v2056_v53 }
 0x1b7   : > { %v6367_v57 = vpop.eup %6366  ;;  %4431 = vst.msk [vmem:[%s6908_s13 + $0x380] sm:$0xf] %vm4206_vm3, %v5345_v46  ;;  %v5348_v59 = vpack.c.bf16 %v6365_v51, %v6365_v51  ;;  %v2058_v61 = vpop.f32.mrb[95].mxu0  ;;  %v2627_v1 = vadd.f32 %v7428_v15, %v5800_v56  ;;  %6392 = vtanh.f32 %v2616_v54 }
 0x1b8   : > { %v2618_v62 = vpop.f32.mrb[95].mxu1  ;;  %v6369_v63 = vpop.eup %6368  ;;  %4294 = vst.msk [vmem:[%s6908_s13 + $0x15c] sm:$0xf] %vm4206_vm3, %v5208_v52  ;;  %v5206_v0 = vpack.c.bf16 %v6367_v57, %v6367_v57  ;;  %v2059_v4 = vadd.f32 %v7428_v15, %v2058_v61  ;;  %6394 = vtanh.f32 %v2067_v60 }
 0x1b9   : > { %v6371_v2 = vpop.eup %6370  ;;  %4434 = vst.msk [vmem:[%s6908_s13 + $0x38c] sm:$0xf] %vm4206_vm3, %v5348_v59  ;;  %v5346_v3 = vpack.c.bf16 %v6369_v63, %v6369_v63  ;;  %v2619_v7 = vadd.f32 %v7428_v15, %v2618_v62  ;;  %6396 = vtanh.f32 %v2627_v1  ;;  %v5663_v12 = vpop.f32.mrb[96].mxu0 }
 0x1ba   : > { %v6373_v5 = vpop.eup %6372  ;;  %4292 = vst.msk [vmem:[%s6908_s13 + $0x154] sm:$0xf] %vm4206_vm3, %v5206_v0  ;;  %v5211_v6 = vpack.c.bf16 %v6371_v2, %v6371_v2  ;;  %v5803_v13 = vpop.f32.mrb[96].mxu1  ;;  %6398 = vtanh.f32 %v2059_v4  ;;  %v2080_v17 = vadd.f32 %v7428_v15, %v5663_v12 }
 0x1bb   : > { %v6375_v8 = vpop.eup %6374  ;;  %4432 = vst.msk [vmem:[%s6908_s13 + $0x384] sm:$0xf] %vm4206_vm3, %v5346_v3  ;;  %v5351_v9 = vpack.c.bf16 %v6373_v5, %v6373_v5  ;;  %v2640_v18 = vadd.f32 %v7428_v15, %v5803_v13  ;;  %v2071_v58 = vpop.f32.mrb[97].mxu0  ;;  %6400 = vtanh.f32 %v2619_v7 }
 0x1bc   : > { %v6377_v10 = vpop.eup %6376  ;;  %4297 = vst.msk [vmem:[%s6908_s13 + $0x168] sm:$0xf] %vm4206_vm3, %v5211_v6  ;;  %v5209_v11 = vpack.c.bf16 %v6375_v8, %v6375_v8  ;;  %v2631_v19 = vpop.f32.mrb[97].mxu1  ;;  %v2072_v22 = vadd.f32 %v7428_v15, %v2071_v58  ;;  %6402 = vtanh.f32 %v2080_v17 }
 0x1bd   : > { %v6379_v14 = vpop.eup %6378  ;;  %4437 = vst.msk [vmem:[%s6908_s13 + $0x398] sm:$0xf] %vm4206_vm3, %v5351_v9  ;;  %v5349_v16 = vpack.c.bf16 %v6377_v10, %v6377_v10  ;;  %v2632_v23 = vadd.f32 %v7428_v15, %v2631_v19  ;;  %v5664_v24 = vpop.f32.mrb[98].mxu0  ;;  %6404 = vtanh.f32 %v2640_v18 }
 0x1be   : > { %v6381_v20 = vpop.eup %6380  ;;  %4295 = vst.msk [vmem:[%s6908_s13 + $0x160] sm:$0xf] %vm4206_vm3, %v5209_v11  ;;  %v5212_v21 = vpack.c.bf16 %v6379_v14, %v6379_v14  ;;  %v5804_v25 = vpop.f32.mrb[98].mxu1  ;;  %v2083_v28 = vadd.f32 %v7428_v15, %v5664_v24  ;;  %6406 = vtanh.f32 %v2072_v22 }
 0x1bf   : > { %v6383_v26 = vpop.eup %6382  ;;  %4435 = vst.msk [vmem:[%s6908_s13 + $0x390] sm:$0xf] %vm4206_vm3, %v5349_v16  ;;  %v5352_v27 = vpack.c.bf16 %v6381_v20, %v6381_v20  ;;  %v2074_v29 = vpop.f32.mrb[99].mxu0  ;;  %v2643_v33 = vadd.f32 %v7428_v15, %v5804_v25  ;;  %6408 = vtanh.f32 %v2632_v23 }
 0x1c0   : > { %v2634_v30 = vpop.f32.mrb[99].mxu1  ;;  %v6385_v31 = vpop.eup %6384  ;;  %4298 = vst.msk [vmem:[%s6908_s13 + $0x16c] sm:$0xf] %vm4206_vm3, %v5212_v21  ;;  %v5210_v32 = vpack.c.bf16 %v6383_v26, %v6383_v26  ;;  %v2075_v36 = vadd.f32 %v7428_v15, %v2074_v29  ;;  %6410 = vtanh.f32 %v2083_v28 }
 0x1c1   : > { %v6387_v34 = vpop.eup %6386  ;;  %4438 = vst.msk [vmem:[%s6908_s13 + $0x39c] sm:$0xf] %vm4206_vm3, %v5352_v27  ;;  %v5350_v35 = vpack.c.bf16 %v6385_v31, %v6385_v31  ;;  %v2635_v39 = vadd.f32 %v7428_v15, %v2634_v30  ;;  %6412 = vtanh.f32 %v2643_v33  ;;  %v5667_v44 = vpop.f32.mrb[100].mxu0 }
 0x1c2   : > { %v6389_v37 = vpop.eup %6388  ;;  %4296 = vst.msk [vmem:[%s6908_s13 + $0x164] sm:$0xf] %vm4206_vm3, %v5210_v32  ;;  %v5215_v38 = vpack.c.bf16 %v6387_v34, %v6387_v34  ;;  %v5807_v45 = vpop.f32.mrb[100].mxu1  ;;  %6414 = vtanh.f32 %v2075_v36  ;;  %v2096_v48 = vadd.f32 %v7428_v15, %v5667_v44 }
 0x1c3   : > { %v6391_v40 = vpop.eup %6390  ;;  %4436 = vst.msk [vmem:[%s6908_s13 + $0x394] sm:$0xf] %vm4206_vm3, %v5350_v35  ;;  %v5355_v41 = vpack.c.bf16 %v6389_v37, %v6389_v37  ;;  %v2656_v49 = vadd.f32 %v7428_v15, %v5807_v45  ;;  %v2087_v50 = vpop.f32.mrb[101].mxu0  ;;  %6416 = vtanh.f32 %v2635_v39 }
 0x1c4   : > { %v6393_v42 = vpop.eup %6392  ;;  %4301 = vst.msk [vmem:[%s6908_s13 + $0x178] sm:$0xf] %vm4206_vm3, %v5215_v38  ;;  %v5213_v43 = vpack.c.bf16 %v6391_v40, %v6391_v40  ;;  %v2647_v51 = vpop.f32.mrb[101].mxu1  ;;  %v2088_v54 = vadd.f32 %v7428_v15, %v2087_v50  ;;  %6418 = vtanh.f32 %v2096_v48 }
 0x1c5   : > { %v6395_v46 = vpop.eup %6394  ;;  %4441 = vst.msk [vmem:[%s6908_s13 + $0x3a8] sm:$0xf] %vm4206_vm3, %v5355_v41  ;;  %v5353_v47 = vpack.c.bf16 %v6393_v42, %v6393_v42  ;;  %v2648_v55 = vadd.f32 %v7428_v15, %v2647_v51  ;;  %v5668_v56 = vpop.f32.mrb[102].mxu0  ;;  %6420 = vtanh.f32 %v2656_v49 }
 0x1c6   : > { %v6397_v52 = vpop.eup %6396  ;;  %4299 = vst.msk [vmem:[%s6908_s13 + $0x170] sm:$0xf] %vm4206_vm3, %v5213_v43  ;;  %v5216_v53 = vpack.c.bf16 %v6395_v46, %v6395_v46  ;;  %v5808_v57 = vpop.f32.mrb[102].mxu1  ;;  %v2099_v61 = vadd.f32 %v7428_v15, %v5668_v56  ;;  %6422 = vtanh.f32 %v2088_v54 }
 0x1c7   : > { %v6399_v59 = vpop.eup %6398  ;;  %4439 = vst.msk [vmem:[%s6908_s13 + $0x3a0] sm:$0xf] %vm4206_vm3, %v5353_v47  ;;  %v5356_v60 = vpack.c.bf16 %v6397_v52, %v6397_v52  ;;  %v2090_v62 = vpop.f32.mrb[103].mxu0  ;;  %v2659_v2 = vadd.f32 %v7428_v15, %v5808_v57  ;;  %6424 = vtanh.f32 %v2648_v55 }
 0x1c8   : > { %v2650_v63 = vpop.f32.mrb[103].mxu1  ;;  %v6401_v0 = vpop.eup %6400  ;;  %4302 = vst.msk [vmem:[%s6908_s13 + $0x17c] sm:$0xf] %vm4206_vm3, %v5216_v53  ;;  %v5214_v1 = vpack.c.bf16 %v6399_v59, %v6399_v59  ;;  %v2091_v5 = vadd.f32 %v7428_v15, %v2090_v62  ;;  %6426 = vtanh.f32 %v2099_v61 }
 0x1c9   : > { %v6403_v3 = vpop.eup %6402  ;;  %4442 = vst.msk [vmem:[%s6908_s13 + $0x3ac] sm:$0xf] %vm4206_vm3, %v5356_v60  ;;  %v5354_v4 = vpack.c.bf16 %v6401_v0, %v6401_v0  ;;  %v2651_v8 = vadd.f32 %v7428_v15, %v2650_v63  ;;  %6428 = vtanh.f32 %v2659_v2  ;;  %v5671_v13 = vpop.f32.mrb[104].mxu0 }
 0x1ca   : > { %v6405_v6 = vpop.eup %6404  ;;  %4300 = vst.msk [vmem:[%s6908_s13 + $0x174] sm:$0xf] %vm4206_vm3, %v5214_v1  ;;  %v5219_v7 = vpack.c.bf16 %v6403_v3, %v6403_v3  ;;  %v5811_v14 = vpop.f32.mrb[104].mxu1  ;;  %6430 = vtanh.f32 %v2091_v5  ;;  %v2112_v18 = vadd.f32 %v7428_v15, %v5671_v13 }
 0x1cb   : > { %v6407_v9 = vpop.eup %6406  ;;  %4440 = vst.msk [vmem:[%s6908_s13 + $0x3a4] sm:$0xf] %vm4206_vm3, %v5354_v4  ;;  %v5359_v10 = vpack.c.bf16 %v6405_v6, %v6405_v6  ;;  %v2672_v58 = vadd.f32 %v7428_v15, %v5811_v14  ;;  %v2103_v19 = vpop.f32.mrb[105].mxu0  ;;  %6432 = vtanh.f32 %v2651_v8 }
 0x1cc   : > { %v6409_v11 = vpop.eup %6408  ;;  %4305 = vst.msk [vmem:[%s6908_s13 + $0x188] sm:$0xf] %vm4206_vm3, %v5219_v7  ;;  %v5217_v12 = vpack.c.bf16 %v6407_v9, %v6407_v9  ;;  %v2663_v20 = vpop.f32.mrb[105].mxu1  ;;  %v2104_v23 = vadd.f32 %v7428_v15, %v2103_v19  ;;  %6434 = vtanh.f32 %v2112_v18 }
 0x1cd   : > { %v6411_v16 = vpop.eup %6410  ;;  %4445 = vst.msk [vmem:[%s6908_s13 + $0x3b8] sm:$0xf] %vm4206_vm3, %v5359_v10  ;;  %v5357_v17 = vpack.c.bf16 %v6409_v11, %v6409_v11  ;;  %v2664_v24 = vadd.f32 %v7428_v15, %v2663_v20  ;;  %v5672_v25 = vpop.f32.mrb[106].mxu0  ;;  %6436 = vtanh.f32 %v2672_v58 }
 0x1ce   : > { %v6413_v21 = vpop.eup %6412  ;;  %4303 = vst.msk [vmem:[%s6908_s13 + $0x180] sm:$0xf] %vm4206_vm3, %v5217_v12  ;;  %v5220_v22 = vpack.c.bf16 %v6411_v16, %v6411_v16  ;;  %v5812_v26 = vpop.f32.mrb[106].mxu1  ;;  %v2115_v29 = vadd.f32 %v7428_v15, %v5672_v25  ;;  %6438 = vtanh.f32 %v2104_v23 }
 0x1cf   : > { %v6415_v27 = vpop.eup %6414  ;;  %4443 = vst.msk [vmem:[%s6908_s13 + $0x3b0] sm:$0xf] %vm4206_vm3, %v5357_v17  ;;  %v5360_v28 = vpack.c.bf16 %v6413_v21, %v6413_v21  ;;  %v2106_v30 = vpop.f32.mrb[107].mxu0  ;;  %v2675_v34 = vadd.f32 %v7428_v15, %v5812_v26  ;;  %6440 = vtanh.f32 %v2664_v24 }
 0x1d0   : > { %v2666_v31 = vpop.f32.mrb[107].mxu1  ;;  %v6417_v32 = vpop.eup %6416  ;;  %4306 = vst.msk [vmem:[%s6908_s13 + $0x18c] sm:$0xf] %vm4206_vm3, %v5220_v22  ;;  %v5218_v33 = vpack.c.bf16 %v6415_v27, %v6415_v27  ;;  %v2107_v37 = vadd.f32 %v7428_v15, %v2106_v30  ;;  %6442 = vtanh.f32 %v2115_v29 }
 0x1d1   : > { %v6419_v35 = vpop.eup %6418  ;;  %4446 = vst.msk [vmem:[%s6908_s13 + $0x3bc] sm:$0xf] %vm4206_vm3, %v5360_v28  ;;  %v5358_v36 = vpack.c.bf16 %v6417_v32, %v6417_v32  ;;  %v2667_v40 = vadd.f32 %v7428_v15, %v2666_v31  ;;  %6444 = vtanh.f32 %v2675_v34  ;;  %v5675_v45 = vpop.f32.mrb[108].mxu0 }
 0x1d2   : > { %v6421_v38 = vpop.eup %6420  ;;  %4304 = vst.msk [vmem:[%s6908_s13 + $0x184] sm:$0xf] %vm4206_vm3, %v5218_v33  ;;  %v5223_v39 = vpack.c.bf16 %v6419_v35, %v6419_v35  ;;  %v5815_v46 = vpop.f32.mrb[108].mxu1  ;;  %6446 = vtanh.f32 %v2107_v37  ;;  %v2128_v49 = vadd.f32 %v7428_v15, %v5675_v45 }
 0x1d3   : > { %v6423_v41 = vpop.eup %6422  ;;  %4444 = vst.msk [vmem:[%s6908_s13 + $0x3b4] sm:$0xf] %vm4206_vm3, %v5358_v36  ;;  %v5363_v42 = vpack.c.bf16 %v6421_v38, %v6421_v38  ;;  %v2688_v50 = vadd.f32 %v7428_v15, %v5815_v46  ;;  %v2119_v51 = vpop.f32.mrb[109].mxu0  ;;  %6448 = vtanh.f32 %v2667_v40 }
 0x1d4   : > { %v6425_v43 = vpop.eup %6424  ;;  %4309 = vst.msk [vmem:[%s6908_s13 + $0x198] sm:$0xf] %vm4206_vm3, %v5223_v39  ;;  %v5221_v44 = vpack.c.bf16 %v6423_v41, %v6423_v41  ;;  %v2679_v52 = vpop.f32.mrb[109].mxu1  ;;  %v2120_v55 = vadd.f32 %v7428_v15, %v2119_v51  ;;  %6450 = vtanh.f32 %v2128_v49 }
 0x1d5   : > { %v6427_v47 = vpop.eup %6426  ;;  %4449 = vst.msk [vmem:[%s6908_s13 + $0x3c8] sm:$0xf] %vm4206_vm3, %v5363_v42  ;;  %v5361_v48 = vpack.c.bf16 %v6425_v43, %v6425_v43  ;;  %v2680_v56 = vadd.f32 %v7428_v15, %v2679_v52  ;;  %v5676_v57 = vpop.f32.mrb[110].mxu0  ;;  %6452 = vtanh.f32 %v2688_v50 }
 0x1d6   : > { %v6429_v53 = vpop.eup %6428  ;;  %4307 = vst.msk [vmem:[%s6908_s13 + $0x190] sm:$0xf] %vm4206_vm3, %v5221_v44  ;;  %v5224_v54 = vpack.c.bf16 %v6427_v47, %v6427_v47  ;;  %v5816_v59 = vpop.f32.mrb[110].mxu1  ;;  %v2131_v62 = vadd.f32 %v7428_v15, %v5676_v57  ;;  %6454 = vtanh.f32 %v2120_v55 }
 0x1d7   : > { %v6431_v60 = vpop.eup %6430  ;;  %4447 = vst.msk [vmem:[%s6908_s13 + $0x3c0] sm:$0xf] %vm4206_vm3, %v5361_v48  ;;  %v5364_v61 = vpack.c.bf16 %v6429_v53, %v6429_v53  ;;  %v2122_v63 = vpop.f32.mrb[111].mxu0  ;;  %v2691_v3 = vadd.f32 %v7428_v15, %v5816_v59  ;;  %6456 = vtanh.f32 %v2680_v56 }
 0x1d8   : > { %v2682_v0 = vpop.f32.mrb[111].mxu1  ;;  %v6433_v1 = vpop.eup %6432  ;;  %4310 = vst.msk [vmem:[%s6908_s13 + $0x19c] sm:$0xf] %vm4206_vm3, %v5224_v54  ;;  %v5222_v2 = vpack.c.bf16 %v6431_v60, %v6431_v60  ;;  %v2123_v6 = vadd.f32 %v7428_v15, %v2122_v63  ;;  %6458 = vtanh.f32 %v2131_v62 }
 0x1d9   : > { %v6435_v4 = vpop.eup %6434  ;;  %4450 = vst.msk [vmem:[%s6908_s13 + $0x3cc] sm:$0xf] %vm4206_vm3, %v5364_v61  ;;  %v5362_v5 = vpack.c.bf16 %v6433_v1, %v6433_v1  ;;  %v2683_v9 = vadd.f32 %v7428_v15, %v2682_v0  ;;  %6460 = vtanh.f32 %v2691_v3  ;;  %v5679_v14 = vpop.f32.mrb[112].mxu0 }
 0x1da   : > { %v6437_v7 = vpop.eup %6436  ;;  %4308 = vst.msk [vmem:[%s6908_s13 + $0x194] sm:$0xf] %vm4206_vm3, %v5222_v2  ;;  %v5227_v8 = vpack.c.bf16 %v6435_v4, %v6435_v4  ;;  %v5819_v16 = vpop.f32.mrb[112].mxu1  ;;  %6462 = vtanh.f32 %v2123_v6  ;;  %v2144_v58 = vadd.f32 %v7428_v15, %v5679_v14 }
 0x1db   : > { %v6439_v10 = vpop.eup %6438  ;;  %4448 = vst.msk [vmem:[%s6908_s13 + $0x3c4] sm:$0xf] %vm4206_vm3, %v5362_v5  ;;  %v5367_v11 = vpack.c.bf16 %v6437_v7, %v6437_v7  ;;  %v2704_v19 = vadd.f32 %v7428_v15, %v5819_v16  ;;  %v2135_v20 = vpop.f32.mrb[113].mxu0  ;;  %6464 = vtanh.f32 %v2683_v9 }
 0x1dc   : > { %v6441_v12 = vpop.eup %6440  ;;  %4313 = vst.msk [vmem:[%s6908_s13 + $0x1a8] sm:$0xf] %vm4206_vm3, %v5227_v8  ;;  %v5225_v13 = vpack.c.bf16 %v6439_v10, %v6439_v10  ;;  %v2695_v21 = vpop.f32.mrb[113].mxu1  ;;  %v2136_v24 = vadd.f32 %v7428_v15, %v2135_v20  ;;  %6466 = vtanh.f32 %v2144_v58 }
 0x1dd   : > { %v6443_v17 = vpop.eup %6442  ;;  %4453 = vst.msk [vmem:[%s6908_s13 + $0x3d8] sm:$0xf] %vm4206_vm3, %v5367_v11  ;;  %v5365_v18 = vpack.c.bf16 %v6441_v12, %v6441_v12  ;;  %v2696_v25 = vadd.f32 %v7428_v15, %v2695_v21  ;;  %v5680_v26 = vpop.f32.mrb[114].mxu0  ;;  %6468 = vtanh.f32 %v2704_v19 }
 0x1de   : > { %v6445_v22 = vpop.eup %6444  ;;  %4311 = vst.msk [vmem:[%s6908_s13 + $0x1a0] sm:$0xf] %vm4206_vm3, %v5225_v13  ;;  %v5228_v23 = vpack.c.bf16 %v6443_v17, %v6443_v17  ;;  %v5820_v27 = vpop.f32.mrb[114].mxu1  ;;  %v2147_v30 = vadd.f32 %v7428_v15, %v5680_v26  ;;  %6470 = vtanh.f32 %v2136_v24 }
 0x1df   : > { %v6447_v28 = vpop.eup %6446  ;;  %4451 = vst.msk [vmem:[%s6908_s13 + $0x3d0] sm:$0xf] %vm4206_vm3, %v5365_v18  ;;  %v5368_v29 = vpack.c.bf16 %v6445_v22, %v6445_v22  ;;  %v2138_v31 = vpop.f32.mrb[115].mxu0  ;;  %v2707_v35 = vadd.f32 %v7428_v15, %v5820_v27  ;;  %6472 = vtanh.f32 %v2696_v25 }
 0x1e0   : > { %v2698_v32 = vpop.f32.mrb[115].mxu1  ;;  %v6449_v33 = vpop.eup %6448  ;;  %4314 = vst.msk [vmem:[%s6908_s13 + $0x1ac] sm:$0xf] %vm4206_vm3, %v5228_v23  ;;  %v5226_v34 = vpack.c.bf16 %v6447_v28, %v6447_v28  ;;  %v2139_v38 = vadd.f32 %v7428_v15, %v2138_v31  ;;  %6474 = vtanh.f32 %v2147_v30 }
 0x1e1   : > { %v6451_v36 = vpop.eup %6450  ;;  %4454 = vst.msk [vmem:[%s6908_s13 + $0x3dc] sm:$0xf] %vm4206_vm3, %v5368_v29  ;;  %v5366_v37 = vpack.c.bf16 %v6449_v33, %v6449_v33  ;;  %v2699_v41 = vadd.f32 %v7428_v15, %v2698_v32  ;;  %6476 = vtanh.f32 %v2707_v35  ;;  %v5683_v46 = vpop.f32.mrb[116].mxu0 }
 0x1e2   : > { %v6453_v39 = vpop.eup %6452  ;;  %4312 = vst.msk [vmem:[%s6908_s13 + $0x1a4] sm:$0xf] %vm4206_vm3, %v5226_v34  ;;  %v5231_v40 = vpack.c.bf16 %v6451_v36, %v6451_v36  ;;  %v5823_v47 = vpop.f32.mrb[116].mxu1  ;;  %6478 = vtanh.f32 %v2139_v38  ;;  %v2160_v50 = vadd.f32 %v7428_v15, %v5683_v46 }
 0x1e3   : > { %v6455_v42 = vpop.eup %6454  ;;  %4452 = vst.msk [vmem:[%s6908_s13 + $0x3d4] sm:$0xf] %vm4206_vm3, %v5366_v37  ;;  %v5371_v43 = vpack.c.bf16 %v6453_v39, %v6453_v39  ;;  %v2720_v51 = vadd.f32 %v7428_v15, %v5823_v47  ;;  %v2151_v52 = vpop.f32.mrb[117].mxu0  ;;  %6480 = vtanh.f32 %v2699_v41 }
 0x1e4   : > { %v6457_v44 = vpop.eup %6456  ;;  %4317 = vst.msk [vmem:[%s6908_s13 + $0x1b8] sm:$0xf] %vm4206_vm3, %v5231_v40  ;;  %v5229_v45 = vpack.c.bf16 %v6455_v42, %v6455_v42  ;;  %v2711_v53 = vpop.f32.mrb[117].mxu1  ;;  %v2152_v56 = vadd.f32 %v7428_v15, %v2151_v52  ;;  %6482 = vtanh.f32 %v2160_v50 }
 0x1e5   : > { %v6459_v48 = vpop.eup %6458  ;;  %4457 = vst.msk [vmem:[%s6908_s13 + $0x3e8] sm:$0xf] %vm4206_vm3, %v5371_v43  ;;  %v5369_v49 = vpack.c.bf16 %v6457_v44, %v6457_v44  ;;  %v2712_v57 = vadd.f32 %v7428_v15, %v2711_v53  ;;  %v5684_v59 = vpop.f32.mrb[118].mxu0  ;;  %6484 = vtanh.f32 %v2720_v51 }
 0x1e6   : > { %v6461_v54 = vpop.eup %6460  ;;  %4315 = vst.msk [vmem:[%s6908_s13 + $0x1b0] sm:$0xf] %vm4206_vm3, %v5229_v45  ;;  %v5232_v55 = vpack.c.bf16 %v6459_v48, %v6459_v48  ;;  %v5824_v60 = vpop.f32.mrb[118].mxu1  ;;  %v2163_v63 = vadd.f32 %v7428_v15, %v5684_v59  ;;  %6486 = vtanh.f32 %v2152_v56 }
 0x1e7   : > { %v6463_v61 = vpop.eup %6462  ;;  %4455 = vst.msk [vmem:[%s6908_s13 + $0x3e0] sm:$0xf] %vm4206_vm3, %v5369_v49  ;;  %v5372_v62 = vpack.c.bf16 %v6461_v54, %v6461_v54  ;;  %v2154_v0 = vpop.f32.mrb[119].mxu0  ;;  %v2723_v4 = vadd.f32 %v7428_v15, %v5824_v60  ;;  %6488 = vtanh.f32 %v2712_v57 }
 0x1e8   : > { %v2714_v1 = vpop.f32.mrb[119].mxu1  ;;  %v6465_v2 = vpop.eup %6464  ;;  %4318 = vst.msk [vmem:[%s6908_s13 + $0x1bc] sm:$0xf] %vm4206_vm3, %v5232_v55  ;;  %v5230_v3 = vpack.c.bf16 %v6463_v61, %v6463_v61  ;;  %v2155_v7 = vadd.f32 %v7428_v15, %v2154_v0  ;;  %6490 = vtanh.f32 %v2163_v63 }
 0x1e9   : > { %v6467_v5 = vpop.eup %6466  ;;  %4458 = vst.msk [vmem:[%s6908_s13 + $0x3ec] sm:$0xf] %vm4206_vm3, %v5372_v62  ;;  %v5370_v6 = vpack.c.bf16 %v6465_v2, %v6465_v2  ;;  %v2715_v10 = vadd.f32 %v7428_v15, %v2714_v1  ;;  %6492 = vtanh.f32 %v2723_v4  ;;  %v5687_v16 = vpop.f32.mrb[120].mxu0 }
 0x1ea   : > { %v6469_v8 = vpop.eup %6468  ;;  %4316 = vst.msk [vmem:[%s6908_s13 + $0x1b4] sm:$0xf] %vm4206_vm3, %v5230_v3  ;;  %v5235_v9 = vpack.c.bf16 %v6467_v5, %v6467_v5  ;;  %v5827_v17 = vpop.f32.mrb[120].mxu1  ;;  %6494 = vtanh.f32 %v2155_v7  ;;  %v2176_v19 = vadd.f32 %v7428_v15, %v5687_v16 }
 0x1eb   : > { %v6471_v11 = vpop.eup %6470  ;;  %4456 = vst.msk [vmem:[%s6908_s13 + $0x3e4] sm:$0xf] %vm4206_vm3, %v5370_v6  ;;  %v5375_v12 = vpack.c.bf16 %v6469_v8, %v6469_v8  ;;  %v2736_v20 = vadd.f32 %v7428_v15, %v5827_v17  ;;  %v2167_v21 = vpop.f32.mrb[121].mxu0  ;;  %6496 = vtanh.f32 %v2715_v10 }
 0x1ec   : > { %v6473_v13 = vpop.eup %6472  ;;  %4321 = vst.msk [vmem:[%s6908_s13 + $0x1c8] sm:$0xf] %vm4206_vm3, %v5235_v9  ;;  %v5233_v14 = vpack.c.bf16 %v6471_v11, %v6471_v11  ;;  %v2727_v22 = vpop.f32.mrb[121].mxu1  ;;  %v2168_v25 = vadd.f32 %v7428_v15, %v2167_v21  ;;  %6498 = vtanh.f32 %v2176_v19  ;;  %v7690_v11 = vld [vmem:[%s7804_s2] ss:$0 sm:$0xff] }
 0x1ed   : > { %v6475_v18 = vpop.eup %6474  ;;  %4461 = vst.msk [vmem:[%s6908_s13 + $0x3f8] sm:$0xf] %vm4206_vm3, %v5375_v12  ;;  %v5373_v58 = vpack.c.bf16 %v6473_v13, %v6473_v13  ;;  %v2728_v26 = vadd.f32 %v7428_v15, %v2727_v22  ;;  %v5688_v27 = vpop.f32.mrb[122].mxu0  ;;  %6500 = vtanh.f32 %v2736_v20 }
 0x1ee   : > { %v6477_v23 = vpop.eup %6476  ;;  %4319 = vst.msk [vmem:[%s6908_s13 + $0x1c0] sm:$0xf] %vm4206_vm3, %v5233_v14  ;;  %v5236_v24 = vpack.c.bf16 %v6475_v18, %v6475_v18  ;;  %v5828_v28 = vpop.f32.mrb[122].mxu1  ;;  %v2179_v31 = vadd.f32 %v7428_v15, %v5688_v27  ;;  %6502 = vtanh.f32 %v2168_v25 }
 0x1ef   : > { %v6479_v29 = vpop.eup %6478  ;;  %4459 = vst.msk [vmem:[%s6908_s13 + $0x3f0] sm:$0xf] %vm4206_vm3, %v5373_v58  ;;  %v5376_v30 = vpack.c.bf16 %v6477_v23, %v6477_v23  ;;  %v2170_v32 = vpop.f32.mrb[123].mxu0  ;;  %v2739_v36 = vadd.f32 %v7428_v15, %v5828_v28  ;;  %6504 = vtanh.f32 %v2728_v26 }
 0x1f0   : > { %v2730_v33 = vpop.f32.mrb[123].mxu1  ;;  %v6481_v34 = vpop.eup %6480  ;;  %4322 = vst.msk [vmem:[%s6908_s13 + $0x1cc] sm:$0xf] %vm4206_vm3, %v5236_v24  ;;  %v5234_v35 = vpack.c.bf16 %v6479_v29, %v6479_v29  ;;  %v2171_v39 = vadd.f32 %v7428_v15, %v2170_v32  ;;  %6506 = vtanh.f32 %v2179_v31 }
 0x1f1   : > { %v6483_v37 = vpop.eup %6482  ;;  %4462 = vst.msk [vmem:[%s6908_s13 + $0x3fc] sm:$0xf] %vm4206_vm3, %v5376_v30  ;;  %v5374_v38 = vpack.c.bf16 %v6481_v34, %v6481_v34  ;;  %v2731_v42 = vadd.f32 %v7428_v15, %v2730_v33  ;;  %6508 = vtanh.f32 %v2739_v36  ;;  %v5691_v47 = vpop.f32.mrb[124].mxu0 }
 0x1f2   : > { %v6485_v40 = vpop.eup %6484  ;;  %4320 = vst.msk [vmem:[%s6908_s13 + $0x1c4] sm:$0xf] %vm4206_vm3, %v5234_v35  ;;  %v5239_v41 = vpack.c.bf16 %v6483_v37, %v6483_v37  ;;  %v5831_v48 = vpop.f32.mrb[124].mxu1  ;;  %6510 = vtanh.f32 %v2171_v39  ;;  %v2192_v51 = vadd.f32 %v7428_v15, %v5691_v47 }
 0x1f3   : > { %v6487_v43 = vpop.eup %6486  ;;  %4460 = vst.msk [vmem:[%s6908_s13 + $0x3f4] sm:$0xf] %vm4206_vm3, %v5374_v38  ;;  %v5379_v44 = vpack.c.bf16 %v6485_v40, %v6485_v40  ;;  %v2752_v52 = vadd.f32 %v7428_v15, %v5831_v48  ;;  %v2183_v53 = vpop.f32.mrb[125].mxu0  ;;  %6512 = vtanh.f32 %v2731_v42 }
 0x1f4   : > { %v6489_v45 = vpop.eup %6488  ;;  %4325 = vst.msk [vmem:[%s6908_s13 + $0x1d8] sm:$0xf] %vm4206_vm3, %v5239_v41  ;;  %v5237_v46 = vpack.c.bf16 %v6487_v43, %v6487_v43  ;;  %v2743_v54 = vpop.f32.mrb[125].mxu1  ;;  %v2184_v57 = vadd.f32 %v7428_v15, %v2183_v53  ;;  %6514 = vtanh.f32 %v2192_v51 }
 0x1f5   : > { %v6491_v49 = vpop.eup %6490  ;;  %4465 = vst.msk [vmem:[%s6908_s13 + $0x408] sm:$0xf] %vm4206_vm3, %v5379_v44  ;;  %v5377_v50 = vpack.c.bf16 %v6489_v45, %v6489_v45  ;;  %v2744_v59 = vadd.f32 %v7428_v15, %v2743_v54  ;;  %v5692_v60 = vpop.f32.mrb[126].mxu0  ;;  %6516 = vtanh.f32 %v2752_v52 }
 0x1f6   : > { %v6493_v55 = vpop.eup %6492  ;;  %4323 = vst.msk [vmem:[%s6908_s13 + $0x1d0] sm:$0xf] %vm4206_vm3, %v5237_v46  ;;  %v5240_v56 = vpack.c.bf16 %v6491_v49, %v6491_v49  ;;  %v5832_v61 = vpop.f32.mrb[126].mxu1  ;;  %v2195_v0 = vadd.f32 %v7428_v15, %v5692_v60  ;;  %6518 = vtanh.f32 %v2184_v57 }
 0x1f7   : > { %v6495_v62 = vpop.eup %6494  ;;  %4463 = vst.msk [vmem:[%s6908_s13 + $0x400] sm:$0xf] %vm4206_vm3, %v5377_v50  ;;  %v5380_v63 = vpack.c.bf16 %v6493_v55, %v6493_v55  ;;  %v2186_v1 = vpop.f32.mrb[127].mxu0  ;;  %v2755_v5 = vadd.f32 %v7428_v15, %v5832_v61  ;;  %6520 = vtanh.f32 %v2744_v59 }
 0x1f8   : > { %v2746_v2 = vpop.f32.mrb[127].mxu1  ;;  %v6497_v3 = vpop.eup %6496  ;;  %4326 = vst.msk [vmem:[%s6908_s13 + $0x1dc] sm:$0xf] %vm4206_vm3, %v5240_v56  ;;  %v5238_v4 = vpack.c.bf16 %v6495_v62, %v6495_v62  ;;  %v2187_v8 = vadd.f32 %v7428_v15, %v2186_v1  ;;  %6522 = vtanh.f32 %v2195_v0 }
 0x1f9   : > { %v6499_v6 = vpop.eup %6498  ;;  %4466 = vst.msk [vmem:[%s6908_s13 + $0x40c] sm:$0xf] %vm4206_vm3, %v5380_v63  ;;  %v5378_v7 = vpack.c.bf16 %v6497_v3, %v6497_v3  ;;  %v2747_v12 = vadd.f32 %v7690_v11, %v2746_v2  ;;  %6524 = vtanh.f32 %v2755_v5  ;;  %v5695_v17 = vpop.f32.mrb[128].mxu0 }
 0x1fa   : > { %v6501_v9 = vpop.eup %6500  ;;  %4324 = vst.msk [vmem:[%s6908_s13 + $0x1d4] sm:$0xf] %vm4206_vm3, %v5238_v4  ;;  %v5243_v10 = vpack.c.bf16 %v6499_v6, %v6499_v6  ;;  %v5835_v18 = vpop.f32.mrb[128].mxu1  ;;  %6526 = vtanh.f32 %v2187_v8  ;;  %v2208_v20 = vadd.f32 %v7690_v11, %v5695_v17 }
 0x1fb   : > { %v6503_v13 = vpop.eup %6502  ;;  %4464 = vst.msk [vmem:[%s6908_s13 + $0x404] sm:$0xf] %vm4206_vm3, %v5378_v7  ;;  %v5383_v14 = vpack.c.bf16 %v6501_v9, %v6501_v9  ;;  %v2768_v21 = vadd.f32 %v7690_v11, %v5835_v18  ;;  %v2199_v22 = vpop.f32.mrb[129].mxu0  ;;  %6528 = vtanh.f32 %v2747_v12 }
 0x1fc   : > { %v6505_v15 = vpop.eup %6504  ;;  %4329 = vst.msk [vmem:[%s6908_s13 + $0x1e8] sm:$0xf] %vm4206_vm3, %v5243_v10  ;;  %v5241_v16 = vpack.c.bf16 %v6503_v13, %v6503_v13  ;;  %v2759_v23 = vpop.f32.mrb[129].mxu1  ;;  %v2200_v26 = vadd.f32 %v7690_v11, %v2199_v22  ;;  %6530 = vtanh.f32 %v2208_v20 }
 0x1fd   : > { %v6507_v58 = vpop.eup %6506  ;;  %4469 = vst.msk [vmem:[%s6908_s13 + $0x418] sm:$0xf] %vm4206_vm3, %v5383_v14  ;;  %v5381_v19 = vpack.c.bf16 %v6505_v15, %v6505_v15  ;;  %v2760_v27 = vadd.f32 %v7690_v11, %v2759_v23  ;;  %v5696_v28 = vpop.f32.mrb[130].mxu0  ;;  %6532 = vtanh.f32 %v2768_v21 }
 0x1fe   : > { %v6509_v24 = vpop.eup %6508  ;;  %4327 = vst.msk [vmem:[%s6908_s13 + $0x1e0] sm:$0xf] %vm4206_vm3, %v5241_v16  ;;  %v5244_v25 = vpack.c.bf16 %v6507_v58, %v6507_v58  ;;  %v5836_v29 = vpop.f32.mrb[130].mxu1  ;;  %v2211_v32 = vadd.f32 %v7690_v11, %v5696_v28  ;;  %6534 = vtanh.f32 %v2200_v26 }
 0x1ff   : > { %v6511_v30 = vpop.eup %6510  ;;  %4467 = vst.msk [vmem:[%s6908_s13 + $0x410] sm:$0xf] %vm4206_vm3, %v5381_v19  ;;  %v5384_v31 = vpack.c.bf16 %v6509_v24, %v6509_v24  ;;  %v2202_v33 = vpop.f32.mrb[131].mxu0  ;;  %v2771_v37 = vadd.f32 %v7690_v11, %v5836_v29  ;;  %6536 = vtanh.f32 %v2760_v27 }
 0x200   : > { %v2762_v34 = vpop.f32.mrb[131].mxu1  ;;  %v6513_v35 = vpop.eup %6512  ;;  %4330 = vst.msk [vmem:[%s6908_s13 + $0x1ec] sm:$0xf] %vm4206_vm3, %v5244_v25  ;;  %v5242_v36 = vpack.c.bf16 %v6511_v30, %v6511_v30  ;;  %v2203_v40 = vadd.f32 %v7690_v11, %v2202_v33  ;;  %6538 = vtanh.f32 %v2211_v32 }
 0x201   : > { %v6515_v38 = vpop.eup %6514  ;;  %4470 = vst.msk [vmem:[%s6908_s13 + $0x41c] sm:$0xf] %vm4206_vm3, %v5384_v31  ;;  %v5382_v39 = vpack.c.bf16 %v6513_v35, %v6513_v35  ;;  %v2763_v43 = vadd.f32 %v7690_v11, %v2762_v34  ;;  %6540 = vtanh.f32 %v2771_v37  ;;  %v5699_v48 = vpop.f32.mrb[132].mxu0 }
 0x202   : > { %v6517_v41 = vpop.eup %6516  ;;  %4328 = vst.msk [vmem:[%s6908_s13 + $0x1e4] sm:$0xf] %vm4206_vm3, %v5242_v36  ;;  %v5247_v42 = vpack.c.bf16 %v6515_v38, %v6515_v38  ;;  %v5839_v49 = vpop.f32.mrb[132].mxu1  ;;  %6542 = vtanh.f32 %v2203_v40  ;;  %v2224_v52 = vadd.f32 %v7690_v11, %v5699_v48 }
 0x203   : > { %v6519_v44 = vpop.eup %6518  ;;  %4468 = vst.msk [vmem:[%s6908_s13 + $0x414] sm:$0xf] %vm4206_vm3, %v5382_v39  ;;  %v5387_v45 = vpack.c.bf16 %v6517_v41, %v6517_v41  ;;  %v2784_v53 = vadd.f32 %v7690_v11, %v5839_v49  ;;  %v2215_v54 = vpop.f32.mrb[133].mxu0  ;;  %6544 = vtanh.f32 %v2763_v43 }
 0x204   : > { %v6521_v46 = vpop.eup %6520  ;;  %4333 = vst.msk [vmem:[%s6908_s13 + $0x1f8] sm:$0xf] %vm4206_vm3, %v5247_v42  ;;  %v5245_v47 = vpack.c.bf16 %v6519_v44, %v6519_v44  ;;  %v2775_v55 = vpop.f32.mrb[133].mxu1  ;;  %v2216_v59 = vadd.f32 %v7690_v11, %v2215_v54  ;;  %6546 = vtanh.f32 %v2224_v52 }
 0x205   : > { %v6523_v50 = vpop.eup %6522  ;;  %4473 = vst.msk [vmem:[%s6908_s13 + $0x428] sm:$0xf] %vm4206_vm3, %v5387_v45  ;;  %v5385_v51 = vpack.c.bf16 %v6521_v46, %v6521_v46  ;;  %v2776_v60 = vadd.f32 %v7690_v11, %v2775_v55  ;;  %v5700_v61 = vpop.f32.mrb[134].mxu0  ;;  %6548 = vtanh.f32 %v2784_v53 }
 0x206   : > { %v6525_v56 = vpop.eup %6524  ;;  %4331 = vst.msk [vmem:[%s6908_s13 + $0x1f0] sm:$0xf] %vm4206_vm3, %v5245_v47  ;;  %v5248_v57 = vpack.c.bf16 %v6523_v50, %v6523_v50  ;;  %v5840_v62 = vpop.f32.mrb[134].mxu1  ;;  %v2227_v1 = vadd.f32 %v7690_v11, %v5700_v61  ;;  %6550 = vtanh.f32 %v2216_v59 }
 0x207   : > { %v6527_v63 = vpop.eup %6526  ;;  %4471 = vst.msk [vmem:[%s6908_s13 + $0x420] sm:$0xf] %vm4206_vm3, %v5385_v51  ;;  %v5388_v0 = vpack.c.bf16 %v6525_v56, %v6525_v56  ;;  %v2218_v2 = vpop.f32.mrb[135].mxu0  ;;  %v2787_v6 = vadd.f32 %v7690_v11, %v5840_v62  ;;  %6552 = vtanh.f32 %v2776_v60 }
 0x208   : > { %v2778_v3 = vpop.f32.mrb[135].mxu1  ;;  %v6529_v4 = vpop.eup %6528  ;;  %4334 = vst.msk [vmem:[%s6908_s13 + $0x1fc] sm:$0xf] %vm4206_vm3, %v5248_v57  ;;  %v5246_v5 = vpack.c.bf16 %v6527_v63, %v6527_v63  ;;  %v2219_v9 = vadd.f32 %v7690_v11, %v2218_v2  ;;  %6554 = vtanh.f32 %v2227_v1 }
 0x209   : > { %v6531_v7 = vpop.eup %6530  ;;  %4474 = vst.msk [vmem:[%s6908_s13 + $0x42c] sm:$0xf] %vm4206_vm3, %v5388_v0  ;;  %v5386_v8 = vpack.c.bf16 %v6529_v4, %v6529_v4  ;;  %v2779_v13 = vadd.f32 %v7690_v11, %v2778_v3  ;;  %6556 = vtanh.f32 %v2787_v6  ;;  %v5703_v18 = vpop.f32.mrb[136].mxu0 }
 0x20a   : > { %v6533_v10 = vpop.eup %6532  ;;  %4332 = vst.msk [vmem:[%s6908_s13 + $0x1f4] sm:$0xf] %vm4206_vm3, %v5246_v5  ;;  %v5251_v12 = vpack.c.bf16 %v6531_v7, %v6531_v7  ;;  %v5843_v58 = vpop.f32.mrb[136].mxu1  ;;  %6558 = vtanh.f32 %v2219_v9  ;;  %v2240_v21 = vadd.f32 %v7690_v11, %v5703_v18 }
 0x20b   : > { %v6535_v14 = vpop.eup %6534  ;;  %4472 = vst.msk [vmem:[%s6908_s13 + $0x424] sm:$0xf] %vm4206_vm3, %v5386_v8  ;;  %v5391_v15 = vpack.c.bf16 %v6533_v10, %v6533_v10  ;;  %v2800_v22 = vadd.f32 %v7690_v11, %v5843_v58  ;;  %v2231_v23 = vpop.f32.mrb[137].mxu0  ;;  %6560 = vtanh.f32 %v2779_v13 }
 0x20c   : > { %v6537_v16 = vpop.eup %6536  ;;  %4337 = vst.msk [vmem:[%s6908_s13 + $0x208] sm:$0xf] %vm4206_vm3, %v5251_v12  ;;  %v5249_v17 = vpack.c.bf16 %v6535_v14, %v6535_v14  ;;  %v2791_v24 = vpop.f32.mrb[137].mxu1  ;;  %v2232_v27 = vadd.f32 %v7690_v11, %v2231_v23  ;;  %6562 = vtanh.f32 %v2240_v21 }
 0x20d   : > { %v6539_v19 = vpop.eup %6538  ;;  %4477 = vst.msk [vmem:[%s6908_s13 + $0x438] sm:$0xf] %vm4206_vm3, %v5391_v15  ;;  %v5389_v20 = vpack.c.bf16 %v6537_v16, %v6537_v16  ;;  %v2792_v28 = vadd.f32 %v7690_v11, %v2791_v24  ;;  %v5704_v29 = vpop.f32.mrb[138].mxu0  ;;  %6564 = vtanh.f32 %v2800_v22 }
 0x20e   : > { %v6541_v25 = vpop.eup %6540  ;;  %4335 = vst.msk [vmem:[%s6908_s13 + $0x200] sm:$0xf] %vm4206_vm3, %v5249_v17  ;;  %v5252_v26 = vpack.c.bf16 %v6539_v19, %v6539_v19  ;;  %v5844_v30 = vpop.f32.mrb[138].mxu1  ;;  %v2243_v33 = vadd.f32 %v7690_v11, %v5704_v29  ;;  %6566 = vtanh.f32 %v2232_v27 }
 0x20f   : > { %v6543_v31 = vpop.eup %6542  ;;  %4475 = vst.msk [vmem:[%s6908_s13 + $0x430] sm:$0xf] %vm4206_vm3, %v5389_v20  ;;  %v5392_v32 = vpack.c.bf16 %v6541_v25, %v6541_v25  ;;  %v2234_v34 = vpop.f32.mrb[139].mxu0  ;;  %v2803_v38 = vadd.f32 %v7690_v11, %v5844_v30  ;;  %6568 = vtanh.f32 %v2792_v28 }
 0x210   : > { %v2794_v35 = vpop.f32.mrb[139].mxu1  ;;  %v6545_v36 = vpop.eup %6544  ;;  %4338 = vst.msk [vmem:[%s6908_s13 + $0x20c] sm:$0xf] %vm4206_vm3, %v5252_v26  ;;  %v5250_v37 = vpack.c.bf16 %v6543_v31, %v6543_v31  ;;  %v2235_v41 = vadd.f32 %v7690_v11, %v2234_v34  ;;  %6570 = vtanh.f32 %v2243_v33 }
 0x211   : > { %v6547_v39 = vpop.eup %6546  ;;  %4478 = vst.msk [vmem:[%s6908_s13 + $0x43c] sm:$0xf] %vm4206_vm3, %v5392_v32  ;;  %v5390_v40 = vpack.c.bf16 %v6545_v36, %v6545_v36  ;;  %v2795_v44 = vadd.f32 %v7690_v11, %v2794_v35  ;;  %6572 = vtanh.f32 %v2803_v38 }
 0x212   : > { %v6549_v42 = vpop.eup %6548  ;;  %4336 = vst.msk [vmem:[%s6908_s13 + $0x204] sm:$0xf] %vm4206_vm3, %v5250_v37  ;;  %v5255_v43 = vpack.c.bf16 %v6547_v39, %v6547_v39  ;;  %6574 = vtanh.f32 %v2235_v41 }
 0x213   : > { %v6551_v45 = vpop.eup %6550  ;;  %4476 = vst.msk [vmem:[%s6908_s13 + $0x434] sm:$0xf] %vm4206_vm3, %v5390_v40  ;;  %v5395_v46 = vpack.c.bf16 %v6549_v42, %v6549_v42  ;;  %6576 = vtanh.f32 %v2795_v44 }
 0x214   : > { %v6553_v47 = vpop.eup %6552  ;;  %4341 = vst.msk [vmem:[%s6908_s13 + $0x218] sm:$0xf] %vm4206_vm3, %v5255_v43  ;;  %v5253_v48 = vpack.c.bf16 %v6551_v45, %v6551_v45 }
 0x215   : > { %v6555_v49 = vpop.eup %6554  ;;  %4481 = vst.msk [vmem:[%s6908_s13 + $0x448] sm:$0xf] %vm4206_vm3, %v5395_v46  ;;  %v5393_v50 = vpack.c.bf16 %v6553_v47, %v6553_v47 }
 0x216   : > { %v6557_v11 = vpop.eup %6556  ;;  %4339 = vst.msk [vmem:[%s6908_s13 + $0x210] sm:$0xf] %vm4206_vm3, %v5253_v48  ;;  %v5256_v51 = vpack.c.bf16 %v6555_v49, %v6555_v49 }
 0x217   : > { %v6559_v52 = vpop.eup %6558  ;;  %4479 = vst.msk [vmem:[%s6908_s13 + $0x440] sm:$0xf] %vm4206_vm3, %v5393_v50  ;;  %v5396_v53 = vpack.c.bf16 %v6557_v11, %v6557_v11 }
 0x218   : > { %v6561_v54 = vpop.eup %6560  ;;  %4342 = vst.msk [vmem:[%s6908_s13 + $0x21c] sm:$0xf] %vm4206_vm3, %v5256_v51  ;;  %v5254_v55 = vpack.c.bf16 %v6559_v52, %v6559_v52 }
 0x219   : > { %v6563_v56 = vpop.eup %6562  ;;  %4482 = vst.msk [vmem:[%s6908_s13 + $0x44c] sm:$0xf] %vm4206_vm3, %v5396_v53  ;;  %v5394_v57 = vpack.c.bf16 %v6561_v54, %v6561_v54 }
 0x21a   : > { %v6565_v59 = vpop.eup %6564  ;;  %4340 = vst.msk [vmem:[%s6908_s13 + $0x214] sm:$0xf] %vm4206_vm3, %v5254_v55  ;;  %v5259_v60 = vpack.c.bf16 %v6563_v56, %v6563_v56 }
 0x21b   : > { %v6567_v61 = vpop.eup %6566  ;;  %4480 = vst.msk [vmem:[%s6908_s13 + $0x444] sm:$0xf] %vm4206_vm3, %v5394_v57  ;;  %v5399_v62 = vpack.c.bf16 %v6565_v59, %v6565_v59 }
 0x21c   : > { %v6569_v63 = vpop.eup %6568  ;;  %4345 = vst.msk [vmem:[%s6908_s13 + $0x228] sm:$0xf] %vm4206_vm3, %v5259_v60  ;;  %v5257_v0 = vpack.c.bf16 %v6567_v61, %v6567_v61 }
 0x21d   : > { %v6571_v1 = vpop.eup %6570  ;;  %4485 = vst.msk [vmem:[%s6908_s13 + $0x458] sm:$0xf] %vm4206_vm3, %v5399_v62  ;;  %v5397_v2 = vpack.c.bf16 %v6569_v63, %v6569_v63 }
 0x21e   : > { %v6573_v3 = vpop.eup %6572  ;;  %4343 = vst.msk [vmem:[%s6908_s13 + $0x220] sm:$0xf] %vm4206_vm3, %v5257_v0  ;;  %v5260_v4 = vpack.c.bf16 %v6571_v1, %v6571_v1 }
 0x21f   : > { %v6575_v5 = vpop.eup %6574  ;;  %4483 = vst.msk [vmem:[%s6908_s13 + $0x450] sm:$0xf] %vm4206_vm3, %v5397_v2  ;;  %v5400_v6 = vpack.c.bf16 %v6573_v3, %v6573_v3 }
 0x220   : > { %v6577_v7 = vpop.eup %6576  ;;  %4346 = vst.msk [vmem:[%s6908_s13 + $0x22c] sm:$0xf] %vm4206_vm3, %v5260_v4  ;;  %v5258_v8 = vpack.c.bf16 %v6575_v5, %v6575_v5 }
 0x221   : > { %4486 = vst.msk [vmem:[%s6908_s13 + $0x45c] sm:$0xf] %vm4206_vm3, %v5400_v6  ;;  %v5398_v9 = vpack.c.bf16 %v6577_v7, %v6577_v7 }
 0x222   : > { %4344 = vst.msk [vmem:[%s6908_s13 + $0x224] sm:$0xf] %vm4206_vm3, %v5258_v8 }
 0x223   : > { %4484 = vst.msk [vmem:[%s6908_s13 + $0x454] sm:$0xf] %vm4206_vm3, %v5398_v9 }
 0x224 PF: > { %s13_s12 = sadd.s32 1, %s6587_s12  }
 0x225   : > { %p10_p4 = scmp.ge.s32.totalorder %s13_s12, 4  }
 0x227   :  { %12 = sbr.rel (!%p10_p4) target bundleno = 1 (0x1), region = 62 }

// kernel: forward.6
= control target key start
LH: loop header
LB: loop body
LE: loop exit
PB: predicated region body
PF: predicated region fallthrough
CT: control target
= control target key end

     0   :  { %s4307_s12 = smov 0   ;;  %s5086_s0 = inlined_call_operand.vmem [shape: bf16[1536,400], index: 0, kind: input, shape index: {}]   ;;  %s5087_s1 = inlined_call_operand.vmem [shape: bf16[400,32], index: 1, kind: input, shape index: {}]   ;;  %s5088_s2 = inlined_call_operand.vmem [shape: f32[1,32], index: 2, kind: input, shape index: {}]   ;;  %s5089_s3 = inlined_call_operand.vmem [shape: bf16[1536,32], index: 3, kind: output, shape index: {}]  }
   0x1 LB: > { %s3101_s13 = sadd.s32 4294967295, %s4284_s12   ;;  %p3105_p0 = scmp.ge.s32.totalorder %s4284_s12, 1  ;;  %s4284_s12 = sphi %s4307_s12, %s13_s12  }
   0x2   : > { %p139_p1 = scmp.lt.s32.totalorder %s4284_s12, 3 }
   0x4   : > { %p140_p2 = pnand %p3105_p0, %p139_p1 }
   0x5   : > { %v3771_v0 = vld [vmem:[%s5087_s1] sm:$0xff] (!%p140_p2)   ;;  %v4286_v1 = vmov (!%p140_p2), 0   ;;  %v3772_v2 = vld [vmem:[%s5087_s1 + $0x8] sm:$0xff] (!%p140_p2)   ;;  %v3773_v3 = vld [vmem:[%s5087_s1 + $0x10] sm:$0xff] (!%p140_p2)   ;;  %s164_s22 = smul.u32 (!%p140_p2), 96, %s3101_s13  ;;  %vm1489_vm0 = vcmask (!%p140_p2), 130048  }
   0x6   : > { %143 = sbr.rel (%p140_p2) target bundleno = 678 (0x2a6), region = 32  ;;  %1634 = vmatprep.subr.bf16.mxu1 (!%p140_p2), %v4286_v1  ;;  %2051 = vmatprep.subr.bf16.mxu0 (!%p140_p2), %v4286_v1  ;;  %v3778_v4 = vld [vmem:[%s5087_s1 + $0x80] sm:$0xff] (!%p140_p2)   ;;  %v3780_v5 = vld [vmem:[%s5087_s1 + $0x88] sm:$0xff] (!%p140_p2)   ;;  %v3774_v6 = vld [vmem:[%s5087_s1 + $0x18] sm:$0xff] (!%p140_p2)   ;;  %vm2948_vm1 = vcmask (!%p140_p2), 257024  }
   0x7   : > { %1635 = vmatpush1.bf16.msra.mxu1 (!%p140_p2), %v3771_v0  ;;  %2052 = vmatpush1.bf16.msra.mxu0 (!%p140_p2), %v3778_v4  ;;  %p165_p3 = scmp.lt.s32.totalorder (!%p140_p2), %s164_s22, 191  ;;  %v3782_v7 = vld [vmem:[%s5087_s1 + $0x90] sm:$0xff] (!%p140_p2)   ;;  %v3775_v8 = vld [vmem:[%s5087_s1 + $0x20] sm:$0xff] (!%p140_p2)   ;;  %v3784_v9 = vld [vmem:[%s5087_s1 + $0x98] sm:$0xff] (!%p140_p2)  }
   0x8   : > { %1636 = vmatprep.subr.bf16.mxu1 (!%p140_p2), %v4286_v1  ;;  %2053 = vmatprep.subr.bf16.mxu0 (!%p140_p2), %v4286_v1  ;;  %v3776_v10 = vld [vmem:[%s5087_s1 + $0x28] sm:$0xff] (!%p140_p2)   ;;  %v3786_v11 = vld [vmem:[%s5087_s1 + $0xa0] sm:$0xff] (!%p140_p2)   ;;  %v3777_v12 = vld [vmem:[%s5087_s1 + $0x30] sm:$0xff] (!%p140_p2)  }
   0x9   : > { %v3779_v13 = vld [vmem:[%s5087_s1 + $0x38] sm:$0xff] (!%p140_p2)   ;;  %v3788_v14 = vld [vmem:[%s5087_s1 + $0xa8] sm:$0xff] (!%p140_p2)   ;;  %v3790_v17 = vld [vmem:[%s5087_s1 + $0xb0] sm:$0xff] (!%p140_p2)  }
   0xa   : > { %v3781_v18 = vld [vmem:[%s5087_s1 + $0x40] sm:$0xff] (!%p140_p2)   ;;  %v3792_v19 = vld [vmem:[%s5087_s1 + $0xb8] sm:$0xff] (!%p140_p2)   ;;  %v3783_v20 = vld [vmem:[%s5087_s1 + $0x48] sm:$0xff] (!%p140_p2)  }
   0xb   : > { %1637 = vmatpush1.bf16.msra.mxu1 (!%p140_p2), %v3772_v2  ;;  %2054 = vmatpush1.bf16.msra.mxu0 (!%p140_p2), %v3780_v5  ;;  %v3794_v21 = vld [vmem:[%s5087_s1 + $0xc0] sm:$0xff] (!%p140_p2)   ;;  %v3785_v22 = vld [vmem:[%s5087_s1 + $0x50] sm:$0xff] (!%p140_p2)   ;;  %v3787_v25 = vld [vmem:[%s5087_s1 + $0x58] sm:$0xff] (!%p140_p2)  }
   0xc   : > { %1638 = vmatprep.subr.bf16.mxu1 (!%p140_p2), %v4286_v1  ;;  %2055 = vmatprep.subr.bf16.mxu0 (!%p140_p2), %v4286_v1  ;;  %v3789_v26 = vld [vmem:[%s5087_s1 + $0x60] sm:$0xff] (!%p140_p2)   ;;  %v3791_v29 = vld [vmem:[%s5087_s1 + $0x68] sm:$0xff] (!%p140_p2)   ;;  %v3793_v30 = vld [vmem:[%s5087_s1 + $0x70] sm:$0xff] (!%p140_p2)  }
   0xd   : > { %s5091_s22 = smov (!%p165_p3, %s164_s22), 191  ;;  %v3795_v33 = vld [vmem:[%s5087_s1 + $0x78] sm:$0xff]  }
   0xe   : > { %s3473_s8 = sshll.u32 %s5091_s22, 4  ;;  %s3108_s21 = sshll.u32 %s5091_s22, 2 }
   0xf   : > { %1639 = vmatpush1.bf16.msra.mxu1 %v3773_v3  ;;  %2056 = vmatpush1.bf16.msra.mxu0 %v3782_v7  ;;  %s4369_s16 = scalar_lea.vmem %s5086_s0, %s3473_s8  ;;  %s4604_s25 = scalar_lea.vmem %s5089_s3, %s3108_s21 }
  0x10   : > { %1640 = vmatprep.subr.bf16.mxu1 %v4286_v1  ;;  %2057 = vmatprep.subr.bf16.mxu0 %v4286_v1  ;;  %v3798_v15 = vld [vmem:[%s4369_s16 + $0xc] ss:$16 sps:$4 sm:$0xff]   ;;  %v3801_v16 = vld [vmem:[%s4369_s16 + $0x4] ss:$16 sps:$4 sm:$0xff]   ;;  %v3796_v23 = vld [vmem:[%s4369_s16 + $0x8] ss:$16 sps:$4 sm:$0xff]  }
  0x11   : > { %3327 = vmatprep.mubr.msk.bf16.mxu0 %vm1489_vm0, %v3798_v15  ;;  %1666 = vmatprep.mubr.bf16.mxu1 %v3801_v16  ;;  %v3802_v24 = vld [vmem:[%s4369_s16 + $0x2c] ss:$16 sps:$4 sm:$0xff]   ;;  %v3806_v27 = vld [vmem:[%s4369_s16 + $0x28] ss:$16 sps:$4 sm:$0xff]   ;;  %v3799_v34 = vld [vmem:[%s4369_s16] ss:$16 sps:$4 sm:$0xff]  }
  0x12   : > { %v3808_v28 = vld [vmem:[%s4369_s16 + $0x4c] ss:$16 sps:$4 sm:$0xff]   ;;  %v3812_v31 = vld [vmem:[%s4369_s16 + $0x48] ss:$16 sps:$4 sm:$0xff]   ;;  %v3804_v35 = vld [vmem:[%s4369_s16 + $0x24] ss:$16 sps:$4 sm:$0xff]  }
  0x13   : > { %1641 = vmatpush1.bf16.msra.mxu1 %v3774_v6  ;;  %2058 = vmatpush1.bf16.msra.mxu0 %v3784_v9  ;;  %v3814_v32 = vld [vmem:[%s4369_s16 + $0x6c] ss:$16 sps:$4 sm:$0xff]   ;;  %v3818_v36 = vld [vmem:[%s4369_s16 + $0x68] ss:$16 sps:$4 sm:$0xff]   ;;  %v3807_v38 = vld [vmem:[%s4369_s16 + $0x20] ss:$16 sps:$4 sm:$0xff]  }
  0x14   : > { %1642 = vmatprep.subr.bf16.mxu1 %v4286_v1  ;;  %2059 = vmatprep.subr.bf16.mxu0 %v4286_v1  ;;  %v3820_v37 = vld [vmem:[%s4369_s16 + $0x8c] ss:$16 sps:$4 sm:$0xff]   ;;  %v3810_v39 = vld [vmem:[%s4369_s16 + $0x44] ss:$16 sps:$4 sm:$0xff]   ;;  %v3824_v40 = vld [vmem:[%s4369_s16 + $0x88] ss:$16 sps:$4 sm:$0xff]  }
  0x15   : > { %v3826_v41 = vld [vmem:[%s4369_s16 + $0xac] ss:$16 sps:$4 sm:$0xff]   ;;  %v3813_v42 = vld [vmem:[%s4369_s16 + $0x40] ss:$16 sps:$4 sm:$0xff]   ;;  %v3816_v43 = vld [vmem:[%s4369_s16 + $0x64] ss:$16 sps:$4 sm:$0xff]  }
  0x16   : > { %v3830_v44 = vld [vmem:[%s4369_s16 + $0xa8] ss:$16 sps:$4 sm:$0xff]   ;;  %v3832_v45 = vld [vmem:[%s4369_s16 + $0xcc] ss:$16 sps:$4 sm:$0xff]   ;;  %v3819_v46 = vld [vmem:[%s4369_s16 + $0x60] ss:$16 sps:$4 sm:$0xff]  }
  0x17   : > { %1643 = vmatpush1.bf16.msra.mxu1 %v3775_v8  ;;  %2060 = vmatpush1.bf16.msra.mxu0 %v3786_v11  ;;  %v3822_v47 = vld [vmem:[%s4369_s16 + $0x84] ss:$16 sps:$4 sm:$0xff]   ;;  %v3836_v48 = vld [vmem:[%s4369_s16 + $0xc8] ss:$16 sps:$4 sm:$0xff]   ;;  %v3838_v49 = vld [vmem:[%s4369_s16 + $0xec] ss:$16 sps:$4 sm:$0xff]  }
  0x18   : > { %1644 = vmatprep.subr.bf16.mxu1 %v4286_v1  ;;  %2061 = vmatprep.subr.bf16.mxu0 %v4286_v1  ;;  %v3825_v50 = vld [vmem:[%s4369_s16 + $0x80] ss:$16 sps:$4 sm:$0xff]   ;;  %v3828_v51 = vld [vmem:[%s4369_s16 + $0xa4] ss:$16 sps:$4 sm:$0xff]   ;;  %v3842_v52 = vld [vmem:[%s4369_s16 + $0xe8] ss:$16 sps:$4 sm:$0xff]  }
  0x19   : > { %v3844_v53 = vld [vmem:[%s4369_s16 + $0x10c] ss:$16 sps:$4 sm:$0xff]   ;;  %v3831_v54 = vld [vmem:[%s4369_s16 + $0xa0] ss:$16 sps:$4 sm:$0xff]   ;;  %v3834_v55 = vld [vmem:[%s4369_s16 + $0xc4] ss:$16 sps:$4 sm:$0xff]  }
  0x1a   : > { %v3848_v56 = vld [vmem:[%s4369_s16 + $0x108] ss:$16 sps:$4 sm:$0xff]   ;;  %v3850_v57 = vld [vmem:[%s4369_s16 + $0x12c] ss:$16 sps:$4 sm:$0xff]   ;;  %v3837_v58 = vld [vmem:[%s4369_s16 + $0xc0] ss:$16 sps:$4 sm:$0xff]  }
  0x1b   : > { %1645 = vmatpush1.bf16.msra.mxu1 %v3776_v10  ;;  %2062 = vmatpush1.bf16.msra.mxu0 %v3788_v14  ;;  %v3840_v59 = vld [vmem:[%s4369_s16 + $0xe4] ss:$16 sps:$4 sm:$0xff]   ;;  %v3854_v60 = vld [vmem:[%s4369_s16 + $0x128] ss:$16 sps:$4 sm:$0xff]   ;;  %v3856_v61 = vld [vmem:[%s4369_s16 + $0x14c] ss:$16 sps:$4 sm:$0xff]  }
  0x1c   : > { %1646 = vmatprep.subr.bf16.mxu1 %v4286_v1  ;;  %2063 = vmatprep.subr.bf16.mxu0 %v4286_v1  ;;  %v3843_v62 = vld [vmem:[%s4369_s16 + $0xe0] ss:$16 sps:$4 sm:$0xff]   ;;  %v3846_v63 = vld [vmem:[%s4369_s16 + $0x104] ss:$16 sps:$4 sm:$0xff]   ;;  %v3860_v0 = vld [vmem:[%s4369_s16 + $0x148] ss:$16 sps:$4 sm:$0xff]  }
  0x1d   : > { %v3849_v2 = vld [vmem:[%s4369_s16 + $0x100] ss:$16 sps:$4 sm:$0xff]   ;;  %v3852_v3 = vld [vmem:[%s4369_s16 + $0x124] ss:$16 sps:$4 sm:$0xff]   ;;  %v3866_v4 = vld [vmem:[%s4369_s16 + $0x168] ss:$16 sps:$4 sm:$0xff]  }
  0x1e   : > { %v3868_v5 = vld [vmem:[%s4369_s16 + $0x18c] ss:$16 sps:$4 sm:$0xff]   ;;  %v3855_v6 = vld [vmem:[%s4369_s16 + $0x120] ss:$16 sps:$4 sm:$0xff]   ;;  %v3858_v7 = vld [vmem:[%s4369_s16 + $0x144] ss:$16 sps:$4 sm:$0xff]  }
  0x1f   : > { %1647 = vmatpush1.bf16.msra.mxu1 %v3777_v12  ;;  %2064 = vmatpush1.bf16.msra.mxu0 %v3790_v17  ;;  %v3872_v8 = vld [vmem:[%s4369_s16 + $0x188] ss:$16 sps:$4 sm:$0xff]   ;;  %v3874_v9 = vld [vmem:[%s4369_s16 + $0x1ac] ss:$16 sps:$4 sm:$0xff]   ;;  %v3861_v10 = vld [vmem:[%s4369_s16 + $0x140] ss:$16 sps:$4 sm:$0xff]  }
  0x20   : > { %1648 = vmatprep.subr.bf16.mxu1 %v4286_v1  ;;  %2065 = vmatprep.subr.bf16.mxu0 %v4286_v1  ;;  %v3864_v11 = vld [vmem:[%s4369_s16 + $0x164] ss:$16 sps:$4 sm:$0xff]   ;;  %v3878_v12 = vld [vmem:[%s4369_s16 + $0x1a8] ss:$16 sps:$4 sm:$0xff]   ;;  %v3867_v14 = vld [vmem:[%s4369_s16 + $0x160] ss:$16 sps:$4 sm:$0xff]  }
  0x21   : > { %v3870_v15 = vld [vmem:[%s4369_s16 + $0x184] ss:$16 sps:$4 sm:$0xff]   ;;  %v3884_v16 = vld [vmem:[%s4369_s16 + $0x1c8] ss:$16 sps:$4 sm:$0xff]   ;;  %v3886_v17 = vld [vmem:[%s4369_s16 + $0x1ec] ss:$16 sps:$4 sm:$0xff]  }
  0x23   : > { %1649 = vmatpush1.bf16.msra.mxu1 %v3779_v13  ;;  %2066 = vmatpush1.bf16.msra.mxu0 %v3792_v19  ;;  %v3880_v13 = vld [vmem:[%s4369_s16 + $0x1cc] ss:$16 sps:$4 sm:$0xff]   ;;  %v3876_v19 = vld [vmem:[%s4369_s16 + $0x1a4] ss:$16 sps:$4 sm:$0xff]  }
  0x24   : > { %1650 = vmatprep.subr.bf16.mxu1 %v4286_v1  ;;  %2067 = vmatprep.subr.bf16.mxu0 %v4286_v1 }
  0x27   : > { %1651 = vmatpush1.bf16.msra.mxu1 %v3781_v18  ;;  %2068 = vmatpush1.bf16.msra.mxu0 %v3794_v21  ;;  %v3873_v18 = vld [vmem:[%s4369_s16 + $0x180] ss:$16 sps:$4 sm:$0xff]   ;;  %v3892_v21 = vld [vmem:[%s4369_s16 + $0x20c] ss:$16 sps:$4 sm:$0xff]  }
  0x28   : > { %1652 = vmatprep.subr.bf16.mxu1 %v4286_v1 }
  0x2a   : > { %2084 = vmatmul.mubr.bf16.vlgmr.msra.gmra.mrb[0].mxu0 %v3796_v23  ;;  %v3882_v23 = vld [vmem:[%s4369_s16 + $0x1c4] ss:$16 sps:$4 sm:$0xff]  }
  0x2b   : > { %1653 = vmatpush1.bf16.msra.mxu1 %v3783_v20  ;;  %3328 = vmatprep.mubr.msk.bf16.mxu0 %vm1489_vm0, %v3802_v24  ;;  %v3890_v20 = vld [vmem:[%s4369_s16 + $0x1e8] ss:$16 sps:$4 sm:$0xff]  }
  0x2c   : > { %1654 = vmatprep.subr.bf16.mxu1 %v4286_v1  ;;  %v3896_v24 = vld [vmem:[%s4369_s16 + $0x208] ss:$16 sps:$4 sm:$0xff]  }
  0x2f   : > { %1655 = vmatpush1.bf16.msra.mxu1 %v3785_v22  ;;  %v3879_v22 = vld [vmem:[%s4369_s16 + $0x1a0] ss:$16 sps:$4 sm:$0xff]  }
  0x30   : > { %1656 = vmatprep.subr.bf16.mxu1 %v4286_v1 }
  0x32   : > { %2092 = vmatmul.mubr.bf16.gmra.mrb[4].mxu0 %v3806_v27  ;;  %v3888_v27 = vld [vmem:[%s4369_s16 + $0x1e4] ss:$16 sps:$4 sm:$0xff]  }
  0x33   : > { %1657 = vmatpush1.bf16.msra.mxu1 %v3787_v25  ;;  %3329 = vmatprep.mubr.msk.bf16.mxu0 %vm1489_vm0, %v3808_v28  ;;  %v3898_v25 = vld [vmem:[%s4369_s16 + $0x22c] ss:$16 sps:$4 sm:$0xff]   ;;  %v3902_v28 = vld [vmem:[%s4369_s16 + $0x228] ss:$16 sps:$4 sm:$0xff]  }
  0x34   : > { %1658 = vmatprep.subr.bf16.mxu1 %v4286_v1 }
  0x37   : > { %1659 = vmatpush1.bf16.msra.mxu1 %v3789_v26  ;;  %v3885_v26 = vld [vmem:[%s4369_s16 + $0x1c0] ss:$16 sps:$4 sm:$0xff]  }
  0x38   : > { %1660 = vmatprep.subr.bf16.mxu1 %v4286_v1 }
  0x3a   : > { %2100 = vmatmul.mubr.bf16.gmra.mrb[8].mxu0 %v3812_v31  ;;  %v3894_v31 = vld [vmem:[%s4369_s16 + $0x204] ss:$16 sps:$4 sm:$0xff]  }
  0x3b   : > { %1661 = vmatpush1.bf16.msra.mxu1 %v3791_v29  ;;  %3330 = vmatprep.mubr.msk.bf16.mxu0 %vm1489_vm0, %v3814_v32  ;;  %v3904_v29 = vld [vmem:[%s4369_s16 + $0x24c] ss:$16 sps:$4 sm:$0xff]   ;;  %v3908_v32 = vld [vmem:[%s4369_s16 + $0x248] ss:$16 sps:$4 sm:$0xff]  }
  0x3c   : > { %1662 = vmatprep.subr.bf16.mxu1 %v4286_v1 }
  0x3f   : > { %1663 = vmatpush1.bf16.msra.mxu1 %v3793_v30  ;;  %v3891_v30 = vld [vmem:[%s4369_s16 + $0x1e0] ss:$16 sps:$4 sm:$0xff]  }
  0x40   : > { %1664 = vmatprep.subr.bf16.mxu1 %v4286_v1  ;;  %v3862_v1 = vld [vmem:[%s4369_s16 + $0x16c] ss:$16 sps:$4 sm:$0xff]  }
  0x42   : > { %2108 = vmatmul.mubr.bf16.gmra.mrb[12].mxu0 %v3818_v36  ;;  %v3914_v36 = vld [vmem:[%s4369_s16 + $0x268] ss:$16 sps:$4 sm:$0xff]  }
  0x43   : > { %1665 = vmatpush1.bf16.msra.mxu1 %v3795_v33  ;;  %3331 = vmatprep.mubr.msk.bf16.mxu0 %vm1489_vm0, %v3820_v37  ;;  %v3910_v33 = vld [vmem:[%s4369_s16 + $0x26c] ss:$16 sps:$4 sm:$0xff]  }
  0x44   : > { %v3916_v37 = vld [vmem:[%s4369_s16 + $0x28c] ss:$16 sps:$4 sm:$0xff]  }
  0x46   : > { %1667 = vmatmul.mubr.bf16.vlgmr.msra.gmra.mrb[0].mxu1 %v3799_v34  ;;  %v3897_v34 = vld [vmem:[%s4369_s16 + $0x200] ss:$16 sps:$4 sm:$0xff]  }
  0x47   : > { %1674 = vmatprep.mubr.bf16.mxu1 %v3804_v35  ;;  %v3900_v35 = vld [vmem:[%s4369_s16 + $0x224] ss:$16 sps:$4 sm:$0xff]  }
  0x4a   : > { %2116 = vmatmul.mubr.bf16.gmra.mrb[16].mxu0 %v3824_v40  ;;  %v3920_v40 = vld [vmem:[%s4369_s16 + $0x288] ss:$16 sps:$4 sm:$0xff]  }
  0x4b   : > { %3332 = vmatprep.mubr.msk.bf16.mxu0 %vm1489_vm0, %v3826_v41  ;;  %v3922_v41 = vld [vmem:[%s4369_s16 + $0x2ac] ss:$16 sps:$4 sm:$0xff]  }
  0x4e   : > { %1675 = vmatmul.mubr.bf16.gmra.mrb[4].mxu1 %v3807_v38  ;;  %v3903_v38 = vld [vmem:[%s4369_s16 + $0x220] ss:$16 sps:$4 sm:$0xff]  }
  0x4f   : > { %1682 = vmatprep.mubr.bf16.mxu1 %v3810_v39  ;;  %v3906_v39 = vld [vmem:[%s4369_s16 + $0x244] ss:$16 sps:$4 sm:$0xff]  }
  0x52   : > { %2124 = vmatmul.mubr.bf16.gmra.mrb[20].mxu0 %v3830_v44  ;;  %v3926_v44 = vld [vmem:[%s4369_s16 + $0x2a8] ss:$16 sps:$4 sm:$0xff]  }
  0x53   : > { %3333 = vmatprep.mubr.msk.bf16.mxu0 %vm1489_vm0, %v3832_v45  ;;  %v3928_v45 = vld [vmem:[%s4369_s16 + $0x2cc] ss:$16 sps:$4 sm:$0xff]  }
  0x56   : > { %1683 = vmatmul.mubr.bf16.gmra.mrb[8].mxu1 %v3813_v42  ;;  %v3909_v42 = vld [vmem:[%s4369_s16 + $0x240] ss:$16 sps:$4 sm:$0xff]  }
  0x57   : > { %1690 = vmatprep.mubr.bf16.mxu1 %v3816_v43  ;;  %v3912_v43 = vld [vmem:[%s4369_s16 + $0x264] ss:$16 sps:$4 sm:$0xff]  }
  0x5a   : > { %2132 = vmatmul.mubr.bf16.gmra.mrb[24].mxu0 %v3836_v48  ;;  %v3932_v48 = vld [vmem:[%s4369_s16 + $0x2c8] ss:$16 sps:$4 sm:$0xff]  }
  0x5b   : > { %3334 = vmatprep.mubr.msk.bf16.mxu0 %vm1489_vm0, %v3838_v49  ;;  %v3934_v49 = vld [vmem:[%s4369_s16 + $0x2ec] ss:$16 sps:$4 sm:$0xff]  }
  0x5e   : > { %1691 = vmatmul.mubr.bf16.gmra.mrb[12].mxu1 %v3819_v46  ;;  %v3915_v46 = vld [vmem:[%s4369_s16 + $0x260] ss:$16 sps:$4 sm:$0xff]  }
  0x5f   : > { %1698 = vmatprep.mubr.bf16.mxu1 %v3822_v47  ;;  %v3918_v47 = vld [vmem:[%s4369_s16 + $0x284] ss:$16 sps:$4 sm:$0xff]  }
  0x62   : > { %2140 = vmatmul.mubr.bf16.gmra.mrb[28].mxu0 %v3842_v52  ;;  %v3938_v52 = vld [vmem:[%s4369_s16 + $0x2e8] ss:$16 sps:$4 sm:$0xff]  }
  0x63   : > { %3335 = vmatprep.mubr.msk.bf16.mxu0 %vm1489_vm0, %v3844_v53  ;;  %v3940_v53 = vld [vmem:[%s4369_s16 + $0x30c] ss:$16 sps:$4 sm:$0xff]  }
  0x66   : > { %1699 = vmatmul.mubr.bf16.gmra.mrb[16].mxu1 %v3825_v50  ;;  %v3921_v50 = vld [vmem:[%s4369_s16 + $0x280] ss:$16 sps:$4 sm:$0xff]  }
  0x67   : > { %1706 = vmatprep.mubr.bf16.mxu1 %v3828_v51  ;;  %v3924_v51 = vld [vmem:[%s4369_s16 + $0x2a4] ss:$16 sps:$4 sm:$0xff]  }
  0x6a   : > { %2148 = vmatmul.mubr.bf16.gmra.mrb[32].mxu0 %v3848_v56  ;;  %v3944_v56 = vld [vmem:[%s4369_s16 + $0x308] ss:$16 sps:$4 sm:$0xff]  }
  0x6b   : > { %3336 = vmatprep.mubr.msk.bf16.mxu0 %vm1489_vm0, %v3850_v57  ;;  %v3946_v57 = vld [vmem:[%s4369_s16 + $0x32c] ss:$16 sps:$4 sm:$0xff]  }
  0x6e   : > { %1707 = vmatmul.mubr.bf16.gmra.mrb[20].mxu1 %v3831_v54  ;;  %v3927_v54 = vld [vmem:[%s4369_s16 + $0x2a0] ss:$16 sps:$4 sm:$0xff]  }
  0x6f   : > { %1714 = vmatprep.mubr.bf16.mxu1 %v3834_v55  ;;  %v3930_v55 = vld [vmem:[%s4369_s16 + $0x2c4] ss:$16 sps:$4 sm:$0xff]  }
  0x72   : > { %2156 = vmatmul.mubr.bf16.gmra.mrb[36].mxu0 %v3854_v60  ;;  %v3950_v60 = vld [vmem:[%s4369_s16 + $0x328] ss:$16 sps:$4 sm:$0xff]  }
  0x73   : > { %3337 = vmatprep.mubr.msk.bf16.mxu0 %vm1489_vm0, %v3856_v61  ;;  %v3952_v61 = vld [vmem:[%s4369_s16 + $0x34c] ss:$16 sps:$4 sm:$0xff]  }
  0x76   : > { %1715 = vmatmul.mubr.bf16.gmra.mrb[24].mxu1 %v3837_v58  ;;  %v3933_v58 = vld [vmem:[%s4369_s16 + $0x2c0] ss:$16 sps:$4 sm:$0xff]  }
  0x77   : > { %1722 = vmatprep.mubr.bf16.mxu1 %v3840_v59  ;;  %v3936_v59 = vld [vmem:[%s4369_s16 + $0x2e4] ss:$16 sps:$4 sm:$0xff]  }
  0x7a   : > { %2164 = vmatmul.mubr.bf16.gmra.mrb[40].mxu0 %v3860_v0  ;;  %v3956_v0 = vld [vmem:[%s4369_s16 + $0x348] ss:$16 sps:$4 sm:$0xff]  }
  0x7b   : > { %3338 = vmatprep.mubr.msk.bf16.mxu0 %vm1489_vm0, %v3862_v1  ;;  %v3958_v1 = vld [vmem:[%s4369_s16 + $0x36c] ss:$16 sps:$4 sm:$0xff]  }
  0x7e   : > { %1723 = vmatmul.mubr.bf16.gmra.mrb[28].mxu1 %v3843_v62  ;;  %v3939_v62 = vld [vmem:[%s4369_s16 + $0x2e0] ss:$16 sps:$4 sm:$0xff]  }
  0x7f   : > { %1730 = vmatprep.mubr.bf16.mxu1 %v3846_v63  ;;  %v3942_v63 = vld [vmem:[%s4369_s16 + $0x304] ss:$16 sps:$4 sm:$0xff]  }
  0x82   : > { %2172 = vmatmul.mubr.bf16.gmra.mrb[44].mxu0 %v3866_v4 }
  0x83   : > { %3339 = vmatprep.mubr.msk.bf16.mxu0 %vm1489_vm0, %v3868_v5 }
  0x86   : > { %1731 = vmatmul.mubr.bf16.gmra.mrb[32].mxu1 %v3849_v2  ;;  %v3945_v2 = vld [vmem:[%s4369_s16 + $0x300] ss:$16 sps:$4 sm:$0xff]  }
  0x87   : > { %1738 = vmatprep.mubr.bf16.mxu1 %v3852_v3  ;;  %v3948_v3 = vld [vmem:[%s4369_s16 + $0x324] ss:$16 sps:$4 sm:$0xff]  }
  0x8a   : > { %2180 = vmatmul.mubr.bf16.gmra.mrb[48].mxu0 %v3872_v8  ;;  %v3964_v8 = vld [vmem:[%s4369_s16 + $0x38c] ss:$16 sps:$4 sm:$0xff]  }
  0x8b   : > { %3340 = vmatprep.mubr.msk.bf16.mxu0 %vm1489_vm0, %v3874_v9 }
  0x8e   : > { %1739 = vmatmul.mubr.bf16.gmra.mrb[36].mxu1 %v3855_v6  ;;  %v3962_v6 = vld [vmem:[%s4369_s16 + $0x368] ss:$16 sps:$4 sm:$0xff]  }
  0x8f   : > { %1746 = vmatprep.mubr.bf16.mxu1 %v3858_v7 }
  0x92   : > { %2188 = vmatmul.mubr.bf16.gmra.mrb[52].mxu0 %v3878_v12 }
  0x93   : > { %3341 = vmatprep.mubr.msk.bf16.mxu0 %vm1489_vm0, %v3880_v13 }
  0x96   : > { %1747 = vmatmul.mubr.bf16.gmra.mrb[40].mxu1 %v3861_v10  ;;  %v3951_v10 = vld [vmem:[%s4369_s16 + $0x320] ss:$16 sps:$4 sm:$0xff]  }
  0x97   : > { %1754 = vmatprep.mubr.bf16.mxu1 %v3864_v11  ;;  %v3954_v11 = vld [vmem:[%s4369_s16 + $0x344] ss:$16 sps:$4 sm:$0xff]  }
  0x9a   : > { %2196 = vmatmul.mubr.bf16.gmra.mrb[56].mxu0 %v3884_v16  ;;  %v3970_v16 = vld [vmem:[%s4369_s16 + $0x3ac] ss:$16 sps:$4 sm:$0xff]  }
  0x9b   : > { %3342 = vmatprep.mubr.msk.bf16.mxu0 %vm1489_vm0, %v3886_v17 }
  0x9e   : > { %1755 = vmatmul.mubr.bf16.gmra.mrb[44].mxu1 %v3867_v14  ;;  %v3968_v14 = vld [vmem:[%s4369_s16 + $0x388] ss:$16 sps:$4 sm:$0xff]  }
  0x9f   : > { %1762 = vmatprep.mubr.bf16.mxu1 %v3870_v15 }
  0xa2   : > { %2204 = vmatmul.mubr.bf16.gmra.mrb[60].mxu0 %v3890_v20 }
  0xa3   : > { %3343 = vmatprep.mubr.msk.bf16.mxu0 %vm1489_vm0, %v3892_v21 }
  0xa6   : > { %1763 = vmatmul.mubr.bf16.gmra.mrb[48].mxu1 %v3873_v18  ;;  %v3957_v18 = vld [vmem:[%s4369_s16 + $0x340] ss:$16 sps:$4 sm:$0xff]  }
  0xa7   : > { %1770 = vmatprep.mubr.bf16.mxu1 %v3876_v19  ;;  %v3960_v19 = vld [vmem:[%s4369_s16 + $0x364] ss:$16 sps:$4 sm:$0xff]  }
  0xaa   : > { %2212 = vmatmul.mubr.bf16.gmra.mrb[64].mxu0 %v3896_v24  ;;  %v3976_v24 = vld [vmem:[%s4369_s16 + $0x3cc] ss:$16 sps:$4 sm:$0xff]  }
  0xab   : > { %3344 = vmatprep.mubr.msk.bf16.mxu0 %vm1489_vm0, %v3898_v25  ;;  %v4576_v25 = vld [vmem:[%s5088_s2] ss:$0 sm:$0xff] }
  0xae   : > { %1771 = vmatmul.mubr.bf16.gmra.mrb[52].mxu1 %v3879_v22  ;;  %v3974_v22 = vld [vmem:[%s4369_s16 + $0x3a8] ss:$16 sps:$4 sm:$0xff]  }
  0xaf   : > { %1778 = vmatprep.mubr.bf16.mxu1 %v3882_v23 }
  0xb2   : > { %2220 = vmatmul.mubr.bf16.gmra.mrb[68].mxu0 %v3902_v28 }
  0xb3   : > { %3345 = vmatprep.mubr.msk.bf16.mxu0 %vm1489_vm0, %v3904_v29 }
  0xb6   : > { %1779 = vmatmul.mubr.bf16.gmra.mrb[56].mxu1 %v3885_v26 }
  0xb7   : > { %1786 = vmatprep.mubr.bf16.mxu1 %v3888_v27 }
  0xba   : > { %2228 = vmatmul.mubr.bf16.gmra.mrb[72].mxu0 %v3908_v32  ;;  %v3966_v32 = vld [vmem:[%s4369_s16 + $0x384] ss:$16 sps:$4 sm:$0xff]  }
  0xbb   : > { %3346 = vmatprep.mubr.msk.bf16.mxu0 %vm1489_vm0, %v3910_v33 }
  0xbe   : > { %1787 = vmatmul.mubr.bf16.gmra.mrb[60].mxu1 %v3891_v30  ;;  %v3963_v30 = vld [vmem:[%s4369_s16 + $0x360] ss:$16 sps:$4 sm:$0xff]  }
  0xbf   : > { %1794 = vmatprep.mubr.bf16.mxu1 %v3894_v31 }
  0xc2   : > { %2236 = vmatmul.mubr.bf16.gmra.mrb[76].mxu0 %v3914_v36 }
  0xc3   : > { %3347 = vmatprep.mubr.msk.bf16.mxu0 %vm1489_vm0, %v3916_v37 }
  0xc6   : > { %1795 = vmatmul.mubr.bf16.gmra.mrb[64].mxu1 %v3897_v34 }
  0xc7   : > { %1802 = vmatprep.mubr.bf16.mxu1 %v3900_v35 }
  0xca   : > { %2244 = vmatmul.mubr.bf16.gmra.mrb[80].mxu0 %v3920_v40 }
  0xcb   : > { %3348 = vmatprep.mubr.msk.bf16.mxu0 %vm1489_vm0, %v3922_v41  ;;  %v3982_v41 = vld [vmem:[%s4369_s16 + $0x3ec] ss:$16 sps:$4 sm:$0xff]  }
  0xce   : > { %1803 = vmatmul.mubr.bf16.gmra.mrb[68].mxu1 %v3903_v38  ;;  %v3980_v38 = vld [vmem:[%s4369_s16 + $0x3c8] ss:$16 sps:$4 sm:$0xff]  }
  0xcf   : > { %1810 = vmatprep.mubr.bf16.mxu1 %v3906_v39 }
  0xd2   : > { %2252 = vmatmul.mubr.bf16.gmra.mrb[84].mxu0 %v3926_v44 }
  0xd3   : > { %3349 = vmatprep.mubr.msk.bf16.mxu0 %vm1489_vm0, %v3928_v45 }
  0xd6   : > { %1811 = vmatmul.mubr.bf16.gmra.mrb[72].mxu1 %v3909_v42 }
  0xd7   : > { %1818 = vmatprep.mubr.bf16.mxu1 %v3912_v43 }
  0xda   : > { %2260 = vmatmul.mubr.bf16.gmra.mrb[88].mxu0 %v3932_v48  ;;  %v3972_v48 = vld [vmem:[%s4369_s16 + $0x3a4] ss:$16 sps:$4 sm:$0xff]  }
  0xdb   : > { %3350 = vmatprep.mubr.msk.bf16.mxu0 %vm1489_vm0, %v3934_v49 }
  0xde   : > { %1819 = vmatmul.mubr.bf16.gmra.mrb[76].mxu1 %v3915_v46  ;;  %v3969_v46 = vld [vmem:[%s4369_s16 + $0x380] ss:$16 sps:$4 sm:$0xff]  }
  0xdf   : > { %1826 = vmatprep.mubr.bf16.mxu1 %v3918_v47 }
  0xe2   : > { %2268 = vmatmul.mubr.bf16.gmra.mrb[92].mxu0 %v3938_v52 }
  0xe3   : > { %3351 = vmatprep.mubr.msk.bf16.mxu0 %vm1489_vm0, %v3940_v53 }
  0xe6   : > { %1827 = vmatmul.mubr.bf16.gmra.mrb[80].mxu1 %v3921_v50 }
  0xe7   : > { %1834 = vmatprep.mubr.bf16.mxu1 %v3924_v51 }
  0xea   : > { %2276 = vmatmul.mubr.bf16.gmra.mrb[96].mxu0 %v3944_v56 }
  0xeb   : > { %3352 = vmatprep.mubr.msk.bf16.mxu0 %vm1489_vm0, %v3946_v57  ;;  %v3988_v57 = vld [vmem:[%s4369_s16 + $0x40c] ss:$16 sps:$4 sm:$0xff]  }
  0xee   : > { %1835 = vmatmul.mubr.bf16.gmra.mrb[84].mxu1 %v3927_v54  ;;  %v3986_v54 = vld [vmem:[%s4369_s16 + $0x3e8] ss:$16 sps:$4 sm:$0xff]  }
  0xef   : > { %1842 = vmatprep.mubr.bf16.mxu1 %v3930_v55 }
  0xf2   : > { %2284 = vmatmul.mubr.bf16.gmra.mrb[100].mxu0 %v3950_v60 }
  0xf3   : > { %3353 = vmatprep.mubr.msk.bf16.mxu0 %vm1489_vm0, %v3952_v61 }
  0xf6   : > { %1843 = vmatmul.mubr.bf16.gmra.mrb[88].mxu1 %v3933_v58 }
  0xf7   : > { %1850 = vmatprep.mubr.bf16.mxu1 %v3936_v59 }
  0xfa   : > { %2292 = vmatmul.mubr.bf16.gmra.mrb[104].mxu0 %v3956_v0 }
  0xfb   : > { %3354 = vmatprep.mubr.msk.bf16.mxu0 %vm1489_vm0, %v3958_v1  ;;  %v3975_v1 = vld [vmem:[%s4369_s16 + $0x3a0] ss:$16 sps:$4 sm:$0xff]  }
  0xfd   : > { %v2085_v4 = vpop.f32.mrb[0].mxu0 }
  0xfe   : > { %1851 = vmatmul.mubr.bf16.gmra.mrb[92].mxu1 %v3939_v62  ;;  %v2087_v5 = vpop.f32.mrb[1].mxu0 }
  0xff   : > { %1858 = vmatprep.mubr.bf16.mxu1 %v3942_v63  ;;  %v2088_v7 = vpop.f32.mrb[2].mxu0 }
 0x100   : > { %v2090_v9 = vpop.f32.mrb[3].mxu0 }
 0x102   : > { %2300 = vmatmul.mubr.bf16.gmra.mrb[108].mxu0 %v3962_v6 }
 0x103   : > { %3355 = vmatprep.mubr.msk.bf16.mxu0 %vm1489_vm0, %v3964_v8 }
 0x105   : > { %v2093_v12 = vpop.f32.mrb[4].mxu0 }
 0x106   : > { %1859 = vmatmul.mubr.bf16.gmra.mrb[96].mxu1 %v3945_v2  ;;  %v2095_v13 = vpop.f32.mrb[5].mxu0 }
 0x107   : > { %1866 = vmatprep.mubr.bf16.mxu1 %v3948_v3  ;;  %v2096_v15 = vpop.f32.mrb[6].mxu0  ;;  %v3994_v13 = vld [vmem:[%s4369_s16 + $0x42c] ss:$16 sps:$4 sm:$0xff]  }
 0x108   : > { %v2098_v17 = vpop.f32.mrb[7].mxu0 }
 0x10a   : > { %2308 = vmatmul.mubr.bf16.gmra.mrb[112].mxu0 %v3968_v14 }
 0x10b   : > { %3356 = vmatprep.mubr.msk.bf16.mxu0 %vm1489_vm0, %v3970_v16 }
 0x10d   : > { %v4567_v20 = vpop.f32.mrb[8].mxu0 }
 0x10e   : > { %1867 = vmatmul.mubr.bf16.gmra.mrb[100].mxu1 %v3951_v10  ;;  %v2103_v21 = vpop.f32.mrb[9].mxu0  ;;  %v3992_v10 = vld [vmem:[%s4369_s16 + $0x408] ss:$16 sps:$4 sm:$0xff]  }
 0x10f   : > { %1874 = vmatprep.mubr.bf16.mxu1 %v3954_v11  ;;  %v4570_v23 = vpop.f32.mrb[10].mxu0  ;;  %v3981_v21 = vld [vmem:[%s4369_s16 + $0x3c0] ss:$16 sps:$4 sm:$0xff]  }
 0x110   : > { %v2106_v26 = vpop.f32.mrb[11].mxu0 }
 0x112   : > { %2316 = vmatmul.mubr.bf16.gmra.mrb[116].mxu0 %v3974_v22 }
 0x113   : > { %3357 = vmatprep.mubr.msk.bf16.mxu0 %vm1489_vm0, %v3976_v24  ;;  %v3984_v24 = vld [vmem:[%s4369_s16 + $0x3e4] ss:$16 sps:$4 sm:$0xff]  }
 0x115   : > { %v4583_v36 = vpop.f32.mrb[12].mxu0 }
 0x116   : > { %1875 = vmatmul.mubr.bf16.gmra.mrb[104].mxu1 %v3957_v18  ;;  %v2111_v37 = vpop.f32.mrb[13].mxu0 }
 0x117   : > { %1882 = vmatprep.mubr.bf16.mxu1 %v3960_v19  ;;  %v4586_v40 = vpop.f32.mrb[14].mxu0 }
 0x118   : > { %v2114_v42 = vpop.f32.mrb[15].mxu0 }
 0x119   : > { %v1668_v27 = vpop.f32.mrb[0].mxu1 }
 0x11a   : > { %v1669_v28 = vadd.f32 %v4576_v25, %v1668_v27  ;;  %v1670_v29 = vpop.f32.mrb[1].mxu1  ;;  %2324 = vmatmul.mubr.bf16.gmra.mrb[120].mxu0 %v3980_v38 }
 0x11b   : > { %v1671_v31 = vpop.f32.mrb[2].mxu1  ;;  %3358 = vmatprep.mubr.msk.bf16.mxu0 %vm1489_vm0, %v3982_v41 }
 0x11c   : > { %v2086_v33 = vadd.f32 %v2085_v4, %v1669_v28  ;;  %v1672_v34 = vadd.f32 %v4576_v25, %v1671_v31  ;;  %v1673_v35 = vpop.f32.mrb[3].mxu1  ;;  %v3978_v4 = vld [vmem:[%s4369_s16 + $0x3c4] ss:$16 sps:$4 sm:$0xff]   ;;  %v3998_v31 = vld [vmem:[%s4369_s16 + $0x428] ss:$16 sps:$4 sm:$0xff]  }
 0x11d   : > { %v4594_v52 = vpop.f32.mrb[16].mxu0 }
 0x11e   : > { %4084 = vtanh.f32 %v2086_v33  ;;  %v2089_v39 = vadd.f32 %v2088_v7, %v1672_v34  ;;  %1883 = vmatmul.mubr.bf16.gmra.mrb[108].mxu1 %v3963_v30  ;;  %v2119_v53 = vpop.f32.mrb[17].mxu0  ;;  %v4000_v34 = vld [vmem:[%s4369_s16 + $0x44c] ss:$16 sps:$4 sm:$0xff]  }
 0x11f   : > { %1890 = vmatprep.mubr.bf16.mxu1 %v3966_v32  ;;  %v4598_v56 = vpop.f32.mrb[18].mxu0 }
 0x120   : > { %4086 = vtanh.f32 %v2089_v39  ;;  %v2122_v58 = vpop.f32.mrb[19].mxu0 }
 0x121   : > { %v1676_v43 = vpop.f32.mrb[4].mxu1 }
 0x122   : > { %v1677_v44 = vadd.f32 %v4576_v25, %v1676_v43  ;;  %v1678_v45 = vpop.f32.mrb[5].mxu1  ;;  %2332 = vmatmul.mubr.bf16.gmra.mrb[124].mxu0 %v3986_v54 }
 0x123   : > { %v1679_v47 = vpop.f32.mrb[6].mxu1  ;;  %3359 = vmatprep.mubr.msk.bf16.mxu0 %vm1489_vm0, %v3988_v57  ;;  %v3990_v45 = vld [vmem:[%s4369_s16 + $0x404] ss:$16 sps:$4 sm:$0xff]  }
 0x124   : > { %v2094_v49 = vadd.f32 %v2093_v12, %v1677_v44  ;;  %v1680_v50 = vadd.f32 %v4576_v25, %v1679_v47  ;;  %v1681_v51 = vpop.f32.mrb[7].mxu1 }
 0x125   : > { %v4614_v8 = vpop.f32.mrb[20].mxu0  ;;  %v4004_v51 = vld [vmem:[%s4369_s16 + $0x448] ss:$16 sps:$4 sm:$0xff]  }
 0x126   : > { %4088 = vtanh.f32 %v2094_v49  ;;  %v2097_v55 = vadd.f32 %v2096_v15, %v1680_v50  ;;  %1891 = vmatmul.mubr.bf16.gmra.mrb[112].mxu1 %v3969_v46  ;;  %v2127_v9 = vpop.f32.mrb[21].mxu0 }
 0x127   : > { %1898 = vmatprep.mubr.bf16.mxu1 %v3972_v48  ;;  %v4620_v12 = vpop.f32.mrb[22].mxu0 }
 0x128   : > { %v4085_v59 = vpop.eup %4084  ;;  %4090 = vtanh.f32 %v2097_v55  ;;  %v2130_v14 = vpop.f32.mrb[23].mxu0  ;;  %v4006_v55 = vld [vmem:[%s4369_s16 + $0x46c] ss:$16 sps:$4 sm:$0xff]  }
 0x129   : > { %v3474_v60 = vpack.c.bf16 %v4085_v59, %v4085_v59  ;;  %v1684_v61 = vpop.f32.mrb[8].mxu1 }
 0x12a   : > { %v4087_v62 = vpop.eup %4086  ;;  %v1685_v63 = vadd.f32 %v4576_v25, %v1684_v61  ;;  %v1686_v0 = vpop.f32.mrb[9].mxu1  ;;  %2340 = vmatmul.mubr.bf16.gmra.mrb[128].mxu0 %v3992_v10 }
 0x12b   : > { %2949 = vst.msk [vmem:[%s4604_s25] sm:$0xf] %vm2948_vm1, %v3474_v60  ;;  %v3475_v2 = vpack.c.bf16 %v4087_v62, %v4087_v62  ;;  %v1687_v3 = vpop.f32.mrb[10].mxu1  ;;  %3360 = vmatprep.mubr.msk.bf16.mxu0 %vm1489_vm0, %v3994_v13 }
 0x12c   : > { %v2102_v5 = vadd.f32 %v4567_v20, %v1685_v63  ;;  %v1688_v6 = vadd.f32 %v4576_v25, %v1687_v3  ;;  %v1689_v7 = vpop.f32.mrb[11].mxu1 }
 0x12d   : > { %2950 = vst.msk [vmem:[%s4604_s25 + $0x4] sm:$0xf] %vm2948_vm1, %v3475_v2  ;;  %v4631_v29 = vpop.f32.mrb[24].mxu0  ;;  %v4010_v7 = vld [vmem:[%s4369_s16 + $0x468] ss:$16 sps:$4 sm:$0xff]  }
 0x12e   : > { %4092 = vtanh.f32 %v2102_v5  ;;  %v2105_v11 = vadd.f32 %v4570_v23, %v1688_v6  ;;  %1899 = vmatmul.mubr.bf16.gmra.mrb[116].mxu1 %v3975_v1  ;;  %v2135_v30 = vpop.f32.mrb[25].mxu0  ;;  %v3996_v1 = vld [vmem:[%s4369_s16 + $0x424] ss:$16 sps:$4 sm:$0xff]  }
 0x12f   : > { %1906 = vmatprep.mubr.bf16.mxu1 %v3978_v4  ;;  %v4637_v33 = vpop.f32.mrb[26].mxu0 }
 0x130   : > { %v4089_v15 = vpop.eup %4088  ;;  %4094 = vtanh.f32 %v2105_v11  ;;  %v2138_v35 = vpop.f32.mrb[27].mxu0  ;;  %v4012_v11 = vld [vmem:[%s4369_s16 + $0x48c] ss:$16 sps:$4 sm:$0xff]  }
 0x131   : > { %v3476_v16 = vpack.c.bf16 %v4089_v15, %v4089_v15  ;;  %v1692_v17 = vpop.f32.mrb[12].mxu1 }
 0x132   : > { %v4091_v18 = vpop.eup %4090  ;;  %v1693_v19 = vadd.f32 %v4576_v25, %v1692_v17  ;;  %v1694_v20 = vpop.f32.mrb[13].mxu1  ;;  %2348 = vmatmul.mubr.bf16.gmra.mrb[132].mxu0 %v3998_v31 }
 0x133   : > { %2951 = vst.msk [vmem:[%s4604_s25 + $0x8] sm:$0xf] %vm2948_vm1, %v3476_v16  ;;  %v3477_v22 = vpack.c.bf16 %v4091_v18, %v4091_v18  ;;  %v1695_v23 = vpop.f32.mrb[14].mxu1  ;;  %3361 = vmatprep.mubr.msk.bf16.mxu0 %vm1489_vm0, %v4000_v34 }
 0x134   : > { %v2110_v26 = vadd.f32 %v4583_v36, %v1693_v19  ;;  %v1696_v27 = vadd.f32 %v4576_v25, %v1695_v23  ;;  %v1697_v28 = vpop.f32.mrb[15].mxu1 }
 0x135   : > { %2952 = vst.msk [vmem:[%s4604_s25 + $0xc] sm:$0xf] %vm2948_vm1, %v3477_v22  ;;  %v4648_v49 = vpop.f32.mrb[28].mxu0  ;;  %v4016_v28 = vld [vmem:[%s4369_s16 + $0x488] ss:$16 sps:$4 sm:$0xff]  }
 0x136   : > { %4096 = vtanh.f32 %v2110_v26  ;;  %v2113_v32 = vadd.f32 %v4586_v40, %v1696_v27  ;;  %1907 = vmatmul.mubr.bf16.gmra.mrb[120].mxu1 %v3981_v21  ;;  %v3987_v40 = vld [vmem:[%s4369_s16 + $0x3e0] ss:$16 sps:$4 sm:$0xff]   ;;  %v2143_v50 = vpop.f32.mrb[29].mxu0  ;;  %v4002_v21 = vld [vmem:[%s4369_s16 + $0x444] ss:$16 sps:$4 sm:$0xff]  }
 0x137   : > { %1914 = vmatprep.mubr.bf16.mxu1 %v3984_v24  ;;  %v4654_v54 = vpop.f32.mrb[30].mxu0 }
 0x138   : > { %v4093_v36 = vpop.eup %4092  ;;  %4098 = vtanh.f32 %v2113_v32  ;;  %v4018_v32 = vld [vmem:[%s4369_s16 + $0x4ac] ss:$16 sps:$4 sm:$0xff]  }
 0x139   : > { %v3478_v37 = vpack.c.bf16 %v4093_v36, %v4093_v36  ;;  %v1700_v38 = vpop.f32.mrb[16].mxu1 }
 0x13a   : > { %v4095_v39 = vpop.eup %4094  ;;  %v1701_v41 = vadd.f32 %v4576_v25, %v1700_v38  ;;  %v1702_v42 = vpop.f32.mrb[17].mxu1  ;;  %2356 = vmatmul.mubr.bf16.gmra.mrb[136].mxu0 %v4004_v51 }
 0x13b   : > { %2953 = vst.msk [vmem:[%s4604_s25 + $0x10] sm:$0xf] %vm2948_vm1, %v3478_v37  ;;  %v3479_v43 = vpack.c.bf16 %v4095_v39, %v4095_v39  ;;  %v1703_v44 = vpop.f32.mrb[18].mxu1  ;;  %3362 = vmatprep.mubr.msk.bf16.mxu0 %vm1489_vm0, %v4006_v55 }
 0x13c   : > { %v2118_v46 = vadd.f32 %v4594_v52, %v1701_v41  ;;  %v1704_v47 = vadd.f32 %v4576_v25, %v1703_v44  ;;  %v1705_v48 = vpop.f32.mrb[19].mxu1  ;;  %v2146_v52 = vpop.f32.mrb[31].mxu0 }
 0x13d   : > { %2954 = vst.msk [vmem:[%s4604_s25 + $0x14] sm:$0xf] %vm2948_vm1, %v3479_v43  ;;  %v4665_v5 = vpop.f32.mrb[32].mxu0  ;;  %v4022_v48 = vld [vmem:[%s4369_s16 + $0x4a8] ss:$16 sps:$4 sm:$0xff]  }
 0x13e   : > { %4100 = vtanh.f32 %v2118_v46  ;;  %v2121_v53 = vadd.f32 %v4598_v56, %v1704_v47  ;;  %1915 = vmatmul.mubr.bf16.gmra.mrb[124].mxu1 %v3987_v40  ;;  %v3993_v56 = vld [vmem:[%s4369_s16 + $0x400] ss:$16 sps:$4 sm:$0xff]   ;;  %v2151_v6 = vpop.f32.mrb[33].mxu0  ;;  %v4008_v40 = vld [vmem:[%s4369_s16 + $0x464] ss:$16 sps:$4 sm:$0xff]  }
 0x13f   : > { %1922 = vmatprep.mubr.bf16.mxu1 %v3990_v45  ;;  %v4671_v10 = vpop.f32.mrb[34].mxu0 }
 0x140   : > { %v4097_v57 = vpop.eup %4096  ;;  %4102 = vtanh.f32 %v2121_v53  ;;  %v4024_v53 = vld [vmem:[%s4369_s16 + $0x4cc] ss:$16 sps:$4 sm:$0xff]  }
 0x141   : > { %v3480_v58 = vpack.c.bf16 %v4097_v57, %v4097_v57  ;;  %v1708_v59 = vpop.f32.mrb[20].mxu1 }
 0x142   : > { %v4099_v60 = vpop.eup %4098  ;;  %v1709_v61 = vadd.f32 %v4576_v25, %v1708_v59  ;;  %v1710_v62 = vpop.f32.mrb[21].mxu1  ;;  %2364 = vmatmul.mubr.bf16.gmra.mrb[140].mxu0 %v4010_v7 }
 0x143   : > { %2955 = vst.msk [vmem:[%s4604_s25 + $0x18] sm:$0xf] %vm2948_vm1, %v3480_v58  ;;  %v3481_v63 = vpack.c.bf16 %v4099_v60, %v4099_v60  ;;  %v1711_v0 = vpop.f32.mrb[22].mxu1  ;;  %3363 = vmatprep.mubr.msk.bf16.mxu0 %vm1489_vm0, %v4012_v11 }
 0x144   : > { %v2126_v2 = vadd.f32 %v4614_v8, %v1709_v61  ;;  %v1712_v3 = vadd.f32 %v4576_v25, %v1711_v0  ;;  %v1713_v4 = vpop.f32.mrb[23].mxu1  ;;  %v2154_v8 = vpop.f32.mrb[35].mxu0 }
 0x145   : > { %2956 = vst.msk [vmem:[%s4604_s25 + $0x1c] sm:$0xf] %vm2948_vm1, %v3481_v63  ;;  %v4682_v26 = vpop.f32.mrb[36].mxu0  ;;  %v4028_v4 = vld [vmem:[%s4369_s16 + $0x4c8] ss:$16 sps:$4 sm:$0xff]  }
 0x146   : > { %4104 = vtanh.f32 %v2126_v2  ;;  %v2129_v9 = vadd.f32 %v4620_v12, %v1712_v3  ;;  %1923 = vmatmul.mubr.bf16.gmra.mrb[128].mxu1 %v3993_v56  ;;  %v3999_v12 = vld [vmem:[%s4369_s16 + $0x420] ss:$16 sps:$4 sm:$0xff]   ;;  %v2159_v27 = vpop.f32.mrb[37].mxu0  ;;  %v4014_v56 = vld [vmem:[%s4369_s16 + $0x484] ss:$16 sps:$4 sm:$0xff]  }
 0x147   : > { %1930 = vmatprep.mubr.bf16.mxu1 %v3996_v1  ;;  %v4688_v31 = vpop.f32.mrb[38].mxu0 }
 0x148   : > { %v4101_v13 = vpop.eup %4100  ;;  %4106 = vtanh.f32 %v2129_v9  ;;  %v4030_v9 = vld [vmem:[%s4369_s16 + $0x4ec] ss:$16 sps:$4 sm:$0xff]  }
 0x149   : > { %v3482_v14 = vpack.c.bf16 %v4101_v13, %v4101_v13  ;;  %v1716_v15 = vpop.f32.mrb[24].mxu1 }
 0x14a   : > { %v4103_v16 = vpop.eup %4102  ;;  %v1717_v17 = vadd.f32 %v4576_v25, %v1716_v15  ;;  %v1718_v18 = vpop.f32.mrb[25].mxu1  ;;  %2372 = vmatmul.mubr.bf16.gmra.mrb[144].mxu0 %v4016_v28 }
 0x14b   : > { %2957 = vst.msk [vmem:[%s4604_s25 + $0x20] sm:$0xf] %vm2948_vm1, %v3482_v14  ;;  %v3483_v19 = vpack.c.bf16 %v4103_v16, %v4103_v16  ;;  %v1719_v20 = vpop.f32.mrb[26].mxu1  ;;  %3364 = vmatprep.mubr.msk.bf16.mxu0 %vm1489_vm0, %v4018_v32 }
 0x14c   : > { %v2134_v22 = vadd.f32 %v4631_v29, %v1717_v17  ;;  %v1720_v23 = vadd.f32 %v4576_v25, %v1719_v20  ;;  %v1721_v24 = vpop.f32.mrb[27].mxu1  ;;  %v2162_v29 = vpop.f32.mrb[39].mxu0 }
 0x14d   : > { %2958 = vst.msk [vmem:[%s4604_s25 + $0x24] sm:$0xf] %vm2948_vm1, %v3483_v19  ;;  %v4699_v46 = vpop.f32.mrb[40].mxu0  ;;  %v4034_v24 = vld [vmem:[%s4369_s16 + $0x4e8] ss:$16 sps:$4 sm:$0xff]  }
 0x14e   : > { %4108 = vtanh.f32 %v2134_v22  ;;  %v2137_v30 = vadd.f32 %v4637_v33, %v1720_v23  ;;  %1931 = vmatmul.mubr.bf16.gmra.mrb[132].mxu1 %v3999_v12  ;;  %v4005_v33 = vld [vmem:[%s4369_s16 + $0x440] ss:$16 sps:$4 sm:$0xff]   ;;  %v2167_v47 = vpop.f32.mrb[41].mxu0  ;;  %v4020_v12 = vld [vmem:[%s4369_s16 + $0x4a4] ss:$16 sps:$4 sm:$0xff]  }
 0x14f   : > { %1938 = vmatprep.mubr.bf16.mxu1 %v4002_v21  ;;  %v4705_v51 = vpop.f32.mrb[42].mxu0 }
 0x150   : > { %v4105_v34 = vpop.eup %4104  ;;  %4110 = vtanh.f32 %v2137_v30  ;;  %v4036_v30 = vld [vmem:[%s4369_s16 + $0x50c] ss:$16 sps:$4 sm:$0xff]  }
 0x151   : > { %v3484_v35 = vpack.c.bf16 %v4105_v34, %v4105_v34  ;;  %v1724_v36 = vpop.f32.mrb[28].mxu1 }
 0x152   : > { %v4107_v37 = vpop.eup %4106  ;;  %v1725_v38 = vadd.f32 %v4576_v25, %v1724_v36  ;;  %v1726_v39 = vpop.f32.mrb[29].mxu1  ;;  %2380 = vmatmul.mubr.bf16.gmra.mrb[148].mxu0 %v4022_v48 }
 0x153   : > { %2959 = vst.msk [vmem:[%s4604_s25 + $0x28] sm:$0xf] %vm2948_vm1, %v3484_v35  ;;  %v3485_v41 = vpack.c.bf16 %v4107_v37, %v4107_v37  ;;  %v1727_v42 = vpop.f32.mrb[30].mxu1  ;;  %3365 = vmatprep.mubr.msk.bf16.mxu0 %vm1489_vm0, %v4024_v53 }
 0x154   : > { %v2142_v43 = vadd.f32 %v4648_v49, %v1725_v38  ;;  %v1728_v44 = vadd.f32 %v4576_v25, %v1727_v42  ;;  %v1729_v45 = vpop.f32.mrb[31].mxu1  ;;  %v2170_v49 = vpop.f32.mrb[43].mxu0 }
 0x155   : > { %2960 = vst.msk [vmem:[%s4604_s25 + $0x2c] sm:$0xf] %vm2948_vm1, %v3485_v41  ;;  %v4716_v2 = vpop.f32.mrb[44].mxu0  ;;  %v4040_v45 = vld [vmem:[%s4369_s16 + $0x508] ss:$16 sps:$4 sm:$0xff]  }
 0x156   : > { %4112 = vtanh.f32 %v2142_v43  ;;  %v2145_v50 = vadd.f32 %v4654_v54, %v1728_v44  ;;  %1939 = vmatmul.mubr.bf16.gmra.mrb[136].mxu1 %v4005_v33  ;;  %v4011_v54 = vld [vmem:[%s4369_s16 + $0x460] ss:$16 sps:$4 sm:$0xff]   ;;  %v2175_v3 = vpop.f32.mrb[45].mxu0  ;;  %v4026_v33 = vld [vmem:[%s4369_s16 + $0x4c4] ss:$16 sps:$4 sm:$0xff]  }
 0x157   : > { %1946 = vmatprep.mubr.bf16.mxu1 %v4008_v40  ;;  %v4722_v7 = vpop.f32.mrb[46].mxu0 }
 0x158   : > { %v4109_v55 = vpop.eup %4108  ;;  %4114 = vtanh.f32 %v2145_v50  ;;  %v4042_v50 = vld [vmem:[%s4369_s16 + $0x52c] ss:$16 sps:$4 sm:$0xff]  }
 0x159   : > { %v3486_v52 = vpack.c.bf16 %v4109_v55, %v4109_v55  ;;  %v1732_v57 = vpop.f32.mrb[32].mxu1 }
 0x15a   : > { %v4111_v58 = vpop.eup %4110  ;;  %v1733_v59 = vadd.f32 %v4576_v25, %v1732_v57  ;;  %v1734_v60 = vpop.f32.mrb[33].mxu1  ;;  %2388 = vmatmul.mubr.bf16.gmra.mrb[152].mxu0 %v4028_v4 }
 0x15b   : > { %2961 = vst.msk [vmem:[%s4604_s25 + $0x30] sm:$0xf] %vm2948_vm1, %v3486_v52  ;;  %v3487_v61 = vpack.c.bf16 %v4111_v58, %v4111_v58  ;;  %v1735_v62 = vpop.f32.mrb[34].mxu1  ;;  %3366 = vmatprep.mubr.msk.bf16.mxu0 %vm1489_vm0, %v4030_v9 }
 0x15c   : > { %v2150_v63 = vadd.f32 %v4665_v5, %v1733_v59  ;;  %v1736_v0 = vadd.f32 %v4576_v25, %v1735_v62  ;;  %v1737_v1 = vpop.f32.mrb[35].mxu1  ;;  %v2178_v5 = vpop.f32.mrb[47].mxu0 }
 0x15d   : > { %2962 = vst.msk [vmem:[%s4604_s25 + $0x34] sm:$0xf] %vm2948_vm1, %v3487_v61  ;;  %v4733_v22 = vpop.f32.mrb[48].mxu0  ;;  %v4046_v1 = vld [vmem:[%s4369_s16 + $0x528] ss:$16 sps:$4 sm:$0xff]  }
 0x15e   : > { %4116 = vtanh.f32 %v2150_v63  ;;  %v2153_v6 = vadd.f32 %v4671_v10, %v1736_v0  ;;  %1947 = vmatmul.mubr.bf16.gmra.mrb[140].mxu1 %v4011_v54  ;;  %v4017_v10 = vld [vmem:[%s4369_s16 + $0x480] ss:$16 sps:$4 sm:$0xff]   ;;  %v2183_v23 = vpop.f32.mrb[49].mxu0  ;;  %v4032_v54 = vld [vmem:[%s4369_s16 + $0x4e4] ss:$16 sps:$4 sm:$0xff]  }
 0x15f   : > { %1954 = vmatprep.mubr.bf16.mxu1 %v4014_v56  ;;  %v4739_v28 = vpop.f32.mrb[50].mxu0 }
 0x160   : > { %v4113_v11 = vpop.eup %4112  ;;  %4118 = vtanh.f32 %v2153_v6  ;;  %v4048_v6 = vld [vmem:[%s4369_s16 + $0x54c] ss:$16 sps:$4 sm:$0xff]  }
 0x161   : > { %v3488_v8 = vpack.c.bf16 %v4113_v11, %v4113_v11  ;;  %v1740_v13 = vpop.f32.mrb[36].mxu1 }
 0x162   : > { %v4115_v14 = vpop.eup %4114  ;;  %v1741_v15 = vadd.f32 %v4576_v25, %v1740_v13  ;;  %v1742_v16 = vpop.f32.mrb[37].mxu1  ;;  %2396 = vmatmul.mubr.bf16.gmra.mrb[156].mxu0 %v4034_v24 }
 0x163   : > { %2963 = vst.msk [vmem:[%s4604_s25 + $0x38] sm:$0xf] %vm2948_vm1, %v3488_v8  ;;  %v3489_v17 = vpack.c.bf16 %v4115_v14, %v4115_v14  ;;  %v1743_v18 = vpop.f32.mrb[38].mxu1  ;;  %3367 = vmatprep.mubr.msk.bf16.mxu0 %vm1489_vm0, %v4036_v30 }
 0x164   : > { %v2158_v19 = vadd.f32 %v4682_v26, %v1741_v15  ;;  %v1744_v20 = vadd.f32 %v4576_v25, %v1743_v18  ;;  %v1745_v21 = vpop.f32.mrb[39].mxu1  ;;  %v2186_v26 = vpop.f32.mrb[51].mxu0 }
 0x165   : > { %2964 = vst.msk [vmem:[%s4604_s25 + $0x3c] sm:$0xf] %vm2948_vm1, %v3489_v17  ;;  %v4750_v43 = vpop.f32.mrb[52].mxu0  ;;  %v4052_v21 = vld [vmem:[%s4369_s16 + $0x548] ss:$16 sps:$4 sm:$0xff]  }
 0x166   : > { %4120 = vtanh.f32 %v2158_v19  ;;  %v2161_v27 = vadd.f32 %v4688_v31, %v1744_v20  ;;  %1955 = vmatmul.mubr.bf16.gmra.mrb[144].mxu1 %v4017_v10  ;;  %v4023_v31 = vld [vmem:[%s4369_s16 + $0x4a0] ss:$16 sps:$4 sm:$0xff]   ;;  %v2191_v44 = vpop.f32.mrb[53].mxu0  ;;  %v4038_v10 = vld [vmem:[%s4369_s16 + $0x504] ss:$16 sps:$4 sm:$0xff]  }
 0x167   : > { %1962 = vmatprep.mubr.bf16.mxu1 %v4020_v12  ;;  %v4756_v48 = vpop.f32.mrb[54].mxu0 }
 0x168   : > { %v4117_v32 = vpop.eup %4116  ;;  %4122 = vtanh.f32 %v2161_v27  ;;  %v4054_v27 = vld [vmem:[%s4369_s16 + $0x56c] ss:$16 sps:$4 sm:$0xff]  }
 0x169   : > { %v3490_v29 = vpack.c.bf16 %v4117_v32, %v4117_v32  ;;  %v1748_v34 = vpop.f32.mrb[40].mxu1 }
 0x16a   : > { %v4119_v35 = vpop.eup %4118  ;;  %v1749_v36 = vadd.f32 %v4576_v25, %v1748_v34  ;;  %v1750_v37 = vpop.f32.mrb[41].mxu1  ;;  %2404 = vmatmul.mubr.bf16.gmra.mrb[160].mxu0 %v4040_v45 }
 0x16b   : > { %2965 = vst.msk [vmem:[%s4604_s25 + $0x40] sm:$0xf] %vm2948_vm1, %v3490_v29  ;;  %v3491_v38 = vpack.c.bf16 %v4119_v35, %v4119_v35  ;;  %v1751_v39 = vpop.f32.mrb[42].mxu1  ;;  %3368 = vmatprep.mubr.msk.bf16.mxu0 %vm1489_vm0, %v4042_v50 }
 0x16c   : > { %v2166_v41 = vadd.f32 %v4699_v46, %v1749_v36  ;;  %v1752_v42 = vadd.f32 %v4576_v25, %v1751_v39  ;;  %v1753_v40 = vpop.f32.mrb[43].mxu1  ;;  %v2194_v46 = vpop.f32.mrb[55].mxu0 }
 0x16d   : > { %2966 = vst.msk [vmem:[%s4604_s25 + $0x44] sm:$0xf] %vm2948_vm1, %v3491_v38  ;;  %v4767_v63 = vpop.f32.mrb[56].mxu0  ;;  %v4058_v40 = vld [vmem:[%s4369_s16 + $0x568] ss:$16 sps:$4 sm:$0xff]  }
 0x16e   : > { %4124 = vtanh.f32 %v2166_v41  ;;  %v2169_v47 = vadd.f32 %v4705_v51, %v1752_v42  ;;  %1963 = vmatmul.mubr.bf16.gmra.mrb[148].mxu1 %v4023_v31  ;;  %v4029_v51 = vld [vmem:[%s4369_s16 + $0x4c0] ss:$16 sps:$4 sm:$0xff]   ;;  %v2199_v0 = vpop.f32.mrb[57].mxu0  ;;  %v4044_v31 = vld [vmem:[%s4369_s16 + $0x524] ss:$16 sps:$4 sm:$0xff]  }
 0x16f   : > { %1970 = vmatprep.mubr.bf16.mxu1 %v4026_v33  ;;  %v4773_v4 = vpop.f32.mrb[58].mxu0 }
 0x170   : > { %v4121_v53 = vpop.eup %4120  ;;  %4126 = vtanh.f32 %v2169_v47  ;;  %v4060_v47 = vld [vmem:[%s4369_s16 + $0x58c] ss:$16 sps:$4 sm:$0xff]  }
 0x171   : > { %v3492_v49 = vpack.c.bf16 %v4121_v53, %v4121_v53  ;;  %v1756_v55 = vpop.f32.mrb[44].mxu1 }
 0x172   : > { %v4123_v52 = vpop.eup %4122  ;;  %v1757_v57 = vadd.f32 %v4576_v25, %v1756_v55  ;;  %v1758_v58 = vpop.f32.mrb[45].mxu1  ;;  %2412 = vmatmul.mubr.bf16.gmra.mrb[164].mxu0 %v4046_v1 }
 0x173   : > { %2967 = vst.msk [vmem:[%s4604_s25 + $0x48] sm:$0xf] %vm2948_vm1, %v3492_v49  ;;  %v3493_v59 = vpack.c.bf16 %v4123_v52, %v4123_v52  ;;  %v1759_v60 = vpop.f32.mrb[46].mxu1  ;;  %3369 = vmatprep.mubr.msk.bf16.mxu0 %vm1489_vm0, %v4048_v6 }
 0x174   : > { %v2174_v61 = vadd.f32 %v4716_v2, %v1757_v57  ;;  %v1760_v62 = vadd.f32 %v4576_v25, %v1759_v60  ;;  %v1761_v56 = vpop.f32.mrb[47].mxu1  ;;  %v2202_v2 = vpop.f32.mrb[59].mxu0 }
 0x175   : > { %2968 = vst.msk [vmem:[%s4604_s25 + $0x4c] sm:$0xf] %vm2948_vm1, %v3493_v59  ;;  %v4784_v19 = vpop.f32.mrb[60].mxu0  ;;  %v4064_v56 = vld [vmem:[%s4369_s16 + $0x588] ss:$16 sps:$4 sm:$0xff]  }
 0x176   : > { %4128 = vtanh.f32 %v2174_v61  ;;  %v2177_v3 = vadd.f32 %v4722_v7, %v1760_v62  ;;  %1971 = vmatmul.mubr.bf16.gmra.mrb[152].mxu1 %v4029_v51  ;;  %v4035_v7 = vld [vmem:[%s4369_s16 + $0x4e0] ss:$16 sps:$4 sm:$0xff]   ;;  %v2207_v20 = vpop.f32.mrb[61].mxu0  ;;  %v4050_v51 = vld [vmem:[%s4369_s16 + $0x544] ss:$16 sps:$4 sm:$0xff]  }
 0x177   : > { %1978 = vmatprep.mubr.bf16.mxu1 %v4032_v54  ;;  %v4790_v24 = vpop.f32.mrb[62].mxu0 }
 0x178   : > { %v4125_v9 = vpop.eup %4124  ;;  %4130 = vtanh.f32 %v2177_v3  ;;  %v4066_v3 = vld [vmem:[%s4369_s16 + $0x5ac] ss:$16 sps:$4 sm:$0xff]  }
 0x179   : > { %v3494_v5 = vpack.c.bf16 %v4125_v9, %v4125_v9  ;;  %v1764_v11 = vpop.f32.mrb[48].mxu1 }
 0x17a   : > { %v4127_v8 = vpop.eup %4126  ;;  %v1765_v13 = vadd.f32 %v4576_v25, %v1764_v11  ;;  %v1766_v14 = vpop.f32.mrb[49].mxu1  ;;  %2420 = vmatmul.mubr.bf16.gmra.mrb[168].mxu0 %v4052_v21 }
 0x17b   : > { %2969 = vst.msk [vmem:[%s4604_s25 + $0x50] sm:$0xf] %vm2948_vm1, %v3494_v5  ;;  %v3495_v15 = vpack.c.bf16 %v4127_v8, %v4127_v8  ;;  %v1767_v16 = vpop.f32.mrb[50].mxu1  ;;  %3370 = vmatprep.mubr.msk.bf16.mxu0 %vm1489_vm0, %v4054_v27 }
 0x17c   : > { %v2182_v17 = vadd.f32 %v4733_v22, %v1765_v13  ;;  %v1768_v18 = vadd.f32 %v4576_v25, %v1767_v16  ;;  %v1769_v12 = vpop.f32.mrb[51].mxu1  ;;  %v2210_v22 = vpop.f32.mrb[63].mxu0 }
 0x17d   : > { %2970 = vst.msk [vmem:[%s4604_s25 + $0x54] sm:$0xf] %vm2948_vm1, %v3495_v15  ;;  %v4801_v41 = vpop.f32.mrb[64].mxu0  ;;  %v4070_v12 = vld [vmem:[%s4369_s16 + $0x5a8] ss:$16 sps:$4 sm:$0xff]  }
 0x17e   : > { %4132 = vtanh.f32 %v2182_v17  ;;  %v2185_v23 = vadd.f32 %v4739_v28, %v1768_v18  ;;  %1979 = vmatmul.mubr.bf16.gmra.mrb[156].mxu1 %v4035_v7  ;;  %v4041_v28 = vld [vmem:[%s4369_s16 + $0x500] ss:$16 sps:$4 sm:$0xff]   ;;  %v2215_v42 = vpop.f32.mrb[65].mxu0  ;;  %v4056_v7 = vld [vmem:[%s4369_s16 + $0x564] ss:$16 sps:$4 sm:$0xff]  }
 0x17f   : > { %1986 = vmatprep.mubr.bf16.mxu1 %v4038_v10  ;;  %v4807_v45 = vpop.f32.mrb[66].mxu0 }
 0x180   : > { %v4129_v30 = vpop.eup %4128  ;;  %4134 = vtanh.f32 %v2185_v23  ;;  %v4072_v23 = vld [vmem:[%s4369_s16 + $0x5cc] ss:$16 sps:$4 sm:$0xff]  }
 0x181   : > { %v3496_v26 = vpack.c.bf16 %v4129_v30, %v4129_v30  ;;  %v1772_v32 = vpop.f32.mrb[52].mxu1 }
 0x182   : > { %v4131_v29 = vpop.eup %4130  ;;  %v1773_v34 = vadd.f32 %v4576_v25, %v1772_v32  ;;  %v1774_v35 = vpop.f32.mrb[53].mxu1  ;;  %2428 = vmatmul.mubr.bf16.gmra.mrb[172].mxu0 %v4058_v40 }
 0x183   : > { %2971 = vst.msk [vmem:[%s4604_s25 + $0x58] sm:$0xf] %vm2948_vm1, %v3496_v26  ;;  %v3497_v36 = vpack.c.bf16 %v4131_v29, %v4131_v29  ;;  %v1775_v37 = vpop.f32.mrb[54].mxu1  ;;  %3371 = vmatprep.mubr.msk.bf16.mxu0 %vm1489_vm0, %v4060_v47 }
 0x184   : > { %v2190_v38 = vadd.f32 %v4750_v43, %v1773_v34  ;;  %v1776_v39 = vadd.f32 %v4576_v25, %v1775_v37  ;;  %v1777_v33 = vpop.f32.mrb[55].mxu1  ;;  %v2218_v43 = vpop.f32.mrb[67].mxu0 }
 0x185   : > { %2972 = vst.msk [vmem:[%s4604_s25 + $0x5c] sm:$0xf] %vm2948_vm1, %v3497_v36  ;;  %v4818_v61 = vpop.f32.mrb[68].mxu0  ;;  %v4076_v33 = vld [vmem:[%s4369_s16 + $0x5c8] ss:$16 sps:$4 sm:$0xff]  }
 0x186   : > { %4136 = vtanh.f32 %v2190_v38  ;;  %v2193_v44 = vadd.f32 %v4756_v48, %v1776_v39  ;;  %1987 = vmatmul.mubr.bf16.gmra.mrb[160].mxu1 %v4041_v28  ;;  %v4047_v48 = vld [vmem:[%s4369_s16 + $0x520] ss:$16 sps:$4 sm:$0xff]   ;;  %v2223_v62 = vpop.f32.mrb[69].mxu0  ;;  %v4062_v28 = vld [vmem:[%s4369_s16 + $0x584] ss:$16 sps:$4 sm:$0xff]  }
 0x187   : > { %1994 = vmatprep.mubr.bf16.mxu1 %v4044_v31  ;;  %v4824_v1 = vpop.f32.mrb[70].mxu0 }
 0x188   : > { %v4133_v50 = vpop.eup %4132  ;;  %4138 = vtanh.f32 %v2193_v44  ;;  %v4078_v44 = vld [vmem:[%s4369_s16 + $0x5ec] ss:$16 sps:$4 sm:$0xff]  }
 0x189   : > { %v3498_v46 = vpack.c.bf16 %v4133_v50, %v4133_v50  ;;  %v1780_v53 = vpop.f32.mrb[56].mxu1 }
 0x18a   : > { %v4135_v49 = vpop.eup %4134  ;;  %v1781_v55 = vadd.f32 %v4576_v25, %v1780_v53  ;;  %v1782_v52 = vpop.f32.mrb[57].mxu1  ;;  %2436 = vmatmul.mubr.bf16.gmra.mrb[176].mxu0 %v4064_v56 }
 0x18b   : > { %2973 = vst.msk [vmem:[%s4604_s25 + $0x60] sm:$0xf] %vm2948_vm1, %v3498_v46  ;;  %v3499_v57 = vpack.c.bf16 %v4135_v49, %v4135_v49  ;;  %v1783_v58 = vpop.f32.mrb[58].mxu1  ;;  %3372 = vmatprep.mubr.msk.bf16.mxu0 %vm1489_vm0, %v4066_v3 }
 0x18c   : > { %v2198_v59 = vadd.f32 %v4767_v63, %v1781_v55  ;;  %v1784_v60 = vadd.f32 %v4576_v25, %v1783_v58  ;;  %v1785_v54 = vpop.f32.mrb[59].mxu1  ;;  %v2226_v63 = vpop.f32.mrb[71].mxu0 }
 0x18d   : > { %2974 = vst.msk [vmem:[%s4604_s25 + $0x64] sm:$0xf] %vm2948_vm1, %v3499_v57  ;;  %v4835_v17 = vpop.f32.mrb[72].mxu0  ;;  %v4082_v54 = vld [vmem:[%s4369_s16 + $0x5e8] ss:$16 sps:$4 sm:$0xff]  }
 0x18e   : > { %4140 = vtanh.f32 %v2198_v59  ;;  %v2201_v0 = vadd.f32 %v4773_v4, %v1784_v60  ;;  %1995 = vmatmul.mubr.bf16.gmra.mrb[164].mxu1 %v4047_v48  ;;  %v4053_v4 = vld [vmem:[%s4369_s16 + $0x540] ss:$16 sps:$4 sm:$0xff]   ;;  %v2231_v18 = vpop.f32.mrb[73].mxu0  ;;  %v4068_v48 = vld [vmem:[%s4369_s16 + $0x5a4] ss:$16 sps:$4 sm:$0xff]  }
 0x18f   : > { %2002 = vmatprep.mubr.bf16.mxu1 %v4050_v51  ;;  %v4841_v21 = vpop.f32.mrb[74].mxu0 }
 0x190   : > { %v4137_v6 = vpop.eup %4136  ;;  %4142 = vtanh.f32 %v2201_v0 }
 0x191   : > { %v3500_v2 = vpack.c.bf16 %v4137_v6, %v4137_v6  ;;  %v1788_v9 = vpop.f32.mrb[60].mxu1 }
 0x192   : > { %v4139_v5 = vpop.eup %4138  ;;  %v1789_v11 = vadd.f32 %v4576_v25, %v1788_v9  ;;  %v1790_v8 = vpop.f32.mrb[61].mxu1  ;;  %2444 = vmatmul.mubr.bf16.gmra.mrb[180].mxu0 %v4070_v12 }
 0x193   : > { %2975 = vst.msk [vmem:[%s4604_s25 + $0x68] sm:$0xf] %vm2948_vm1, %v3500_v2  ;;  %v3501_v13 = vpack.c.bf16 %v4139_v5, %v4139_v5  ;;  %v1791_v14 = vpop.f32.mrb[62].mxu1  ;;  %3373 = vmatprep.mubr.msk.bf16.mxu0 %vm1489_vm0, %v4072_v23  ;;  %v4071_v5 = vld [vmem:[%s4369_s16 + $0x5a0] ss:$16 sps:$4 sm:$0xff]  }
 0x194   : > { %v2206_v15 = vadd.f32 %v4784_v19, %v1789_v11  ;;  %v1792_v16 = vadd.f32 %v4576_v25, %v1791_v14  ;;  %v1793_v10 = vpop.f32.mrb[63].mxu1  ;;  %v2234_v19 = vpop.f32.mrb[75].mxu0  ;;  %v4074_v8 = vld [vmem:[%s4369_s16 + $0x5c4] ss:$16 sps:$4 sm:$0xff]   ;;  %v4894_v23 = vld [vmem:[%s5088_s2] ss:$0 sm:$0xff] }
 0x195   : > { %2976 = vst.msk [vmem:[%s4604_s25 + $0x6c] sm:$0xf] %vm2948_vm1, %v3501_v13  ;;  %v4852_v38 = vpop.f32.mrb[76].mxu0 }
 0x196   : > { %4144 = vtanh.f32 %v2206_v15  ;;  %v2209_v20 = vadd.f32 %v4790_v24, %v1792_v16  ;;  %2003 = vmatmul.mubr.bf16.gmra.mrb[168].mxu1 %v4053_v4  ;;  %v4059_v24 = vld [vmem:[%s4369_s16 + $0x560] ss:$16 sps:$4 sm:$0xff]   ;;  %v2239_v39 = vpop.f32.mrb[77].mxu0 }
 0x197   : > { %2010 = vmatprep.mubr.bf16.mxu1 %v4056_v7  ;;  %v4858_v40 = vpop.f32.mrb[78].mxu0 }
 0x198   : > { %v4141_v27 = vpop.eup %4140  ;;  %4146 = vtanh.f32 %v2209_v20 }
 0x199   : > { %v3502_v22 = vpack.c.bf16 %v4141_v27, %v4141_v27  ;;  %v1796_v30 = vpop.f32.mrb[64].mxu1  ;;  %v4077_v27 = vld [vmem:[%s4369_s16 + $0x5c0] ss:$16 sps:$4 sm:$0xff]  }
 0x19a   : > { %v4143_v26 = vpop.eup %4142  ;;  %v1797_v32 = vadd.f32 %v4576_v25, %v1796_v30  ;;  %v1798_v29 = vpop.f32.mrb[65].mxu1  ;;  %2452 = vmatmul.mubr.bf16.gmra.mrb[184].mxu0 %v4076_v33 }
 0x19b   : > { %2977 = vst.msk [vmem:[%s4604_s25 + $0x70] sm:$0xf] %vm2948_vm1, %v3502_v22  ;;  %v3503_v34 = vpack.c.bf16 %v4143_v26, %v4143_v26  ;;  %v1799_v35 = vpop.f32.mrb[66].mxu1  ;;  %3374 = vmatprep.mubr.msk.bf16.mxu0 %vm1489_vm0, %v4078_v44  ;;  %v4080_v26 = vld [vmem:[%s4369_s16 + $0x5e4] ss:$16 sps:$4 sm:$0xff]  }
 0x19c   : > { %v2214_v36 = vadd.f32 %v4801_v41, %v1797_v32  ;;  %v1800_v37 = vadd.f32 %v4576_v25, %v1799_v35  ;;  %v1801_v31 = vpop.f32.mrb[67].mxu1  ;;  %v2242_v41 = vpop.f32.mrb[79].mxu0 }
 0x19d   : > { %2978 = vst.msk [vmem:[%s4604_s25 + $0x74] sm:$0xf] %vm2948_vm1, %v3503_v34  ;;  %v4869_v59 = vpop.f32.mrb[80].mxu0  ;;  %v4083_v41 = vld [vmem:[%s4369_s16 + $0x5e0] ss:$16 sps:$4 sm:$0xff]  }
 0x19e   : > { %4148 = vtanh.f32 %v2214_v36  ;;  %v2217_v42 = vadd.f32 %v4807_v45, %v1800_v37  ;;  %2011 = vmatmul.mubr.bf16.gmra.mrb[172].mxu1 %v4059_v24  ;;  %v4065_v45 = vld [vmem:[%s4369_s16 + $0x580] ss:$16 sps:$4 sm:$0xff]   ;;  %v2247_v60 = vpop.f32.mrb[81].mxu0 }
 0x19f   : > { %2018 = vmatprep.mubr.bf16.mxu1 %v4062_v28  ;;  %v4875_v56 = vpop.f32.mrb[82].mxu0 }
 0x1a0   : > { %v4145_v47 = vpop.eup %4144  ;;  %4150 = vtanh.f32 %v2217_v42 }
 0x1a1   : > { %v3504_v43 = vpack.c.bf16 %v4145_v47, %v4145_v47  ;;  %v1804_v50 = vpop.f32.mrb[68].mxu1 }
 0x1a2   : > { %v4147_v46 = vpop.eup %4146  ;;  %v1805_v53 = vadd.f32 %v4576_v25, %v1804_v50  ;;  %v1806_v49 = vpop.f32.mrb[69].mxu1  ;;  %2460 = vmatmul.mubr.bf16.gmra.mrb[188].mxu0 %v4082_v54 }
 0x1a3   : > { %2979 = vst.msk [vmem:[%s4604_s25 + $0x78] sm:$0xf] %vm2948_vm1, %v3504_v43  ;;  %v3505_v55 = vpack.c.bf16 %v4147_v46, %v4147_v46  ;;  %v1807_v52 = vpop.f32.mrb[70].mxu1 }
 0x1a4   : > { %v2222_v57 = vadd.f32 %v4818_v61, %v1805_v53  ;;  %v1808_v58 = vadd.f32 %v4576_v25, %v1807_v52  ;;  %v1809_v51 = vpop.f32.mrb[71].mxu1  ;;  %v2250_v61 = vpop.f32.mrb[83].mxu0 }
 0x1a5   : > { %2980 = vst.msk [vmem:[%s4604_s25 + $0x7c] sm:$0xf] %vm2948_vm1, %v3505_v55  ;;  %v4884_v7 = vpop.f32.mrb[84].mxu0 }
 0x1a6   : > { %4152 = vtanh.f32 %v2222_v57  ;;  %v2225_v62 = vadd.f32 %v4824_v1, %v1808_v58  ;;  %2019 = vmatmul.mubr.bf16.gmra.mrb[176].mxu1 %v4065_v45  ;;  %v2255_v15 = vpop.f32.mrb[85].mxu0 }
 0x1a7   : > { %2026 = vmatprep.mubr.bf16.mxu1 %v4068_v48  ;;  %v4889_v10 = vpop.f32.mrb[86].mxu0 }
 0x1a8   : > { %v4149_v0 = vpop.eup %4148  ;;  %4154 = vtanh.f32 %v2225_v62  ;;  %v2258_v18 = vpop.f32.mrb[87].mxu0 }
 0x1a9   : > { %v3506_v3 = vpack.c.bf16 %v4149_v0, %v4149_v0  ;;  %v1812_v63 = vpop.f32.mrb[72].mxu1 }
 0x1aa   : > { %v4151_v6 = vpop.eup %4150  ;;  %v1813_v2 = vadd.f32 %v4576_v25, %v1812_v63  ;;  %v1814_v9 = vpop.f32.mrb[73].mxu1 }
 0x1ab   : > { %2981 = vst.msk [vmem:[%s4604_s25 + $0x80] sm:$0xf] %vm2948_vm1, %v3506_v3  ;;  %v3507_v1 = vpack.c.bf16 %v4151_v6, %v4151_v6  ;;  %v1815_v11 = vpop.f32.mrb[74].mxu1 }
 0x1ac   : > { %v2230_v4 = vadd.f32 %v4835_v17, %v1813_v2  ;;  %v1816_v13 = vadd.f32 %v4576_v25, %v1815_v11  ;;  %v1817_v14 = vpop.f32.mrb[75].mxu1 }
 0x1ad   : > { %2982 = vst.msk [vmem:[%s4604_s25 + $0x84] sm:$0xf] %vm2948_vm1, %v3507_v1  ;;  %v2261_v34 = vpop.f32.mrb[88].mxu0 }
 0x1ae   : > { %4156 = vtanh.f32 %v2230_v4  ;;  %v2233_v16 = vadd.f32 %v4841_v21, %v1816_v13  ;;  %2027 = vmatmul.mubr.bf16.gmra.mrb[180].mxu1 %v4071_v5  ;;  %v2263_v35 = vpop.f32.mrb[89].mxu0 }
 0x1af   : > { %2034 = vmatprep.mubr.bf16.mxu1 %v4074_v8  ;;  %v2264_v36 = vpop.f32.mrb[90].mxu0 }
 0x1b0   : > { %v4153_v17 = vpop.eup %4152  ;;  %4158 = vtanh.f32 %v2233_v16  ;;  %v2266_v37 = vpop.f32.mrb[91].mxu0 }
 0x1b1   : > { %v3508_v25 = vpack.c.bf16 %v4153_v17, %v4153_v17  ;;  %v1820_v12 = vpop.f32.mrb[76].mxu1 }
 0x1b2   : > { %v4155_v20 = vpop.eup %4154  ;;  %v1821_v19 = vadd.f32 %v4894_v23, %v1820_v12  ;;  %v1822_v21 = vpop.f32.mrb[77].mxu1 }
 0x1b3   : > { %2983 = vst.msk [vmem:[%s4604_s25 + $0x88] sm:$0xf] %vm2948_vm1, %v3508_v25  ;;  %v3509_v22 = vpack.c.bf16 %v4155_v20, %v4155_v20  ;;  %v1823_v30 = vpop.f32.mrb[78].mxu1 }
 0x1b4   : > { %v2238_v32 = vadd.f32 %v4852_v38, %v1821_v19  ;;  %v1824_v29 = vadd.f32 %v4894_v23, %v1823_v30  ;;  %v1825_v24 = vpop.f32.mrb[79].mxu1 }
 0x1b5   : > { %2984 = vst.msk [vmem:[%s4604_s25 + $0x8c] sm:$0xf] %vm2948_vm1, %v3509_v22  ;;  %v2269_v53 = vpop.f32.mrb[92].mxu0 }
 0x1b6   : > { %4160 = vtanh.f32 %v2238_v32  ;;  %v2241_v28 = vadd.f32 %v4858_v40, %v1824_v29  ;;  %2035 = vmatmul.mubr.bf16.gmra.mrb[184].mxu1 %v4077_v27  ;;  %v2271_v49 = vpop.f32.mrb[93].mxu0 }
 0x1b7   : > { %2042 = vmatprep.mubr.bf16.mxu1 %v4080_v26  ;;  %v2272_v55 = vpop.f32.mrb[94].mxu0 }
 0x1b8   : > { %v4157_v31 = vpop.eup %4156  ;;  %4162 = vtanh.f32 %v2241_v28  ;;  %v2274_v52 = vpop.f32.mrb[95].mxu0 }
 0x1b9   : > { %v3510_v38 = vpack.c.bf16 %v4157_v31, %v4157_v31  ;;  %v1828_v39 = vpop.f32.mrb[80].mxu1 }
 0x1ba   : > { %v4159_v33 = vpop.eup %4158  ;;  %v1829_v42 = vadd.f32 %v4894_v23, %v1828_v39  ;;  %v1830_v44 = vpop.f32.mrb[81].mxu1 }
 0x1bb   : > { %2985 = vst.msk [vmem:[%s4604_s25 + $0x90] sm:$0xf] %vm2948_vm1, %v3510_v38  ;;  %v3511_v47 = vpack.c.bf16 %v4159_v33, %v4159_v33  ;;  %v1831_v43 = vpop.f32.mrb[82].mxu1 }
 0x1bc   : > { %v2246_v40 = vadd.f32 %v4869_v59, %v1829_v42  ;;  %v1832_v50 = vadd.f32 %v4894_v23, %v1831_v43  ;;  %v1833_v46 = vpop.f32.mrb[83].mxu1 }
 0x1bd   : > { %2986 = vst.msk [vmem:[%s4604_s25 + $0x94] sm:$0xf] %vm2948_vm1, %v3511_v47  ;;  %v2277_v3 = vpop.f32.mrb[96].mxu0 }
 0x1be   : > { %4164 = vtanh.f32 %v2246_v40  ;;  %v2249_v45 = vadd.f32 %v4875_v56, %v1832_v50  ;;  %2043 = vmatmul.mubr.bf16.gmra.mrb[188].mxu1 %v4083_v41  ;;  %v2279_v63 = vpop.f32.mrb[97].mxu0 }
 0x1bf   : > { %v2280_v2 = vpop.f32.mrb[98].mxu0 }
 0x1c0   : > { %v4161_v48 = vpop.eup %4160  ;;  %4166 = vtanh.f32 %v2249_v45  ;;  %v2282_v9 = vpop.f32.mrb[99].mxu0 }
 0x1c1   : > { %v3512_v57 = vpack.c.bf16 %v4161_v48, %v4161_v48  ;;  %v1836_v58 = vpop.f32.mrb[84].mxu1 }
 0x1c2   : > { %v4163_v51 = vpop.eup %4162  ;;  %v1837_v59 = vadd.f32 %v4894_v23, %v1836_v58  ;;  %v1838_v60 = vpop.f32.mrb[85].mxu1 }
 0x1c3   : > { %2987 = vst.msk [vmem:[%s4604_s25 + $0x98] sm:$0xf] %vm2948_vm1, %v3512_v57  ;;  %v3513_v54 = vpack.c.bf16 %v4163_v51, %v4163_v51  ;;  %v1839_v62 = vpop.f32.mrb[86].mxu1 }
 0x1c4   : > { %v2254_v61 = vadd.f32 %v4884_v7, %v1837_v59  ;;  %v1840_v56 = vadd.f32 %v4894_v23, %v1839_v62  ;;  %v1841_v0 = vpop.f32.mrb[87].mxu1 }
 0x1c5   : > { %2988 = vst.msk [vmem:[%s4604_s25 + $0x9c] sm:$0xf] %vm2948_vm1, %v3513_v54  ;;  %v2285_v18 = vpop.f32.mrb[100].mxu0 }
 0x1c6   : > { %4168 = vtanh.f32 %v2254_v61  ;;  %v2257_v6 = vadd.f32 %v4889_v10, %v1840_v56  ;;  %v2287_v17 = vpop.f32.mrb[101].mxu0 }
 0x1c7   : > { %v2288_v12 = vpop.f32.mrb[102].mxu0 }
 0x1c8   : > { %v4165_v5 = vpop.eup %4164  ;;  %4170 = vtanh.f32 %v2257_v6  ;;  %v2290_v20 = vpop.f32.mrb[103].mxu0 }
 0x1c9   : > { %v3514_v1 = vpack.c.bf16 %v4165_v5, %v4165_v5  ;;  %v1844_v11 = vpop.f32.mrb[88].mxu1 }
 0x1ca   : > { %v4167_v8 = vpop.eup %4166  ;;  %v1845_v4 = vadd.f32 %v4894_v23, %v1844_v11  ;;  %v1846_v13 = vpop.f32.mrb[89].mxu1 }
 0x1cb   : > { %2989 = vst.msk [vmem:[%s4604_s25 + $0xa0] sm:$0xf] %vm2948_vm1, %v3514_v1  ;;  %v3515_v14 = vpack.c.bf16 %v4167_v8, %v4167_v8  ;;  %v1847_v7 = vpop.f32.mrb[90].mxu1 }
 0x1cc   : > { %v2262_v15 = vadd.f32 %v2261_v34, %v1845_v4  ;;  %v1848_v16 = vadd.f32 %v4894_v23, %v1847_v7  ;;  %v1849_v10 = vpop.f32.mrb[91].mxu1 }
 0x1cd   : > { %2990 = vst.msk [vmem:[%s4604_s25 + $0xa4] sm:$0xf] %vm2948_vm1, %v3515_v14  ;;  %v2293_v28 = vpop.f32.mrb[104].mxu0 }
 0x1ce   : > { %4172 = vtanh.f32 %v2262_v15  ;;  %v2265_v25 = vadd.f32 %v2264_v36, %v1848_v16  ;;  %v2295_v36 = vpop.f32.mrb[105].mxu0 }
 0x1cf   : > { %v2296_v31 = vpop.f32.mrb[106].mxu0 }
 0x1d0   : > { %v4169_v19 = vpop.eup %4168  ;;  %4174 = vtanh.f32 %v2265_v25  ;;  %v2298_v38 = vpop.f32.mrb[107].mxu0 }
 0x1d1   : > { %v3516_v21 = vpack.c.bf16 %v4169_v19, %v4169_v19  ;;  %v1852_v27 = vpop.f32.mrb[92].mxu1 }
 0x1d2   : > { %v4171_v22 = vpop.eup %4170  ;;  %v1853_v30 = vadd.f32 %v4894_v23, %v1852_v27  ;;  %v1854_v26 = vpop.f32.mrb[93].mxu1 }
 0x1d3   : > { %2991 = vst.msk [vmem:[%s4604_s25 + $0xa8] sm:$0xf] %vm2948_vm1, %v3516_v21  ;;  %v3517_v32 = vpack.c.bf16 %v4171_v22, %v4171_v22  ;;  %v1855_v29 = vpop.f32.mrb[94].mxu1 }
 0x1d4   : > { %v2270_v24 = vadd.f32 %v2269_v53, %v1853_v30  ;;  %v1856_v34 = vadd.f32 %v4894_v23, %v1855_v29  ;;  %v1857_v35 = vpop.f32.mrb[95].mxu1 }
 0x1d5   : > { %2992 = vst.msk [vmem:[%s4604_s25 + $0xac] sm:$0xf] %vm2948_vm1, %v3517_v32  ;;  %v2301_v49 = vpop.f32.mrb[108].mxu0 }
 0x1d6   : > { %4176 = vtanh.f32 %v2270_v24  ;;  %v2273_v37 = vadd.f32 %v2272_v55, %v1856_v34  ;;  %v2303_v45 = vpop.f32.mrb[109].mxu0 }
 0x1d7   : > { %v2304_v52 = vpop.f32.mrb[110].mxu0 }
 0x1d8   : > { %v4173_v39 = vpop.eup %4172  ;;  %4178 = vtanh.f32 %v2273_v37  ;;  %v2306_v48 = vpop.f32.mrb[111].mxu0 }
 0x1d9   : > { %v3518_v33 = vpack.c.bf16 %v4173_v39, %v4173_v39  ;;  %v1860_v42 = vpop.f32.mrb[96].mxu1 }
 0x1da   : > { %v4175_v44 = vpop.eup %4174  ;;  %v1861_v41 = vadd.f32 %v4894_v23, %v1860_v42  ;;  %v1862_v47 = vpop.f32.mrb[97].mxu1 }
 0x1db   : > { %2993 = vst.msk [vmem:[%s4604_s25 + $0xb0] sm:$0xf] %vm2948_vm1, %v3518_v33  ;;  %v3519_v43 = vpack.c.bf16 %v4175_v44, %v4175_v44  ;;  %v1863_v40 = vpop.f32.mrb[98].mxu1 }
 0x1dc   : > { %v2278_v50 = vadd.f32 %v2277_v3, %v1861_v41  ;;  %v1864_v46 = vadd.f32 %v4894_v23, %v1863_v40  ;;  %v1865_v53 = vpop.f32.mrb[99].mxu1 }
 0x1dd   : > { %2994 = vst.msk [vmem:[%s4604_s25 + $0xb4] sm:$0xf] %vm2948_vm1, %v3519_v43  ;;  %v2309_v63 = vpop.f32.mrb[112].mxu0 }
 0x1de   : > { %4180 = vtanh.f32 %v2278_v50  ;;  %v2281_v55 = vadd.f32 %v2280_v2, %v1864_v46  ;;  %v2311_v6 = vpop.f32.mrb[113].mxu0 }
 0x1df   : > { %v2312_v9 = vpop.f32.mrb[114].mxu0 }
 0x1e0   : > { %v4177_v57 = vpop.eup %4176  ;;  %4182 = vtanh.f32 %v2281_v55  ;;  %v2314_v5 = vpop.f32.mrb[115].mxu0 }
 0x1e1   : > { %v3520_v58 = vpack.c.bf16 %v4177_v57, %v4177_v57  ;;  %v1868_v51 = vpop.f32.mrb[100].mxu1 }
 0x1e2   : > { %v4179_v59 = vpop.eup %4178  ;;  %v1869_v60 = vadd.f32 %v4894_v23, %v1868_v51  ;;  %v1870_v54 = vpop.f32.mrb[101].mxu1 }
 0x1e3   : > { %2995 = vst.msk [vmem:[%s4604_s25 + $0xb8] sm:$0xf] %vm2948_vm1, %v3520_v58  ;;  %v3521_v62 = vpack.c.bf16 %v4179_v59, %v4179_v59  ;;  %v1871_v61 = vpop.f32.mrb[102].mxu1 }
 0x1e4   : > { %v2286_v56 = vadd.f32 %v2285_v18, %v1869_v60  ;;  %v1872_v0 = vadd.f32 %v4894_v23, %v1871_v61  ;;  %v1873_v3 = vpop.f32.mrb[103].mxu1 }
 0x1e5   : > { %2996 = vst.msk [vmem:[%s4604_s25 + $0xbc] sm:$0xf] %vm2948_vm1, %v3521_v62  ;;  %v2317_v17 = vpop.f32.mrb[116].mxu0 }
 0x1e6   : > { %4184 = vtanh.f32 %v2286_v56  ;;  %v2289_v2 = vadd.f32 %v2288_v12, %v1872_v0  ;;  %v2319_v25 = vpop.f32.mrb[117].mxu0 }
 0x1e7   : > { %v2320_v20 = vpop.f32.mrb[118].mxu0 }
 0x1e8   : > { %v4181_v1 = vpop.eup %4180  ;;  %4186 = vtanh.f32 %v2289_v2  ;;  %v2322_v19 = vpop.f32.mrb[119].mxu0 }
 0x1e9   : > { %v3522_v11 = vpack.c.bf16 %v4181_v1, %v4181_v1  ;;  %v1876_v8 = vpop.f32.mrb[104].mxu1 }
 0x1ea   : > { %v4183_v4 = vpop.eup %4182  ;;  %v1877_v13 = vadd.f32 %v4894_v23, %v1876_v8  ;;  %v1878_v14 = vpop.f32.mrb[105].mxu1 }
 0x1eb   : > { %2997 = vst.msk [vmem:[%s4604_s25 + $0xc0] sm:$0xf] %vm2948_vm1, %v3522_v11  ;;  %v3523_v7 = vpack.c.bf16 %v4183_v4, %v4183_v4  ;;  %v1879_v15 = vpop.f32.mrb[106].mxu1 }
 0x1ec   : > { %v2294_v16 = vadd.f32 %v2293_v28, %v1877_v13  ;;  %v1880_v10 = vadd.f32 %v4894_v23, %v1879_v15  ;;  %v1881_v18 = vpop.f32.mrb[107].mxu1 }
 0x1ed   : > { %2998 = vst.msk [vmem:[%s4604_s25 + $0xc4] sm:$0xf] %vm2948_vm1, %v3523_v7  ;;  %v2325_v36 = vpop.f32.mrb[120].mxu0 }
 0x1ee   : > { %4188 = vtanh.f32 %v2294_v16  ;;  %v2297_v12 = vadd.f32 %v2296_v31, %v1880_v10  ;;  %v2327_v37 = vpop.f32.mrb[121].mxu0 }
 0x1ef   : > { %v2328_v38 = vpop.f32.mrb[122].mxu0 }
 0x1f0   : > { %v4185_v21 = vpop.eup %4184  ;;  %4190 = vtanh.f32 %v2297_v12  ;;  %v2330_v39 = vpop.f32.mrb[123].mxu0 }
 0x1f1   : > { %v3524_v27 = vpack.c.bf16 %v4185_v21, %v4185_v21  ;;  %v1884_v22 = vpop.f32.mrb[108].mxu1 }
 0x1f2   : > { %v4187_v30 = vpop.eup %4186  ;;  %v1885_v26 = vadd.f32 %v4894_v23, %v1884_v22  ;;  %v1886_v32 = vpop.f32.mrb[109].mxu1 }
 0x1f3   : > { %2999 = vst.msk [vmem:[%s4604_s25 + $0xc8] sm:$0xf] %vm2948_vm1, %v3524_v27  ;;  %v3525_v29 = vpack.c.bf16 %v4187_v30, %v4187_v30  ;;  %v1887_v24 = vpop.f32.mrb[110].mxu1 }
 0x1f4   : > { %v2302_v34 = vadd.f32 %v2301_v49, %v1885_v26  ;;  %v1888_v35 = vadd.f32 %v4894_v23, %v1887_v24  ;;  %v1889_v28 = vpop.f32.mrb[111].mxu1 }
 0x1f5   : > { %3000 = vst.msk [vmem:[%s4604_s25 + $0xcc] sm:$0xf] %vm2948_vm1, %v3525_v29  ;;  %v2333_v45 = vpop.f32.mrb[124].mxu0 }
 0x1f6   : > { %4192 = vtanh.f32 %v2302_v34  ;;  %v2305_v31 = vadd.f32 %v2304_v52, %v1888_v35  ;;  %v2335_v55 = vpop.f32.mrb[125].mxu0 }
 0x1f7   : > { %v2336_v48 = vpop.f32.mrb[126].mxu0 }
 0x1f8   : > { %v4189_v33 = vpop.eup %4188  ;;  %4194 = vtanh.f32 %v2305_v31  ;;  %v2338_v57 = vpop.f32.mrb[127].mxu0 }
 0x1f9   : > { %v3526_v42 = vpack.c.bf16 %v4189_v33, %v4189_v33  ;;  %v1892_v44 = vpop.f32.mrb[112].mxu1 }
 0x1fa   : > { %v4191_v41 = vpop.eup %4190  ;;  %v1893_v47 = vadd.f32 %v4894_v23, %v1892_v44  ;;  %v1894_v43 = vpop.f32.mrb[113].mxu1 }
 0x1fb   : > { %3001 = vst.msk [vmem:[%s4604_s25 + $0xd0] sm:$0xf] %vm2948_vm1, %v3526_v42  ;;  %v3527_v40 = vpack.c.bf16 %v4191_v41, %v4191_v41  ;;  %v1895_v50 = vpop.f32.mrb[114].mxu1 }
 0x1fc   : > { %v2310_v46 = vadd.f32 %v2309_v63, %v1893_v47  ;;  %v1896_v53 = vadd.f32 %v4894_v23, %v1895_v50  ;;  %v1897_v49 = vpop.f32.mrb[115].mxu1 }
 0x1fd   : > { %3002 = vst.msk [vmem:[%s4604_s25 + $0xd4] sm:$0xf] %vm2948_vm1, %v3527_v40  ;;  %v2341_v6 = vpop.f32.mrb[128].mxu0 }
 0x1fe   : > { %4196 = vtanh.f32 %v2310_v46  ;;  %v2313_v52 = vadd.f32 %v2312_v9, %v1896_v53  ;;  %v2343_v2 = vpop.f32.mrb[129].mxu0 }
 0x1ff   : > { %v2344_v5 = vpop.f32.mrb[130].mxu0 }
 0x200   : > { %v4193_v58 = vpop.eup %4192  ;;  %4198 = vtanh.f32 %v2313_v52  ;;  %v2346_v1 = vpop.f32.mrb[131].mxu0 }
 0x201   : > { %v3528_v51 = vpack.c.bf16 %v4193_v58, %v4193_v58  ;;  %v1900_v59 = vpop.f32.mrb[116].mxu1 }
 0x202   : > { %v4195_v60 = vpop.eup %4194  ;;  %v1901_v54 = vadd.f32 %v4894_v23, %v1900_v59  ;;  %v1902_v62 = vpop.f32.mrb[117].mxu1 }
 0x203   : > { %3003 = vst.msk [vmem:[%s4604_s25 + $0xd8] sm:$0xf] %vm2948_vm1, %v3528_v51  ;;  %v3529_v61 = vpack.c.bf16 %v4195_v60, %v4195_v60  ;;  %v1903_v56 = vpop.f32.mrb[118].mxu1 }
 0x204   : > { %v2318_v0 = vadd.f32 %v2317_v17, %v1901_v54  ;;  %v1904_v3 = vadd.f32 %v4894_v23, %v1903_v56  ;;  %v1905_v63 = vpop.f32.mrb[119].mxu1 }
 0x205   : > { %3004 = vst.msk [vmem:[%s4604_s25 + $0xdc] sm:$0xf] %vm2948_vm1, %v3529_v61  ;;  %v2349_v25 = vpop.f32.mrb[132].mxu0 }
 0x206   : > { %4200 = vtanh.f32 %v2318_v0  ;;  %v2321_v9 = vadd.f32 %v2320_v20, %v1904_v3  ;;  %v2351_v12 = vpop.f32.mrb[133].mxu0 }
 0x207   : > { %v2352_v19 = vpop.f32.mrb[134].mxu0 }
 0x208   : > { %v4197_v11 = vpop.eup %4196  ;;  %4202 = vtanh.f32 %v2321_v9  ;;  %v2354_v21 = vpop.f32.mrb[135].mxu0 }
 0x209   : > { %v3530_v8 = vpack.c.bf16 %v4197_v11, %v4197_v11  ;;  %v1908_v4 = vpop.f32.mrb[120].mxu1 }
 0x20a   : > { %v4199_v13 = vpop.eup %4198  ;;  %v1909_v14 = vadd.f32 %v4894_v23, %v1908_v4  ;;  %v1910_v7 = vpop.f32.mrb[121].mxu1 }
 0x20b   : > { %3005 = vst.msk [vmem:[%s4604_s25 + $0xe0] sm:$0xf] %vm2948_vm1, %v3530_v8  ;;  %v3531_v15 = vpack.c.bf16 %v4199_v13, %v4199_v13  ;;  %v1911_v16 = vpop.f32.mrb[122].mxu1 }
 0x20c   : > { %v2326_v10 = vadd.f32 %v2325_v36, %v1909_v14  ;;  %v1912_v18 = vadd.f32 %v4894_v23, %v1911_v16  ;;  %v1913_v17 = vpop.f32.mrb[123].mxu1 }
 0x20d   : > { %3006 = vst.msk [vmem:[%s4604_s25 + $0xe4] sm:$0xf] %vm2948_vm1, %v3531_v15  ;;  %v2357_v37 = vpop.f32.mrb[136].mxu0 }
 0x20e   : > { %4204 = vtanh.f32 %v2326_v10  ;;  %v2329_v20 = vadd.f32 %v2328_v38, %v1912_v18  ;;  %v2359_v31 = vpop.f32.mrb[137].mxu0 }
 0x20f   : > { %v2360_v39 = vpop.f32.mrb[138].mxu0 }
 0x210   : > { %v4201_v27 = vpop.eup %4200  ;;  %4206 = vtanh.f32 %v2329_v20  ;;  %v2362_v33 = vpop.f32.mrb[139].mxu0 }
 0x211   : > { %v3532_v22 = vpack.c.bf16 %v4201_v27, %v4201_v27  ;;  %v1916_v30 = vpop.f32.mrb[124].mxu1 }
 0x212   : > { %v4203_v26 = vpop.eup %4202  ;;  %v1917_v32 = vadd.f32 %v4894_v23, %v1916_v30  ;;  %v1918_v29 = vpop.f32.mrb[125].mxu1 }
 0x213   : > { %3007 = vst.msk [vmem:[%s4604_s25 + $0xe8] sm:$0xf] %vm2948_vm1, %v3532_v22  ;;  %v3533_v24 = vpack.c.bf16 %v4203_v26, %v4203_v26  ;;  %v1919_v34 = vpop.f32.mrb[126].mxu1 }
 0x214   : > { %v2334_v35 = vadd.f32 %v2333_v45, %v1917_v32  ;;  %v1920_v28 = vadd.f32 %v4894_v23, %v1919_v34  ;;  %v1921_v36 = vpop.f32.mrb[127].mxu1 }
 0x215   : > { %3008 = vst.msk [vmem:[%s4604_s25 + $0xec] sm:$0xf] %vm2948_vm1, %v3533_v24  ;;  %v2365_v55 = vpop.f32.mrb[140].mxu0 }
 0x216   : > { %4208 = vtanh.f32 %v2334_v35  ;;  %v2337_v38 = vadd.f32 %v2336_v48, %v1920_v28  ;;  %v2367_v52 = vpop.f32.mrb[141].mxu0 }
 0x217   : > { %v2368_v57 = vpop.f32.mrb[142].mxu0 }
 0x218   : > { %v4205_v42 = vpop.eup %4204  ;;  %4210 = vtanh.f32 %v2337_v38  ;;  %v2370_v58 = vpop.f32.mrb[143].mxu0 }
 0x219   : > { %v3534_v44 = vpack.c.bf16 %v4205_v42, %v4205_v42  ;;  %v1924_v41 = vpop.f32.mrb[128].mxu1 }
 0x21a   : > { %v4207_v47 = vpop.eup %4206  ;;  %v1925_v43 = vadd.f32 %v4894_v23, %v1924_v41  ;;  %v1926_v40 = vpop.f32.mrb[129].mxu1 }
 0x21b   : > { %3009 = vst.msk [vmem:[%s4604_s25 + $0xf0] sm:$0xf] %vm2948_vm1, %v3534_v44  ;;  %v3535_v50 = vpack.c.bf16 %v4207_v47, %v4207_v47  ;;  %v1927_v46 = vpop.f32.mrb[130].mxu1 }
 0x21c   : > { %v2342_v53 = vadd.f32 %v2341_v6, %v1925_v43  ;;  %v1928_v49 = vadd.f32 %v4894_v23, %v1927_v46  ;;  %v1929_v45 = vpop.f32.mrb[131].mxu1 }
 0x21d   : > { %3010 = vst.msk [vmem:[%s4604_s25 + $0xf4] sm:$0xf] %vm2948_vm1, %v3535_v50  ;;  %v2373_v2 = vpop.f32.mrb[144].mxu0 }
 0x21e   : > { %4212 = vtanh.f32 %v2342_v53  ;;  %v2345_v48 = vadd.f32 %v2344_v5, %v1928_v49  ;;  %v2375_v9 = vpop.f32.mrb[145].mxu0 }
 0x21f   : > { %v2376_v1 = vpop.f32.mrb[146].mxu0 }
 0x220   : > { %v4209_v51 = vpop.eup %4208  ;;  %4214 = vtanh.f32 %v2345_v48  ;;  %v2378_v11 = vpop.f32.mrb[147].mxu0 }
 0x221   : > { %v3536_v59 = vpack.c.bf16 %v4209_v51, %v4209_v51  ;;  %v1932_v60 = vpop.f32.mrb[132].mxu1 }
 0x222   : > { %v4211_v54 = vpop.eup %4210  ;;  %v1933_v62 = vadd.f32 %v4894_v23, %v1932_v60  ;;  %v1934_v61 = vpop.f32.mrb[133].mxu1 }
 0x223   : > { %3011 = vst.msk [vmem:[%s4604_s25 + $0xf8] sm:$0xf] %vm2948_vm1, %v3536_v59  ;;  %v3537_v56 = vpack.c.bf16 %v4211_v54, %v4211_v54  ;;  %v1935_v0 = vpop.f32.mrb[134].mxu1 }
 0x224   : > { %v2350_v3 = vadd.f32 %v2349_v25, %v1933_v62  ;;  %v1936_v63 = vadd.f32 %v4894_v23, %v1935_v0  ;;  %v1937_v6 = vpop.f32.mrb[135].mxu1 }
 0x225   : > { %3012 = vst.msk [vmem:[%s4604_s25 + $0xfc] sm:$0xf] %vm2948_vm1, %v3537_v56  ;;  %v2381_v12 = vpop.f32.mrb[148].mxu0 }
 0x226   : > { %4216 = vtanh.f32 %v2350_v3  ;;  %v2353_v5 = vadd.f32 %v2352_v19, %v1936_v63  ;;  %v2383_v20 = vpop.f32.mrb[149].mxu0 }
 0x227   : > { %v2384_v21 = vpop.f32.mrb[150].mxu0 }
 0x228   : > { %v4213_v8 = vpop.eup %4212  ;;  %4218 = vtanh.f32 %v2353_v5  ;;  %v2386_v27 = vpop.f32.mrb[151].mxu0 }
 0x229   : > { %v3538_v4 = vpack.c.bf16 %v4213_v8, %v4213_v8  ;;  %v1940_v13 = vpop.f32.mrb[136].mxu1 }
 0x22a   : > { %v4215_v14 = vpop.eup %4214  ;;  %v1941_v7 = vadd.f32 %v4894_v23, %v1940_v13  ;;  %v1942_v15 = vpop.f32.mrb[137].mxu1 }
 0x22b   : > { %3013 = vst.msk [vmem:[%s4604_s25 + $0x100] sm:$0xf] %vm2948_vm1, %v3538_v4  ;;  %v3539_v16 = vpack.c.bf16 %v4215_v14, %v4215_v14  ;;  %v1943_v10 = vpop.f32.mrb[138].mxu1 }
 0x22c   : > { %v2358_v18 = vadd.f32 %v2357_v37, %v1941_v7  ;;  %v1944_v17 = vadd.f32 %v4894_v23, %v1943_v10  ;;  %v1945_v25 = vpop.f32.mrb[139].mxu1 }
 0x22d   : > { %3014 = vst.msk [vmem:[%s4604_s25 + $0x104] sm:$0xf] %vm2948_vm1, %v3539_v16  ;;  %v2389_v31 = vpop.f32.mrb[152].mxu0 }
 0x22e   : > { %4220 = vtanh.f32 %v2358_v18  ;;  %v2361_v19 = vadd.f32 %v2360_v39, %v1944_v17  ;;  %v2391_v38 = vpop.f32.mrb[153].mxu0 }
 0x22f   : > { %v2392_v33 = vpop.f32.mrb[154].mxu0 }
 0x230   : > { %v4217_v22 = vpop.eup %4216  ;;  %4222 = vtanh.f32 %v2361_v19  ;;  %v2394_v42 = vpop.f32.mrb[155].mxu0 }
 0x231   : > { %v3540_v30 = vpack.c.bf16 %v4217_v22, %v4217_v22  ;;  %v1948_v26 = vpop.f32.mrb[140].mxu1 }
 0x232   : > { %v4219_v32 = vpop.eup %4218  ;;  %v1949_v29 = vadd.f32 %v4894_v23, %v1948_v26  ;;  %v1950_v24 = vpop.f32.mrb[141].mxu1 }
 0x233   : > { %3015 = vst.msk [vmem:[%s4604_s25 + $0x108] sm:$0xf] %vm2948_vm1, %v3540_v30  ;;  %v3541_v34 = vpack.c.bf16 %v4219_v32, %v4219_v32  ;;  %v1951_v35 = vpop.f32.mrb[142].mxu1 }
 0x234   : > { %v2366_v28 = vadd.f32 %v2365_v55, %v1949_v29  ;;  %v1952_v36 = vadd.f32 %v4894_v23, %v1951_v35  ;;  %v1953_v37 = vpop.f32.mrb[143].mxu1 }
 0x235   : > { %3016 = vst.msk [vmem:[%s4604_s25 + $0x10c] sm:$0xf] %vm2948_vm1, %v3541_v34  ;;  %v2397_v52 = vpop.f32.mrb[156].mxu0 }
 0x236   : > { %4224 = vtanh.f32 %v2366_v28  ;;  %v2369_v39 = vadd.f32 %v2368_v57, %v1952_v36  ;;  %v2399_v48 = vpop.f32.mrb[157].mxu0 }
 0x237   : > { %v2400_v58 = vpop.f32.mrb[158].mxu0 }
 0x238   : > { %v4221_v44 = vpop.eup %4220  ;;  %4226 = vtanh.f32 %v2369_v39  ;;  %v2402_v51 = vpop.f32.mrb[159].mxu0 }
 0x239   : > { %v3542_v41 = vpack.c.bf16 %v4221_v44, %v4221_v44  ;;  %v1956_v47 = vpop.f32.mrb[144].mxu1 }
 0x23a   : > { %v4223_v43 = vpop.eup %4222  ;;  %v1957_v40 = vadd.f32 %v4894_v23, %v1956_v47  ;;  %v1958_v50 = vpop.f32.mrb[145].mxu1 }
 0x23b   : > { %3017 = vst.msk [vmem:[%s4604_s25 + $0x110] sm:$0xf] %vm2948_vm1, %v3542_v41  ;;  %v3543_v46 = vpack.c.bf16 %v4223_v43, %v4223_v43  ;;  %v1959_v53 = vpop.f32.mrb[146].mxu1 }
 0x23c   : > { %v2374_v49 = vadd.f32 %v2373_v2, %v1957_v40  ;;  %v1960_v45 = vadd.f32 %v4894_v23, %v1959_v53  ;;  %v1961_v55 = vpop.f32.mrb[147].mxu1 }
 0x23d   : > { %3018 = vst.msk [vmem:[%s4604_s25 + $0x114] sm:$0xf] %vm2948_vm1, %v3543_v46  ;;  %v2405_v9 = vpop.f32.mrb[160].mxu0 }
 0x23e   : > { %4228 = vtanh.f32 %v2374_v49  ;;  %v2377_v57 = vadd.f32 %v2376_v1, %v1960_v45  ;;  %v2407_v5 = vpop.f32.mrb[161].mxu0 }
 0x23f   : > { %v2408_v11 = vpop.f32.mrb[162].mxu0 }
 0x240   : > { %v4225_v59 = vpop.eup %4224  ;;  %4230 = vtanh.f32 %v2377_v57  ;;  %v2410_v8 = vpop.f32.mrb[163].mxu0 }
 0x241   : > { %v3544_v60 = vpack.c.bf16 %v4225_v59, %v4225_v59  ;;  %v1964_v54 = vpop.f32.mrb[148].mxu1 }
 0x242   : > { %v4227_v62 = vpop.eup %4226  ;;  %v1965_v61 = vadd.f32 %v4894_v23, %v1964_v54  ;;  %v1966_v56 = vpop.f32.mrb[149].mxu1 }
 0x243   : > { %3019 = vst.msk [vmem:[%s4604_s25 + $0x118] sm:$0xf] %vm2948_vm1, %v3544_v60  ;;  %v3545_v0 = vpack.c.bf16 %v4227_v62, %v4227_v62  ;;  %v1967_v3 = vpop.f32.mrb[150].mxu1 }
 0x244   : > { %v2382_v63 = vadd.f32 %v2381_v12, %v1965_v61  ;;  %v1968_v6 = vadd.f32 %v4894_v23, %v1967_v3  ;;  %v1969_v2 = vpop.f32.mrb[151].mxu1 }
 0x245   : > { %3020 = vst.msk [vmem:[%s4604_s25 + $0x11c] sm:$0xf] %vm2948_vm1, %v3545_v0  ;;  %v2413_v20 = vpop.f32.mrb[164].mxu0 }
 0x246   : > { %4232 = vtanh.f32 %v2382_v63  ;;  %v2385_v1 = vadd.f32 %v2384_v21, %v1968_v6  ;;  %v2415_v19 = vpop.f32.mrb[165].mxu0 }
 0x247   : > { %v2416_v27 = vpop.f32.mrb[166].mxu0 }
 0x248   : > { %v4229_v4 = vpop.eup %4228  ;;  %4234 = vtanh.f32 %v2385_v1  ;;  %v2418_v22 = vpop.f32.mrb[167].mxu0 }
 0x249   : > { %v3546_v13 = vpack.c.bf16 %v4229_v4, %v4229_v4  ;;  %v1972_v14 = vpop.f32.mrb[152].mxu1 }
 0x24a   : > { %v4231_v7 = vpop.eup %4230  ;;  %v1973_v15 = vadd.f32 %v4894_v23, %v1972_v14  ;;  %v1974_v16 = vpop.f32.mrb[153].mxu1 }
 0x24b   : > { %3021 = vst.msk [vmem:[%s4604_s25 + $0x120] sm:$0xf] %vm2948_vm1, %v3546_v13  ;;  %v3547_v10 = vpack.c.bf16 %v4231_v7, %v4231_v7  ;;  %v1975_v18 = vpop.f32.mrb[154].mxu1 }
 0x24c   : > { %v2390_v17 = vadd.f32 %v2389_v31, %v1973_v15  ;;  %v1976_v25 = vadd.f32 %v4894_v23, %v1975_v18  ;;  %v1977_v12 = vpop.f32.mrb[155].mxu1 }
 0x24d   : > { %3022 = vst.msk [vmem:[%s4604_s25 + $0x124] sm:$0xf] %vm2948_vm1, %v3547_v10  ;;  %v2421_v38 = vpop.f32.mrb[168].mxu0 }
 0x24e   : > { %4236 = vtanh.f32 %v2390_v17  ;;  %v2393_v21 = vadd.f32 %v2392_v33, %v1976_v25  ;;  %v2423_v39 = vpop.f32.mrb[169].mxu0 }
 0x24f   : > { %v2424_v42 = vpop.f32.mrb[170].mxu0 }
 0x250   : > { %v4233_v30 = vpop.eup %4232  ;;  %4238 = vtanh.f32 %v2393_v21  ;;  %v2426_v44 = vpop.f32.mrb[171].mxu0 }
 0x251   : > { %v3548_v26 = vpack.c.bf16 %v4233_v30, %v4233_v30  ;;  %v1980_v32 = vpop.f32.mrb[156].mxu1 }
 0x252   : > { %v4235_v29 = vpop.eup %4234  ;;  %v1981_v24 = vadd.f32 %v4894_v23, %v1980_v32  ;;  %v1982_v34 = vpop.f32.mrb[157].mxu1 }
 0x253   : > { %3023 = vst.msk [vmem:[%s4604_s25 + $0x128] sm:$0xf] %vm2948_vm1, %v3548_v26  ;;  %v3549_v35 = vpack.c.bf16 %v4235_v29, %v4235_v29  ;;  %v1983_v28 = vpop.f32.mrb[158].mxu1 }
 0x254   : > { %v2398_v36 = vadd.f32 %v2397_v52, %v1981_v24  ;;  %v1984_v37 = vadd.f32 %v4894_v23, %v1983_v28  ;;  %v1985_v31 = vpop.f32.mrb[159].mxu1 }
 0x255   : > { %3024 = vst.msk [vmem:[%s4604_s25 + $0x12c] sm:$0xf] %vm2948_vm1, %v3549_v35  ;;  %v2429_v48 = vpop.f32.mrb[172].mxu0 }
 0x256   : > { %4240 = vtanh.f32 %v2398_v36  ;;  %v2401_v33 = vadd.f32 %v2400_v58, %v1984_v37  ;;  %v2431_v57 = vpop.f32.mrb[173].mxu0 }
 0x257   : > { %v2432_v51 = vpop.f32.mrb[174].mxu0 }
 0x258   : > { %v4237_v41 = vpop.eup %4236  ;;  %4242 = vtanh.f32 %v2401_v33  ;;  %v2434_v59 = vpop.f32.mrb[175].mxu0 }
 0x259   : > { %v3550_v47 = vpack.c.bf16 %v4237_v41, %v4237_v41  ;;  %v1988_v43 = vpop.f32.mrb[160].mxu1 }
 0x25a   : > { %v4239_v40 = vpop.eup %4238  ;;  %v1989_v50 = vadd.f32 %v4894_v23, %v1988_v43  ;;  %v1990_v46 = vpop.f32.mrb[161].mxu1 }
 0x25b   : > { %3025 = vst.msk [vmem:[%s4604_s25 + $0x130] sm:$0xf] %vm2948_vm1, %v3550_v47  ;;  %v3551_v53 = vpack.c.bf16 %v4239_v40, %v4239_v40  ;;  %v1991_v49 = vpop.f32.mrb[162].mxu1 }
 0x25c   : > { %v2406_v45 = vadd.f32 %v2405_v9, %v1989_v50  ;;  %v1992_v55 = vadd.f32 %v4894_v23, %v1991_v49  ;;  %v1993_v52 = vpop.f32.mrb[163].mxu1 }
 0x25d   : > { %3026 = vst.msk [vmem:[%s4604_s25 + $0x134] sm:$0xf] %vm2948_vm1, %v3551_v53  ;;  %v2437_v5 = vpop.f32.mrb[176].mxu0  ;;  %v4277_v52 = vld [vmem:[%s5088_s2] ss:$0 sm:$0xff] }
 0x25e   : > { %4244 = vtanh.f32 %v2406_v45  ;;  %v2409_v58 = vadd.f32 %v2408_v11, %v1992_v55  ;;  %v2439_v1 = vpop.f32.mrb[177].mxu0 }
 0x25f   : > { %v2440_v8 = vpop.f32.mrb[178].mxu0 }
 0x260   : > { %v4241_v60 = vpop.eup %4240  ;;  %4246 = vtanh.f32 %v2409_v58  ;;  %v2442_v4 = vpop.f32.mrb[179].mxu0 }
 0x261   : > { %v3552_v54 = vpack.c.bf16 %v4241_v60, %v4241_v60  ;;  %v1996_v62 = vpop.f32.mrb[164].mxu1 }
 0x262   : > { %v4243_v61 = vpop.eup %4242  ;;  %v1997_v56 = vadd.f32 %v4894_v23, %v1996_v62  ;;  %v1998_v0 = vpop.f32.mrb[165].mxu1 }
 0x263   : > { %3027 = vst.msk [vmem:[%s4604_s25 + $0x138] sm:$0xf] %vm2948_vm1, %v3552_v54  ;;  %v3553_v3 = vpack.c.bf16 %v4243_v61, %v4243_v61  ;;  %v1999_v63 = vpop.f32.mrb[166].mxu1 }
 0x264   : > { %v2414_v6 = vadd.f32 %v2413_v20, %v1997_v56  ;;  %v2000_v2 = vadd.f32 %v4894_v23, %v1999_v63  ;;  %v2001_v9 = vpop.f32.mrb[167].mxu1 }
 0x265   : > { %3028 = vst.msk [vmem:[%s4604_s25 + $0x13c] sm:$0xf] %vm2948_vm1, %v3553_v3  ;;  %v2445_v19 = vpop.f32.mrb[180].mxu0 }
 0x266   : > { %4248 = vtanh.f32 %v2414_v6  ;;  %v2417_v11 = vadd.f32 %v2416_v27, %v2000_v2  ;;  %v2447_v21 = vpop.f32.mrb[181].mxu0 }
 0x267   : > { %v2448_v22 = vpop.f32.mrb[182].mxu0 }
 0x268   : > { %v4245_v13 = vpop.eup %4244  ;;  %4250 = vtanh.f32 %v2417_v11  ;;  %v2450_v30 = vpop.f32.mrb[183].mxu0 }
 0x269   : > { %v3554_v14 = vpack.c.bf16 %v4245_v13, %v4245_v13  ;;  %v2004_v7 = vpop.f32.mrb[168].mxu1 }
 0x26a   : > { %v4247_v15 = vpop.eup %4246  ;;  %v2005_v16 = vadd.f32 %v4894_v23, %v2004_v7  ;;  %v2006_v10 = vpop.f32.mrb[169].mxu1 }
 0x26b   : > { %3029 = vst.msk [vmem:[%s4604_s25 + $0x140] sm:$0xf] %vm2948_vm1, %v3554_v14  ;;  %v3555_v18 = vpack.c.bf16 %v4247_v15, %v4247_v15  ;;  %v2007_v17 = vpop.f32.mrb[170].mxu1 }
 0x26c   : > { %v2422_v25 = vadd.f32 %v2421_v38, %v2005_v16  ;;  %v2008_v12 = vadd.f32 %v4894_v23, %v2007_v17  ;;  %v2009_v20 = vpop.f32.mrb[171].mxu1 }
 0x26d   : > { %3030 = vst.msk [vmem:[%s4604_s25 + $0x144] sm:$0xf] %vm2948_vm1, %v3555_v18  ;;  %v2453_v39 = vpop.f32.mrb[184].mxu0 }
 0x26e   : > { %4252 = vtanh.f32 %v2422_v25  ;;  %v2425_v27 = vadd.f32 %v2424_v42, %v2008_v12  ;;  %v2455_v33 = vpop.f32.mrb[185].mxu0 }
 0x26f   : > { %v2456_v44 = vpop.f32.mrb[186].mxu0 }
 0x270   : > { %v4249_v26 = vpop.eup %4248  ;;  %4254 = vtanh.f32 %v2425_v27  ;;  %v2458_v41 = vpop.f32.mrb[187].mxu0 }
 0x271   : > { %v3556_v32 = vpack.c.bf16 %v4249_v26, %v4249_v26  ;;  %v2012_v29 = vpop.f32.mrb[172].mxu1 }
 0x272   : > { %v4251_v24 = vpop.eup %4250  ;;  %v2013_v34 = vadd.f32 %v4894_v23, %v2012_v29  ;;  %v2014_v35 = vpop.f32.mrb[173].mxu1 }
 0x273   : > { %3031 = vst.msk [vmem:[%s4604_s25 + $0x148] sm:$0xf] %vm2948_vm1, %v3556_v32  ;;  %v3557_v28 = vpack.c.bf16 %v4251_v24, %v4251_v24  ;;  %v2015_v36 = vpop.f32.mrb[174].mxu1 }
 0x274   : > { %v2430_v37 = vadd.f32 %v2429_v48, %v2013_v34  ;;  %v2016_v31 = vadd.f32 %v4894_v23, %v2015_v36  ;;  %v2017_v38 = vpop.f32.mrb[175].mxu1 }
 0x275   : > { %3032 = vst.msk [vmem:[%s4604_s25 + $0x14c] sm:$0xf] %vm2948_vm1, %v3557_v28  ;;  %v2461_v58 = vpop.f32.mrb[188].mxu0 }
 0x276   : > { %4256 = vtanh.f32 %v2430_v37  ;;  %v2433_v42 = vadd.f32 %v2432_v51, %v2016_v31  ;;  %v2463_v51 = vpop.f32.mrb[189].mxu0 }
 0x278   : > { %v4253_v47 = vpop.eup %4252  ;;  %4258 = vtanh.f32 %v2433_v42 }
 0x279   : > { %v3558_v43 = vpack.c.bf16 %v4253_v47, %v4253_v47  ;;  %v2020_v40 = vpop.f32.mrb[176].mxu1 }
 0x27a   : > { %v4255_v50 = vpop.eup %4254  ;;  %v2021_v46 = vadd.f32 %v4894_v23, %v2020_v40  ;;  %v2022_v53 = vpop.f32.mrb[177].mxu1 }
 0x27b   : > { %3033 = vst.msk [vmem:[%s4604_s25 + $0x150] sm:$0xf] %vm2948_vm1, %v3558_v43  ;;  %v3559_v49 = vpack.c.bf16 %v4255_v50, %v4255_v50  ;;  %v2023_v45 = vpop.f32.mrb[178].mxu1  ;;  %v2464_v23 = vpop.f32.mrb[190].mxu0 }
 0x27c   : > { %v2438_v55 = vadd.f32 %v2437_v5, %v2021_v46  ;;  %v2024_v48 = vadd.f32 %v4277_v52, %v2023_v45  ;;  %v2025_v57 = vpop.f32.mrb[179].mxu1  ;;  %v2466_v60 = vpop.f32.mrb[191].mxu0 }
 0x27d   : > { %3034 = vst.msk [vmem:[%s4604_s25 + $0x154] sm:$0xf] %vm2948_vm1, %v3559_v49 }
 0x27e   : > { %4260 = vtanh.f32 %v2438_v55  ;;  %v2441_v59 = vadd.f32 %v2440_v8, %v2024_v48 }
 0x280   : > { %v4257_v54 = vpop.eup %4256  ;;  %4262 = vtanh.f32 %v2441_v59 }
 0x281   : > { %v3560_v62 = vpack.c.bf16 %v4257_v54, %v4257_v54  ;;  %v2028_v61 = vpop.f32.mrb[180].mxu1 }
 0x282   : > { %v4259_v56 = vpop.eup %4258  ;;  %v2029_v0 = vadd.f32 %v4277_v52, %v2028_v61  ;;  %v2030_v3 = vpop.f32.mrb[181].mxu1 }
 0x283   : > { %3035 = vst.msk [vmem:[%s4604_s25 + $0x158] sm:$0xf] %vm2948_vm1, %v3560_v62  ;;  %v3561_v63 = vpack.c.bf16 %v4259_v56, %v4259_v56  ;;  %v2031_v6 = vpop.f32.mrb[182].mxu1 }
 0x284   : > { %v2446_v2 = vadd.f32 %v2445_v19, %v2029_v0  ;;  %v2032_v9 = vadd.f32 %v4277_v52, %v2031_v6  ;;  %v2033_v5 = vpop.f32.mrb[183].mxu1 }
 0x285   : > { %3036 = vst.msk [vmem:[%s4604_s25 + $0x15c] sm:$0xf] %vm2948_vm1, %v3561_v63 }
 0x286   : > { %4264 = vtanh.f32 %v2446_v2  ;;  %v2449_v1 = vadd.f32 %v2448_v22, %v2032_v9 }
 0x288   : > { %v4261_v11 = vpop.eup %4260  ;;  %4266 = vtanh.f32 %v2449_v1 }
 0x289   : > { %v3562_v8 = vpack.c.bf16 %v4261_v11, %v4261_v11  ;;  %v2036_v4 = vpop.f32.mrb[184].mxu1 }
 0x28a   : > { %v4263_v13 = vpop.eup %4262  ;;  %v2037_v14 = vadd.f32 %v4277_v52, %v2036_v4  ;;  %v2038_v7 = vpop.f32.mrb[185].mxu1 }
 0x28b   : > { %3037 = vst.msk [vmem:[%s4604_s25 + $0x160] sm:$0xf] %vm2948_vm1, %v3562_v8  ;;  %v3563_v15 = vpack.c.bf16 %v4263_v13, %v4263_v13  ;;  %v2039_v16 = vpop.f32.mrb[186].mxu1 }
 0x28c   : > { %v2454_v10 = vadd.f32 %v2453_v39, %v2037_v14  ;;  %v2040_v18 = vadd.f32 %v4277_v52, %v2039_v16  ;;  %v2041_v17 = vpop.f32.mrb[187].mxu1 }
 0x28d   : > { %3038 = vst.msk [vmem:[%s4604_s25 + $0x164] sm:$0xf] %vm2948_vm1, %v3563_v15 }
 0x28e   : > { %4268 = vtanh.f32 %v2454_v10  ;;  %v2457_v25 = vadd.f32 %v2456_v44, %v2040_v18 }
 0x290   : > { %v4265_v12 = vpop.eup %4264  ;;  %4270 = vtanh.f32 %v2457_v25 }
 0x291   : > { %v3564_v20 = vpack.c.bf16 %v4265_v12, %v4265_v12  ;;  %v2044_v19 = vpop.f32.mrb[188].mxu1 }
 0x292   : > { %v4267_v21 = vpop.eup %4266  ;;  %v2045_v27 = vadd.f32 %v4277_v52, %v2044_v19  ;;  %v2046_v22 = vpop.f32.mrb[189].mxu1 }
 0x293   : > { %3039 = vst.msk [vmem:[%s4604_s25 + $0x168] sm:$0xf] %vm2948_vm1, %v3564_v20  ;;  %v3565_v30 = vpack.c.bf16 %v4267_v21, %v4267_v21  ;;  %v2047_v26 = vpop.f32.mrb[190].mxu1 }
 0x294   : > { %v2462_v32 = vadd.f32 %v2461_v58, %v2045_v27  ;;  %v2048_v29 = vadd.f32 %v4277_v52, %v2047_v26  ;;  %v2049_v24 = vpop.f32.mrb[191].mxu1 }
 0x295   : > { %3040 = vst.msk [vmem:[%s4604_s25 + $0x16c] sm:$0xf] %vm2948_vm1, %v3565_v30 }
 0x296   : > { %4272 = vtanh.f32 %v2462_v32  ;;  %v2465_v34 = vadd.f32 %v2464_v23, %v2048_v29 }
 0x298   : > { %v4269_v35 = vpop.eup %4268  ;;  %4274 = vtanh.f32 %v2465_v34 }
 0x299   : > { %v3566_v28 = vpack.c.bf16 %v4269_v35, %v4269_v35 }
 0x29a   : > { %v4271_v36 = vpop.eup %4270 }
 0x29b   : > { %3041 = vst.msk [vmem:[%s4604_s25 + $0x170] sm:$0xf] %vm2948_vm1, %v3566_v28  ;;  %v3567_v37 = vpack.c.bf16 %v4271_v36, %v4271_v36 }
 0x29d   : > { %3042 = vst.msk [vmem:[%s4604_s25 + $0x174] sm:$0xf] %vm2948_vm1, %v3567_v37 }
 0x2a0   : > { %v4273_v31 = vpop.eup %4272 }
 0x2a1   : > { %v3568_v38 = vpack.c.bf16 %v4273_v31, %v4273_v31 }
 0x2a2   : > { %v4275_v39 = vpop.eup %4274 }
 0x2a3   : > { %3043 = vst.msk [vmem:[%s4604_s25 + $0x178] sm:$0xf] %vm2948_vm1, %v3568_v38  ;;  %v3569_v33 = vpack.c.bf16 %v4275_v39, %v4275_v39 }
 0x2a5   : > { %3044 = vst.msk [vmem:[%s4604_s25 + $0x17c] sm:$0xf] %vm2948_vm1, %v3569_v33 }
 0x2a6 PF: > { %s13_s12 = sadd.s32 1, %s4284_s12  }
 0x2a7   : > { %p10_p4 = scmp.ge.s32.totalorder %s13_s12, 4  }
 0x2a9   :  { %12 = sbr.rel (!%p10_p4) target bundleno = 1 (0x1), region = 62 }

// kernel: forward.7
= control target key start
LH: loop header
LB: loop body
LE: loop exit
PB: predicated region body
PF: predicated region fallthrough
CT: control target
= control target key end

     0   :  { %s3502_s12 = smov 0   ;;  %s4312_s0 = inlined_call_operand.vmem [shape: bf16[640,800], index: 0, kind: input, shape index: {}]   ;;  %s4313_s1 = inlined_call_operand.vmem [shape: bf16[800,32], index: 1, kind: input, shape index: {}]   ;;  %s4314_s2 = inlined_call_operand.vmem [shape: f32[1,32], index: 2, kind: input, shape index: {}]   ;;  %s4315_s3 = inlined_call_operand.vmem [shape: bf16[640,32], index: 3, kind: output, shape index: {}]  }
   0x1 LB: > { %s2575_s13 = sadd.s32 4294967295, %s3479_s12   ;;  %p2579_p0 = scmp.ge.s32.totalorder %s3479_s12, 1  ;;  %s3479_s12 = sphi %s3502_s12, %s13_s12  }
   0x2   : > { %p139_p1 = scmp.lt.s32.totalorder %s3479_s12, 3 }
   0x4   : > { %p140_p2 = pnand %p2579_p0, %p139_p1 }
   0x5   : > { %v3143_v0 = vld [vmem:[%s4313_s1] sm:$0xff] (!%p140_p2)   ;;  %v3481_v1 = vmov (!%p140_p2), 0   ;;  %v3145_v3 = vld [vmem:[%s4313_s1 + $0x8] sm:$0xff] (!%p140_p2)   ;;  %v3147_v5 = vld [vmem:[%s4313_s1 + $0x10] sm:$0xff] (!%p140_p2)   ;;  %s164_s5 = smul.u32 (!%p140_p2), 40, %s2575_s13  ;;  %vm1445_vm0 = vcmask (!%p140_p2), 261120  }
   0x6   : > { %143 = sbr.rel (%p140_p2) target bundleno = 575 (0x23f), region = 32  ;;  %1506 = vmatprep.subr.bf16.mxu1 (!%p140_p2), %v3481_v1  ;;  %1699 = vmatprep.subr.bf16.mxu0 (!%p140_p2), %v3481_v1  ;;  %v3518_v2 = vld [vmem:[%s4313_s1 + $0x80] sm:$0xff] (!%p140_p2)   ;;  %v3528_v4 = vld [vmem:[%s4313_s1 + $0x88] sm:$0xff] (!%p140_p2)   ;;  %v3539_v6 = vld [vmem:[%s4313_s1 + $0x90] sm:$0xff] (!%p140_p2)   ;;  %vm2478_vm1 = vcmask (!%p140_p2), 257024  }
   0x7   : > { %1507 = vmatpush1.bf16.msra.mxu1 (!%p140_p2), %v3143_v0  ;;  %1700 = vmatpush1.bf16.msra.mxu0 (!%p140_p2), %v3518_v2  ;;  %v3149_v7 = vld [vmem:[%s4313_s1 + $0x18] sm:$0xff] (!%p140_p2)   ;;  %v3151_v9 = vld [vmem:[%s4313_s1 + $0x20] sm:$0xff] (!%p140_p2)   ;;  %v3153_v11 = vld [vmem:[%s4313_s1 + $0x28] sm:$0xff] (!%p140_p2)   ;;  %p165_p3 = scmp.lt.s32.totalorder (!%p140_p2), %s164_s5, 79 }
   0x8   : > { %1508 = vmatprep.subr.bf16.mxu1 (!%p140_p2), %v3481_v1  ;;  %1701 = vmatprep.subr.bf16.mxu0 (!%p140_p2), %v3481_v1  ;;  %v3550_v8 = vld [vmem:[%s4313_s1 + $0x98] sm:$0xff] (!%p140_p2)   ;;  %v3563_v10 = vld [vmem:[%s4313_s1 + $0xa0] sm:$0xff] (!%p140_p2)   ;;  %v3574_v12 = vld [vmem:[%s4313_s1 + $0xa8] sm:$0xff] (!%p140_p2)  }
   0x9   : > { %v3155_v13 = vld [vmem:[%s4313_s1 + $0x30] sm:$0xff] (!%p140_p2)   ;;  %v3157_v15 = vld [vmem:[%s4313_s1 + $0x38] sm:$0xff] (!%p140_p2)   ;;  %v3159_v17 = vld [vmem:[%s4313_s1 + $0x40] sm:$0xff] (!%p140_p2)  }
   0xa   : > { %v3587_v14 = vld [vmem:[%s4313_s1 + $0xb0] sm:$0xff] (!%p140_p2)   ;;  %v3599_v16 = vld [vmem:[%s4313_s1 + $0xb8] sm:$0xff] (!%p140_p2)   ;;  %v3615_v18 = vld [vmem:[%s4313_s1 + $0xc0] sm:$0xff] (!%p140_p2)  }
   0xb   : > { %1509 = vmatpush1.bf16.msra.mxu1 (!%p140_p2), %v3145_v3  ;;  %1702 = vmatpush1.bf16.msra.mxu0 (!%p140_p2), %v3528_v4  ;;  %v3161_v20 = vld [vmem:[%s4313_s1 + $0x48] sm:$0xff] (!%p140_p2)   ;;  %v3163_v23 = vld [vmem:[%s4313_s1 + $0x50] sm:$0xff] (!%p140_p2)   ;;  %v3165_v25 = vld [vmem:[%s4313_s1 + $0x58] sm:$0xff] (!%p140_p2)  }
   0xc   : > { %1510 = vmatprep.subr.bf16.mxu1 (!%p140_p2), %v3481_v1  ;;  %1703 = vmatprep.subr.bf16.mxu0 (!%p140_p2), %v3481_v1  ;;  %v3628_v22 = vld [vmem:[%s4313_s1 + $0xc8] sm:$0xff] (!%p140_p2)   ;;  %v3639_v24 = vld [vmem:[%s4313_s1 + $0xd0] sm:$0xff] (!%p140_p2)   ;;  %v3650_v26 = vld [vmem:[%s4313_s1 + $0xd8] sm:$0xff] (!%p140_p2)  }
   0xd   : > { %s4317_s5 = smov (!%p165_p3, %s164_s5), 79  ;;  %v3167_v27 = vld [vmem:[%s4313_s1 + $0x60] sm:$0xff]   ;;  %v3169_v29 = vld [vmem:[%s4313_s1 + $0x68] sm:$0xff]   ;;  %v3171_v31 = vld [vmem:[%s4313_s1 + $0x70] sm:$0xff]  }
   0xe   : > { %s3133_s19 = smul.u32 28, %s4317_s5  ;;  %v3661_v28 = vld [vmem:[%s4313_s1 + $0xe0] sm:$0xff]   ;;  %v3672_v30 = vld [vmem:[%s4313_s1 + $0xe8] sm:$0xff]   ;;  %v3683_v32 = vld [vmem:[%s4313_s1 + $0xf0] sm:$0xff]   ;;  %s2581_s21 = sshll.u32 %s4317_s5, 2 }
   0xf   : > { %1511 = vmatpush1.bf16.msra.mxu1 %v3147_v5  ;;  %1704 = vmatpush1.bf16.msra.mxu0 %v3539_v6  ;;  %v3173_v33 = vld [vmem:[%s4313_s1 + $0x78] sm:$0xff]   ;;  %v3181_v37 = vld [vmem:[%s4313_s1 + $0x100] sm:$0xff]   ;;  %v3188_v40 = vld [vmem:[%s4313_s1 + $0x108] sm:$0xff]   ;;  %s4155_s23 = scalar_lea.vmem %s4315_s3, %s2581_s21 }
  0x10   : > { %1512 = vmatprep.subr.bf16.mxu1 %v3481_v1  ;;  %1705 = vmatprep.subr.bf16.mxu0 %v3481_v1  ;;  %s3608_s26 = scalar_lea.vmem %s4312_s0, %s3133_s19  ;;  %v3694_v34 = vld [vmem:[%s4313_s1 + $0xf8] sm:$0xff]   ;;  %v3195_v45 = vld [vmem:[%s4313_s1 + $0x110] sm:$0xff]   ;;  %v3207_v51 = vld [vmem:[%s4313_s1 + $0x120] sm:$0xff]  }
  0x11   : > { %v3177_v19 = vld [vmem:[%s3608_s26 + $0x4] ss:$28 sps:$4 sm:$0xff]   ;;  %v3180_v21 = vld [vmem:[%s3608_s26 + $0xc] ss:$28 sps:$4 sm:$0xff]   ;;  %v3182_v38 = vld [vmem:[%s3608_s26 + $0x3c] ss:$28 sps:$4 sm:$0xff]  }
  0x12   : > { %1538 = vmatprep.mubr.bf16.mxu1 %v3177_v19  ;;  %1731 = vmatprep.mubr.bf16.mxu0 %v3180_v21  ;;  %v3175_v35 = vld [vmem:[%s3608_s26] ss:$28 sps:$4 sm:$0xff]   ;;  %v3178_v36 = vld [vmem:[%s3608_s26 + $0x8] ss:$28 sps:$4 sm:$0xff]   ;;  %v3186_v41 = vld [vmem:[%s3608_s26 + $0x38] ss:$28 sps:$4 sm:$0xff]  }
  0x13   : > { %1513 = vmatpush1.bf16.msra.mxu1 %v3149_v7  ;;  %1706 = vmatpush1.bf16.msra.mxu0 %v3550_v8  ;;  %v3184_v39 = vld [vmem:[%s3608_s26 + $0x44] ss:$28 sps:$4 sm:$0xff]   ;;  %v3189_v43 = vld [vmem:[%s3608_s26 + $0x74] ss:$28 sps:$4 sm:$0xff]   ;;  %v3191_v44 = vld [vmem:[%s3608_s26 + $0x7c] ss:$28 sps:$4 sm:$0xff]  }
  0x14   : > { %1514 = vmatprep.subr.bf16.mxu1 %v3481_v1  ;;  %1707 = vmatprep.subr.bf16.mxu0 %v3481_v1  ;;  %v3187_v42 = vld [vmem:[%s3608_s26 + $0x40] ss:$28 sps:$4 sm:$0xff]   ;;  %v3193_v47 = vld [vmem:[%s3608_s26 + $0x70] ss:$28 sps:$4 sm:$0xff]   ;;  %v3194_v48 = vld [vmem:[%s3608_s26 + $0x78] ss:$28 sps:$4 sm:$0xff]  }
  0x15   : > { %v3202_v46 = vld [vmem:[%s4313_s1 + $0x118] sm:$0xff]   ;;  %v3196_v49 = vld [vmem:[%s3608_s26 + $0xac] ss:$28 sps:$4 sm:$0xff]   ;;  %v3198_v50 = vld [vmem:[%s3608_s26 + $0xb4] ss:$28 sps:$4 sm:$0xff]  }
  0x16   : > { %v3214_v52 = vld [vmem:[%s4313_s1 + $0x128] sm:$0xff]   ;;  %v3203_v55 = vld [vmem:[%s3608_s26 + $0xe4] ss:$28 sps:$4 sm:$0xff]   ;;  %v3217_v57 = vld [vmem:[%s4313_s1 + $0x130] sm:$0xff]  }
  0x17   : > { %1515 = vmatpush1.bf16.msra.mxu1 %v3151_v9  ;;  %1708 = vmatpush1.bf16.msra.mxu0 %v3563_v10  ;;  %v3200_v53 = vld [vmem:[%s3608_s26 + $0xa8] ss:$28 sps:$4 sm:$0xff]   ;;  %v3201_v54 = vld [vmem:[%s3608_s26 + $0xb0] ss:$28 sps:$4 sm:$0xff]   ;;  %v3224_v58 = vld [vmem:[%s4313_s1 + $0x138] sm:$0xff]  }
  0x18   : > { %1516 = vmatprep.subr.bf16.mxu1 %v3481_v1  ;;  %1709 = vmatprep.subr.bf16.mxu0 %v3481_v1  ;;  %v3205_v56 = vld [vmem:[%s3608_s26 + $0xec] ss:$28 sps:$4 sm:$0xff]   ;;  %v3208_v59 = vld [vmem:[%s3608_s26 + $0xe0] ss:$28 sps:$4 sm:$0xff]   ;;  %v3223_v9 = vld [vmem:[%s3608_s26 + $0x158] ss:$28 sps:$4 sm:$0xff]  }
  0x19   : > { %v3209_v60 = vld [vmem:[%s3608_s26 + $0xe8] ss:$28 sps:$4 sm:$0xff]   ;;  %v3210_v61 = vld [vmem:[%s3608_s26 + $0x11c] ss:$28 sps:$4 sm:$0xff]   ;;  %v3222_v7 = vld [vmem:[%s3608_s26 + $0x150] ss:$28 sps:$4 sm:$0xff]  }
  0x1a   : > { %v3212_v62 = vld [vmem:[%s3608_s26 + $0x124] ss:$28 sps:$4 sm:$0xff]   ;;  %v3238_v0 = vld [vmem:[%s4313_s1 + $0x148] sm:$0xff]   ;;  %v3220_v5 = vld [vmem:[%s3608_s26 + $0x15c] ss:$28 sps:$4 sm:$0xff]  }
  0x1b   : > { %1517 = vmatpush1.bf16.msra.mxu1 %v3153_v11  ;;  %1710 = vmatpush1.bf16.msra.mxu0 %v3574_v12  ;;  %v3231_v63 = vld [vmem:[%s4313_s1 + $0x140] sm:$0xff]   ;;  %v3227_v11 = vld [vmem:[%s3608_s26 + $0x194] ss:$28 sps:$4 sm:$0xff]   ;;  %v3280_v19 = vld [vmem:[%s4313_s1 + $0x178] sm:$0xff]  }
  0x1c   : > { %1518 = vmatprep.subr.bf16.mxu1 %v3481_v1  ;;  %1711 = vmatprep.subr.bf16.mxu0 %v3481_v1  ;;  %v3216_v3 = vld [vmem:[%s3608_s26 + $0x120] ss:$28 sps:$4 sm:$0xff]  }
  0x1d   : > { %v3826_v21 = vld [vmem:[%s4313_s1 + $0x180] sm:$0xff]  }
  0x1f   : > { %1519 = vmatpush1.bf16.msra.mxu1 %v3155_v13  ;;  %1712 = vmatpush1.bf16.msra.mxu0 %v3587_v14  ;;  %v3229_v13 = vld [vmem:[%s3608_s26 + $0x188] ss:$28 sps:$4 sm:$0xff]  }
  0x20   : > { %1520 = vmatprep.subr.bf16.mxu1 %v3481_v1  ;;  %1713 = vmatprep.subr.bf16.mxu0 %v3481_v1 }
  0x23   : > { %1521 = vmatpush1.bf16.msra.mxu1 %v3157_v15  ;;  %1714 = vmatpush1.bf16.msra.mxu0 %v3599_v16  ;;  %v3230_v15 = vld [vmem:[%s3608_s26 + $0x190] ss:$28 sps:$4 sm:$0xff]  }
  0x24   : > { %1522 = vmatprep.subr.bf16.mxu1 %v3481_v1  ;;  %1715 = vmatprep.subr.bf16.mxu0 %v3481_v1 }
  0x27   : > { %1523 = vmatpush1.bf16.msra.mxu1 %v3159_v17  ;;  %1716 = vmatpush1.bf16.msra.mxu0 %v3615_v18  ;;  %v3234_v17 = vld [vmem:[%s3608_s26 + $0x1cc] ss:$28 sps:$4 sm:$0xff]  }
  0x28   : > { %1524 = vmatprep.subr.bf16.mxu1 %v3481_v1  ;;  %1717 = vmatprep.subr.bf16.mxu0 %v3481_v1 }
  0x2b   : > { %1525 = vmatpush1.bf16.msra.mxu1 %v3161_v20  ;;  %1718 = vmatpush1.bf16.msra.mxu0 %v3628_v22  ;;  %v3236_v20 = vld [vmem:[%s3608_s26 + $0x1c0] ss:$28 sps:$4 sm:$0xff]  }
  0x2c   : > { %1526 = vmatprep.subr.bf16.mxu1 %v3481_v1  ;;  %1719 = vmatprep.subr.bf16.mxu0 %v3481_v1 }
  0x2f   : > { %1527 = vmatpush1.bf16.msra.mxu1 %v3163_v23  ;;  %1720 = vmatpush1.bf16.msra.mxu0 %v3639_v24  ;;  %v3239_v23 = vld [vmem:[%s3608_s26 + $0x1fc] ss:$28 sps:$4 sm:$0xff]  }
  0x30   : > { %1528 = vmatprep.subr.bf16.mxu1 %v3481_v1  ;;  %1721 = vmatprep.subr.bf16.mxu0 %v3481_v1 }
  0x33   : > { %1529 = vmatpush1.bf16.msra.mxu1 %v3165_v25  ;;  %1722 = vmatpush1.bf16.msra.mxu0 %v3650_v26  ;;  %v3243_v25 = vld [vmem:[%s3608_s26 + $0x1f8] ss:$28 sps:$4 sm:$0xff]  }
  0x34   : > { %1530 = vmatprep.subr.bf16.mxu1 %v3481_v1  ;;  %1723 = vmatprep.subr.bf16.mxu0 %v3481_v1 }
  0x37   : > { %1531 = vmatpush1.bf16.msra.mxu1 %v3167_v27  ;;  %1724 = vmatpush1.bf16.msra.mxu0 %v3661_v28  ;;  %v3246_v27 = vld [vmem:[%s3608_s26 + $0x234] ss:$28 sps:$4 sm:$0xff]  }
  0x38   : > { %1532 = vmatprep.subr.bf16.mxu1 %v3481_v1  ;;  %1725 = vmatprep.subr.bf16.mxu0 %v3481_v1 }
  0x3b   : > { %1533 = vmatpush1.bf16.msra.mxu1 %v3169_v29  ;;  %1726 = vmatpush1.bf16.msra.mxu0 %v3672_v30  ;;  %v3251_v29 = vld [vmem:[%s3608_s26 + $0x238] ss:$28 sps:$4 sm:$0xff]  }
  0x3c   : > { %1534 = vmatprep.subr.bf16.mxu1 %v3481_v1  ;;  %1727 = vmatprep.subr.bf16.mxu0 %v3481_v1 }
  0x3f   : > { %1535 = vmatpush1.bf16.msra.mxu1 %v3171_v31  ;;  %1728 = vmatpush1.bf16.msra.mxu0 %v3683_v32  ;;  %v3255_v31 = vld [vmem:[%s3608_s26 + $0x274] ss:$28 sps:$4 sm:$0xff]  }
  0x40   : > { %1536 = vmatprep.subr.bf16.mxu1 %v3481_v1  ;;  %1729 = vmatprep.subr.bf16.mxu0 %v3481_v1 }
  0x43   : > { %1537 = vmatpush1.bf16.msra.mxu1 %v3173_v33  ;;  %1730 = vmatpush1.bf16.msra.mxu0 %v3694_v34  ;;  %v3258_v33 = vld [vmem:[%s3608_s26 + $0x270] ss:$28 sps:$4 sm:$0xff]  }
  0x44   : > { %2941 = vmatprep.subr.bf16.mxu1 %v3481_v1  ;;  %1892 = vmatprep.subr.bf16.mxu0 %v3481_v1 }
  0x46   : > { %1539 = vmatmul.mubr.bf16.vlgmr.msra.gmra.mrb[0].mxu1 %v3175_v35  ;;  %1732 = vmatmul.mubr.bf16.vlgmr.msra.gmra.mrb[0].mxu0 %v3178_v36  ;;  %v3262_v35 = vld [vmem:[%s3608_s26 + $0x2ac] ss:$28 sps:$4 sm:$0xff]   ;;  %v3264_v36 = vld [vmem:[%s3608_s26 + $0x2a0] ss:$28 sps:$4 sm:$0xff]  }
  0x47   : > { %2957 = vmatpush1.bf16.msra.mxu1 %v3518_v2  ;;  %1893 = vmatpush1.bf16.msra.mxu0 %v3181_v37  ;;  %v3215_v2 = vld [vmem:[%s3608_s26 + $0x118] ss:$28 sps:$4 sm:$0xff]   ;;  %v3265_v37 = vld [vmem:[%s3608_s26 + $0x2a8] ss:$28 sps:$4 sm:$0xff]  }
  0x48   : > { %1546 = vmatprep.mubr.bf16.mxu1 %v3182_v38  ;;  %1739 = vmatprep.mubr.bf16.mxu0 %v3184_v39  ;;  %v3267_v38 = vld [vmem:[%s3608_s26 + $0x2dc] ss:$28 sps:$4 sm:$0xff]   ;;  %v3269_v39 = vld [vmem:[%s3608_s26 + $0x2e4] ss:$28 sps:$4 sm:$0xff]  }
  0x49   : > { %1894 = vmatprep.subr.bf16.mxu0 %v3481_v1  ;;  %2942 = vmatprep.subr.bf16.mxu1 %v3481_v1 }
  0x4b   : > { %2958 = vmatpush1.bf16.msra.mxu1 %v3528_v4  ;;  %1895 = vmatpush1.bf16.msra.mxu0 %v3188_v40  ;;  %v3218_v4 = vld [vmem:[%s3608_s26 + $0x154] ss:$28 sps:$4 sm:$0xff]  }
  0x4c   : > { %2943 = vmatprep.subr.bf16.mxu1 %v3481_v1  ;;  %1896 = vmatprep.subr.bf16.mxu0 %v3481_v1  ;;  %v3271_v40 = vld [vmem:[%s3608_s26 + $0x2d8] ss:$28 sps:$4 sm:$0xff]  }
  0x4e   : > { %1547 = vmatmul.mubr.bf16.gmra.mrb[4].mxu1 %v3186_v41  ;;  %1740 = vmatmul.mubr.bf16.gmra.mrb[4].mxu0 %v3187_v42  ;;  %v3272_v41 = vld [vmem:[%s3608_s26 + $0x2e0] ss:$28 sps:$4 sm:$0xff]   ;;  %v3274_v42 = vld [vmem:[%s3608_s26 + $0x314] ss:$28 sps:$4 sm:$0xff]  }
  0x4f   : > { %1554 = vmatprep.mubr.bf16.mxu1 %v3189_v43  ;;  %1747 = vmatprep.mubr.bf16.mxu0 %v3191_v44  ;;  %v3276_v43 = vld [vmem:[%s3608_s26 + $0x31c] ss:$28 sps:$4 sm:$0xff]   ;;  %v3278_v44 = vld [vmem:[%s3608_s26 + $0x310] ss:$28 sps:$4 sm:$0xff]  }
  0x50   : > { %1897 = vmatpush1.bf16.msra.mxu0 %v3195_v45  ;;  %2959 = vmatpush1.bf16.msra.mxu1 %v3539_v6  ;;  %v3245_v6 = vld [vmem:[%s4313_s1 + $0x150] sm:$0xff]  }
  0x51   : > { %1898 = vmatprep.subr.bf16.mxu0 %v3481_v1  ;;  %2944 = vmatprep.subr.bf16.mxu1 %v3481_v1  ;;  %v3279_v45 = vld [vmem:[%s3608_s26 + $0x318] ss:$28 sps:$4 sm:$0xff]  }
  0x54   : > { %1899 = vmatpush1.bf16.msra.mxu0 %v3202_v46  ;;  %2960 = vmatpush1.bf16.msra.mxu1 %v3550_v8  ;;  %v3252_v8 = vld [vmem:[%s4313_s1 + $0x158] sm:$0xff]   ;;  %v3281_v46 = vld [vmem:[%s3608_s26 + $0x34c] ss:$28 sps:$4 sm:$0xff]  }
  0x55   : > { %1900 = vmatprep.subr.bf16.mxu0 %v3481_v1  ;;  %2945 = vmatprep.subr.bf16.mxu1 %v3481_v1 }
  0x56   : > { %1555 = vmatmul.mubr.bf16.gmra.mrb[8].mxu1 %v3193_v47  ;;  %1748 = vmatmul.mubr.bf16.gmra.mrb[8].mxu0 %v3194_v48  ;;  %v3285_v47 = vld [vmem:[%s3608_s26 + $0x14] ss:$28 sps:$4 sm:$0xff]   ;;  %v3286_v48 = vld [vmem:[%s3608_s26 + $0x348] ss:$28 sps:$4 sm:$0xff]  }
  0x57   : > { %1562 = vmatprep.mubr.bf16.mxu1 %v3196_v49  ;;  %1755 = vmatprep.mubr.bf16.mxu0 %v3198_v50  ;;  %v3283_v49 = vld [vmem:[%s3608_s26 + $0x10] ss:$28 sps:$4 sm:$0xff]   ;;  %v3287_v50 = vld [vmem:[%s3608_s26 + $0x384] ss:$28 sps:$4 sm:$0xff]  }
  0x58   : > { %1901 = vmatpush1.bf16.msra.mxu0 %v3207_v51  ;;  %2961 = vmatpush1.bf16.msra.mxu1 %v3563_v10  ;;  %v3225_v10 = vld [vmem:[%s3608_s26 + $0x18c] ss:$28 sps:$4 sm:$0xff]  }
  0x59   : > { %1902 = vmatprep.subr.bf16.mxu0 %v3481_v1  ;;  %2946 = vmatprep.subr.bf16.mxu1 %v3481_v1  ;;  %v3289_v51 = vld [vmem:[%s3608_s26 + $0x4c] ss:$28 sps:$4 sm:$0xff]  }
  0x5c   : > { %1903 = vmatpush1.bf16.msra.mxu0 %v3214_v52  ;;  %2962 = vmatpush1.bf16.msra.mxu1 %v3574_v12  ;;  %v3259_v12 = vld [vmem:[%s4313_s1 + $0x160] sm:$0xff]  }
  0x5d   : > { %1904 = vmatprep.subr.bf16.mxu0 %v3481_v1  ;;  %2947 = vmatprep.subr.bf16.mxu1 %v3481_v1  ;;  %v3291_v52 = vld [vmem:[%s3608_s26 + $0x380] ss:$28 sps:$4 sm:$0xff]  }
  0x5e   : > { %1563 = vmatmul.mubr.bf16.gmra.mrb[12].mxu1 %v3200_v53  ;;  %1756 = vmatmul.mubr.bf16.gmra.mrb[12].mxu0 %v3201_v54  ;;  %v3292_v53 = vld [vmem:[%s3608_s26 + $0x48] ss:$28 sps:$4 sm:$0xff]   ;;  %v3293_v54 = vld [vmem:[%s3608_s26 + $0x3bc] ss:$28 sps:$4 sm:$0xff]  }
  0x5f   : > { %1570 = vmatprep.mubr.bf16.mxu1 %v3203_v55  ;;  %1763 = vmatprep.mubr.bf16.mxu0 %v3205_v56  ;;  %v3295_v55 = vld [vmem:[%s3608_s26 + $0x84] ss:$28 sps:$4 sm:$0xff]   ;;  %v3297_v56 = vld [vmem:[%s3608_s26 + $0x3b8] ss:$28 sps:$4 sm:$0xff]  }
  0x60   : > { %1905 = vmatpush1.bf16.msra.mxu0 %v3217_v57  ;;  %2963 = vmatpush1.bf16.msra.mxu1 %v3587_v14  ;;  %v3266_v14 = vld [vmem:[%s4313_s1 + $0x168] sm:$0xff]   ;;  %v3298_v57 = vld [vmem:[%s3608_s26 + $0x80] ss:$28 sps:$4 sm:$0xff]  }
  0x61   : > { %1906 = vmatprep.subr.bf16.mxu0 %v3481_v1  ;;  %2948 = vmatprep.subr.bf16.mxu1 %v3481_v1 }
  0x64   : > { %1907 = vmatpush1.bf16.msra.mxu0 %v3224_v58  ;;  %2964 = vmatpush1.bf16.msra.mxu1 %v3599_v16  ;;  %v3232_v16 = vld [vmem:[%s3608_s26 + $0x1c4] ss:$28 sps:$4 sm:$0xff]   ;;  %v3299_v58 = vld [vmem:[%s3608_s26 + $0x3f4] ss:$28 sps:$4 sm:$0xff]  }
  0x65   : > { %1908 = vmatprep.subr.bf16.mxu0 %v3481_v1  ;;  %2949 = vmatprep.subr.bf16.mxu1 %v3481_v1 }
  0x66   : > { %1571 = vmatmul.mubr.bf16.gmra.mrb[16].mxu1 %v3208_v59  ;;  %1764 = vmatmul.mubr.bf16.gmra.mrb[16].mxu0 %v3209_v60  ;;  %v3301_v59 = vld [vmem:[%s3608_s26 + $0xbc] ss:$28 sps:$4 sm:$0xff]   ;;  %v3303_v60 = vld [vmem:[%s3608_s26 + $0x3f0] ss:$28 sps:$4 sm:$0xff]  }
  0x67   : > { %1578 = vmatprep.mubr.bf16.mxu1 %v3210_v61  ;;  %1771 = vmatprep.mubr.bf16.mxu0 %v3212_v62  ;;  %v3304_v61 = vld [vmem:[%s3608_s26 + $0xb8] ss:$28 sps:$4 sm:$0xff]   ;;  %v3305_v62 = vld [vmem:[%s3608_s26 + $0x42c] ss:$28 sps:$4 sm:$0xff]  }
  0x68   : > { %1909 = vmatpush1.bf16.msra.mxu0 %v3231_v63  ;;  %2965 = vmatpush1.bf16.msra.mxu1 %v3615_v18  ;;  %v3273_v18 = vld [vmem:[%s4313_s1 + $0x170] sm:$0xff]  }
  0x69   : > { %1910 = vmatprep.subr.bf16.mxu0 %v3481_v1  ;;  %2950 = vmatprep.subr.bf16.mxu1 %v3481_v1  ;;  %v3307_v63 = vld [vmem:[%s3608_s26 + $0xf4] ss:$28 sps:$4 sm:$0xff]  }
  0x6c   : > { %1911 = vmatpush1.bf16.msra.mxu0 %v3238_v0  ;;  %2966 = vmatpush1.bf16.msra.mxu1 %v3628_v22  ;;  %v3237_v22 = vld [vmem:[%s3608_s26 + $0x1c8] ss:$28 sps:$4 sm:$0xff]  }
  0x6d   : > { %1912 = vmatprep.subr.bf16.mxu0 %v3481_v1  ;;  %2951 = vmatprep.subr.bf16.mxu1 %v3481_v1  ;;  %v3309_v0 = vld [vmem:[%s3608_s26 + $0x428] ss:$28 sps:$4 sm:$0xff]  }
  0x6e   : > { %1579 = vmatmul.mubr.bf16.gmra.mrb[20].mxu1 %v3215_v2  ;;  %1772 = vmatmul.mubr.bf16.gmra.mrb[20].mxu0 %v3216_v3  ;;  %v3310_v2 = vld [vmem:[%s3608_s26 + $0xf0] ss:$28 sps:$4 sm:$0xff]  }
  0x6f   : > { %1586 = vmatprep.mubr.bf16.mxu1 %v3218_v4  ;;  %1779 = vmatprep.mubr.bf16.mxu0 %v3220_v5  ;;  %v3313_v3 = vld [vmem:[%s3608_s26 + $0x354] ss:$28 sps:$4 sm:$0xff]   ;;  %v3314_v4 = vld [vmem:[%s3608_s26 + $0x12c] ss:$28 sps:$4 sm:$0xff]  }
  0x70   : > { %1913 = vmatpush1.bf16.msra.mxu0 %v3245_v6  ;;  %2967 = vmatpush1.bf16.msra.mxu1 %v3639_v24  ;;  %v3241_v24 = vld [vmem:[%s3608_s26 + $0x204] ss:$28 sps:$4 sm:$0xff]   ;;  %v3311_v5 = vld [vmem:[%s3608_s26 + $0x350] ss:$28 sps:$4 sm:$0xff]  }
  0x71   : > { %1914 = vmatprep.subr.bf16.mxu0 %v3481_v1  ;;  %2952 = vmatprep.subr.bf16.mxu1 %v3481_v1  ;;  %v3316_v6 = vld [vmem:[%s3608_s26 + $0x128] ss:$28 sps:$4 sm:$0xff]  }
  0x74   : > { %1915 = vmatpush1.bf16.msra.mxu0 %v3252_v8  ;;  %2968 = vmatpush1.bf16.msra.mxu1 %v3650_v26  ;;  %v3244_v26 = vld [vmem:[%s3608_s26 + $0x200] ss:$28 sps:$4 sm:$0xff]  }
  0x75   : > { %1916 = vmatprep.subr.bf16.mxu0 %v3481_v1  ;;  %2953 = vmatprep.subr.bf16.mxu1 %v3481_v1  ;;  %v3320_v8 = vld [vmem:[%s3608_s26 + $0x164] ss:$28 sps:$4 sm:$0xff]  }
  0x76   : > { %1587 = vmatmul.mubr.bf16.gmra.mrb[24].mxu1 %v3222_v7  ;;  %1780 = vmatmul.mubr.bf16.gmra.mrb[24].mxu0 %v3223_v9  ;;  %v3318_v7 = vld [vmem:[%s3608_s26 + $0x38c] ss:$28 sps:$4 sm:$0xff]  }
  0x77   : > { %1594 = vmatprep.mubr.bf16.mxu1 %v3225_v10  ;;  %1787 = vmatprep.mubr.bf16.mxu0 %v3227_v11  ;;  %v3330_v9 = vld [vmem:[%s4313_s1 + $0x188] sm:$0xff]   ;;  %v3323_v11 = vld [vmem:[%s3608_s26 + $0x160] ss:$28 sps:$4 sm:$0xff]  }
  0x78   : > { %1917 = vmatpush1.bf16.msra.mxu0 %v3259_v12  ;;  %2969 = vmatpush1.bf16.msra.mxu1 %v3661_v28  ;;  %v3250_v28 = vld [vmem:[%s3608_s26 + $0x230] ss:$28 sps:$4 sm:$0xff]   ;;  %v3322_v10 = vld [vmem:[%s3608_s26 + $0x388] ss:$28 sps:$4 sm:$0xff]  }
  0x79   : > { %1918 = vmatprep.subr.bf16.mxu0 %v3481_v1  ;;  %2954 = vmatprep.subr.bf16.mxu1 %v3481_v1  ;;  %v3324_v12 = vld [vmem:[%s3608_s26 + $0x3c4] ss:$28 sps:$4 sm:$0xff]  }
  0x7c   : > { %1919 = vmatpush1.bf16.msra.mxu0 %v3266_v14  ;;  %2970 = vmatpush1.bf16.msra.mxu1 %v3672_v30  ;;  %v3253_v30 = vld [vmem:[%s3608_s26 + $0x26c] ss:$28 sps:$4 sm:$0xff]   ;;  %v3328_v14 = vld [vmem:[%s3608_s26 + $0x3c0] ss:$28 sps:$4 sm:$0xff]  }
  0x7d   : > { %1920 = vmatprep.subr.bf16.mxu0 %v3481_v1  ;;  %2955 = vmatprep.subr.bf16.mxu1 %v3481_v1 }
  0x7e   : > { %1595 = vmatmul.mubr.bf16.gmra.mrb[28].mxu1 %v3229_v13  ;;  %1788 = vmatmul.mubr.bf16.gmra.mrb[28].mxu0 %v3230_v15  ;;  %v3326_v13 = vld [vmem:[%s3608_s26 + $0x19c] ss:$28 sps:$4 sm:$0xff]  }
  0x7f   : > { %1602 = vmatprep.mubr.bf16.mxu1 %v3232_v16  ;;  %1795 = vmatprep.mubr.bf16.mxu0 %v3234_v17  ;;  %v3329_v15 = vld [vmem:[%s3608_s26 + $0x198] ss:$28 sps:$4 sm:$0xff]  }
  0x80   : > { %1921 = vmatpush1.bf16.msra.mxu0 %v3273_v18  ;;  %2971 = vmatpush1.bf16.msra.mxu1 %v3683_v32  ;;  %v3257_v32 = vld [vmem:[%s3608_s26 + $0x268] ss:$28 sps:$4 sm:$0xff]   ;;  %v3331_v16 = vld [vmem:[%s3608_s26 + $0x3fc] ss:$28 sps:$4 sm:$0xff]   ;;  %v3333_v17 = vld [vmem:[%s3608_s26 + $0x1d4] ss:$28 sps:$4 sm:$0xff]  }
  0x81   : > { %1922 = vmatprep.subr.bf16.mxu0 %v3481_v1  ;;  %2956 = vmatprep.subr.bf16.mxu1 %v3481_v1  ;;  %v3248_v1 = vld [vmem:[%s3608_s26 + $0x23c] ss:$28 sps:$4 sm:$0xff]  }
  0x82   : > { %v3335_v18 = vld [vmem:[%s3608_s26 + $0x3f8] ss:$28 sps:$4 sm:$0xff]  }
  0x84   : > { %1923 = vmatpush1.bf16.msra.mxu0 %v3280_v19  ;;  %2972 = vmatpush1.bf16.msra.mxu1 %v3694_v34  ;;  %v3260_v34 = vld [vmem:[%s3608_s26 + $0x2a4] ss:$28 sps:$4 sm:$0xff]   ;;  %v3336_v19 = vld [vmem:[%s3608_s26 + $0x1d0] ss:$28 sps:$4 sm:$0xff]  }
  0x85   : > { %2897 = vmatprep.subr.bf16.mxu1 %v3826_v21 }
  0x86   : > { %1603 = vmatmul.mubr.bf16.gmra.mrb[32].mxu1 %v3236_v20  ;;  %1796 = vmatmul.mubr.bf16.gmra.mrb[32].mxu0 %v3237_v22  ;;  %v3337_v20 = vld [vmem:[%s3608_s26 + $0x434] ss:$28 sps:$4 sm:$0xff]  }
  0x87   : > { %1610 = vmatprep.mubr.bf16.mxu1 %v3239_v23  ;;  %1803 = vmatprep.mubr.bf16.mxu0 %v3241_v24  ;;  %v3341_v22 = vld [vmem:[%s3608_s26 + $0x430] ss:$28 sps:$4 sm:$0xff]   ;;  %v3342_v23 = vld [vmem:[%s3608_s26 + $0x208] ss:$28 sps:$4 sm:$0xff]   ;;  %v3345_v24 = vld [vmem:[%s3608_s26 + $0x18] ss:$28 sps:$4 sm:$0xff]  }
  0x8e   : > { %1611 = vmatmul.mubr.bf16.gmra.mrb[36].mxu1 %v3243_v25  ;;  %1804 = vmatmul.mubr.bf16.gmra.mrb[36].mxu0 %v3244_v26  ;;  %v3343_v25 = vld [vmem:[%s3608_s26 + $0x244] ss:$28 sps:$4 sm:$0xff]   ;;  %v3347_v26 = vld [vmem:[%s3608_s26 + $0x50] ss:$28 sps:$4 sm:$0xff]  }
  0x8f   : > { %1618 = vmatprep.mubr.bf16.mxu1 %v3246_v27  ;;  %1811 = vmatprep.mubr.bf16.mxu0 %v3248_v1  ;;  %v3346_v27 = vld [vmem:[%s3608_s26 + $0x240] ss:$28 sps:$4 sm:$0xff]   ;;  %v3350_v1 = vld [vmem:[%s3608_s26 + $0x88] ss:$28 sps:$4 sm:$0xff]  }
  0x96   : > { %1619 = vmatmul.mubr.bf16.gmra.mrb[40].mxu1 %v3250_v28  ;;  %1812 = vmatmul.mubr.bf16.gmra.mrb[40].mxu0 %v3251_v29  ;;  %v3348_v28 = vld [vmem:[%s3608_s26 + $0x27c] ss:$28 sps:$4 sm:$0xff]  }
  0x97   : > { %1626 = vmatprep.mubr.bf16.mxu1 %v3253_v30  ;;  %1819 = vmatprep.mubr.bf16.mxu0 %v3255_v31  ;;  %v3352_v29 = vld [vmem:[%s3608_s26 + $0xc0] ss:$28 sps:$4 sm:$0xff]   ;;  %v3351_v30 = vld [vmem:[%s3608_s26 + $0x278] ss:$28 sps:$4 sm:$0xff]  }
  0x98   : > { %v3355_v31 = vld [vmem:[%s3608_s26 + $0xf8] ss:$28 sps:$4 sm:$0xff]  }
  0x9e   : > { %1627 = vmatmul.mubr.bf16.gmra.mrb[44].mxu1 %v3257_v32  ;;  %1820 = vmatmul.mubr.bf16.gmra.mrb[44].mxu0 %v3258_v33  ;;  %v3353_v32 = vld [vmem:[%s3608_s26 + $0x2b4] ss:$28 sps:$4 sm:$0xff]  }
  0x9f   : > { %1634 = vmatprep.mubr.bf16.mxu1 %v3260_v34  ;;  %1827 = vmatprep.mubr.bf16.mxu0 %v3262_v35  ;;  %v3357_v35 = vld [vmem:[%s3608_s26 + $0x130] ss:$28 sps:$4 sm:$0xff]  }
  0xa6   : > { %1635 = vmatmul.mubr.bf16.gmra.mrb[48].mxu1 %v3264_v36  ;;  %1828 = vmatmul.mubr.bf16.gmra.mrb[48].mxu0 %v3265_v37  ;;  %v3356_v37 = vld [vmem:[%s3608_s26 + $0x2b0] ss:$28 sps:$4 sm:$0xff]  }
  0xa7   : > { %1642 = vmatprep.mubr.bf16.mxu1 %v3267_v38  ;;  %1835 = vmatprep.mubr.bf16.mxu0 %v3269_v39  ;;  %v3360_v38 = vld [vmem:[%s3608_s26 + $0x168] ss:$28 sps:$4 sm:$0xff]  }
  0xae   : > { %1643 = vmatmul.mubr.bf16.gmra.mrb[52].mxu1 %v3271_v40  ;;  %1836 = vmatmul.mubr.bf16.gmra.mrb[52].mxu0 %v3272_v41  ;;  %v3358_v40 = vld [vmem:[%s3608_s26 + $0x2ec] ss:$28 sps:$4 sm:$0xff]  }
  0xaf   : > { %1650 = vmatprep.mubr.bf16.mxu1 %v3274_v42  ;;  %1843 = vmatprep.mubr.bf16.mxu0 %v3276_v43  ;;  %v3362_v43 = vld [vmem:[%s3608_s26 + $0x1a0] ss:$28 sps:$4 sm:$0xff]  }
  0xb6   : > { %1651 = vmatmul.mubr.bf16.gmra.mrb[56].mxu1 %v3278_v44  ;;  %1844 = vmatmul.mubr.bf16.gmra.mrb[56].mxu0 %v3279_v45  ;;  %v3361_v45 = vld [vmem:[%s3608_s26 + $0x2e8] ss:$28 sps:$4 sm:$0xff]  }
  0xb7   : > { %1658 = vmatprep.mubr.bf16.mxu1 %v3281_v46  ;;  %1924 = vmatprep.mubr.bf16.mxu0 %v3285_v47  ;;  %v3365_v46 = vld [vmem:[%s3608_s26 + $0x1d8] ss:$28 sps:$4 sm:$0xff]  }
  0xbe   : > { %1659 = vmatmul.mubr.bf16.gmra.mrb[60].mxu1 %v3286_v48  ;;  %1925 = vmatmul.mubr.bf16.vlgmr.msra.gmra.mrb[0].mxu0 %v3283_v49  ;;  %v3363_v48 = vld [vmem:[%s3608_s26 + $0x324] ss:$28 sps:$4 sm:$0xff]  }
  0xbf   : > { %1666 = vmatprep.mubr.bf16.mxu1 %v3287_v50  ;;  %1932 = vmatprep.mubr.bf16.mxu0 %v3289_v51  ;;  %v3367_v51 = vld [vmem:[%s3608_s26 + $0x210] ss:$28 sps:$4 sm:$0xff]  }
  0xc6   : > { %1667 = vmatmul.mubr.bf16.gmra.mrb[64].mxu1 %v3291_v52  ;;  %1933 = vmatmul.mubr.bf16.gmra.mrb[4].mxu0 %v3292_v53  ;;  %v3366_v53 = vld [vmem:[%s3608_s26 + $0x320] ss:$28 sps:$4 sm:$0xff]  }
  0xc7   : > { %1674 = vmatprep.mubr.bf16.mxu1 %v3293_v54  ;;  %1940 = vmatprep.mubr.bf16.mxu0 %v3295_v55  ;;  %v3370_v54 = vld [vmem:[%s3608_s26 + $0x248] ss:$28 sps:$4 sm:$0xff]  }
  0xce   : > { %1675 = vmatmul.mubr.bf16.gmra.mrb[68].mxu1 %v3297_v56  ;;  %1941 = vmatmul.mubr.bf16.gmra.mrb[8].mxu0 %v3298_v57  ;;  %v3368_v56 = vld [vmem:[%s3608_s26 + $0x35c] ss:$28 sps:$4 sm:$0xff]  }
  0xcf   : > { %1682 = vmatprep.mubr.bf16.mxu1 %v3299_v58  ;;  %1948 = vmatprep.mubr.bf16.mxu0 %v3301_v59  ;;  %v3372_v59 = vld [vmem:[%s3608_s26 + $0x280] ss:$28 sps:$4 sm:$0xff]  }
  0xd6   : > { %1683 = vmatmul.mubr.bf16.gmra.mrb[72].mxu1 %v3303_v60  ;;  %1949 = vmatmul.mubr.bf16.gmra.mrb[12].mxu0 %v3304_v61  ;;  %v3371_v61 = vld [vmem:[%s3608_s26 + $0x358] ss:$28 sps:$4 sm:$0xff]  }
  0xd7   : > { %1690 = vmatprep.mubr.bf16.mxu1 %v3305_v62  ;;  %1956 = vmatprep.mubr.bf16.mxu0 %v3307_v63  ;;  %v3375_v62 = vld [vmem:[%s3608_s26 + $0x2b8] ss:$28 sps:$4 sm:$0xff]  }
  0xde   : > { %1691 = vmatmul.mubr.bf16.gmra.mrb[76].mxu1 %v3309_v0  ;;  %1957 = vmatmul.mubr.bf16.gmra.mrb[16].mxu0 %v3310_v2  ;;  %v3373_v0 = vld [vmem:[%s3608_s26 + $0x394] ss:$28 sps:$4 sm:$0xff]  }
  0xdf   : > { %1851 = vmatprep.mubr.bf16.mxu1 %v3313_v3  ;;  %1964 = vmatprep.mubr.bf16.mxu0 %v3314_v4  ;;  %v3377_v4 = vld [vmem:[%s3608_s26 + $0x2f0] ss:$28 sps:$4 sm:$0xff]  }
  0xe6   : > { %1852 = vmatmul.mubr.bf16.vlgmr.msra.gmra.mrb[60].mxu1 %v3311_v5  ;;  %1965 = vmatmul.mubr.bf16.gmra.mrb[20].mxu0 %v3316_v6  ;;  %v3376_v6 = vld [vmem:[%s3608_s26 + $0x390] ss:$28 sps:$4 sm:$0xff]  }
  0xe7   : > { %2898 = vmatpush3.bf16.msra.mxu1 %v3826_v21  ;;  %1859 = vmatprep.mubr.bf16.mxu1 %v3318_v7  ;;  %v3339_v21 = vld [vmem:[%s3608_s26 + $0x20c] ss:$28 sps:$4 sm:$0xff]  }
  0xe8   : > { %1972 = vmatprep.mubr.bf16.mxu0 %v3320_v8  ;;  %2899 = vmatprep.subr.bf16.mxu1 %v3330_v9  ;;  %v3380_v7 = vld [vmem:[%s3608_s26 + $0x328] ss:$28 sps:$4 sm:$0xff]  }
  0xeb   : > { %2900 = vmatpush3.bf16.msra.mxu1 %v3330_v9  ;;  %v3378_v9 = vld [vmem:[%s3608_s26 + $0x3cc] ss:$28 sps:$4 sm:$0xff]  }
  0xee   : > { %1860 = vmatmul.mubr.bf16.gmra.mrb[64].mxu1 %v3322_v10  ;;  %1973 = vmatmul.mubr.bf16.gmra.mrb[24].mxu0 %v3323_v11 }
  0xef   : > { %1867 = vmatprep.mubr.bf16.mxu1 %v3324_v12  ;;  %1980 = vmatprep.mubr.bf16.mxu0 %v3326_v13  ;;  %v3382_v12 = vld [vmem:[%s3608_s26 + $0x360] ss:$28 sps:$4 sm:$0xff]  }
  0xf6   : > { %1868 = vmatmul.mubr.bf16.gmra.mrb[68].mxu1 %v3328_v14  ;;  %1981 = vmatmul.mubr.bf16.gmra.mrb[28].mxu0 %v3329_v15  ;;  %v3381_v14 = vld [vmem:[%s3608_s26 + $0x3c8] ss:$28 sps:$4 sm:$0xff]   ;;  %v3385_v15 = vld [vmem:[%s3608_s26 + $0x398] ss:$28 sps:$4 sm:$0xff]  }
  0xf7   : > { %1875 = vmatprep.mubr.bf16.mxu1 %v3331_v16  ;;  %1988 = vmatprep.mubr.bf16.mxu0 %v3333_v17  ;;  %v3383_v17 = vld [vmem:[%s3608_s26 + $0x404] ss:$28 sps:$4 sm:$0xff]  }
  0xfe   : > { %1876 = vmatmul.mubr.bf16.gmra.mrb[72].mxu1 %v3335_v18  ;;  %1989 = vmatmul.mubr.bf16.gmra.mrb[32].mxu0 %v3336_v19 }
  0xff   : > { %1883 = vmatprep.mubr.bf16.mxu1 %v3337_v20  ;;  %1996 = vmatprep.mubr.bf16.mxu0 %v3339_v21  ;;  %v3387_v20 = vld [vmem:[%s3608_s26 + $0x3d0] ss:$28 sps:$4 sm:$0xff]  }
 0x106   : > { %1884 = vmatmul.mubr.bf16.gmra.mrb[76].mxu1 %v3341_v22  ;;  %1997 = vmatmul.mubr.bf16.gmra.mrb[36].mxu0 %v3342_v23  ;;  %v3386_v22 = vld [vmem:[%s3608_s26 + $0x400] ss:$28 sps:$4 sm:$0xff]   ;;  %v3390_v23 = vld [vmem:[%s3608_s26 + $0x408] ss:$28 sps:$4 sm:$0xff]  }
 0x107   : > { %2901 = vmatprep.mubr.msk.bf16.mxu1 %vm1445_vm0, %v3345_v24  ;;  %2004 = vmatprep.mubr.bf16.mxu0 %v3343_v25  ;;  %v3388_v25 = vld [vmem:[%s3608_s26 + $0x43c] ss:$28 sps:$4 sm:$0xff]  }
 0x10e   : > { %2902 = vmatmul.mubr.msk.bf16.vlgmr.msra.gmra.mrb[80].mxu1 %vm1445_vm0, %v3347_v26  ;;  %2005 = vmatmul.mubr.bf16.gmra.mrb[40].mxu0 %v3346_v27 }
 0x10f   : > { %2905 = vmatprep.mubr.msk.bf16.mxu1 %vm1445_vm0, %v3350_v1  ;;  %2012 = vmatprep.mubr.bf16.mxu0 %v3348_v28  ;;  %v3392_v1 = vld [vmem:[%s3608_s26 + $0x440] ss:$28 sps:$4 sm:$0xff]  }
 0x116   : > { %2906 = vmatmul.mubr.msk.bf16.gmra.mrb[84].mxu1 %vm1445_vm0, %v3352_v29  ;;  %2013 = vmatmul.mubr.bf16.gmra.mrb[44].mxu0 %v3351_v30  ;;  %v3391_v29 = vld [vmem:[%s3608_s26 + $0x438] ss:$28 sps:$4 sm:$0xff]  }
 0x117   : > { %2909 = vmatprep.mubr.msk.bf16.mxu1 %vm1445_vm0, %v3355_v31  ;;  %2020 = vmatprep.mubr.bf16.mxu0 %v3353_v32 }
 0x119   : > { %v3917_v33 = vpop.f32.mrb[0].mxu1 }
 0x11a   : > { %v1542_v34 = vpop.f32.mrb[1].mxu1 }
 0x11b   : > { %v3920_v36 = vpop.f32.mrb[2].mxu1 }
 0x11c   : > { %v1545_v39 = vpop.f32.mrb[3].mxu1 }
 0x11e   : > { %2910 = vmatmul.mubr.msk.bf16.gmra.mrb[88].mxu1 %vm1445_vm0, %v3357_v35  ;;  %2021 = vmatmul.mubr.bf16.gmra.mrb[48].mxu0 %v3356_v37 }
 0x11f   : > { %2913 = vmatprep.mubr.msk.bf16.mxu1 %vm1445_vm0, %v3360_v38  ;;  %2028 = vmatprep.mubr.bf16.mxu0 %v3358_v40 }
 0x121   : > { %v3927_v41 = vpop.f32.mrb[4].mxu1 }
 0x122   : > { %v1550_v42 = vpop.f32.mrb[5].mxu1 }
 0x123   : > { %v3930_v44 = vpop.f32.mrb[6].mxu1 }
 0x124   : > { %v1553_v47 = vpop.f32.mrb[7].mxu1 }
 0x126   : > { %2914 = vmatmul.mubr.msk.bf16.gmra.mrb[92].mxu1 %vm1445_vm0, %v3362_v43  ;;  %2029 = vmatmul.mubr.bf16.gmra.mrb[52].mxu0 %v3361_v45 }
 0x127   : > { %2917 = vmatprep.mubr.msk.bf16.mxu1 %vm1445_vm0, %v3365_v46  ;;  %2036 = vmatprep.mubr.bf16.mxu0 %v3363_v48 }
 0x129   : > { %v3937_v49 = vpop.f32.mrb[8].mxu1 }
 0x12a   : > { %v1558_v50 = vpop.f32.mrb[9].mxu1 }
 0x12b   : > { %v3940_v52 = vpop.f32.mrb[10].mxu1 }
 0x12c   : > { %v1561_v55 = vpop.f32.mrb[11].mxu1 }
 0x12e   : > { %2918 = vmatmul.mubr.msk.bf16.gmra.mrb[96].mxu1 %vm1445_vm0, %v3367_v51  ;;  %2037 = vmatmul.mubr.bf16.gmra.mrb[56].mxu0 %v3366_v53 }
 0x12f   : > { %2921 = vmatprep.mubr.msk.bf16.mxu1 %vm1445_vm0, %v3370_v54  ;;  %2044 = vmatprep.mubr.bf16.mxu0 %v3368_v56 }
 0x131   : > { %v3947_v57 = vpop.f32.mrb[12].mxu1 }
 0x132   : > { %v1566_v58 = vpop.f32.mrb[13].mxu1 }
 0x133   : > { %v3950_v60 = vpop.f32.mrb[14].mxu1 }
 0x134   : > { %v1569_v63 = vpop.f32.mrb[15].mxu1 }
 0x136   : > { %2922 = vmatmul.mubr.msk.bf16.gmra.mrb[100].mxu1 %vm1445_vm0, %v3372_v59  ;;  %2045 = vmatmul.mubr.bf16.gmra.mrb[60].mxu0 %v3371_v61 }
 0x137   : > { %2925 = vmatprep.mubr.msk.bf16.mxu1 %vm1445_vm0, %v3375_v62  ;;  %2052 = vmatprep.mubr.bf16.mxu0 %v3373_v0 }
 0x139   : > { %v3957_v2 = vpop.f32.mrb[16].mxu1 }
 0x13a   : > { %v1574_v3 = vpop.f32.mrb[17].mxu1 }
 0x13b   : > { %v3960_v5 = vpop.f32.mrb[18].mxu1 }
 0x13c   : > { %v1577_v8 = vpop.f32.mrb[19].mxu1 }
 0x13e   : > { %2926 = vmatmul.mubr.msk.bf16.gmra.mrb[104].mxu1 %vm1445_vm0, %v3377_v4  ;;  %2053 = vmatmul.mubr.bf16.gmra.mrb[64].mxu0 %v3376_v6  ;;  %v4025_v6 = vld [vmem:[%s4314_s2] ss:$0 sm:$0xff] }
 0x13f   : > { %2929 = vmatprep.mubr.msk.bf16.mxu1 %vm1445_vm0, %v3380_v7  ;;  %2060 = vmatprep.mubr.bf16.mxu0 %v3378_v9  ;;  %v1541_v7 = vadd.f32 %v4025_v6, %v3917_v33  ;;  %v1544_v9 = vadd.f32 %v4025_v6, %v3920_v36 }
 0x141   : > { %v3967_v10 = vpop.f32.mrb[20].mxu1 }
 0x142   : > { %v1582_v11 = vpop.f32.mrb[21].mxu1 }
 0x143   : > { %v3970_v13 = vpop.f32.mrb[22].mxu1 }
 0x144   : > { %v1585_v16 = vpop.f32.mrb[23].mxu1 }
 0x146   : > { %2930 = vmatmul.mubr.msk.bf16.gmra.mrb[108].mxu1 %vm1445_vm0, %v3382_v12  ;;  %2061 = vmatmul.mubr.bf16.gmra.mrb[68].mxu0 %v3381_v14 }
 0x147   : > { %2933 = vmatprep.mubr.msk.bf16.mxu1 %vm1445_vm0, %v3385_v15  ;;  %2068 = vmatprep.mubr.bf16.mxu0 %v3383_v17  ;;  %v1549_v17 = vadd.f32 %v4025_v6, %v3927_v41 }
 0x149   : > { %v3977_v18 = vpop.f32.mrb[24].mxu1 }
 0x14a   : > { %v1590_v19 = vpop.f32.mrb[25].mxu1 }
 0x14b   : > { %v3980_v21 = vpop.f32.mrb[26].mxu1 }
 0x14c   : > { %v1593_v24 = vpop.f32.mrb[27].mxu1 }
 0x14e   : > { %2934 = vmatmul.mubr.msk.bf16.gmra.mrb[112].mxu1 %vm1445_vm0, %v3387_v20  ;;  %2069 = vmatmul.mubr.bf16.gmra.mrb[72].mxu0 %v3386_v22  ;;  %v1552_v20 = vadd.f32 %v4025_v6, %v3930_v44 }
 0x14f   : > { %2937 = vmatprep.mubr.msk.bf16.mxu1 %vm1445_vm0, %v3390_v23  ;;  %2076 = vmatprep.mubr.bf16.mxu0 %v3388_v25  ;;  %v1557_v25 = vadd.f32 %v4025_v6, %v3937_v49 }
 0x151   : > { %v3987_v26 = vpop.f32.mrb[28].mxu1 }
 0x152   : > { %v1598_v27 = vpop.f32.mrb[29].mxu1 }
 0x153   : > { %v3990_v28 = vpop.f32.mrb[30].mxu1 }
 0x154   : > { %v1601_v30 = vpop.f32.mrb[31].mxu1 }
 0x156   : > { %2938 = vmatmul.mubr.msk.bf16.gmra.mrb[116].mxu1 %vm1445_vm0, %v3392_v1  ;;  %2077 = vmatmul.mubr.bf16.gmra.mrb[76].mxu0 %v3391_v29  ;;  %v1560_v1 = vadd.f32 %v4025_v6, %v3940_v52 }
 0x159   : > { %v3994_v31 = vpop.f32.mrb[32].mxu1 }
 0x15a   : > { %v1606_v32 = vpop.f32.mrb[33].mxu1 }
 0x15b   : > { %v3996_v34 = vpop.f32.mrb[34].mxu1 }
 0x15c   : > { %v1609_v35 = vpop.f32.mrb[35].mxu1 }
 0x15d   : > { %v1565_v35 = vadd.f32 %v4025_v6, %v3947_v57 }
 0x161   : > { %v3998_v37 = vpop.f32.mrb[36].mxu1 }
 0x162   : > { %v1614_v38 = vpop.f32.mrb[37].mxu1 }
 0x163   : > { %v4000_v39 = vpop.f32.mrb[38].mxu1 }
 0x164   : > { %v1617_v40 = vpop.f32.mrb[39].mxu1 }
 0x165   : > { %v1568_v40 = vadd.f32 %v4025_v6, %v3950_v60 }
 0x169   : > { %v4002_v42 = vpop.f32.mrb[40].mxu1 }
 0x16a   : > { %v1622_v43 = vpop.f32.mrb[41].mxu1 }
 0x16b   : > { %v4004_v45 = vpop.f32.mrb[42].mxu1 }
 0x16c   : > { %v1625_v46 = vpop.f32.mrb[43].mxu1 }
 0x171   : > { %v4006_v47 = vpop.f32.mrb[44].mxu1 }
 0x172   : > { %v1630_v48 = vpop.f32.mrb[45].mxu1 }
 0x173   : > { %v4008_v50 = vpop.f32.mrb[46].mxu1 }
 0x174   : > { %v1633_v51 = vpop.f32.mrb[47].mxu1 }
 0x175   : > { %v1573_v51 = vadd.f32 %v4025_v6, %v3957_v2  ;;  %v1584_v2 = vadd.f32 %v4025_v6, %v3970_v13  ;;  %v1592_v13 = vadd.f32 %v4025_v6, %v3980_v21  ;;  %v1600_v21 = vadd.f32 %v4025_v6, %v3990_v28 }
 0x176   : > { %v1608_v28 = vadd.f32 %v4025_v6, %v3996_v34  ;;  %v1616_v34 = vadd.f32 %v4025_v6, %v4000_v39  ;;  %v1624_v39 = vadd.f32 %v4025_v6, %v4004_v45  ;;  %v1629_v45 = vadd.f32 %v4025_v6, %v4006_v47 }
 0x179   : > { %v4010_v53 = vpop.f32.mrb[48].mxu1 }
 0x17a   : > { %v1638_v54 = vpop.f32.mrb[49].mxu1 }
 0x17b   : > { %v4012_v55 = vpop.f32.mrb[50].mxu1 }
 0x17c   : > { %v1641_v56 = vpop.f32.mrb[51].mxu1 }
 0x17d   : > { %v1576_v56 = vadd.f32 %v4025_v6, %v3960_v5 }
 0x181   : > { %v4014_v58 = vpop.f32.mrb[52].mxu1 }
 0x182   : > { %v1646_v59 = vpop.f32.mrb[53].mxu1 }
 0x183   : > { %v4016_v61 = vpop.f32.mrb[54].mxu1 }
 0x184   : > { %v1649_v62 = vpop.f32.mrb[55].mxu1 }
 0x189   : > { %v4018_v63 = vpop.f32.mrb[56].mxu1 }
 0x18a   : > { %v1654_v0 = vpop.f32.mrb[57].mxu1 }
 0x18b   : > { %v4020_v3 = vpop.f32.mrb[58].mxu1 }
 0x18c   : > { %v1657_v4 = vpop.f32.mrb[59].mxu1 }
 0x18d   : > { %v1581_v4 = vadd.f32 %v4025_v6, %v3967_v10  ;;  %v1589_v10 = vadd.f32 %v4025_v6, %v3977_v18  ;;  %v1597_v18 = vadd.f32 %v4025_v6, %v3987_v26  ;;  %v1605_v26 = vadd.f32 %v4025_v6, %v3994_v31 }
 0x18e   : > { %v1613_v31 = vadd.f32 %v4025_v6, %v3998_v37  ;;  %v1621_v37 = vadd.f32 %v4025_v6, %v4002_v42 }
 0x191   : > { %v1926_v8 = vpop.f32.mrb[0].mxu0 }
 0x192   : > { %v4031_v11 = vadd.f32 %v1926_v8, %v1541_v7  ;;  %v1928_v12 = vpop.f32.mrb[1].mxu0 }
 0x193   : > { %v1929_v14 = vpop.f32.mrb[2].mxu0 }
 0x194   : > { %v4033_v15 = vadd.f32 %v1929_v14, %v1544_v9  ;;  %v1931_v16 = vpop.f32.mrb[3].mxu0 }
 0x199   : > { %v1934_v19 = vpop.f32.mrb[4].mxu0 }
 0x19a   : > { %v4039_v22 = vadd.f32 %v1934_v19, %v1549_v17  ;;  %v1936_v33 = vpop.f32.mrb[5].mxu0 }
 0x19b   : > { %v1937_v23 = vpop.f32.mrb[6].mxu0 }
 0x19c   : > { %v4041_v24 = vadd.f32 %v1937_v23, %v1552_v20  ;;  %v1939_v36 = vpop.f32.mrb[7].mxu0 }
 0x1a1   : > { %v1942_v27 = vpop.f32.mrb[8].mxu0 }
 0x1a2   : > { %v4047_v29 = vadd.f32 %v1942_v27, %v1557_v25  ;;  %v1944_v41 = vpop.f32.mrb[9].mxu0 }
 0x1a3   : > { %v1945_v30 = vpop.f32.mrb[10].mxu0 }
 0x1a4   : > { %v4049_v32 = vadd.f32 %v1945_v30, %v1560_v1  ;;  %v1947_v44 = vpop.f32.mrb[11].mxu0 }
 0x1a9   : > { %v1950_v38 = vpop.f32.mrb[12].mxu0 }
 0x1aa   : > { %v4055_v43 = vadd.f32 %v1950_v38, %v1565_v35  ;;  %v1952_v49 = vpop.f32.mrb[13].mxu0 }
 0x1ab   : > { %v1953_v46 = vpop.f32.mrb[14].mxu0 }
 0x1ac   : > { %v4057_v48 = vadd.f32 %v1953_v46, %v1568_v40  ;;  %v1955_v52 = vpop.f32.mrb[15].mxu0 }
 0x1b1   : > { %v1958_v54 = vpop.f32.mrb[16].mxu0 }
 0x1b2   : > { %v4063_v59 = vadd.f32 %v1958_v54, %v1573_v51  ;;  %v1960_v57 = vpop.f32.mrb[17].mxu0 }
 0x1b3   : > { %v1961_v62 = vpop.f32.mrb[18].mxu0 }
 0x1b4   : > { %v4065_v0 = vadd.f32 %v1961_v62, %v1576_v56  ;;  %v1963_v60 = vpop.f32.mrb[19].mxu0 }
 0x1b9   : > { %v4069_v7 = vpop.f32.mrb[60].mxu1  ;;  %v1966_v8 = vpop.f32.mrb[20].mxu0 }
 0x1ba   : > { %v1855_v9 = vpop.f32.mrb[61].mxu1  ;;  %v4073_v12 = vadd.f32 %v1966_v8, %v1581_v4  ;;  %v1968_v5 = vpop.f32.mrb[21].mxu0 }
 0x1bb   : > { %v4075_v14 = vpop.f32.mrb[62].mxu1  ;;  %v1969_v16 = vpop.f32.mrb[22].mxu0 }
 0x1bc   : > { %v1858_v17 = vpop.f32.mrb[63].mxu1  ;;  %v4077_v19 = vadd.f32 %v1969_v16, %v1584_v2  ;;  %v1971_v20 = vpop.f32.mrb[23].mxu0 }
 0x1c1   : > { %v4081_v33 = vpop.f32.mrb[64].mxu1  ;;  %v1974_v23 = vpop.f32.mrb[24].mxu0 }
 0x1c2   : > { %v1863_v36 = vpop.f32.mrb[65].mxu1  ;;  %v4085_v25 = vadd.f32 %v1974_v23, %v1589_v10  ;;  %v1976_v27 = vpop.f32.mrb[25].mxu0 }
 0x1c3   : > { %v4087_v1 = vpop.f32.mrb[66].mxu1  ;;  %v1977_v41 = vpop.f32.mrb[26].mxu0 }
 0x1c4   : > { %v1866_v30 = vpop.f32.mrb[67].mxu1  ;;  %v4089_v44 = vadd.f32 %v1977_v41, %v1592_v13  ;;  %v1979_v35 = vpop.f32.mrb[27].mxu0 }
 0x1c9   : > { %v4093_v38 = vpop.f32.mrb[68].mxu1  ;;  %v1982_v40 = vpop.f32.mrb[28].mxu0 }
 0x1ca   : > { %v1871_v49 = vpop.f32.mrb[69].mxu1  ;;  %v4097_v46 = vadd.f32 %v1982_v40, %v1597_v18  ;;  %v1984_v52 = vpop.f32.mrb[29].mxu0 }
 0x1cb   : > { %v4099_v51 = vpop.f32.mrb[70].mxu1  ;;  %v1985_v54 = vpop.f32.mrb[30].mxu0 }
 0x1cc   : > { %v1874_v56 = vpop.f32.mrb[71].mxu1  ;;  %v4101_v57 = vadd.f32 %v1985_v54, %v1600_v21  ;;  %v1987_v62 = vpop.f32.mrb[31].mxu0 }
 0x1d1   : > { %v4105_v60 = vpop.f32.mrb[72].mxu1  ;;  %v1990_v4 = vpop.f32.mrb[32].mxu0 }
 0x1d2   : > { %v1879_v8 = vpop.f32.mrb[73].mxu1  ;;  %v4109_v9 = vadd.f32 %v1990_v4, %v1605_v26  ;;  %v1992_v2 = vpop.f32.mrb[33].mxu0 }
 0x1d3   : > { %v4111_v5 = vpop.f32.mrb[74].mxu1  ;;  %v1993_v16 = vpop.f32.mrb[34].mxu0 }
 0x1d4   : > { %v1882_v17 = vpop.f32.mrb[75].mxu1  ;;  %v4113_v20 = vadd.f32 %v1993_v16, %v1608_v28  ;;  %v1995_v10 = vpop.f32.mrb[35].mxu0 }
 0x1d9   : > { %v4117_v23 = vpop.f32.mrb[76].mxu1  ;;  %v1998_v36 = vpop.f32.mrb[36].mxu0 }
 0x1da   : > { %v1887_v13 = vpop.f32.mrb[77].mxu1  ;;  %v4121_v27 = vadd.f32 %v1998_v36, %v1613_v31  ;;  %v2000_v41 = vpop.f32.mrb[37].mxu0 }
 0x1db   : > { %v4123_v30 = vpop.f32.mrb[78].mxu1  ;;  %v2001_v35 = vpop.f32.mrb[38].mxu0 }
 0x1dc   : > { %v1890_v18 = vpop.f32.mrb[79].mxu1  ;;  %v4125_v40 = vadd.f32 %v2001_v35, %v1616_v34  ;;  %v2003_v49 = vpop.f32.mrb[39].mxu0 }
 0x1e1   : > { %v2903_v21 = vpop.f32.mrb[80].mxu1  ;;  %v2006_v52 = vpop.f32.mrb[40].mxu0 }
 0x1e2   : > { %v2128_v54 = vadd.f32 %v4039_v22, %v2903_v21  ;;  %v2119_v56 = vpop.f32.mrb[81].mxu1  ;;  %v4132_v62 = vadd.f32 %v2006_v52, %v1621_v37  ;;  %v2008_v26 = vpop.f32.mrb[41].mxu0 }
 0x1e3   : > { %v2120_v4 = vadd.f32 %v4031_v11, %v2119_v56  ;;  %v2904_v8 = vpop.f32.mrb[82].mxu1  ;;  %v2009_v28 = vpop.f32.mrb[42].mxu0 }
 0x1e4   : > { %3393 = vtanh.f32 %v2128_v54  ;;  %v2131_v2 = vadd.f32 %v4041_v24, %v2904_v8  ;;  %v2122_v42 = vpop.f32.mrb[83].mxu1  ;;  %v4136_v16 = vadd.f32 %v2009_v28, %v1624_v39  ;;  %v2011_v22 = vpop.f32.mrb[43].mxu0  ;;  %v1632_v24 = vadd.f32 %v4025_v6, %v4008_v50 }
 0x1e5   : > { %3395 = vtanh.f32 %v2120_v4  ;;  %v2123_v17 = vadd.f32 %v4033_v15, %v2122_v42 }
 0x1e6   : > { %3397 = vtanh.f32 %v2131_v2  ;;  %v1640_v2 = vadd.f32 %v4025_v6, %v4012_v55 }
 0x1e7   : > { %3399 = vtanh.f32 %v2123_v17 }
 0x1e9   : > { %v2907_v10 = vpop.f32.mrb[84].mxu1  ;;  %v2014_v11 = vpop.f32.mrb[44].mxu0 }
 0x1ea   : > { %v2144_v31 = vadd.f32 %v4055_v43, %v2907_v10  ;;  %v2135_v36 = vpop.f32.mrb[85].mxu1  ;;  %v4145_v13 = vadd.f32 %v2014_v11, %v1629_v45  ;;  %v2016_v34 = vpop.f32.mrb[45].mxu0 }
 0x1eb   : > { %v2136_v41 = vadd.f32 %v4047_v29, %v2135_v36  ;;  %v2908_v15 = vpop.f32.mrb[86].mxu1  ;;  %v2017_v35 = vpop.f32.mrb[46].mxu0 }
 0x1ec   : > { %3401 = vtanh.f32 %v2144_v31  ;;  %v2147_v18 = vadd.f32 %v4057_v48, %v2908_v15  ;;  %v2138_v47 = vpop.f32.mrb[87].mxu1  ;;  %v4149_v49 = vadd.f32 %v2017_v35, %v1632_v24  ;;  %v2019_v43 = vpop.f32.mrb[47].mxu0 }
 0x1ed   : > { %3403 = vtanh.f32 %v2136_v41  ;;  %v2139_v37 = vadd.f32 %v4049_v32, %v2138_v47  ;;  %v1637_v32 = vadd.f32 %v4025_v6, %v4010_v53 }
 0x1ee   : > { %v3394_v21 = vpop.eup %3393  ;;  %3405 = vtanh.f32 %v2147_v18 }
 0x1ef   : > { %v3396_v50 = vpop.eup %3395  ;;  %v2837_v29 = vpack.c.bf16 %v3394_v21, %v3394_v21  ;;  %3407 = vtanh.f32 %v2139_v37  ;;  %v1648_v21 = vadd.f32 %v4025_v6, %v4016_v61 }
 0x1f0   : > { %v3398_v48 = vpop.eup %3397  ;;  %v2835_v52 = vpack.c.bf16 %v3396_v50, %v3396_v50 }
 0x1f1   : > { %v3400_v54 = vpop.eup %3399  ;;  %2481 = vst.msk [vmem:[%s4155_s23 + $0x8] sm:$0xf] %vm2478_vm1, %v2837_v29  ;;  %v2838_v56 = vpack.c.bf16 %v3398_v48, %v3398_v48  ;;  %v2911_v39 = vpop.f32.mrb[88].mxu1 }
 0x1f2   : > { %2479 = vst.msk [vmem:[%s4155_s23] sm:$0xf] %vm2478_vm1, %v2835_v52  ;;  %v2836_v26 = vpack.c.bf16 %v3400_v54, %v3400_v54  ;;  %v2022_v4 = vpop.f32.mrb[48].mxu0  ;;  %v2160_v8 = vadd.f32 %v4073_v12, %v2911_v39  ;;  %v2151_v28 = vpop.f32.mrb[89].mxu1 }
 0x1f3   : > { %2482 = vst.msk [vmem:[%s4155_s23 + $0xc] sm:$0xf] %vm2478_vm1, %v2838_v56  ;;  %v4168_v42 = vadd.f32 %v2022_v4, %v1637_v32  ;;  %v2024_v22 = vpop.f32.mrb[49].mxu0  ;;  %v2152_v53 = vadd.f32 %v4063_v59, %v2151_v28  ;;  %v2912_v17 = vpop.f32.mrb[90].mxu1 }
 0x1f4   : > { %2480 = vst.msk [vmem:[%s4155_s23 + $0x4] sm:$0xf] %vm2478_vm1, %v2836_v26  ;;  %3409 = vtanh.f32 %v2160_v8  ;;  %v2025_v45 = vpop.f32.mrb[50].mxu0  ;;  %v2163_v10 = vadd.f32 %v4077_v19, %v2912_v17  ;;  %v2154_v12 = vpop.f32.mrb[91].mxu1  ;;  %v1645_v19 = vadd.f32 %v4025_v6, %v4014_v58 }
 0x1f5   : > { %3411 = vtanh.f32 %v2152_v53  ;;  %v4174_v11 = vadd.f32 %v2025_v45, %v1640_v2  ;;  %v2027_v55 = vpop.f32.mrb[51].mxu0  ;;  %v2155_v31 = vadd.f32 %v4065_v0, %v2154_v12 }
 0x1f6   : > { %v3402_v36 = vpop.eup %3401  ;;  %3413 = vtanh.f32 %v2163_v10  ;;  %v1656_v10 = vadd.f32 %v4025_v6, %v4020_v3 }
 0x1f7   : > { %v3404_v24 = vpop.eup %3403  ;;  %v2841_v59 = vpack.c.bf16 %v3402_v36, %v3402_v36  ;;  %3415 = vtanh.f32 %v2155_v31 }
 0x1f8   : > { %v3406_v34 = vpop.eup %3405  ;;  %v2839_v41 = vpack.c.bf16 %v3404_v24, %v3404_v24 }
 0x1f9   : > { %v3408_v15 = vpop.eup %3407  ;;  %2485 = vst.msk [vmem:[%s4155_s23 + $0x18] sm:$0xf] %vm2478_vm1, %v2841_v59  ;;  %v2842_v35 = vpack.c.bf16 %v3406_v34, %v3406_v34  ;;  %v2915_v18 = vpop.f32.mrb[92].mxu1 }
 0x1fa   : > { %2483 = vst.msk [vmem:[%s4155_s23 + $0x10] sm:$0xf] %vm2478_vm1, %v2839_v41  ;;  %v2840_v0 = vpack.c.bf16 %v3408_v15, %v3408_v15  ;;  %v2030_v47 = vpop.f32.mrb[52].mxu0  ;;  %v2176_v43 = vadd.f32 %v4097_v46, %v2915_v18  ;;  %v2167_v37 = vpop.f32.mrb[93].mxu1 }
 0x1fb   : > { %2486 = vst.msk [vmem:[%s4155_s23 + $0x1c] sm:$0xf] %vm2478_vm1, %v2842_v35  ;;  %v4188_v50 = vadd.f32 %v2030_v47, %v1645_v19  ;;  %v2032_v29 = vpop.f32.mrb[53].mxu0  ;;  %v2168_v58 = vadd.f32 %v4085_v25, %v2167_v37  ;;  %v2916_v48 = vpop.f32.mrb[94].mxu1 }
 0x1fc   : > { %2484 = vst.msk [vmem:[%s4155_s23 + $0x14] sm:$0xf] %vm2478_vm1, %v2840_v0  ;;  %3417 = vtanh.f32 %v2176_v43  ;;  %v2033_v52 = vpop.f32.mrb[54].mxu0  ;;  %v2179_v54 = vadd.f32 %v4101_v57, %v2916_v48  ;;  %v2170_v46 = vpop.f32.mrb[95].mxu1  ;;  %v1653_v57 = vadd.f32 %v4025_v6, %v4018_v63  ;;  %v3035_v29 = vadd.f32 %v4025_v6, %v4075_v14 }
 0x1fd   : > { %3419 = vtanh.f32 %v2168_v58  ;;  %v4194_v32 = vadd.f32 %v2033_v52, %v1648_v21  ;;  %v2035_v61 = vpop.f32.mrb[55].mxu0  ;;  %v2171_v56 = vadd.f32 %v4089_v44, %v2170_v46 }
 0x1fe   : > { %v3410_v39 = vpop.eup %3409  ;;  %3421 = vtanh.f32 %v2179_v54 }
 0x1ff   : > { %v3412_v26 = vpop.eup %3411  ;;  %v2845_v25 = vpack.c.bf16 %v3410_v39, %v3410_v39  ;;  %3423 = vtanh.f32 %v2171_v56 }
 0x200   : > { %v3414_v4 = vpop.eup %3413  ;;  %v2843_v8 = vpack.c.bf16 %v3412_v26, %v3412_v26 }
 0x201   : > { %v3416_v28 = vpop.eup %3415  ;;  %2489 = vst.msk [vmem:[%s4155_s23 + $0x28] sm:$0xf] %vm2478_vm1, %v2845_v25  ;;  %v2846_v2 = vpack.c.bf16 %v3414_v4, %v3414_v4  ;;  %v2919_v22 = vpop.f32.mrb[96].mxu1 }
 0x202   : > { %2487 = vst.msk [vmem:[%s4155_s23 + $0x20] sm:$0xf] %vm2478_vm1, %v2843_v8  ;;  %v2844_v44 = vpack.c.bf16 %v3416_v28, %v3416_v28  ;;  %v2038_v53 = vpop.f32.mrb[56].mxu0  ;;  %v2192_v17 = vadd.f32 %v4121_v27, %v2919_v22  ;;  %v2183_v45 = vpop.f32.mrb[97].mxu1 }
 0x203   : > { %2490 = vst.msk [vmem:[%s4155_s23 + $0x2c] sm:$0xf] %vm2478_vm1, %v2846_v2  ;;  %v4208_v12 = vadd.f32 %v2038_v53, %v1653_v57  ;;  %v2040_v55 = vpop.f32.mrb[57].mxu0  ;;  %v2184_v63 = vadd.f32 %v4109_v9, %v2183_v45  ;;  %v2920_v31 = vpop.f32.mrb[98].mxu1  ;;  %v3039_v53 = vadd.f32 %v4025_v6, %v4087_v1 }
 0x204   : > { %2488 = vst.msk [vmem:[%s4155_s23 + $0x24] sm:$0xf] %vm2478_vm1, %v2844_v44  ;;  %3425 = vtanh.f32 %v2192_v17  ;;  %v2041_v36 = vpop.f32.mrb[58].mxu0  ;;  %v2195_v24 = vadd.f32 %v4125_v40, %v2920_v31  ;;  %v2186_v27 = vpop.f32.mrb[99].mxu1  ;;  %v3033_v40 = vadd.f32 %v4025_v6, %v4069_v7 }
 0x205   : > { %3427 = vtanh.f32 %v2184_v63  ;;  %v4214_v59 = vadd.f32 %v2041_v36, %v1656_v10  ;;  %v2043_v3 = vpop.f32.mrb[59].mxu0  ;;  %v2187_v34 = vadd.f32 %v4113_v20, %v2186_v27 }
 0x206   : > { %v3418_v41 = vpop.eup %3417  ;;  %3429 = vtanh.f32 %v2195_v24 }
 0x207   : > { %v3420_v15 = vpop.eup %3419  ;;  %v2849_v9 = vpack.c.bf16 %v3418_v41, %v3418_v41  ;;  %3431 = vtanh.f32 %v2187_v34 }
 0x208   : > { %v3422_v19 = vpop.eup %3421  ;;  %v2847_v35 = vpack.c.bf16 %v3420_v15, %v3420_v15 }
 0x209   : > { %v3424_v18 = vpop.eup %3423  ;;  %2493 = vst.msk [vmem:[%s4155_s23 + $0x38] sm:$0xf] %vm2478_vm1, %v2849_v9  ;;  %v2850_v0 = vpack.c.bf16 %v3422_v19, %v3422_v19  ;;  %v2923_v47 = vpop.f32.mrb[100].mxu1 }
 0x20a   : > { %2491 = vst.msk [vmem:[%s4155_s23 + $0x30] sm:$0xf] %vm2478_vm1, %v2847_v35  ;;  %v2848_v20 = vpack.c.bf16 %v3424_v18, %v3424_v18  ;;  %v2046_v43 = vpop.f32.mrb[60].mxu0  ;;  %v2208_v37 = vadd.f32 %v4145_v13, %v2923_v47  ;;  %v2199_v21 = vpop.f32.mrb[101].mxu1 }
 0x20b   : > { %2494 = vst.msk [vmem:[%s4155_s23 + $0x3c] sm:$0xf] %vm2478_vm1, %v2850_v0  ;;  %v3034_v58 = vadd.f32 %v3033_v40, %v2046_v43  ;;  %v2048_v48 = vpop.f32.mrb[61].mxu0  ;;  %v2200_v7 = vadd.f32 %v4132_v62, %v2199_v21  ;;  %v2924_v52 = vpop.f32.mrb[102].mxu1  ;;  %v3043_v40 = vadd.f32 %v4025_v6, %v4099_v51 }
 0x20c   : > { %2492 = vst.msk [vmem:[%s4155_s23 + $0x34] sm:$0xf] %vm2478_vm1, %v2848_v20  ;;  %3433 = vtanh.f32 %v2208_v37  ;;  %v2049_v54 = vpop.f32.mrb[62].mxu0  ;;  %v2211_v46 = vadd.f32 %v4149_v49, %v2924_v52  ;;  %v2202_v61 = vpop.f32.mrb[103].mxu1  ;;  %v3037_v49 = vadd.f32 %v4025_v6, %v4081_v33 }
 0x20d   : > { %3435 = vtanh.f32 %v2200_v7  ;;  %v3036_v13 = vadd.f32 %v3035_v29, %v2049_v54  ;;  %v2051_v56 = vpop.f32.mrb[63].mxu0  ;;  %v2203_v14 = vadd.f32 %v4136_v16, %v2202_v61  ;;  %v3045_v61 = vadd.f32 %v4025_v6, %v4105_v60 }
 0x20e   : > { %v3426_v39 = vpop.eup %3425  ;;  %3437 = vtanh.f32 %v2211_v46 }
 0x20f   : > { %v3428_v26 = vpop.eup %3427  ;;  %v2853_v62 = vpack.c.bf16 %v3426_v39, %v3426_v39  ;;  %3439 = vtanh.f32 %v2203_v14 }
 0x210   : > { %v3430_v25 = vpop.eup %3429  ;;  %v2851_v4 = vpack.c.bf16 %v3428_v26, %v3428_v26 }
 0x211   : > { %v3432_v8 = vpop.eup %3431  ;;  %2497 = vst.msk [vmem:[%s4155_s23 + $0x48] sm:$0xf] %vm2478_vm1, %v2853_v62  ;;  %v2854_v28 = vpack.c.bf16 %v3430_v25, %v3430_v25  ;;  %v2927_v57 = vpop.f32.mrb[104].mxu1  ;;  %v3047_v62 = vadd.f32 %v4025_v6, %v4111_v5 }
 0x212   : > { %2495 = vst.msk [vmem:[%s4155_s23 + $0x40] sm:$0xf] %vm2478_vm1, %v2851_v4  ;;  %v2852_v16 = vpack.c.bf16 %v3432_v8, %v3432_v8  ;;  %v2054_v2 = vpop.f32.mrb[64].mxu0  ;;  %v2224_v22 = vadd.f32 %v4188_v50, %v2927_v57  ;;  %v2215_v44 = vpop.f32.mrb[105].mxu1 }
 0x213   : > { %2498 = vst.msk [vmem:[%s4155_s23 + $0x4c] sm:$0xf] %vm2478_vm1, %v2854_v28  ;;  %v4244_v17 = vadd.f32 %v3037_v49, %v2054_v2  ;;  %v2056_v45 = vpop.f32.mrb[65].mxu0  ;;  %v2216_v33 = vadd.f32 %v4168_v42, %v2215_v44  ;;  %v2928_v10 = vpop.f32.mrb[106].mxu1 }
 0x214   : > { %2496 = vst.msk [vmem:[%s4155_s23 + $0x44] sm:$0xf] %vm2478_vm1, %v2852_v16  ;;  %3441 = vtanh.f32 %v2224_v22  ;;  %v2057_v55 = vpop.f32.mrb[66].mxu0  ;;  %v2227_v63 = vadd.f32 %v4194_v32, %v2928_v10  ;;  %v2218_v50 = vpop.f32.mrb[107].mxu1  ;;  %v3041_v32 = vadd.f32 %v4025_v6, %v4093_v38  ;;  %v3049_v10 = vadd.f32 %v4025_v6, %v4117_v23 }
 0x215   : > { %3443 = vtanh.f32 %v2216_v33  ;;  %v4250_v31 = vadd.f32 %v3039_v53, %v2057_v55  ;;  %v2059_v1 = vpop.f32.mrb[67].mxu0  ;;  %v2219_v36 = vadd.f32 %v4174_v11, %v2218_v50 }
 0x216   : > { %v3434_v24 = vpop.eup %3433  ;;  %3445 = vtanh.f32 %v2227_v63 }
 0x217   : > { %v3436_v27 = vpop.eup %3435  ;;  %v2857_v42 = vpack.c.bf16 %v3434_v24, %v3434_v24  ;;  %3447 = vtanh.f32 %v2219_v36  ;;  %v3051_v36 = vadd.f32 %v4025_v6, %v4123_v30 }
 0x218   : > { %v3438_v3 = vpop.eup %3437  ;;  %v2855_v34 = vpack.c.bf16 %v3436_v27, %v3436_v27 }
 0x219   : > { %v3440_v41 = vpop.eup %3439  ;;  %2501 = vst.msk [vmem:[%s4155_s23 + $0x58] sm:$0xf] %vm2478_vm1, %v2857_v42  ;;  %v2858_v15 = vpack.c.bf16 %v3438_v3, %v3438_v3  ;;  %v2931_v9 = vpop.f32.mrb[108].mxu1 }
 0x21a   : > { %2499 = vst.msk [vmem:[%s4155_s23 + $0x50] sm:$0xf] %vm2478_vm1, %v2855_v34  ;;  %v2856_v11 = vpack.c.bf16 %v3440_v41, %v3440_v41  ;;  %v2062_v19 = vpop.f32.mrb[68].mxu0  ;;  %v2240_v35 = vadd.f32 %v3034_v58, %v2931_v9  ;;  %v2231_v18 = vpop.f32.mrb[109].mxu1 }
 0x21b   : > { %2502 = vst.msk [vmem:[%s4155_s23 + $0x5c] sm:$0xf] %vm2478_vm1, %v2858_v15  ;;  %v3042_v0 = vadd.f32 %v3041_v32, %v2062_v19  ;;  %v2064_v47 = vpop.f32.mrb[69].mxu0  ;;  %v2232_v20 = vadd.f32 %v4208_v12, %v2231_v18  ;;  %v2932_v38 = vpop.f32.mrb[110].mxu1 }
 0x21c   : > { %2500 = vst.msk [vmem:[%s4155_s23 + $0x54] sm:$0xf] %vm2478_vm1, %v2856_v11  ;;  %3449 = vtanh.f32 %v2240_v35  ;;  %v2065_v43 = vpop.f32.mrb[70].mxu0  ;;  %v2243_v37 = vadd.f32 %v3036_v13, %v2932_v38  ;;  %v2234_v21 = vpop.f32.mrb[111].mxu1 }
 0x21d   : > { %3451 = vtanh.f32 %v2232_v20  ;;  %v3044_v29 = vadd.f32 %v3043_v40, %v2065_v43  ;;  %v2067_v58 = vpop.f32.mrb[71].mxu0  ;;  %v2235_v51 = vadd.f32 %v4214_v59, %v2234_v21 }
 0x21e   : > { %v3442_v48 = vpop.eup %3441  ;;  %3453 = vtanh.f32 %v2243_v37 }
 0x21f   : > { %v3444_v7 = vpop.eup %3443  ;;  %v2861_v52 = vpack.c.bf16 %v3442_v48, %v3442_v48  ;;  %3455 = vtanh.f32 %v2235_v51 }
 0x220   : > { %v3446_v12 = vpop.eup %3445  ;;  %v2859_v54 = vpack.c.bf16 %v3444_v7, %v3444_v7 }
 0x221   : > { %v3448_v46 = vpop.eup %3447  ;;  %2505 = vst.msk [vmem:[%s4155_s23 + $0x68] sm:$0xf] %vm2478_vm1, %v2861_v52  ;;  %v2862_v13 = vpack.c.bf16 %v3446_v12, %v3446_v12  ;;  %v2935_v56 = vpop.f32.mrb[112].mxu1 }
 0x222   : > { %2503 = vst.msk [vmem:[%s4155_s23 + $0x60] sm:$0xf] %vm2478_vm1, %v2859_v54  ;;  %v2860_v59 = vpack.c.bf16 %v3448_v46, %v3448_v46  ;;  %v2070_v14 = vpop.f32.mrb[72].mxu0  ;;  %v2256_v39 = vadd.f32 %v3042_v0, %v2935_v56  ;;  %v2247_v26 = vpop.f32.mrb[113].mxu1 }
 0x223   : > { %2506 = vst.msk [vmem:[%s4155_s23 + $0x6c] sm:$0xf] %vm2478_vm1, %v2862_v13  ;;  %v3046_v25 = vadd.f32 %v3045_v61, %v2070_v14  ;;  %v2072_v4 = vpop.f32.mrb[73].mxu0  ;;  %v2248_v8 = vadd.f32 %v4244_v17, %v2247_v26  ;;  %v2936_v60 = vpop.f32.mrb[114].mxu1 }
 0x224   : > { %2504 = vst.msk [vmem:[%s4155_s23 + $0x64] sm:$0xf] %vm2478_vm1, %v2860_v59  ;;  %3457 = vtanh.f32 %v2256_v39  ;;  %v2073_v49 = vpop.f32.mrb[74].mxu0  ;;  %v2259_v28 = vadd.f32 %v3044_v29, %v2936_v60  ;;  %v2250_v57 = vpop.f32.mrb[115].mxu1 }
 0x225   : > { %3459 = vtanh.f32 %v2248_v8  ;;  %v3048_v16 = vadd.f32 %v3047_v62, %v2073_v49  ;;  %v2075_v2 = vpop.f32.mrb[75].mxu0  ;;  %v2251_v5 = vadd.f32 %v4250_v31, %v2250_v57 }
 0x226   : > { %v3450_v22 = vpop.eup %3449  ;;  %3461 = vtanh.f32 %v2259_v28 }
 0x227   : > { %v3452_v44 = vpop.eup %3451  ;;  %v2865_v53 = vpack.c.bf16 %v3450_v22, %v3450_v22  ;;  %3463 = vtanh.f32 %v2251_v5 }
 0x228   : > { %v3454_v17 = vpop.eup %3453  ;;  %v2863_v45 = vpack.c.bf16 %v3452_v44, %v3452_v44 }
 0x229   : > { %v3456_v33 = vpop.eup %3455  ;;  %2509 = vst.msk [vmem:[%s4155_s23 + $0x78] sm:$0xf] %vm2478_vm1, %v2865_v53  ;;  %v2866_v55 = vpack.c.bf16 %v3454_v17, %v3454_v17  ;;  %v2939_v63 = vpop.f32.mrb[116].mxu1 }
 0x22a   : > { %2507 = vst.msk [vmem:[%s4155_s23 + $0x70] sm:$0xf] %vm2478_vm1, %v2863_v45  ;;  %v2864_v50 = vpack.c.bf16 %v3456_v33, %v3456_v33  ;;  %v2078_v31 = vpop.f32.mrb[76].mxu0  ;;  %v2263_v1 = vpop.f32.mrb[117].mxu1 }
 0x22b   : > { %2510 = vst.msk [vmem:[%s4155_s23 + $0x7c] sm:$0xf] %vm2478_vm1, %v2866_v55  ;;  %v3050_v24 = vadd.f32 %v3049_v10, %v2078_v31  ;;  %v2080_v27 = vpop.f32.mrb[77].mxu0  ;;  %v2264_v42 = vadd.f32 %v3046_v25, %v2263_v1  ;;  %v2940_v3 = vpop.f32.mrb[118].mxu1 }
 0x22c   : > { %2508 = vst.msk [vmem:[%s4155_s23 + $0x74] sm:$0xf] %vm2478_vm1, %v2864_v50  ;;  %v2081_v23 = vpop.f32.mrb[78].mxu0  ;;  %v2266_v34 = vpop.f32.mrb[119].mxu1 }
 0x22d   : > { %v2272_v41 = vadd.f32 %v3050_v24, %v2939_v63  ;;  %3465 = vtanh.f32 %v2264_v42  ;;  %v3052_v32 = vadd.f32 %v3051_v36, %v2081_v23  ;;  %v2083_v15 = vpop.f32.mrb[79].mxu0  ;;  %v2267_v9 = vadd.f32 %v3048_v16, %v2266_v34 }
 0x22e   : > { %v3458_v6 = vpop.eup %3457 }
 0x22f   : > { %v3460_v30 = vpop.eup %3459  ;;  %v2869_v11 = vpack.c.bf16 %v3458_v6, %v3458_v6  ;;  %3467 = vtanh.f32 %v2272_v41  ;;  %v2275_v19 = vadd.f32 %v3052_v32, %v2940_v3 }
 0x230   : > { %v3462_v35 = vpop.eup %3461  ;;  %v2867_v18 = vpack.c.bf16 %v3460_v30, %v3460_v30  ;;  %3469 = vtanh.f32 %v2267_v9 }
 0x231   : > { %v3464_v40 = vpop.eup %3463  ;;  %2513 = vst.msk [vmem:[%s4155_s23 + $0x88] sm:$0xf] %vm2478_vm1, %v2869_v11  ;;  %v2870_v0 = vpack.c.bf16 %v3462_v35, %v3462_v35  ;;  %3471 = vtanh.f32 %v2275_v19 }
 0x232   : > { %2511 = vst.msk [vmem:[%s4155_s23 + $0x80] sm:$0xf] %vm2478_vm1, %v2867_v18  ;;  %v2868_v47 = vpack.c.bf16 %v3464_v40, %v3464_v40 }
 0x233   : > { %2514 = vst.msk [vmem:[%s4155_s23 + $0x8c] sm:$0xf] %vm2478_vm1, %v2870_v0 }
 0x234   : > { %2512 = vst.msk [vmem:[%s4155_s23 + $0x84] sm:$0xf] %vm2478_vm1, %v2868_v47 }
 0x237   : > { %v3466_v20 = vpop.eup %3465 }
 0x238   : > { %v2871_v38 = vpack.c.bf16 %v3466_v20, %v3466_v20 }
 0x239   : > { %v3468_v43 = vpop.eup %3467 }
 0x23a   : > { %v3470_v37 = vpop.eup %3469  ;;  %v2873_v21 = vpack.c.bf16 %v3468_v43, %v3468_v43  ;;  %2515 = vst.msk [vmem:[%s4155_s23 + $0x90] sm:$0xf] %vm2478_vm1, %v2871_v38 }
 0x23b   : > { %v3472_v29 = vpop.eup %3471  ;;  %v2872_v58 = vpack.c.bf16 %v3470_v37, %v3470_v37 }
 0x23c   : > { %2517 = vst.msk [vmem:[%s4155_s23 + $0x98] sm:$0xf] %vm2478_vm1, %v2873_v21  ;;  %v2874_v51 = vpack.c.bf16 %v3472_v29, %v3472_v29 }
 0x23d   : > { %2516 = vst.msk [vmem:[%s4155_s23 + $0x94] sm:$0xf] %vm2478_vm1, %v2872_v58 }
 0x23e   : > { %2518 = vst.msk [vmem:[%s4155_s23 + $0x9c] sm:$0xf] %vm2478_vm1, %v2874_v51 }
 0x23f PF: > { %s13_s12 = sadd.s32 1, %s3479_s12  }
 0x240   : > { %p10_p4 = scmp.ge.s32.totalorder %s13_s12, 4  }
 0x242   :  { %12 = sbr.rel (!%p10_p4) target bundleno = 1 (0x1), region = 62 }

// kernel: forward.8
= control target key start
LH: loop header
LB: loop body
LE: loop exit
PB: predicated region body
PF: predicated region fallthrough
CT: control target
= control target key end

     0   :  { %vm852_vm0 = vcmask 261120   ;;  %vm1535_vm1 = vcmask 19456   ;;  %s2825_s1 = inlined_call_operand.vmem [shape: bf16[800,3], index: 1, kind: input, shape index: {}]   ;;  %s2826_s0 = inlined_call_operand.vmem [shape: bf16[160,800], index: 0, kind: input, shape index: {}]   ;;  %s2827_s2 = inlined_call_operand.vmem [shape: f32[1,3], index: 2, kind: input, shape index: {}]   ;;  %s2828_s3 = inlined_call_operand.vmem [shape: bf16[160,3], index: 3, kind: output, shape index: {}]  }
   0x1   :  { %v2031_v0 = vld [vmem:[%s2825_s1 + $0x40] sm:$0xff]   ;;  %v2035_v4 = vld [vmem:[%s2825_s1 + $0x48] sm:$0xff]   ;;  %v2039_v8 = vld [vmem:[%s2825_s1 + $0x50] sm:$0xff]  }
   0x2   :  { %v2032_v1 = vld [vmem:[%s2825_s1 + $0xc0] sm:$0xff]   ;;  %1751 = vmatprep.subr.bf16.mxu0 %v2031_v0  ;;  %v2036_v5 = vld [vmem:[%s2825_s1 + $0xc8] sm:$0xff]   ;;  %v2040_v9 = vld [vmem:[%s2825_s1 + $0xd0] sm:$0xff]  }
   0x3   :  { %v2033_v2 = vld [vmem:[%s2825_s1] sm:$0xff]   ;;  %1827 = vmatprep.subr.bf16.mxu1 %v2032_v1  ;;  %v2037_v6 = vld [vmem:[%s2825_s1 + $0x8] sm:$0xff]   ;;  %v2041_v10 = vld [vmem:[%s2825_s1 + $0x10] sm:$0xff]  }
   0x4   :  { %v2034_v3 = vld [vmem:[%s2825_s1 + $0x80] sm:$0xff]   ;;  %1752 = vmatpush3.bf16.msra.mxu0 %v2033_v2  ;;  %v2038_v7 = vld [vmem:[%s2825_s1 + $0x88] sm:$0xff]   ;;  %v2042_v11 = vld [vmem:[%s2825_s1 + $0x90] sm:$0xff]  }
   0x5   :  { %1828 = vmatpush3.bf16.msra.mxu1 %v2034_v3  ;;  %1753 = vmatprep.subr.bf16.mxu0 %v2035_v4  ;;  %v2043_v12 = vld [vmem:[%s2825_s1 + $0x58] sm:$0xff]   ;;  %v2047_v16 = vld [vmem:[%s2825_s1 + $0x60] sm:$0xff]   ;;  %v2051_v20 = vld [vmem:[%s2825_s1 + $0x68] sm:$0xff]  }
   0x6   :  { %1829 = vmatprep.subr.bf16.mxu1 %v2036_v5  ;;  %v2044_v13 = vld [vmem:[%s2825_s1 + $0xd8] sm:$0xff]   ;;  %v2048_v17 = vld [vmem:[%s2825_s1 + $0xe0] sm:$0xff]   ;;  %v2052_v21 = vld [vmem:[%s2825_s1 + $0xe8] sm:$0xff]  }
   0x7   :  { %v2045_v14 = vld [vmem:[%s2825_s1 + $0x18] sm:$0xff]   ;;  %v2049_v18 = vld [vmem:[%s2825_s1 + $0x20] sm:$0xff]   ;;  %v2053_v22 = vld [vmem:[%s2825_s1 + $0x28] sm:$0xff]  }
   0x8   :  { %1754 = vmatpush3.bf16.msra.mxu0 %v2037_v6  ;;  %v2046_v15 = vld [vmem:[%s2825_s1 + $0x98] sm:$0xff]   ;;  %v2050_v19 = vld [vmem:[%s2825_s1 + $0xa0] sm:$0xff]   ;;  %v2054_v23 = vld [vmem:[%s2825_s1 + $0xa8] sm:$0xff]  }
   0x9   :  { %1830 = vmatpush3.bf16.msra.mxu1 %v2038_v7  ;;  %1755 = vmatprep.subr.bf16.mxu0 %v2039_v8  ;;  %v2055_v24 = vld [vmem:[%s2825_s1 + $0x70] sm:$0xff]   ;;  %v2059_v28 = vld [vmem:[%s2825_s1 + $0x78] sm:$0xff]   ;;  %v2065_v33 = vld [vmem:[%s2826_s0 + $0x4] ss:$28 sps:$4 sm:$0xff]  }
   0xa   :  { %1831 = vmatprep.subr.bf16.mxu1 %v2040_v9  ;;  %v2056_v25 = vld [vmem:[%s2825_s1 + $0xf0] sm:$0xff]   ;;  %v2060_v29 = vld [vmem:[%s2825_s1 + $0xf8] sm:$0xff]   ;;  %v2066_v34 = vld [vmem:[%s2826_s0 + $0x8] ss:$28 sps:$4 sm:$0xff]   ;;  %915 = vmatprep.mubr.bf16.mxu0 %v2065_v33 }
   0xb   :  { %v2057_v26 = vld [vmem:[%s2825_s1 + $0x30] sm:$0xff]   ;;  %v2061_v30 = vld [vmem:[%s2825_s1 + $0x38] sm:$0xff]   ;;  %v2068_v35 = vld [vmem:[%s2826_s0 + $0xc] ss:$28 sps:$4 sm:$0xff]  }
   0xc   :  { %1756 = vmatpush3.bf16.msra.mxu0 %v2041_v10  ;;  %v2058_v27 = vld [vmem:[%s2825_s1 + $0xb0] sm:$0xff]   ;;  %v2062_v31 = vld [vmem:[%s2825_s1 + $0xb8] sm:$0xff]   ;;  %v2069_v36 = vld [vmem:[%s2825_s1 + $0x140] sm:$0xff]   ;;  %1028 = vmatprep.mubr.bf16.mxu1 %v2068_v35 }
   0xd   :  { %1832 = vmatpush3.bf16.msra.mxu1 %v2042_v11  ;;  %1757 = vmatprep.subr.bf16.mxu0 %v2043_v12  ;;  %v2063_v32 = vld [vmem:[%s2826_s0] ss:$28 sps:$4 sm:$0xff]   ;;  %v2075_v40 = vld [vmem:[%s2826_s0 + $0x38] ss:$28 sps:$4 sm:$0xff]   ;;  %v2077_v42 = vld [vmem:[%s2825_s1 + $0x148] sm:$0xff]  }
   0xe   :  { %1833 = vmatprep.subr.bf16.mxu1 %v2044_v13  ;;  %v2070_v37 = vld [vmem:[%s2825_s1 + $0x100] sm:$0xff]   ;;  %v2071_v38 = vld [vmem:[%s2826_s0 + $0x3c] ss:$28 sps:$4 sm:$0xff]   ;;  %v2078_v43 = vld [vmem:[%s2825_s1 + $0x108] sm:$0xff]  }
   0xf   :  { %v2073_v39 = vld [vmem:[%s2826_s0 + $0x44] ss:$28 sps:$4 sm:$0xff]   ;;  %v2079_v44 = vld [vmem:[%s2826_s0 + $0x74] ss:$28 sps:$4 sm:$0xff]   ;;  %v2081_v45 = vld [vmem:[%s2826_s0 + $0x7c] ss:$28 sps:$4 sm:$0xff]  }
  0x10   :  { %1758 = vmatpush3.bf16.msra.mxu0 %v2045_v14  ;;  %v2076_v41 = vld [vmem:[%s2826_s0 + $0x40] ss:$28 sps:$4 sm:$0xff]   ;;  %v2085_v46 = vld [vmem:[%s2825_s1 + $0x150] sm:$0xff]   ;;  %v2087_v50 = vld [vmem:[%s2826_s0 + $0xac] ss:$28 sps:$4 sm:$0xff]  }
  0x11   :  { %1834 = vmatpush3.bf16.msra.mxu1 %v2046_v15  ;;  %1759 = vmatprep.subr.bf16.mxu0 %v2047_v16  ;;  %v2086_v47 = vld [vmem:[%s2825_s1 + $0x110] sm:$0xff]   ;;  %v2093_v51 = vld [vmem:[%s2825_s1 + $0x158] sm:$0xff]   ;;  %v2091_v54 = vld [vmem:[%s2826_s0 + $0xa8] ss:$28 sps:$4 sm:$0xff]  }
  0x12   :  { %1835 = vmatprep.subr.bf16.mxu1 %v2048_v17  ;;  %v2083_v48 = vld [vmem:[%s2826_s0 + $0x70] ss:$28 sps:$4 sm:$0xff]   ;;  %v2084_v49 = vld [vmem:[%s2826_s0 + $0x78] ss:$28 sps:$4 sm:$0xff]   ;;  %v2094_v56 = vld [vmem:[%s2826_s0 + $0xe4] ss:$28 sps:$4 sm:$0xff]  }
  0x13   :  { %v2089_v52 = vld [vmem:[%s2826_s0 + $0xb4] ss:$28 sps:$4 sm:$0xff]   ;;  %v2098_v53 = vld [vmem:[%s2825_s1 + $0x118] sm:$0xff]   ;;  %v2107_v57 = vld [vmem:[%s2825_s1 + $0x160] sm:$0xff]  }
  0x14   :  { %1760 = vmatpush3.bf16.msra.mxu0 %v2049_v18  ;;  %v2092_v55 = vld [vmem:[%s2826_s0 + $0xb0] ss:$28 sps:$4 sm:$0xff]   ;;  %v2108_v58 = vld [vmem:[%s2825_s1 + $0x120] sm:$0xff]   ;;  %v2101_v0 = vld [vmem:[%s2826_s0 + $0x11c] ss:$28 sps:$4 sm:$0xff]  }
  0x15   :  { %1836 = vmatpush3.bf16.msra.mxu1 %v2050_v19  ;;  %1761 = vmatprep.subr.bf16.mxu0 %v2051_v20  ;;  %v2096_v59 = vld [vmem:[%s2826_s0 + $0xec] ss:$28 sps:$4 sm:$0xff]   ;;  %v2099_v62 = vld [vmem:[%s2826_s0 + $0xe0] ss:$28 sps:$4 sm:$0xff]   ;;  %v2123_v2 = vld [vmem:[%s2825_s1 + $0x170] sm:$0xff]  }
  0x16   :  { %1837 = vmatprep.subr.bf16.mxu1 %v2052_v21  ;;  %v2115_v60 = vld [vmem:[%s2825_s1 + $0x168] sm:$0xff]   ;;  %v2103_v1 = vld [vmem:[%s2826_s0 + $0x124] ss:$28 sps:$4 sm:$0xff]   ;;  %v2124_v3 = vld [vmem:[%s2825_s1 + $0x130] sm:$0xff]  }
  0x17   :  { %v2116_v61 = vld [vmem:[%s2825_s1 + $0x128] sm:$0xff]   ;;  %v2105_v4 = vld [vmem:[%s2826_s0 + $0x118] ss:$28 sps:$4 sm:$0xff]   ;;  %v2106_v6 = vld [vmem:[%s2826_s0 + $0x120] ss:$28 sps:$4 sm:$0xff]  }
  0x18   :  { %1762 = vmatpush3.bf16.msra.mxu0 %v2053_v22  ;;  %v2100_v63 = vld [vmem:[%s2826_s0 + $0xe8] ss:$28 sps:$4 sm:$0xff]   ;;  %v2131_v5 = vld [vmem:[%s2825_s1 + $0x178] sm:$0xff]   ;;  %v2109_v7 = vld [vmem:[%s2826_s0 + $0x154] ss:$28 sps:$4 sm:$0xff]  }
  0x19   :  { %1838 = vmatpush3.bf16.msra.mxu1 %v2054_v23  ;;  %1763 = vmatprep.subr.bf16.mxu0 %v2055_v24  ;;  %v2136_v8 = vld [vmem:[%s2825_s1 + $0x138] sm:$0xff]   ;;  %v2113_v10 = vld [vmem:[%s2826_s0 + $0x150] ss:$28 sps:$4 sm:$0xff]   ;;  %v2151_v12 = vld [vmem:[%s2825_s1 + $0x180] sm:$0xff]  }
  0x1a   :  { %1839 = vmatprep.subr.bf16.mxu1 %v2056_v25  ;;  %v2111_v9 = vld [vmem:[%s2826_s0 + $0x15c] ss:$28 sps:$4 sm:$0xff]   ;;  %v2117_v13 = vld [vmem:[%s2826_s0 + $0x18c] ss:$28 sps:$4 sm:$0xff]   ;;  %v2119_v14 = vld [vmem:[%s2826_s0 + $0x194] ss:$28 sps:$4 sm:$0xff]  }
  0x1b   :  { %v2114_v11 = vld [vmem:[%s2826_s0 + $0x158] ss:$28 sps:$4 sm:$0xff]   ;;  %v2121_v15 = vld [vmem:[%s2826_s0 + $0x188] ss:$28 sps:$4 sm:$0xff]   ;;  %v2122_v16 = vld [vmem:[%s2826_s0 + $0x190] ss:$28 sps:$4 sm:$0xff]  }
  0x1c   :  { %1764 = vmatpush3.bf16.msra.mxu0 %v2057_v26  ;;  %v2125_v17 = vld [vmem:[%s2826_s0 + $0x1c4] ss:$28 sps:$4 sm:$0xff]   ;;  %v2127_v18 = vld [vmem:[%s2826_s0 + $0x1cc] ss:$28 sps:$4 sm:$0xff]   ;;  %v2132_v21 = vld [vmem:[%s2826_s0 + $0x1fc] ss:$28 sps:$4 sm:$0xff]  }
  0x1d   :  { %1840 = vmatpush3.bf16.msra.mxu1 %v2058_v27  ;;  %1765 = vmatprep.subr.bf16.mxu0 %v2059_v28  ;;  %v2129_v19 = vld [vmem:[%s2826_s0 + $0x1c0] ss:$28 sps:$4 sm:$0xff]   ;;  %v2130_v20 = vld [vmem:[%s2826_s0 + $0x1c8] ss:$28 sps:$4 sm:$0xff]   ;;  %v2137_v23 = vld [vmem:[%s2826_s0 + $0x1f8] ss:$28 sps:$4 sm:$0xff]  }
  0x1e   :  { %1841 = vmatprep.subr.bf16.mxu1 %v2060_v29  ;;  %v2134_v22 = vld [vmem:[%s2826_s0 + $0x204] ss:$28 sps:$4 sm:$0xff]   ;;  %v2141_v25 = vld [vmem:[%s2826_s0 + $0x14] ss:$28 sps:$4 sm:$0xff]   ;;  %v2145_v29 = vld [vmem:[%s2826_s0 + $0x4c] ss:$28 sps:$4 sm:$0xff]  }
  0x1f   :  { %v2138_v24 = vld [vmem:[%s2826_s0 + $0x200] ss:$28 sps:$4 sm:$0xff]   ;;  %v2144_v26 = vld [vmem:[%s2826_s0 + $0x1d4] ss:$28 sps:$4 sm:$0xff]   ;;  %v2150_v33 = vld [vmem:[%s2826_s0 + $0x208] ss:$28 sps:$4 sm:$0xff]  }
  0x20   :  { %1766 = vmatpush3.bf16.msra.mxu0 %v2061_v30  ;;  %v2139_v27 = vld [vmem:[%s2826_s0 + $0x10] ss:$28 sps:$4 sm:$0xff]   ;;  %v2155_v35 = vld [vmem:[%s2826_s0 + $0x18] ss:$28 sps:$4 sm:$0xff]  }
  0x21   :  { %1842 = vmatpush3.bf16.msra.mxu1 %v2062_v31  ;;  %1903 = vmatprep.subr.bf16.mxu0 %v2069_v36  ;;  %v2142_v28 = vld [vmem:[%s2826_s0 + $0x1d0] ss:$28 sps:$4 sm:$0xff]  }
  0x22   :  { %2015 = vmatprep.subr.bf16.mxu1 %v2069_v36  ;;  %v2147_v30 = vld [vmem:[%s2826_s0 + $0x20c] ss:$28 sps:$4 sm:$0xff]   ;;  %v2156_v36 = vld [vmem:[%s2826_s0 + $0x80] ss:$28 sps:$4 sm:$0xff]  }
  0x23   :  { %916 = vmatmul.mubr.bf16.vlgmr.msra.gmra.mrb[0].mxu0 %v2063_v32  ;;  %v2152_v31 = vld [vmem:[%s2825_s1 + $0x188] sm:$0xff]  }
  0x24   :  { %1029 = vmatmul.mubr.bf16.vlgmr.msra.gmra.mrb[0].mxu1 %v2066_v34  ;;  %1904 = vmatpush3.bf16.msra.mxu0 %v2070_v37  ;;  %v2149_v32 = vld [vmem:[%s2826_s0 + $0x48] ss:$28 sps:$4 sm:$0xff]  }
  0x25   :  { %923 = vmatprep.mubr.bf16.mxu0 %v2071_v38  ;;  %2023 = vmatpush3.bf16.msra.mxu1 %v2070_v37  ;;  %v2153_v34 = vld [vmem:[%s2826_s0 + $0x84] ss:$28 sps:$4 sm:$0xff]   ;;  %v2157_v37 = vld [vmem:[%s2826_s0 + $0x50] ss:$28 sps:$4 sm:$0xff]   ;;  %v2158_v38 = vld [vmem:[%s2826_s0 + $0xbc] ss:$28 sps:$4 sm:$0xff]  }
  0x26   :  { %1036 = vmatprep.mubr.bf16.mxu1 %v2073_v39  ;;  %1905 = vmatprep.subr.bf16.mxu0 %v2077_v42  ;;  %v2160_v39 = vld [vmem:[%s2826_s0 + $0x88] ss:$28 sps:$4 sm:$0xff]  }
  0x27   :  { %2016 = vmatprep.subr.bf16.mxu1 %v2077_v42  ;;  %v2163_v42 = vld [vmem:[%s2826_s0 + $0xf4] ss:$28 sps:$4 sm:$0xff]  }
  0x28   :  { %1906 = vmatpush3.bf16.msra.mxu0 %v2078_v43 }
  0x29   :  { %2024 = vmatpush3.bf16.msra.mxu1 %v2078_v43  ;;  %1907 = vmatprep.subr.bf16.mxu0 %v2085_v46  ;;  %v2165_v43 = vld [vmem:[%s2826_s0 + $0xf8] ss:$28 sps:$4 sm:$0xff]  }
  0x2a   :  { %2017 = vmatprep.subr.bf16.mxu1 %v2085_v46  ;;  %v2168_v46 = vld [vmem:[%s2826_s0 + $0x12c] ss:$28 sps:$4 sm:$0xff]  }
  0x2b   :  { %924 = vmatmul.mubr.bf16.gmra.mrb[4].mxu0 %v2075_v40  ;;  %v2161_v40 = vld [vmem:[%s2826_s0 + $0xb8] ss:$28 sps:$4 sm:$0xff]  }
  0x2c   :  { %1037 = vmatmul.mubr.bf16.gmra.mrb[4].mxu1 %v2076_v41  ;;  %931 = vmatprep.mubr.bf16.mxu0 %v2079_v44  ;;  %v2162_v41 = vld [vmem:[%s2826_s0 + $0xc0] ss:$28 sps:$4 sm:$0xff]   ;;  %v2166_v44 = vld [vmem:[%s2826_s0 + $0xf0] ss:$28 sps:$4 sm:$0xff]  }
  0x2d   :  { %1044 = vmatprep.mubr.bf16.mxu1 %v2081_v45  ;;  %1908 = vmatpush3.bf16.msra.mxu0 %v2086_v47  ;;  %v2167_v45 = vld [vmem:[%s2826_s0 + $0x130] ss:$28 sps:$4 sm:$0xff]  }
  0x2e   :  { %2025 = vmatpush3.bf16.msra.mxu1 %v2086_v47  ;;  %1909 = vmatprep.subr.bf16.mxu0 %v2093_v51  ;;  %v2170_v47 = vld [vmem:[%s2826_s0 + $0x168] ss:$28 sps:$4 sm:$0xff]  }
  0x2f   :  { %2018 = vmatprep.subr.bf16.mxu1 %v2093_v51  ;;  %v2175_v51 = vld [vmem:[%s2826_s0 + $0x1d8] ss:$28 sps:$4 sm:$0xff]  }
  0x31   :  { %1910 = vmatpush3.bf16.msra.mxu0 %v2098_v53 }
  0x32   :  { %2026 = vmatpush3.bf16.msra.mxu1 %v2098_v53  ;;  %1911 = vmatprep.subr.bf16.mxu0 %v2107_v57  ;;  %v2177_v53 = vld [vmem:[%s2826_s0 + $0x210] ss:$28 sps:$4 sm:$0xff]  }
  0x33   :  { %932 = vmatmul.mubr.bf16.gmra.mrb[8].mxu0 %v2083_v48  ;;  %2019 = vmatprep.subr.bf16.mxu1 %v2107_v57  ;;  %v2171_v48 = vld [vmem:[%s2826_s0 + $0x128] ss:$28 sps:$4 sm:$0xff]   ;;  %v2654_v57 = vld [vmem:[%s2827_s2] ss:$0 sm:$0xff] }
  0x34   :  { %1045 = vmatmul.mubr.bf16.gmra.mrb[8].mxu1 %v2084_v49  ;;  %939 = vmatprep.mubr.bf16.mxu0 %v2087_v50  ;;  %v2172_v49 = vld [vmem:[%s2826_s0 + $0x1a0] ss:$28 sps:$4 sm:$0xff]  }
  0x35   :  { %1052 = vmatprep.mubr.bf16.mxu1 %v2089_v52  ;;  %1912 = vmatpush3.bf16.msra.mxu0 %v2108_v58  ;;  %v2173_v50 = vld [vmem:[%s2826_s0 + $0x164] ss:$28 sps:$4 sm:$0xff]  }
  0x36   :  { %2027 = vmatpush3.bf16.msra.mxu1 %v2108_v58  ;;  %1913 = vmatprep.subr.bf16.mxu0 %v2115_v60  ;;  %v2176_v52 = vld [vmem:[%s2826_s0 + $0x160] ss:$28 sps:$4 sm:$0xff]  }
  0x37   :  { %2020 = vmatprep.subr.bf16.mxu1 %v2115_v60 }
  0x39   :  { %1914 = vmatpush3.bf16.msra.mxu0 %v2116_v61 }
  0x3a   :  { %2028 = vmatpush3.bf16.msra.mxu1 %v2116_v61  ;;  %1915 = vmatprep.subr.bf16.mxu0 %v2123_v2 }
  0x3b   :  { %940 = vmatmul.mubr.bf16.gmra.mrb[12].mxu0 %v2091_v54  ;;  %2021 = vmatprep.subr.bf16.mxu1 %v2123_v2  ;;  %v2178_v54 = vld [vmem:[%s2826_s0 + $0x19c] ss:$28 sps:$4 sm:$0xff]  }
  0x3c   :  { %1053 = vmatmul.mubr.bf16.gmra.mrb[12].mxu1 %v2092_v55  ;;  %947 = vmatprep.mubr.bf16.mxu0 %v2094_v56  ;;  %v2180_v55 = vld [vmem:[%s2826_s0 + $0x198] ss:$28 sps:$4 sm:$0xff]  }
  0x3d   :  { %1060 = vmatprep.mubr.bf16.mxu1 %v2096_v59  ;;  %1916 = vmatpush3.bf16.msra.mxu0 %v2124_v3 }
  0x3e   :  { %1917 = vmatprep.subr.bf16.mxu0 %v2131_v5  ;;  %2029 = vmatpush3.bf16.msra.mxu1 %v2124_v3 }
  0x3f   :  { %2022 = vmatprep.subr.bf16.mxu1 %v2131_v5 }
  0x41   :  { %1918 = vmatpush3.bf16.msra.mxu0 %v2136_v8 }
  0x42   :  { %2030 = vmatpush3.bf16.msra.mxu1 %v2136_v8 }
  0x43   :  { %948 = vmatmul.mubr.bf16.gmra.mrb[16].mxu0 %v2099_v62  ;;  %1991 = vmatprep.subr.bf16.mxu1 %v2151_v12 }
  0x44   :  { %1061 = vmatmul.mubr.bf16.gmra.mrb[16].mxu1 %v2100_v63  ;;  %955 = vmatprep.mubr.bf16.mxu0 %v2101_v0 }
  0x45   :  { %1068 = vmatprep.mubr.bf16.mxu1 %v2103_v1 }
  0x4b   :  { %956 = vmatmul.mubr.bf16.gmra.mrb[20].mxu0 %v2105_v4 }
  0x4c   :  { %1069 = vmatmul.mubr.bf16.gmra.mrb[20].mxu1 %v2106_v6  ;;  %963 = vmatprep.mubr.bf16.mxu0 %v2109_v7 }
  0x4d   :  { %1076 = vmatprep.mubr.bf16.mxu1 %v2111_v9 }
  0x53   :  { %964 = vmatmul.mubr.bf16.gmra.mrb[24].mxu0 %v2113_v10 }
  0x54   :  { %1077 = vmatmul.mubr.bf16.gmra.mrb[24].mxu1 %v2114_v11  ;;  %971 = vmatprep.mubr.bf16.mxu0 %v2117_v13 }
  0x55   :  { %1084 = vmatprep.mubr.bf16.mxu1 %v2119_v14 }
  0x5b   :  { %972 = vmatmul.mubr.bf16.gmra.mrb[28].mxu0 %v2121_v15 }
  0x5c   :  { %1085 = vmatmul.mubr.bf16.gmra.mrb[28].mxu1 %v2122_v16  ;;  %979 = vmatprep.mubr.bf16.mxu0 %v2125_v17 }
  0x5d   :  { %1092 = vmatprep.mubr.bf16.mxu1 %v2127_v18 }
  0x63   :  { %980 = vmatmul.mubr.bf16.gmra.mrb[32].mxu0 %v2129_v19 }
  0x64   :  { %1093 = vmatmul.mubr.bf16.gmra.mrb[32].mxu1 %v2130_v20  ;;  %987 = vmatprep.mubr.bf16.mxu0 %v2132_v21 }
  0x65   :  { %1100 = vmatprep.mubr.bf16.mxu1 %v2134_v22 }
  0x6b   :  { %988 = vmatmul.mubr.bf16.gmra.mrb[36].mxu0 %v2137_v23 }
  0x6c   :  { %1101 = vmatmul.mubr.bf16.gmra.mrb[36].mxu1 %v2138_v24  ;;  %1141 = vmatprep.mubr.bf16.mxu0 %v2141_v25 }
  0x6d   :  { %1205 = vmatprep.mubr.bf16.mxu1 %v2144_v26 }
  0x73   :  { %1142 = vmatmul.mubr.bf16.vlgmr.msra.gmra.mrb[40].mxu0 %v2139_v27 }
  0x74   :  { %1206 = vmatmul.mubr.bf16.vlgmr.msra.gmra.mrb[40].mxu1 %v2142_v28  ;;  %1149 = vmatprep.mubr.bf16.mxu0 %v2145_v29 }
  0x75   :  { %1213 = vmatprep.mubr.bf16.mxu1 %v2147_v30  ;;  %1992 = vmatpush3.bf16.msra.mxu1 %v2151_v12 }
  0x76   :  { %1993 = vmatprep.subr.bf16.mxu1 %v2152_v31 }
  0x79   :  { %1994 = vmatpush3.bf16.msra.mxu1 %v2152_v31 }
  0x7b   :  { %1150 = vmatmul.mubr.bf16.gmra.mrb[44].mxu0 %v2149_v32 }
  0x7c   :  { %1214 = vmatmul.mubr.bf16.gmra.mrb[44].mxu1 %v2150_v33  ;;  %1157 = vmatprep.mubr.bf16.mxu0 %v2153_v34 }
  0x7d   :  { %1995 = vmatprep.mubr.msk.bf16.mxu1 %vm852_vm0, %v2155_v35 }
  0x83   :  { %1158 = vmatmul.mubr.bf16.gmra.mrb[48].mxu0 %v2156_v36 }
  0x84   :  { %1996 = vmatmul.mubr.msk.bf16.vlgmr.msra.gmra.mrb[48].mxu1 %vm852_vm0, %v2157_v37  ;;  %1165 = vmatprep.mubr.bf16.mxu0 %v2158_v38 }
  0x85   :  { %1999 = vmatprep.mubr.msk.bf16.mxu1 %vm852_vm0, %v2160_v39 }
  0x8b   :  { %1166 = vmatmul.mubr.bf16.gmra.mrb[52].mxu0 %v2161_v40 }
  0x8c   :  { %2000 = vmatmul.mubr.msk.bf16.gmra.mrb[52].mxu1 %vm852_vm0, %v2162_v41  ;;  %1173 = vmatprep.mubr.bf16.mxu0 %v2163_v42 }
  0x8d   :  { %2003 = vmatprep.mubr.msk.bf16.mxu1 %vm852_vm0, %v2165_v43 }
  0x93   :  { %1174 = vmatmul.mubr.bf16.gmra.mrb[56].mxu0 %v2166_v44 }
  0x94   :  { %2004 = vmatmul.mubr.msk.bf16.gmra.mrb[56].mxu1 %vm852_vm0, %v2167_v45  ;;  %1181 = vmatprep.mubr.bf16.mxu0 %v2168_v46 }
  0x95   :  { %2007 = vmatprep.mubr.msk.bf16.mxu1 %vm852_vm0, %v2170_v47 }
  0x9b   :  { %1182 = vmatmul.mubr.bf16.gmra.mrb[60].mxu0 %v2171_v48 }
  0x9c   :  { %2008 = vmatmul.mubr.msk.bf16.gmra.mrb[60].mxu1 %vm852_vm0, %v2172_v49  ;;  %1189 = vmatprep.mubr.bf16.mxu0 %v2173_v50 }
  0x9d   :  { %2011 = vmatprep.mubr.msk.bf16.mxu1 %vm852_vm0, %v2175_v51 }
  0xa3   :  { %1190 = vmatmul.mubr.bf16.gmra.mrb[64].mxu0 %v2176_v52 }
  0xa4   :  { %2012 = vmatmul.mubr.msk.bf16.gmra.mrb[64].mxu1 %vm852_vm0, %v2177_v53  ;;  %1197 = vmatprep.mubr.bf16.mxu0 %v2178_v54 }
  0xab   :  { %1198 = vmatmul.mubr.bf16.gmra.mrb[68].mxu0 %v2180_v55 }
  0xf6   :  { %v1767_v56 = vpop.f32.mrb[0].mxu0 }
  0xf7   :  { %v1768_v58 = vpop.f32.mrb[1].mxu0  ;;  %v1843_v59 = vpop.f32.mrb[0].mxu1 }
  0xf8   :  { %v1769_v60 = vadd.f32 %v1768_v58, %v1767_v56  ;;  %v1770_v61 = vpop.f32.mrb[2].mxu0  ;;  %v1844_v62 = vpop.f32.mrb[1].mxu1 }
  0xf9   :  { %v1771_v63 = vpop.f32.mrb[3].mxu0  ;;  %v1845_v0 = vadd.f32 %v1844_v62, %v1843_v59  ;;  %v1846_v1 = vpop.f32.mrb[2].mxu1 }
  0xfa   :  { %v918_v2 = vadd.f32 %v1769_v60, %v2654_v57  ;;  %v1772_v3 = vadd.f32 %v1771_v63, %v1770_v61  ;;  %v1847_v4 = vpop.f32.mrb[3].mxu1 }
  0xfb   :  { %v1848_v5 = vadd.f32 %v1847_v4, %v1846_v1 }
  0xfc   :  { %v921_v6 = vadd.f32 %v1772_v3, %v2654_v57  ;;  %v2658_v7 = vadd.f32 %v1845_v0, %v918_v2 }
  0xfe   :  { %v2660_v8 = vadd.f32 %v1848_v5, %v921_v6  ;;  %v1773_v9 = vpop.f32.mrb[4].mxu0 }
  0xff   :  { %v1774_v10 = vpop.f32.mrb[5].mxu0  ;;  %v1849_v11 = vpop.f32.mrb[4].mxu1 }
 0x100   :  { %v1775_v12 = vadd.f32 %v1774_v10, %v1773_v9  ;;  %v1776_v13 = vpop.f32.mrb[6].mxu0  ;;  %v1850_v14 = vpop.f32.mrb[5].mxu1 }
 0x101   :  { %v1777_v15 = vpop.f32.mrb[7].mxu0  ;;  %v1851_v16 = vadd.f32 %v1850_v14, %v1849_v11  ;;  %v1852_v17 = vpop.f32.mrb[6].mxu1 }
 0x102   :  { %v926_v18 = vadd.f32 %v1775_v12, %v2654_v57  ;;  %v1778_v19 = vadd.f32 %v1777_v15, %v1776_v13  ;;  %v1853_v20 = vpop.f32.mrb[7].mxu1 }
 0x103   :  { %v1854_v21 = vadd.f32 %v1853_v20, %v1852_v17 }
 0x104   :  { %v929_v22 = vadd.f32 %v1778_v19, %v2654_v57  ;;  %v2664_v23 = vadd.f32 %v1851_v16, %v926_v18 }
 0x106   :  { %v2666_v24 = vadd.f32 %v1854_v21, %v929_v22  ;;  %v1779_v25 = vpop.f32.mrb[8].mxu0 }
 0x107   :  { %v1780_v26 = vpop.f32.mrb[9].mxu0  ;;  %v1855_v27 = vpop.f32.mrb[8].mxu1 }
 0x108   :  { %v1781_v28 = vadd.f32 %v1780_v26, %v1779_v25  ;;  %v1782_v29 = vpop.f32.mrb[10].mxu0  ;;  %v1856_v30 = vpop.f32.mrb[9].mxu1 }
 0x109   :  { %v1783_v31 = vpop.f32.mrb[11].mxu0  ;;  %v1857_v32 = vadd.f32 %v1856_v30, %v1855_v27  ;;  %v1858_v33 = vpop.f32.mrb[10].mxu1 }
 0x10a   :  { %v934_v34 = vadd.f32 %v1781_v28, %v2654_v57  ;;  %v1784_v35 = vadd.f32 %v1783_v31, %v1782_v29  ;;  %v1859_v36 = vpop.f32.mrb[11].mxu1 }
 0x10b   :  { %v1860_v37 = vadd.f32 %v1859_v36, %v1858_v33 }
 0x10c   :  { %v937_v38 = vadd.f32 %v1784_v35, %v2654_v57  ;;  %v2670_v39 = vadd.f32 %v1857_v32, %v934_v34 }
 0x10e   :  { %v2672_v40 = vadd.f32 %v1860_v37, %v937_v38  ;;  %v1785_v41 = vpop.f32.mrb[12].mxu0 }
 0x10f   :  { %v1786_v42 = vpop.f32.mrb[13].mxu0  ;;  %v1861_v43 = vpop.f32.mrb[12].mxu1 }
 0x110   :  { %v1787_v44 = vadd.f32 %v1786_v42, %v1785_v41  ;;  %v1788_v45 = vpop.f32.mrb[14].mxu0  ;;  %v1862_v46 = vpop.f32.mrb[13].mxu1 }
 0x111   :  { %v1789_v47 = vpop.f32.mrb[15].mxu0  ;;  %v1863_v48 = vadd.f32 %v1862_v46, %v1861_v43  ;;  %v1864_v49 = vpop.f32.mrb[14].mxu1 }
 0x112   :  { %v942_v50 = vadd.f32 %v1787_v44, %v2654_v57  ;;  %v1790_v51 = vadd.f32 %v1789_v47, %v1788_v45  ;;  %v1865_v52 = vpop.f32.mrb[15].mxu1 }
 0x113   :  { %v1866_v53 = vadd.f32 %v1865_v52, %v1864_v49 }
 0x114   :  { %v945_v54 = vadd.f32 %v1790_v51, %v2654_v57  ;;  %v2676_v55 = vadd.f32 %v1863_v48, %v942_v50 }
 0x116   :  { %v2678_v56 = vadd.f32 %v1866_v53, %v945_v54  ;;  %v1791_v58 = vpop.f32.mrb[16].mxu0 }
 0x117   :  { %v1792_v59 = vpop.f32.mrb[17].mxu0  ;;  %v1867_v60 = vpop.f32.mrb[16].mxu1 }
 0x118   :  { %v1793_v61 = vadd.f32 %v1792_v59, %v1791_v58  ;;  %v1794_v62 = vpop.f32.mrb[18].mxu0  ;;  %v1868_v63 = vpop.f32.mrb[17].mxu1 }
 0x119   :  { %v1795_v0 = vpop.f32.mrb[19].mxu0  ;;  %v1869_v1 = vadd.f32 %v1868_v63, %v1867_v60  ;;  %v1870_v2 = vpop.f32.mrb[18].mxu1 }
 0x11a   :  { %v950_v3 = vadd.f32 %v1793_v61, %v2654_v57  ;;  %v1796_v4 = vadd.f32 %v1795_v0, %v1794_v62  ;;  %v1871_v5 = vpop.f32.mrb[19].mxu1 }
 0x11b   :  { %v1872_v6 = vadd.f32 %v1871_v5, %v1870_v2 }
 0x11c   :  { %v953_v9 = vadd.f32 %v1796_v4, %v2654_v57  ;;  %v2682_v10 = vadd.f32 %v1869_v1, %v950_v3 }
 0x11e   :  { %v2684_v11 = vadd.f32 %v1872_v6, %v953_v9  ;;  %v1797_v12 = vpop.f32.mrb[20].mxu0 }
 0x11f   :  { %v1798_v13 = vpop.f32.mrb[21].mxu0  ;;  %v1873_v14 = vpop.f32.mrb[20].mxu1 }
 0x120   :  { %v1799_v15 = vadd.f32 %v1798_v13, %v1797_v12  ;;  %v1800_v16 = vpop.f32.mrb[22].mxu0  ;;  %v1874_v17 = vpop.f32.mrb[21].mxu1 }
 0x121   :  { %v1801_v18 = vpop.f32.mrb[23].mxu0  ;;  %v1875_v19 = vadd.f32 %v1874_v17, %v1873_v14  ;;  %v1876_v20 = vpop.f32.mrb[22].mxu1 }
 0x122   :  { %v958_v21 = vadd.f32 %v1799_v15, %v2654_v57  ;;  %v1802_v22 = vadd.f32 %v1801_v18, %v1800_v16  ;;  %v1877_v25 = vpop.f32.mrb[23].mxu1 }
 0x123   :  { %v1878_v26 = vadd.f32 %v1877_v25, %v1876_v20 }
 0x124   :  { %v961_v27 = vadd.f32 %v1802_v22, %v2654_v57  ;;  %v2688_v28 = vadd.f32 %v1875_v19, %v958_v21 }
 0x126   :  { %v2690_v29 = vadd.f32 %v1878_v26, %v961_v27  ;;  %v1803_v30 = vpop.f32.mrb[24].mxu0 }
 0x127   :  { %v1804_v31 = vpop.f32.mrb[25].mxu0  ;;  %v1879_v32 = vpop.f32.mrb[24].mxu1 }
 0x128   :  { %v1805_v33 = vadd.f32 %v1804_v31, %v1803_v30  ;;  %v1806_v34 = vpop.f32.mrb[26].mxu0  ;;  %v1880_v35 = vpop.f32.mrb[25].mxu1 }
 0x129   :  { %v1807_v36 = vpop.f32.mrb[27].mxu0  ;;  %v1881_v37 = vadd.f32 %v1880_v35, %v1879_v32  ;;  %v1882_v38 = vpop.f32.mrb[26].mxu1 }
 0x12a   :  { %v966_v41 = vadd.f32 %v1805_v33, %v2654_v57  ;;  %v1808_v42 = vadd.f32 %v1807_v36, %v1806_v34  ;;  %v1883_v43 = vpop.f32.mrb[27].mxu1 }
 0x12b   :  { %v1884_v44 = vadd.f32 %v1883_v43, %v1882_v38 }
 0x12c   :  { %v969_v45 = vadd.f32 %v1808_v42, %v2654_v57  ;;  %v2694_v46 = vadd.f32 %v1881_v37, %v966_v41 }
 0x12e   :  { %v2696_v47 = vadd.f32 %v1884_v44, %v969_v45  ;;  %v1809_v48 = vpop.f32.mrb[28].mxu0 }
 0x12f   :  { %v1810_v49 = vpop.f32.mrb[29].mxu0  ;;  %v1885_v50 = vpop.f32.mrb[28].mxu1 }
 0x130   :  { %v1811_v51 = vadd.f32 %v1810_v49, %v1809_v48  ;;  %v1812_v52 = vpop.f32.mrb[30].mxu0  ;;  %v1886_v53 = vpop.f32.mrb[29].mxu1 }
 0x131   :  { %v1813_v54 = vpop.f32.mrb[31].mxu0  ;;  %v1887_v58 = vadd.f32 %v1886_v53, %v1885_v50  ;;  %v1888_v59 = vpop.f32.mrb[30].mxu1 }
 0x132   :  { %v974_v60 = vadd.f32 %v1811_v51, %v2654_v57  ;;  %v1814_v61 = vadd.f32 %v1813_v54, %v1812_v52  ;;  %v1889_v62 = vpop.f32.mrb[31].mxu1 }
 0x133   :  { %v1890_v63 = vadd.f32 %v1889_v62, %v1888_v59 }
 0x134   :  { %v977_v0 = vadd.f32 %v1814_v61, %v2654_v57  ;;  %v2700_v1 = vadd.f32 %v1887_v58, %v974_v60 }
 0x136   :  { %v2702_v2 = vadd.f32 %v1890_v63, %v977_v0  ;;  %v1815_v3 = vpop.f32.mrb[32].mxu0 }
 0x137   :  { %v1816_v4 = vpop.f32.mrb[33].mxu0  ;;  %v1891_v5 = vpop.f32.mrb[32].mxu1 }
 0x138   :  { %v1817_v6 = vadd.f32 %v1816_v4, %v1815_v3  ;;  %v1818_v9 = vpop.f32.mrb[34].mxu0  ;;  %v1892_v12 = vpop.f32.mrb[33].mxu1 }
 0x139   :  { %v1819_v13 = vpop.f32.mrb[35].mxu0  ;;  %v1893_v14 = vadd.f32 %v1892_v12, %v1891_v5  ;;  %v1894_v15 = vpop.f32.mrb[34].mxu1 }
 0x13a   :  { %v982_v16 = vadd.f32 %v1817_v6, %v2654_v57  ;;  %v1820_v17 = vadd.f32 %v1819_v13, %v1818_v9  ;;  %v1895_v18 = vpop.f32.mrb[35].mxu1 }
 0x13b   :  { %v1896_v19 = vadd.f32 %v1895_v18, %v1894_v15 }
 0x13c   :  { %v985_v20 = vadd.f32 %v1820_v17, %v2654_v57  ;;  %v1095_v21 = vadd.f32 %v1893_v14, %v982_v16 }
 0x13e   :  { %v1098_v22 = vadd.f32 %v1896_v19, %v985_v20  ;;  %v1821_v25 = vpop.f32.mrb[36].mxu0 }
 0x13f   :  { %v1822_v26 = vpop.f32.mrb[37].mxu0  ;;  %v1897_v27 = vpop.f32.mrb[36].mxu1 }
 0x140   :  { %v1823_v30 = vadd.f32 %v1822_v26, %v1821_v25  ;;  %v1824_v31 = vpop.f32.mrb[38].mxu0  ;;  %v1898_v32 = vpop.f32.mrb[37].mxu1 }
 0x141   :  { %v1825_v33 = vpop.f32.mrb[39].mxu0  ;;  %v1899_v34 = vadd.f32 %v1898_v32, %v1897_v27  ;;  %v1900_v35 = vpop.f32.mrb[38].mxu1 }
 0x142   :  { %v990_v36 = vadd.f32 %v1823_v30, %v2654_v57  ;;  %v1826_v37 = vadd.f32 %v1825_v33, %v1824_v31  ;;  %v1901_v38 = vpop.f32.mrb[39].mxu1 }
 0x143   :  { %v1902_v41 = vadd.f32 %v1901_v38, %v1900_v35 }
 0x144   :  { %v993_v42 = vadd.f32 %v1826_v37, %v2654_v57  ;;  %v1103_v43 = vadd.f32 %v1899_v34, %v990_v36 }
 0x146   :  { %v1106_v44 = vadd.f32 %v1902_v41, %v993_v42  ;;  %v1919_v45 = vpop.f32.mrb[40].mxu0 }
 0x147   :  { %v1967_v48 = vpop.f32.mrb[40].mxu1  ;;  %v1920_v49 = vpop.f32.mrb[41].mxu0 }
 0x148   :  { %v1921_v50 = vadd.f32 %v1920_v49, %v1919_v45  ;;  %v1968_v51 = vpop.f32.mrb[41].mxu1  ;;  %v1922_v52 = vpop.f32.mrb[42].mxu0 }
 0x149   :  { %v1969_v53 = vadd.f32 %v1968_v51, %v1967_v48  ;;  %v1970_v54 = vpop.f32.mrb[42].mxu1  ;;  %v1923_v58 = vpop.f32.mrb[43].mxu0 }
 0x14a   :  { %v1924_v59 = vadd.f32 %v1923_v58, %v1922_v52  ;;  %v1971_v60 = vpop.f32.mrb[43].mxu1  ;;  %v1144_v61 = vadd.f32 %v1921_v50, %v2658_v7 }
 0x14b   :  { %v1972_v62 = vadd.f32 %v1971_v60, %v1970_v54  ;;  %v2709_v63 = vadd.f32 %v1969_v53, %v1095_v21 }
 0x14c   :  { %v1147_v57 = vadd.f32 %v1924_v59, %v2660_v8 }
 0x14d   :  { %v2712_v0 = vadd.f32 %v1972_v62, %v1098_v22 }
 0x14e   :  { %v1925_v3 = vpop.f32.mrb[44].mxu0 }
 0x14f   :  { %v1973_v4 = vpop.f32.mrb[44].mxu1  ;;  %v1926_v5 = vpop.f32.mrb[45].mxu0 }
 0x150   :  { %v1927_v6 = vadd.f32 %v1926_v5, %v1925_v3  ;;  %v1974_v9 = vpop.f32.mrb[45].mxu1  ;;  %v1928_v12 = vpop.f32.mrb[46].mxu0 }
 0x151   :  { %v1975_v13 = vadd.f32 %v1974_v9, %v1973_v4  ;;  %v1976_v14 = vpop.f32.mrb[46].mxu1  ;;  %v1929_v15 = vpop.f32.mrb[47].mxu0 }
 0x152   :  { %v1930_v16 = vadd.f32 %v1929_v15, %v1928_v12  ;;  %v1977_v17 = vpop.f32.mrb[47].mxu1  ;;  %v1152_v7 = vadd.f32 %v1927_v6, %v2664_v23 }
 0x153   :  { %v1978_v18 = vadd.f32 %v1977_v17, %v1976_v14  ;;  %v2715_v19 = vadd.f32 %v1975_v13, %v1103_v43 }
 0x154   :  { %v1155_v8 = vadd.f32 %v1930_v16, %v2666_v24 }
 0x155   :  { %v2718_v20 = vadd.f32 %v1978_v18, %v1106_v44 }
 0x156   :  { %v1931_v21 = vpop.f32.mrb[48].mxu0 }
 0x157   :  { %v1997_v22 = vpop.f32.mrb[48].mxu1  ;;  %v1932_v25 = vpop.f32.mrb[49].mxu0 }
 0x158   :  { %v1265_v26 = vadd.f32 %v1997_v22, %v1152_v7  ;;  %v1933_v27 = vadd.f32 %v1932_v25, %v1931_v21  ;;  %v1256_v30 = vpop.f32.mrb[49].mxu1  ;;  %v1934_v31 = vpop.f32.mrb[50].mxu0 }
 0x159   :  { %v1257_v32 = vadd.f32 %v1256_v30, %v1144_v61  ;;  %v1998_v33 = vpop.f32.mrb[50].mxu1  ;;  %v1935_v34 = vpop.f32.mrb[51].mxu0 }
 0x15a   :  { %v1693_v35 = vmul.f32 -1.442695, %v1265_v26  ;;  %v1268_v36 = vadd.f32 %v1998_v33, %v1155_v8  ;;  %v1936_v23 = vadd.f32 %v1935_v34, %v1934_v31  ;;  %v1259_v37 = vpop.f32.mrb[51].mxu1  ;;  %v1160_v38 = vadd.f32 %v1933_v27, %v2670_v39 }
 0x15b   :  { %v1691_v41 = vmul.f32 -1.442695, %v1257_v32  ;;  %v1260_v24 = vadd.f32 %v1259_v37, %v1147_v57 }
 0x15c   :  { %2181 = vpow2.f32 %v1693_v35  ;;  %v1694_v42 = vmul.f32 -1.442695, %v1268_v36  ;;  %v1163_v43 = vadd.f32 %v1936_v23, %v2672_v40 }
 0x15d   :  { %2183 = vpow2.f32 %v1691_v41  ;;  %v1692_v44 = vmul.f32 -1.442695, %v1260_v24 }
 0x15e   :  { %2185 = vpow2.f32 %v1694_v42  ;;  %v1937_v45 = vpop.f32.mrb[52].mxu0 }
 0x15f   :  { %2187 = vpow2.f32 %v1692_v44  ;;  %v2001_v48 = vpop.f32.mrb[52].mxu1  ;;  %v1938_v49 = vpop.f32.mrb[53].mxu0 }
 0x160   :  { %v1939_v50 = vadd.f32 %v1938_v49, %v1937_v45  ;;  %v1272_v51 = vpop.f32.mrb[53].mxu1  ;;  %v1940_v52 = vpop.f32.mrb[54].mxu0 }
 0x161   :  { %v1273_v53 = vadd.f32 %v1272_v51, %v1160_v38  ;;  %v2002_v54 = vpop.f32.mrb[54].mxu1  ;;  %v1941_v58 = vpop.f32.mrb[55].mxu0 }
 0x162   :  { %v1168_v39 = vadd.f32 %v1939_v50, %v2676_v55  ;;  %v1942_v59 = vadd.f32 %v1941_v58, %v1940_v52  ;;  %v1275_v60 = vpop.f32.mrb[55].mxu1 }
 0x163   :  { %v1695_v61 = vmul.f32 -1.442695, %v1273_v53  ;;  %v1276_v62 = vadd.f32 %v1275_v60, %v1163_v43 }
 0x164   :  { %v1281_v40 = vadd.f32 %v2001_v48, %v1168_v39  ;;  %v1171_v57 = vadd.f32 %v1942_v59, %v2678_v56 }
 0x165   :  { %2189 = vpow2.f32 %v1695_v61  ;;  %v1696_v3 = vmul.f32 -1.442695, %v1276_v62 }
 0x166   :  { %v2182_v4 = vpop.eup %2181  ;;  %v1697_v5 = vmul.f32 -1.442695, %v1281_v40  ;;  %v1284_v6 = vadd.f32 %v2002_v54, %v1171_v57  ;;  %v1943_v9 = vpop.f32.mrb[56].mxu0 }
 0x167   :  { %v2184_v12 = vpop.eup %2183  ;;  %v1397_v13 = vadd.f32 1.0, %v2182_v4  ;;  %2191 = vpow2.f32 %v1696_v3  ;;  %v1944_v14 = vpop.f32.mrb[57].mxu0 }
 0x168   :  { %v2005_v15 = vpop.f32.mrb[56].mxu1  ;;  %v2186_v16 = vpop.eup %2185  ;;  %v1395_v55 = vadd.f32 1.0, %v2184_v12  ;;  %2193 = vpow2.f32 %v1697_v5  ;;  %v1945_v17 = vadd.f32 %v1944_v14, %v1943_v9  ;;  %v1698_v21 = vmul.f32 -1.442695, %v1284_v6 }
 0x169   :  { %v1946_v7 = vpop.f32.mrb[58].mxu0  ;;  %v1288_v18 = vpop.f32.mrb[57].mxu1  ;;  %2195 = vrcp.f32 %v1397_v13  ;;  %v1398_v56 = vadd.f32 1.0, %v2186_v16 }
 0x16a   :  { %v2188_v8 = vpop.eup %2187  ;;  %v1947_v22 = vpop.f32.mrb[59].mxu0  ;;  %2197 = vrcp.f32 %v1395_v55  ;;  %v1176_v30 = vadd.f32 %v1945_v17, %v2682_v10 }
 0x16b   :  { %v2006_v25 = vpop.f32.mrb[58].mxu1  ;;  %v1396_v26 = vadd.f32 1.0, %v2188_v8  ;;  %v1948_v27 = vadd.f32 %v1947_v22, %v1946_v7  ;;  %2199 = vrcp.f32 %v1398_v56 }
 0x16c   :  { %v1291_v31 = vpop.f32.mrb[59].mxu1  ;;  %v1289_v32 = vadd.f32 %v1288_v18, %v1176_v30 }
 0x16d   :  { %2201 = vrcp.f32 %v1396_v26  ;;  %v1179_v33 = vadd.f32 %v1948_v27, %v2684_v11 }
 0x16e   :  { %2203 = vpow2.f32 %v1698_v21  ;;  %v1699_v34 = vmul.f32 -1.442695, %v1289_v32  ;;  %v1949_v36 = vpop.f32.mrb[60].mxu0 }
 0x16f   :  { %v1292_v35 = vadd.f32 %v1291_v31, %v1179_v33  ;;  %v2190_v23 = vpop.eup %2189  ;;  %v1950_v37 = vpop.f32.mrb[61].mxu0 }
 0x170   :  { %v2726_v38 = vpop.f32.mrb[60].mxu1  ;;  %v1399_v41 = vadd.f32 1.0, %v2190_v23  ;;  %2205 = vpow2.f32 %v1699_v34  ;;  %v1951_v42 = vadd.f32 %v1950_v37, %v1949_v36  ;;  %v1952_v43 = vpop.f32.mrb[62].mxu0 }
 0x171   :  { %v1700_v24 = vmul.f32 -1.442695, %v1292_v35  ;;  %v2728_v10 = vpop.f32.mrb[61].mxu1  ;;  %v2192_v44 = vpop.eup %2191 }
 0x172   :  { %v1953_v45 = vpop.f32.mrb[63].mxu0  ;;  %v2730_v48 = vpop.f32.mrb[62].mxu1  ;;  %2207 = vrcp.f32 %v1399_v41  ;;  %v1400_v49 = vadd.f32 1.0, %v2192_v44  ;;  %v1184_v50 = vadd.f32 %v1951_v42, %v2688_v28 }
 0x173   :  { %v2194_v11 = vpop.eup %2193  ;;  %v1954_v51 = vadd.f32 %v1953_v45, %v1952_v43  ;;  %v1307_v52 = vpop.f32.mrb[63].mxu1  ;;  %2209 = vpow2.f32 %v1700_v24 }
 0x174   :  { %v2196_v53 = vpop.eup %2195  ;;  %v1401_v54 = vadd.f32 1.0, %v2194_v11  ;;  %2211 = vrcp.f32 %v1400_v49  ;;  %v1297_v59 = vadd.f32 %v2005_v15, %v1184_v50 }
 0x175   :  { %v2198_v58 = vpop.eup %2197  ;;  %v1733_v39 = vpack.c.bf16 %v2196_v53, %v2196_v53  ;;  %v1187_v60 = vadd.f32 %v1954_v51, %v2690_v29 }
 0x176   :  { %v2200_v61 = vpop.eup %2199  ;;  %v1731_v62 = vpack.c.bf16 %v2198_v58, %v2198_v58  ;;  %2213 = vrcp.f32 %v1401_v54  ;;  %v1701_v57 = vmul.f32 -1.442695, %v1297_v59  ;;  %v1955_v4 = vpop.f32.mrb[64].mxu0 }
 0x177   :  { %v2202_v40 = vpop.eup %2201  ;;  %1538 = vst.msk [vmem:[%s2828_s3 + $0x8] sm:$0xf] %vm1535_vm1, %v1733_v39  ;;  %v1734_v28 = vpack.c.bf16 %v2200_v61, %v2200_v61  ;;  %v1300_v3 = vadd.f32 %v2006_v25, %v1187_v60  ;;  %v2013_v6 = vpop.f32.mrb[64].mxu1 }
 0x178   :  { %v2204_v5 = vpop.eup %2203  ;;  %1536 = vst.msk [vmem:[%s2828_s3] sm:$0xf] %vm1535_vm1, %v1731_v62  ;;  %v1732_v29 = vpack.c.bf16 %v2202_v40, %v2202_v40  ;;  %v1956_v9 = vpop.f32.mrb[65].mxu0  ;;  %2215 = vpow2.f32 %v1701_v57  ;;  %v1329_v14 = vadd.f32 %v2013_v6, %v2715_v19 }
 0x179   :  { %1539 = vst.msk [vmem:[%s2828_s3 + $0xc] sm:$0xf] %vm1535_vm1, %v1734_v28  ;;  %v1402_v12 = vadd.f32 1.0, %v2204_v5  ;;  %v1702_v13 = vmul.f32 -1.442695, %v1300_v3  ;;  %v1320_v15 = vpop.f32.mrb[65].mxu1  ;;  %v1957_v55 = vadd.f32 %v1956_v9, %v1955_v4 }
 0x17a   :  { %v1958_v16 = vpop.f32.mrb[66].mxu0  ;;  %1537 = vst.msk [vmem:[%s2828_s3 + $0x4] sm:$0xf] %vm1535_vm1, %v1732_v29  ;;  %v1321_v17 = vadd.f32 %v1320_v15, %v2709_v63  ;;  %v2014_v7 = vpop.f32.mrb[66].mxu1  ;;  %v1709_v56 = vmul.f32 -1.442695, %v1329_v14 }
 0x17b   :  { %v1959_v18 = vpop.f32.mrb[67].mxu0  ;;  %v2206_v8 = vpop.eup %2205  ;;  %2217 = vrcp.f32 %v1402_v12  ;;  %v1332_v21 = vadd.f32 %v2014_v7, %v2718_v20  ;;  %v1192_v26 = vadd.f32 %v1957_v55, %v2694_v46 }
 0x17c   :  { %v1960_v22 = vadd.f32 %v1959_v18, %v1958_v16  ;;  %v1323_v25 = vpop.f32.mrb[67].mxu1  ;;  %v1403_v19 = vadd.f32 1.0, %v2206_v8  ;;  %2219 = vpow2.f32 %v1702_v13  ;;  %v1707_v27 = vmul.f32 -1.442695, %v1321_v17  ;;  %v2208_v30 = vpop.eup %2207 }
 0x17d   :  { %2221 = vpow2.f32 %v1709_v56  ;;  %v1710_v31 = vmul.f32 -1.442695, %v1332_v21  ;;  %v1324_v63 = vadd.f32 %v1323_v25, %v2712_v0  ;;  %v2210_v33 = vpop.eup %2209  ;;  %v1735_v34 = vpack.c.bf16 %v2208_v30, %v2208_v30 }
 0x17e   :  { %v1195_v32 = vadd.f32 %v1960_v22, %v2696_v47  ;;  %2223 = vrcp.f32 %v1403_v19  ;;  %v1305_v35 = vadd.f32 %v2728_v10, %v1192_v26  ;;  %v2212_v20 = vpop.eup %2211  ;;  %v1404_v36 = vadd.f32 1.0, %v2210_v33  ;;  %v1961_v37 = vpop.f32.mrb[68].mxu0 }
 0x17f   :  { %2225 = vpow2.f32 %v1707_v27  ;;  %1540 = vst.msk [vmem:[%s2828_s3 + $0x10] sm:$0xf] %vm1535_vm1, %v1735_v34  ;;  %v1736_v46 = vpack.c.bf16 %v2212_v20, %v2212_v20  ;;  %v1708_v0 = vmul.f32 -1.442695, %v1324_v63  ;;  %v1962_v24 = vpop.f32.mrb[69].mxu0 }
 0x180   :  { %v1308_v23 = vadd.f32 %v1307_v52, %v1195_v32  ;;  %v2214_v41 = vpop.eup %2213  ;;  %v1703_v47 = vmul.f32 -1.442695, %v1305_v35  ;;  %2227 = vpow2.f32 %v1710_v31  ;;  %v1963_v10 = vadd.f32 %v1962_v24, %v1961_v37  ;;  %v1964_v44 = vpop.f32.mrb[70].mxu0 }
 0x181   :  { %v1737_v42 = vpack.c.bf16 %v2214_v41, %v2214_v41  ;;  %2229 = vrcp.f32 %v1404_v36  ;;  %1541 = vst.msk [vmem:[%s2828_s3 + $0x14] sm:$0xf] %vm1535_vm1, %v1736_v46  ;;  %v1965_v45 = vpop.f32.mrb[71].mxu0 }
 0x182   :  { %v1704_v43 = vmul.f32 -1.442695, %v1308_v23  ;;  %2231 = vpow2.f32 %v1703_v47  ;;  %v2216_v11 = vpop.eup %2215  ;;  %v1200_v49 = vadd.f32 %v1963_v10, %v2700_v1  ;;  %v1966_v50 = vadd.f32 %v1965_v45, %v1964_v44 }
 0x183   :  { %1542 = vst.msk [vmem:[%s2828_s3 + $0x18] sm:$0xf] %vm1535_vm1, %v1737_v42  ;;  %v1405_v51 = vadd.f32 1.0, %v2216_v11 }
 0x184   :  { %2233 = vpow2.f32 %v1704_v43  ;;  %v1313_v53 = vadd.f32 %v2726_v38, %v1200_v49  ;;  %v1203_v54 = vadd.f32 %v1966_v50, %v2702_v2 }
 0x185   :  { %2235 = vpow2.f32 %v1708_v0  ;;  %v2218_v52 = vpop.eup %2217 }
 0x186   :  { %v2220_v58 = vpop.eup %2219  ;;  %v1738_v39 = vpack.c.bf16 %v2218_v52, %v2218_v52  ;;  %2237 = vrcp.f32 %v1405_v51  ;;  %v1705_v61 = vmul.f32 -1.442695, %v1313_v53  ;;  %v1316_v62 = vadd.f32 %v2730_v48, %v1203_v54 }
 0x187   :  { %v2222_v59 = vpop.eup %2221  ;;  %v1406_v60 = vadd.f32 1.0, %v2220_v58 }
 0x188   :  { %v2224_v40 = vpop.eup %2223  ;;  %1543 = vst.msk [vmem:[%s2828_s3 + $0x1c] sm:$0xf] %vm1535_vm1, %v1738_v39  ;;  %v1413_v1 = vadd.f32 1.0, %v2222_v59  ;;  %v1706_v3 = vmul.f32 -1.442695, %v1316_v62 }
 0x189   :  { %v2226_v28 = vpop.eup %2225  ;;  %v1739_v57 = vpack.c.bf16 %v2224_v40, %v2224_v40  ;;  %2239 = vrcp.f32 %v1406_v60 }
 0x18a   :  { %v2228_v38 = vpop.eup %2227  ;;  %2241 = vrcp.f32 %v1413_v1  ;;  %v1411_v2 = vadd.f32 1.0, %v2226_v28 }
 0x18b   :  { %v2230_v4 = vpop.eup %2229  ;;  %1544 = vst.msk [vmem:[%s2828_s3 + $0x20] sm:$0xf] %vm1535_vm1, %v1739_v57  ;;  %v1414_v48 = vadd.f32 1.0, %v2228_v38  ;;  %2243 = vpow2.f32 %v1705_v61 }
 0x18c   :  { %v2232_v5 = vpop.eup %2231  ;;  %v1740_v29 = vpack.c.bf16 %v2230_v4, %v2230_v4  ;;  %2245 = vrcp.f32 %v1411_v2 }
 0x18d   :  { %v1407_v9 = vadd.f32 1.0, %v2232_v5  ;;  %2247 = vrcp.f32 %v1414_v48 }
 0x18e   :  { %v2234_v6 = vpop.eup %2233  ;;  %1545 = vst.msk [vmem:[%s2828_s3 + $0x24] sm:$0xf] %vm1535_vm1, %v1740_v29  ;;  %2249 = vpow2.f32 %v1706_v3 }
 0x18f   :  { %v2236_v12 = vpop.eup %2235  ;;  %v1408_v13 = vadd.f32 1.0, %v2234_v6  ;;  %2251 = vrcp.f32 %v1407_v9 }
 0x190   :  { %v1412_v14 = vadd.f32 1.0, %v2236_v12  ;;  %v2238_v15 = vpop.eup %2237 }
 0x191   :  { %2253 = vrcp.f32 %v1408_v13  ;;  %v1741_v16 = vpack.c.bf16 %v2238_v15, %v2238_v15 }
 0x192   :  { %2255 = vrcp.f32 %v1412_v14 }
 0x193   :  { %v2240_v55 = vpop.eup %2239  ;;  %1546 = vst.msk [vmem:[%s2828_s3 + $0x28] sm:$0xf] %vm1535_vm1, %v1741_v16 }
 0x194   :  { %v2242_v17 = vpop.eup %2241  ;;  %v1742_v7 = vpack.c.bf16 %v2240_v55, %v2240_v55 }
 0x195   :  { %v2244_v18 = vpop.eup %2243  ;;  %v1749_v8 = vpack.c.bf16 %v2242_v17, %v2242_v17 }
 0x196   :  { %v2246_v56 = vpop.eup %2245  ;;  %1547 = vst.msk [vmem:[%s2828_s3 + $0x2c] sm:$0xf] %vm1535_vm1, %v1742_v7  ;;  %v1409_v21 = vadd.f32 1.0, %v2244_v18 }
 0x197   :  { %v2248_v22 = vpop.eup %2247  ;;  %1554 = vst.msk [vmem:[%s2828_s3 + $0x48] sm:$0xf] %vm1535_vm1, %v1749_v8  ;;  %v1747_v25 = vpack.c.bf16 %v2246_v56, %v2246_v56 }
 0x198   :  { %v2250_v19 = vpop.eup %2249  ;;  %v1750_v26 = vpack.c.bf16 %v2248_v22, %v2248_v22  ;;  %2257 = vrcp.f32 %v1409_v21 }
 0x199   :  { %v2252_v27 = vpop.eup %2251  ;;  %1552 = vst.msk [vmem:[%s2828_s3 + $0x40] sm:$0xf] %vm1535_vm1, %v1747_v25  ;;  %v1410_v30 = vadd.f32 1.0, %v2250_v19 }
 0x19a   :  { %v1743_v32 = vpack.c.bf16 %v2252_v27, %v2252_v27  ;;  %1555 = vst.msk [vmem:[%s2828_s3 + $0x4c] sm:$0xf] %vm1535_vm1, %v1750_v26 }
 0x19b   :  { %v2254_v31 = vpop.eup %2253  ;;  %2259 = vrcp.f32 %v1410_v30 }
 0x19c   :  { %v2256_v63 = vpop.eup %2255  ;;  %v1744_v33 = vpack.c.bf16 %v2254_v31, %v2254_v31  ;;  %1548 = vst.msk [vmem:[%s2828_s3 + $0x30] sm:$0xf] %vm1535_vm1, %v1743_v32 }
 0x19d   :  { %v1748_v34 = vpack.c.bf16 %v2256_v63, %v2256_v63 }
 0x19e   :  { %1549 = vst.msk [vmem:[%s2828_s3 + $0x34] sm:$0xf] %vm1535_vm1, %v1744_v33 }
 0x19f   :  { %1553 = vst.msk [vmem:[%s2828_s3 + $0x44] sm:$0xf] %vm1535_vm1, %v1748_v34 }
 0x1a2   :  { %v2258_v35 = vpop.eup %2257 }
 0x1a3   :  { %v1745_v20 = vpack.c.bf16 %v2258_v35, %v2258_v35 }
 0x1a5   :  { %v2260_v36 = vpop.eup %2259  ;;  %1550 = vst.msk [vmem:[%s2828_s3 + $0x38] sm:$0xf] %vm1535_vm1, %v1745_v20 }
 0x1a6   :  { %v1746_v23 = vpack.c.bf16 %v2260_v36, %v2260_v36 }
 0x1a8   :  { %1551 = vst.msk [vmem:[%s2828_s3 + $0x3c] sm:$0xf] %vm1535_vm1, %v1746_v23 }

// kernel: forward.9
= control target key start
LH: loop header
LB: loop body
LE: loop exit
PB: predicated region body
PF: predicated region fallthrough
CT: control target
= control target key end

     0   :  { %s2904_s1 = inlined_call_operand.vmem [shape: bf16[2560,128], index: 1, kind: input, shape index: {}]   ;;  %s2905_s0 = inlined_call_operand.vmem [shape: bf16[8,2560], index: 0, kind: input, shape index: {}]   ;;  %s2906_s2 = inlined_call_operand.vmem [shape: f32[1,128], index: 2, kind: input, shape index: {}]   ;;  %s2907_s3 = inlined_call_operand.vmem [shape: f32[8,128], index: 3, kind: output, shape index: {}]  }
   0x1   :  { %v2188_v0 = vld [vmem:[%s2904_s1 + $0x40] sm:$0xff]   ;;  %v2192_v4 = vld [vmem:[%s2904_s1 + $0x48] sm:$0xff]   ;;  %v2196_v8 = vld [vmem:[%s2904_s1 + $0x50] sm:$0xff]  }
   0x2   :  { %v2189_v1 = vld [vmem:[%s2904_s1 + $0xc0] sm:$0xff]   ;;  %1968 = vmatprep.subr.bf16.mxu0 %v2188_v0  ;;  %v2193_v5 = vld [vmem:[%s2904_s1 + $0xc8] sm:$0xff]   ;;  %v2197_v9 = vld [vmem:[%s2904_s1 + $0xd0] sm:$0xff]  }
   0x3   :  { %v2190_v2 = vld [vmem:[%s2904_s1] sm:$0xff]   ;;  %1990 = vmatprep.subr.bf16.mxu1 %v2189_v1  ;;  %v2194_v6 = vld [vmem:[%s2904_s1 + $0x8] sm:$0xff]   ;;  %v2198_v10 = vld [vmem:[%s2904_s1 + $0x10] sm:$0xff]  }
   0x4   :  { %v2191_v3 = vld [vmem:[%s2904_s1 + $0x80] sm:$0xff]   ;;  %1969 = vmatpush3.bf16.msra.mxu0 %v2190_v2  ;;  %v2195_v7 = vld [vmem:[%s2904_s1 + $0x88] sm:$0xff]   ;;  %v2199_v11 = vld [vmem:[%s2904_s1 + $0x90] sm:$0xff]  }
   0x5   :  { %1991 = vmatpush3.bf16.msra.mxu1 %v2191_v3  ;;  %1970 = vmatprep.subr.bf16.mxu0 %v2192_v4  ;;  %v2200_v12 = vld [vmem:[%s2904_s1 + $0x58] sm:$0xff]   ;;  %v2204_v16 = vld [vmem:[%s2904_s1 + $0x60] sm:$0xff]   ;;  %v2208_v20 = vld [vmem:[%s2904_s1 + $0x68] sm:$0xff]  }
   0x6   :  { %1992 = vmatprep.subr.bf16.mxu1 %v2193_v5  ;;  %v2201_v13 = vld [vmem:[%s2904_s1 + $0xd8] sm:$0xff]   ;;  %v2205_v17 = vld [vmem:[%s2904_s1 + $0xe0] sm:$0xff]   ;;  %v2209_v21 = vld [vmem:[%s2904_s1 + $0xe8] sm:$0xff]  }
   0x7   :  { %v2202_v14 = vld [vmem:[%s2904_s1 + $0x18] sm:$0xff]   ;;  %v2206_v18 = vld [vmem:[%s2904_s1 + $0x20] sm:$0xff]   ;;  %v2210_v22 = vld [vmem:[%s2904_s1 + $0x28] sm:$0xff]  }
   0x8   :  { %1971 = vmatpush3.bf16.msra.mxu0 %v2194_v6  ;;  %v2203_v15 = vld [vmem:[%s2904_s1 + $0x98] sm:$0xff]   ;;  %v2207_v19 = vld [vmem:[%s2904_s1 + $0xa0] sm:$0xff]   ;;  %v2211_v23 = vld [vmem:[%s2904_s1 + $0xa8] sm:$0xff]  }
   0x9   :  { %1993 = vmatpush3.bf16.msra.mxu1 %v2195_v7  ;;  %1972 = vmatprep.subr.bf16.mxu0 %v2196_v8  ;;  %v2212_v24 = vld [vmem:[%s2904_s1 + $0x70] sm:$0xff]   ;;  %v2216_v28 = vld [vmem:[%s2904_s1 + $0x78] sm:$0xff]   ;;  %v15_v32 = vld [vmem:[%s2905_s0] sm:$0xff] }
   0xa   :  { %1994 = vmatprep.subr.bf16.mxu1 %v2197_v9  ;;  %v2213_v25 = vld [vmem:[%s2904_s1 + $0xf0] sm:$0xff]   ;;  %v2217_v29 = vld [vmem:[%s2904_s1 + $0xf8] sm:$0xff]   ;;  %v16_v33 = vld [vmem:[%s2905_s0 + $0x8] sm:$0xff]  ;;  %v1788_v34 = vcombine.low %v15_v32, %v15_v32  ;;  %v1789_v35 = vcombine.high %v15_v32, %v15_v32 }
   0xb   :  { %v2214_v26 = vld [vmem:[%s2904_s1 + $0x30] sm:$0xff]   ;;  %v2218_v30 = vld [vmem:[%s2904_s1 + $0x38] sm:$0xff]   ;;  %v1790_v36 = vcombine.low %v16_v33, %v16_v33  ;;  %v1791_v37 = vcombine.high %v16_v33, %v16_v33  ;;  %v2224_v38 = vld [vmem:[%s2904_s1 + $0x140] sm:$0xff]  }
   0xc   :  { %1973 = vmatpush3.bf16.msra.mxu0 %v2198_v10  ;;  %v2215_v27 = vld [vmem:[%s2904_s1 + $0xb0] sm:$0xff]   ;;  %v2219_v31 = vld [vmem:[%s2904_s1 + $0xb8] sm:$0xff]   ;;  %v2225_v39 = vld [vmem:[%s2904_s1 + $0x1c0] sm:$0xff]   ;;  %1414 = vmatprep.mubr.bf16.mxu0 %v1789_v35 }
   0xd   :  { %1995 = vmatpush3.bf16.msra.mxu1 %v2199_v11  ;;  %1974 = vmatprep.subr.bf16.mxu0 %v2200_v12  ;;  %v2226_v40 = vld [vmem:[%s2904_s1 + $0x100] sm:$0xff]   ;;  %v2228_v42 = vld [vmem:[%s2904_s1 + $0x148] sm:$0xff]   ;;  %v2232_v46 = vld [vmem:[%s2904_s1 + $0x150] sm:$0xff]  }
   0xe   :  { %1996 = vmatprep.subr.bf16.mxu1 %v2201_v13  ;;  %1454 = vmatprep.mubr.bf16.mxu1 %v1791_v37  ;;  %v2227_v41 = vld [vmem:[%s2904_s1 + $0x180] sm:$0xff]   ;;  %v2229_v43 = vld [vmem:[%s2904_s1 + $0x1c8] sm:$0xff]   ;;  %v2233_v47 = vld [vmem:[%s2904_s1 + $0x1d0] sm:$0xff]  }
   0xf   :  { %v2230_v44 = vld [vmem:[%s2904_s1 + $0x108] sm:$0xff]   ;;  %v2234_v48 = vld [vmem:[%s2904_s1 + $0x110] sm:$0xff]   ;;  %v2236_v50 = vld [vmem:[%s2904_s1 + $0x158] sm:$0xff]  }
  0x10   :  { %1975 = vmatpush3.bf16.msra.mxu0 %v2202_v14  ;;  %v2231_v45 = vld [vmem:[%s2904_s1 + $0x188] sm:$0xff]   ;;  %v2235_v49 = vld [vmem:[%s2904_s1 + $0x190] sm:$0xff]   ;;  %v2237_v51 = vld [vmem:[%s2904_s1 + $0x1d8] sm:$0xff]  }
  0x11   :  { %1997 = vmatpush3.bf16.msra.mxu1 %v2203_v15  ;;  %1976 = vmatprep.subr.bf16.mxu0 %v2204_v16  ;;  %v2238_v52 = vld [vmem:[%s2904_s1 + $0x118] sm:$0xff]   ;;  %v2240_v54 = vld [vmem:[%s2904_s1 + $0x160] sm:$0xff]   ;;  %v2244_v58 = vld [vmem:[%s2904_s1 + $0x168] sm:$0xff]  }
  0x12   :  { %1998 = vmatprep.subr.bf16.mxu1 %v2205_v17  ;;  %v2239_v53 = vld [vmem:[%s2904_s1 + $0x198] sm:$0xff]   ;;  %v2241_v55 = vld [vmem:[%s2904_s1 + $0x1e0] sm:$0xff]   ;;  %v2245_v59 = vld [vmem:[%s2904_s1 + $0x1e8] sm:$0xff]  }
  0x13   :  { %v2242_v56 = vld [vmem:[%s2904_s1 + $0x120] sm:$0xff]   ;;  %v2246_v60 = vld [vmem:[%s2904_s1 + $0x128] sm:$0xff]   ;;  %v2248_v62 = vld [vmem:[%s2904_s1 + $0x170] sm:$0xff]  }
  0x14   :  { %1977 = vmatpush3.bf16.msra.mxu0 %v2206_v18  ;;  %v2243_v57 = vld [vmem:[%s2904_s1 + $0x1a0] sm:$0xff]   ;;  %v2247_v61 = vld [vmem:[%s2904_s1 + $0x1a8] sm:$0xff]   ;;  %v2249_v63 = vld [vmem:[%s2904_s1 + $0x1f0] sm:$0xff]  }
  0x15   :  { %1999 = vmatpush3.bf16.msra.mxu1 %v2207_v19  ;;  %1978 = vmatprep.subr.bf16.mxu0 %v2208_v20  ;;  %v2250_v0 = vld [vmem:[%s2904_s1 + $0x130] sm:$0xff]   ;;  %v2252_v2 = vld [vmem:[%s2904_s1 + $0x178] sm:$0xff]   ;;  %v2260_v12 = vld [vmem:[%s2904_s1 + $0x240] sm:$0xff]  }
  0x16   :  { %2000 = vmatprep.subr.bf16.mxu1 %v2209_v21  ;;  %v2251_v1 = vld [vmem:[%s2904_s1 + $0x1b0] sm:$0xff]   ;;  %v2253_v3 = vld [vmem:[%s2904_s1 + $0x1f8] sm:$0xff]   ;;  %v2261_v13 = vld [vmem:[%s2904_s1 + $0x2c0] sm:$0xff]  }
  0x17   :  { %v2254_v4 = vld [vmem:[%s2904_s1 + $0x138] sm:$0xff]   ;;  %v17_v6 = vld [vmem:[%s2905_s0 + $0x10] sm:$0xff]  ;;  %v2262_v14 = vld [vmem:[%s2904_s1 + $0x200] sm:$0xff]  }
  0x18   :  { %1979 = vmatpush3.bf16.msra.mxu0 %v2210_v22  ;;  %v2255_v5 = vld [vmem:[%s2904_s1 + $0x1b8] sm:$0xff]   ;;  %v1792_v7 = vcombine.low %v17_v6, %v17_v6  ;;  %v1793_v8 = vcombine.high %v17_v6, %v17_v6  ;;  %v2263_v15 = vld [vmem:[%s2904_s1 + $0x280] sm:$0xff]   ;;  %v2264_v16 = vld [vmem:[%s2904_s1 + $0x248] sm:$0xff]  }
  0x19   :  { %2001 = vmatpush3.bf16.msra.mxu1 %v2211_v23  ;;  %1980 = vmatprep.subr.bf16.mxu0 %v2212_v24  ;;  %v18_v9 = vld [vmem:[%s2905_s0 + $0x18] sm:$0xff]  ;;  %v2265_v17 = vld [vmem:[%s2904_s1 + $0x2c8] sm:$0xff]   ;;  %v2268_v20 = vld [vmem:[%s2904_s1 + $0x250] sm:$0xff]  }
  0x1a   :  { %2002 = vmatprep.subr.bf16.mxu1 %v2213_v25  ;;  %v1794_v10 = vcombine.low %v18_v9, %v18_v9  ;;  %v1795_v11 = vcombine.high %v18_v9, %v18_v9  ;;  %v2266_v18 = vld [vmem:[%s2904_s1 + $0x208] sm:$0xff]   ;;  %v2269_v21 = vld [vmem:[%s2904_s1 + $0x2d0] sm:$0xff]   ;;  %v2272_v24 = vld [vmem:[%s2904_s1 + $0x258] sm:$0xff]  }
  0x1b   :  { %v2267_v19 = vld [vmem:[%s2904_s1 + $0x288] sm:$0xff]   ;;  %v2270_v22 = vld [vmem:[%s2904_s1 + $0x210] sm:$0xff]   ;;  %v2273_v25 = vld [vmem:[%s2904_s1 + $0x2d8] sm:$0xff]  }
  0x1c   :  { %1981 = vmatpush3.bf16.msra.mxu0 %v2214_v26  ;;  %v2271_v23 = vld [vmem:[%s2904_s1 + $0x290] sm:$0xff]   ;;  %v2274_v26 = vld [vmem:[%s2904_s1 + $0x218] sm:$0xff]   ;;  %v2280_v32 = vld [vmem:[%s2904_s1 + $0x268] sm:$0xff]  }
  0x1d   :  { %2003 = vmatpush3.bf16.msra.mxu1 %v2215_v27  ;;  %1982 = vmatprep.subr.bf16.mxu0 %v2216_v28  ;;  %v2275_v27 = vld [vmem:[%s2904_s1 + $0x298] sm:$0xff]   ;;  %v2276_v28 = vld [vmem:[%s2904_s1 + $0x260] sm:$0xff]   ;;  %v2281_v33 = vld [vmem:[%s2904_s1 + $0x2e8] sm:$0xff]  }
  0x1e   :  { %2004 = vmatprep.subr.bf16.mxu1 %v2217_v29  ;;  %v2277_v29 = vld [vmem:[%s2904_s1 + $0x2e0] sm:$0xff]   ;;  %v2283_v35 = vld [vmem:[%s2904_s1 + $0x2a8] sm:$0xff]   ;;  %v2285_v37 = vld [vmem:[%s2904_s1 + $0x2f0] sm:$0xff]  }
  0x1f   :  { %v2316_v6 = vld [vmem:[%s2904_s1 + $0x368] sm:$0xff]  }
  0x20   :  { %1983 = vmatpush3.bf16.msra.mxu0 %v2218_v30  ;;  %v2278_v30 = vld [vmem:[%s2904_s1 + $0x220] sm:$0xff]   ;;  %v2319_v9 = vld [vmem:[%s2904_s1 + $0x3a8] sm:$0xff]  }
  0x21   :  { %2005 = vmatpush3.bf16.msra.mxu1 %v2219_v31  ;;  %2012 = vmatprep.subr.bf16.mxu0 %v2224_v38  ;;  %v2279_v31 = vld [vmem:[%s2904_s1 + $0x2a0] sm:$0xff]   ;;  %v2286_v38 = vld [vmem:[%s2904_s1 + $0x230] sm:$0xff]  }
  0x22   :  { %2034 = vmatprep.subr.bf16.mxu1 %v2225_v39  ;;  %v2287_v39 = vld [vmem:[%s2904_s1 + $0x2b0] sm:$0xff]  }
  0x23   :  { %1415 = vmatmul.mubr.bf16.vlgmr.msra.gmra.mrb[0].mxu0 %v1788_v34  ;;  %v2282_v34 = vld [vmem:[%s2904_s1 + $0x228] sm:$0xff]  }
  0x24   :  { %1455 = vmatmul.mubr.bf16.vlgmr.msra.gmra.mrb[0].mxu1 %v1790_v36  ;;  %2013 = vmatpush3.bf16.msra.mxu0 %v2226_v40  ;;  %v2284_v36 = vld [vmem:[%s2904_s1 + $0x270] sm:$0xff]   ;;  %v2288_v40 = vld [vmem:[%s2904_s1 + $0x278] sm:$0xff]  }
  0x25   :  { %2035 = vmatpush3.bf16.msra.mxu1 %v2227_v41  ;;  %2014 = vmatprep.subr.bf16.mxu0 %v2228_v42  ;;  %v2289_v41 = vld [vmem:[%s2904_s1 + $0x2f8] sm:$0xff]  }
  0x26   :  { %2036 = vmatprep.subr.bf16.mxu1 %v2229_v43  ;;  %1494 = vmatprep.mubr.bf16.mxu0 %v1793_v8  ;;  %v2290_v42 = vld [vmem:[%s2904_s1 + $0x238] sm:$0xff]   ;;  %v2318_v8 = vld [vmem:[%s2904_s1 + $0x328] sm:$0xff]  }
  0x27   :  { %1534 = vmatprep.mubr.bf16.mxu1 %v1795_v11  ;;  %v2291_v43 = vld [vmem:[%s2904_s1 + $0x2b8] sm:$0xff]   ;;  %v2321_v11 = vld [vmem:[%s2904_s1 + $0x3f0] sm:$0xff]  }
  0x28   :  { %2015 = vmatpush3.bf16.msra.mxu0 %v2230_v44  ;;  %v19_v44 = vld [vmem:[%s2905_s0 + $0x20] sm:$0xff] }
  0x29   :  { %2037 = vmatpush3.bf16.msra.mxu1 %v2231_v45  ;;  %2016 = vmatprep.subr.bf16.mxu0 %v2232_v46  ;;  %v20_v45 = vld [vmem:[%s2905_s0 + $0x28] sm:$0xff]  ;;  %v1796_v46 = vcombine.low %v19_v44, %v19_v44 }
  0x2a   :  { %2038 = vmatprep.subr.bf16.mxu1 %v2233_v47  ;;  %v1797_v47 = vcombine.high %v19_v44, %v19_v44  ;;  %v2352_v44 = vld [vmem:[%s2904_s1 + $0x468] sm:$0xff]  }
  0x2c   :  { %2017 = vmatpush3.bf16.msra.mxu0 %v2234_v48  ;;  %v1798_v48 = vcombine.low %v20_v45, %v20_v45 }
  0x2d   :  { %2039 = vmatpush3.bf16.msra.mxu1 %v2235_v49  ;;  %2018 = vmatprep.subr.bf16.mxu0 %v2236_v50  ;;  %v1799_v49 = vcombine.high %v20_v45, %v20_v45  ;;  %v2296_v50 = vld [vmem:[%s2904_s1 + $0x340] sm:$0xff]   ;;  %v2353_v45 = vld [vmem:[%s2904_s1 + $0x4e8] sm:$0xff]  }
  0x2e   :  { %2040 = vmatprep.subr.bf16.mxu1 %v2237_v51  ;;  %v2297_v51 = vld [vmem:[%s2904_s1 + $0x3c0] sm:$0xff]  }
  0x30   :  { %2019 = vmatpush3.bf16.msra.mxu0 %v2238_v52  ;;  %v2298_v52 = vld [vmem:[%s2904_s1 + $0x300] sm:$0xff]  }
  0x31   :  { %2041 = vmatpush3.bf16.msra.mxu1 %v2239_v53  ;;  %2020 = vmatprep.subr.bf16.mxu0 %v2240_v54  ;;  %v2299_v53 = vld [vmem:[%s2904_s1 + $0x380] sm:$0xff]   ;;  %v2300_v54 = vld [vmem:[%s2904_s1 + $0x348] sm:$0xff]  }
  0x32   :  { %2042 = vmatprep.subr.bf16.mxu1 %v2241_v55  ;;  %v2301_v55 = vld [vmem:[%s2904_s1 + $0x3c8] sm:$0xff]  }
  0x34   :  { %2021 = vmatpush3.bf16.msra.mxu0 %v2242_v56  ;;  %v2302_v56 = vld [vmem:[%s2904_s1 + $0x308] sm:$0xff]  }
  0x35   :  { %2043 = vmatpush3.bf16.msra.mxu1 %v2243_v57  ;;  %2022 = vmatprep.subr.bf16.mxu0 %v2244_v58  ;;  %v2303_v57 = vld [vmem:[%s2904_s1 + $0x388] sm:$0xff]   ;;  %v2304_v58 = vld [vmem:[%s2904_s1 + $0x350] sm:$0xff]  }
  0x36   :  { %2044 = vmatprep.subr.bf16.mxu1 %v2245_v59  ;;  %v2305_v59 = vld [vmem:[%s2904_s1 + $0x3d0] sm:$0xff]  }
  0x38   :  { %2023 = vmatpush3.bf16.msra.mxu0 %v2246_v60  ;;  %v2306_v60 = vld [vmem:[%s2904_s1 + $0x310] sm:$0xff]  }
  0x39   :  { %2045 = vmatpush3.bf16.msra.mxu1 %v2247_v61  ;;  %2024 = vmatprep.subr.bf16.mxu0 %v2248_v62  ;;  %v2307_v61 = vld [vmem:[%s2904_s1 + $0x390] sm:$0xff]   ;;  %v2308_v62 = vld [vmem:[%s2904_s1 + $0x358] sm:$0xff]  }
  0x3a   :  { %2046 = vmatprep.subr.bf16.mxu1 %v2249_v63  ;;  %v2309_v63 = vld [vmem:[%s2904_s1 + $0x3d8] sm:$0xff]  }
  0x3c   :  { %2025 = vmatpush3.bf16.msra.mxu0 %v2250_v0  ;;  %v2310_v0 = vld [vmem:[%s2904_s1 + $0x318] sm:$0xff]  }
  0x3d   :  { %2047 = vmatpush3.bf16.msra.mxu1 %v2251_v1  ;;  %2026 = vmatprep.subr.bf16.mxu0 %v2252_v2  ;;  %v2311_v1 = vld [vmem:[%s2904_s1 + $0x398] sm:$0xff]   ;;  %v2312_v2 = vld [vmem:[%s2904_s1 + $0x360] sm:$0xff]  }
  0x3e   :  { %2048 = vmatprep.subr.bf16.mxu1 %v2253_v3  ;;  %v2313_v3 = vld [vmem:[%s2904_s1 + $0x3e0] sm:$0xff]  }
  0x40   :  { %2027 = vmatpush3.bf16.msra.mxu0 %v2254_v4  ;;  %v2314_v4 = vld [vmem:[%s2904_s1 + $0x320] sm:$0xff]  }
  0x41   :  { %2049 = vmatpush3.bf16.msra.mxu1 %v2255_v5  ;;  %2056 = vmatprep.subr.bf16.mxu0 %v2260_v12  ;;  %v2315_v5 = vld [vmem:[%s2904_s1 + $0x3a0] sm:$0xff]   ;;  %v2322_v12 = vld [vmem:[%s2904_s1 + $0x330] sm:$0xff]  }
  0x42   :  { %2078 = vmatprep.subr.bf16.mxu1 %v2261_v13  ;;  %v2323_v13 = vld [vmem:[%s2904_s1 + $0x3b0] sm:$0xff]  }
  0x43   :  { %1495 = vmatmul.mubr.bf16.vlgmr.msra.gmra.mrb[4].mxu0 %v1792_v7  ;;  %v2317_v7 = vld [vmem:[%s2904_s1 + $0x3e8] sm:$0xff]  }
  0x44   :  { %1535 = vmatmul.mubr.bf16.vlgmr.msra.gmra.mrb[4].mxu1 %v1794_v10  ;;  %2057 = vmatpush3.bf16.msra.mxu0 %v2262_v14  ;;  %v2320_v10 = vld [vmem:[%s2904_s1 + $0x370] sm:$0xff]   ;;  %v2324_v14 = vld [vmem:[%s2904_s1 + $0x378] sm:$0xff]  }
  0x45   :  { %2079 = vmatpush3.bf16.msra.mxu1 %v2263_v15  ;;  %2058 = vmatprep.subr.bf16.mxu0 %v2264_v16  ;;  %v2325_v15 = vld [vmem:[%s2904_s1 + $0x3f8] sm:$0xff]  }
  0x46   :  { %2080 = vmatprep.subr.bf16.mxu1 %v2265_v17  ;;  %1574 = vmatprep.mubr.bf16.mxu0 %v1797_v47  ;;  %v2326_v16 = vld [vmem:[%s2904_s1 + $0x338] sm:$0xff]   ;;  %v2355_v47 = vld [vmem:[%s2904_s1 + $0x4a8] sm:$0xff]  }
  0x47   :  { %1614 = vmatprep.mubr.bf16.mxu1 %v1799_v49  ;;  %v2327_v17 = vld [vmem:[%s2904_s1 + $0x3b8] sm:$0xff]   ;;  %v2357_v49 = vld [vmem:[%s2904_s1 + $0x4f0] sm:$0xff]  }
  0x48   :  { %2059 = vmatpush3.bf16.msra.mxu0 %v2266_v18  ;;  %v21_v18 = vld [vmem:[%s2905_s0 + $0x30] sm:$0xff] }
  0x49   :  { %2081 = vmatpush3.bf16.msra.mxu1 %v2267_v19  ;;  %2060 = vmatprep.subr.bf16.mxu0 %v2268_v20  ;;  %v22_v19 = vld [vmem:[%s2905_s0 + $0x38] sm:$0xff]  ;;  %v1800_v20 = vcombine.low %v21_v18, %v21_v18 }
  0x4a   :  { %2082 = vmatprep.subr.bf16.mxu1 %v2269_v21  ;;  %v1801_v21 = vcombine.high %v21_v18, %v21_v18 }
  0x4c   :  { %2061 = vmatpush3.bf16.msra.mxu0 %v2270_v22  ;;  %v1802_v22 = vcombine.low %v22_v19, %v22_v19 }
  0x4d   :  { %2083 = vmatpush3.bf16.msra.mxu1 %v2271_v23  ;;  %2062 = vmatprep.subr.bf16.mxu0 %v2272_v24  ;;  %v2332_v23 = vld [vmem:[%s2904_s1 + $0x440] sm:$0xff]   ;;  %v1803_v24 = vcombine.high %v22_v19, %v22_v19 }
  0x4e   :  { %2084 = vmatprep.subr.bf16.mxu1 %v2273_v25  ;;  %v2333_v25 = vld [vmem:[%s2904_s1 + $0x4c0] sm:$0xff]  }
  0x50   :  { %2063 = vmatpush3.bf16.msra.mxu0 %v2274_v26  ;;  %v2334_v26 = vld [vmem:[%s2904_s1 + $0x400] sm:$0xff]  }
  0x51   :  { %2085 = vmatpush3.bf16.msra.mxu1 %v2275_v27  ;;  %2064 = vmatprep.subr.bf16.mxu0 %v2276_v28  ;;  %v2335_v27 = vld [vmem:[%s2904_s1 + $0x480] sm:$0xff]   ;;  %v2336_v28 = vld [vmem:[%s2904_s1 + $0x448] sm:$0xff]  }
  0x52   :  { %2086 = vmatprep.subr.bf16.mxu1 %v2277_v29  ;;  %v2337_v29 = vld [vmem:[%s2904_s1 + $0x4c8] sm:$0xff]  }
  0x54   :  { %2065 = vmatpush3.bf16.msra.mxu0 %v2278_v30  ;;  %v2338_v30 = vld [vmem:[%s2904_s1 + $0x408] sm:$0xff]  }
  0x55   :  { %2087 = vmatpush3.bf16.msra.mxu1 %v2279_v31  ;;  %2066 = vmatprep.subr.bf16.mxu0 %v2280_v32  ;;  %v2339_v31 = vld [vmem:[%s2904_s1 + $0x488] sm:$0xff]   ;;  %v2340_v32 = vld [vmem:[%s2904_s1 + $0x450] sm:$0xff]  }
  0x56   :  { %2088 = vmatprep.subr.bf16.mxu1 %v2281_v33  ;;  %v2341_v33 = vld [vmem:[%s2904_s1 + $0x4d0] sm:$0xff]  }
  0x58   :  { %2067 = vmatpush3.bf16.msra.mxu0 %v2282_v34  ;;  %v2342_v34 = vld [vmem:[%s2904_s1 + $0x410] sm:$0xff]  }
  0x59   :  { %2089 = vmatpush3.bf16.msra.mxu1 %v2283_v35  ;;  %2068 = vmatprep.subr.bf16.mxu0 %v2284_v36  ;;  %v2343_v35 = vld [vmem:[%s2904_s1 + $0x490] sm:$0xff]   ;;  %v2344_v36 = vld [vmem:[%s2904_s1 + $0x458] sm:$0xff]  }
  0x5a   :  { %2090 = vmatprep.subr.bf16.mxu1 %v2285_v37  ;;  %v2345_v37 = vld [vmem:[%s2904_s1 + $0x4d8] sm:$0xff]  }
  0x5c   :  { %2069 = vmatpush3.bf16.msra.mxu0 %v2286_v38  ;;  %v2346_v38 = vld [vmem:[%s2904_s1 + $0x418] sm:$0xff]  }
  0x5d   :  { %2091 = vmatpush3.bf16.msra.mxu1 %v2287_v39  ;;  %2070 = vmatprep.subr.bf16.mxu0 %v2288_v40  ;;  %v2347_v39 = vld [vmem:[%s2904_s1 + $0x498] sm:$0xff]   ;;  %v2348_v40 = vld [vmem:[%s2904_s1 + $0x460] sm:$0xff]  }
  0x5e   :  { %2092 = vmatprep.subr.bf16.mxu1 %v2289_v41  ;;  %v2349_v41 = vld [vmem:[%s2904_s1 + $0x4e0] sm:$0xff]  }
  0x60   :  { %2071 = vmatpush3.bf16.msra.mxu0 %v2290_v42  ;;  %v2350_v42 = vld [vmem:[%s2904_s1 + $0x420] sm:$0xff]  }
  0x61   :  { %2093 = vmatpush3.bf16.msra.mxu1 %v2291_v43  ;;  %2100 = vmatprep.subr.bf16.mxu0 %v2296_v50  ;;  %v2351_v43 = vld [vmem:[%s2904_s1 + $0x4a0] sm:$0xff]   ;;  %v2358_v50 = vld [vmem:[%s2904_s1 + $0x430] sm:$0xff]  }
  0x62   :  { %2122 = vmatprep.subr.bf16.mxu1 %v2297_v51  ;;  %v2359_v51 = vld [vmem:[%s2904_s1 + $0x4b0] sm:$0xff]  }
  0x63   :  { %1575 = vmatmul.mubr.bf16.vlgmr.msra.gmra.mrb[8].mxu0 %v1796_v46  ;;  %v2354_v46 = vld [vmem:[%s2904_s1 + $0x428] sm:$0xff]  }
  0x64   :  { %1615 = vmatmul.mubr.bf16.vlgmr.msra.gmra.mrb[8].mxu1 %v1798_v48  ;;  %2101 = vmatpush3.bf16.msra.mxu0 %v2298_v52  ;;  %v2356_v48 = vld [vmem:[%s2904_s1 + $0x470] sm:$0xff]   ;;  %v2360_v52 = vld [vmem:[%s2904_s1 + $0x478] sm:$0xff]  }
  0x65   :  { %2123 = vmatpush3.bf16.msra.mxu1 %v2299_v53  ;;  %2102 = vmatprep.subr.bf16.mxu0 %v2300_v54  ;;  %v2361_v53 = vld [vmem:[%s2904_s1 + $0x4f8] sm:$0xff]  }
  0x66   :  { %2124 = vmatprep.subr.bf16.mxu1 %v2301_v55  ;;  %1654 = vmatprep.mubr.bf16.mxu0 %v1801_v21  ;;  %v2362_v54 = vld [vmem:[%s2904_s1 + $0x438] sm:$0xff]  }
  0x67   :  { %1694 = vmatprep.mubr.bf16.mxu1 %v1803_v24  ;;  %v2363_v55 = vld [vmem:[%s2904_s1 + $0x4b8] sm:$0xff]  }
  0x68   :  { %2103 = vmatpush3.bf16.msra.mxu0 %v2302_v56  ;;  %v23_v56 = vld [vmem:[%s2905_s0 + $0x40] sm:$0xff] }
  0x69   :  { %2125 = vmatpush3.bf16.msra.mxu1 %v2303_v57  ;;  %2104 = vmatprep.subr.bf16.mxu0 %v2304_v58  ;;  %v1804_v57 = vcombine.low %v23_v56, %v23_v56  ;;  %v1805_v58 = vcombine.high %v23_v56, %v23_v56 }
  0x6a   :  { %2126 = vmatprep.subr.bf16.mxu1 %v2305_v59  ;;  %v24_v59 = vld [vmem:[%s2905_s0 + $0x48] sm:$0xff] }
  0x6c   :  { %2105 = vmatpush3.bf16.msra.mxu0 %v2306_v60  ;;  %v1806_v60 = vcombine.low %v24_v59, %v24_v59 }
  0x6d   :  { %2127 = vmatpush3.bf16.msra.mxu1 %v2307_v61  ;;  %2106 = vmatprep.subr.bf16.mxu0 %v2308_v62  ;;  %v1807_v61 = vcombine.high %v24_v59, %v24_v59 }
  0x6e   :  { %2128 = vmatprep.subr.bf16.mxu1 %v2309_v63 }
  0x70   :  { %2107 = vmatpush3.bf16.msra.mxu0 %v2310_v0  ;;  %v1787_v0 = vld [vmem:[%s2906_s2] ss:$0 sm:$0xff] }
  0x71   :  { %2129 = vmatpush3.bf16.msra.mxu1 %v2311_v1  ;;  %2108 = vmatprep.subr.bf16.mxu0 %v2312_v2 }
  0x72   :  { %2130 = vmatprep.subr.bf16.mxu1 %v2313_v3 }
  0x74   :  { %2109 = vmatpush3.bf16.msra.mxu0 %v2314_v4 }
  0x75   :  { %2131 = vmatpush3.bf16.msra.mxu1 %v2315_v5  ;;  %2110 = vmatprep.subr.bf16.mxu0 %v2316_v6 }
  0x76   :  { %2132 = vmatprep.subr.bf16.mxu1 %v2317_v7 }
  0x78   :  { %2111 = vmatpush3.bf16.msra.mxu0 %v2318_v8 }
  0x79   :  { %2133 = vmatpush3.bf16.msra.mxu1 %v2319_v9  ;;  %2112 = vmatprep.subr.bf16.mxu0 %v2320_v10 }
  0x7a   :  { %2134 = vmatprep.subr.bf16.mxu1 %v2321_v11 }
  0x7c   :  { %2113 = vmatpush3.bf16.msra.mxu0 %v2322_v12 }
  0x7d   :  { %2135 = vmatpush3.bf16.msra.mxu1 %v2323_v13  ;;  %2114 = vmatprep.subr.bf16.mxu0 %v2324_v14 }
  0x7e   :  { %2136 = vmatprep.subr.bf16.mxu1 %v2325_v15 }
  0x80   :  { %2115 = vmatpush3.bf16.msra.mxu0 %v2326_v16 }
  0x81   :  { %2137 = vmatpush3.bf16.msra.mxu1 %v2327_v17  ;;  %2144 = vmatprep.subr.bf16.mxu0 %v2332_v23 }
  0x82   :  { %2166 = vmatprep.subr.bf16.mxu1 %v2333_v25 }
  0x83   :  { %1655 = vmatmul.mubr.bf16.vlgmr.msra.gmra.mrb[12].mxu0 %v1800_v20 }
  0x84   :  { %1695 = vmatmul.mubr.bf16.vlgmr.msra.gmra.mrb[12].mxu1 %v1802_v22  ;;  %2145 = vmatpush3.bf16.msra.mxu0 %v2334_v26 }
  0x85   :  { %2167 = vmatpush3.bf16.msra.mxu1 %v2335_v27  ;;  %2146 = vmatprep.subr.bf16.mxu0 %v2336_v28 }
  0x86   :  { %2168 = vmatprep.subr.bf16.mxu1 %v2337_v29  ;;  %1734 = vmatprep.mubr.bf16.mxu0 %v1805_v58 }
  0x87   :  { %1774 = vmatprep.mubr.bf16.mxu1 %v1807_v61 }
  0x88   :  { %2147 = vmatpush3.bf16.msra.mxu0 %v2338_v30 }
  0x89   :  { %2169 = vmatpush3.bf16.msra.mxu1 %v2339_v31  ;;  %2148 = vmatprep.subr.bf16.mxu0 %v2340_v32 }
  0x8a   :  { %2170 = vmatprep.subr.bf16.mxu1 %v2341_v33 }
  0x8c   :  { %2149 = vmatpush3.bf16.msra.mxu0 %v2342_v34 }
  0x8d   :  { %2171 = vmatpush3.bf16.msra.mxu1 %v2343_v35  ;;  %2150 = vmatprep.subr.bf16.mxu0 %v2344_v36 }
  0x8e   :  { %2172 = vmatprep.subr.bf16.mxu1 %v2345_v37 }
  0x90   :  { %2151 = vmatpush3.bf16.msra.mxu0 %v2346_v38 }
  0x91   :  { %2173 = vmatpush3.bf16.msra.mxu1 %v2347_v39  ;;  %2152 = vmatprep.subr.bf16.mxu0 %v2348_v40 }
  0x92   :  { %2174 = vmatprep.subr.bf16.mxu1 %v2349_v41 }
  0x94   :  { %2153 = vmatpush3.bf16.msra.mxu0 %v2350_v42 }
  0x95   :  { %2175 = vmatpush3.bf16.msra.mxu1 %v2351_v43  ;;  %2154 = vmatprep.subr.bf16.mxu0 %v2352_v44 }
  0x96   :  { %2176 = vmatprep.subr.bf16.mxu1 %v2353_v45 }
  0x98   :  { %2155 = vmatpush3.bf16.msra.mxu0 %v2354_v46 }
  0x99   :  { %2177 = vmatpush3.bf16.msra.mxu1 %v2355_v47  ;;  %2156 = vmatprep.subr.bf16.mxu0 %v2356_v48 }
  0x9a   :  { %2178 = vmatprep.subr.bf16.mxu1 %v2357_v49 }
  0x9c   :  { %2157 = vmatpush3.bf16.msra.mxu0 %v2358_v50 }
  0x9d   :  { %2179 = vmatpush3.bf16.msra.mxu1 %v2359_v51  ;;  %2158 = vmatprep.subr.bf16.mxu0 %v2360_v52 }
  0x9e   :  { %2180 = vmatprep.subr.bf16.mxu1 %v2361_v53 }
  0xa0   :  { %2159 = vmatpush3.bf16.msra.mxu0 %v2362_v54 }
  0xa1   :  { %2181 = vmatpush3.bf16.msra.mxu1 %v2363_v55 }
  0xa3   :  { %1735 = vmatmul.mubr.bf16.vlgmr.msra.gmra.mrb[16].mxu0 %v1804_v57 }
  0xa4   :  { %1775 = vmatmul.mubr.bf16.vlgmr.msra.gmra.mrb[16].mxu1 %v1806_v60 }
  0xf6   :  { %v1984_v62 = vpop.f32.mrb[0].mxu0 }
  0xf7   :  { %v2006_v63 = vpop.f32.mrb[0].mxu1  ;;  %v1985_v1 = vpop.f32.mrb[1].mxu0 }
  0xf8   :  { %v2007_v2 = vpop.f32.mrb[1].mxu1  ;;  %v1986_v3 = vadd.f32 %v1985_v1, %v1984_v62  ;;  %v1987_v5 = vpop.f32.mrb[2].mxu0 }
  0xf9   :  { %v2008_v4 = vadd.f32 %v2007_v2, %v2006_v63  ;;  %v2009_v6 = vpop.f32.mrb[2].mxu1  ;;  %v1988_v7 = vpop.f32.mrb[3].mxu0 }
  0xfa   :  { %v2010_v8 = vpop.f32.mrb[3].mxu1  ;;  %v1417_v9 = vadd.f32 %v1986_v3, %v1787_v0 }
  0xfc   :  { %v1457_v10 = vadd.f32 %v2008_v4, %v1417_v9 }
 0x116   :  { %v2028_v11 = vpop.f32.mrb[4].mxu0 }
 0x117   :  { %v2050_v12 = vpop.f32.mrb[4].mxu1  ;;  %v2029_v13 = vpop.f32.mrb[5].mxu0 }
 0x118   :  { %v2051_v14 = vpop.f32.mrb[5].mxu1  ;;  %v2030_v15 = vadd.f32 %v2029_v13, %v2028_v11  ;;  %v2031_v17 = vpop.f32.mrb[6].mxu0 }
 0x119   :  { %v2052_v16 = vadd.f32 %v2051_v14, %v2050_v12  ;;  %v2053_v18 = vpop.f32.mrb[6].mxu1  ;;  %v2032_v19 = vpop.f32.mrb[7].mxu0 }
 0x11a   :  { %v2054_v20 = vpop.f32.mrb[7].mxu1  ;;  %v1497_v21 = vadd.f32 %v2030_v15, %v1457_v10 }
 0x11c   :  { %v1537_v22 = vadd.f32 %v2052_v16, %v1497_v21 }
 0x136   :  { %v2072_v23 = vpop.f32.mrb[8].mxu0 }
 0x137   :  { %v2094_v24 = vpop.f32.mrb[8].mxu1  ;;  %v2073_v25 = vpop.f32.mrb[9].mxu0 }
 0x138   :  { %v2074_v26 = vadd.f32 %v2073_v25, %v2072_v23  ;;  %v2095_v27 = vpop.f32.mrb[9].mxu1  ;;  %v2075_v28 = vpop.f32.mrb[10].mxu0 }
 0x139   :  { %v2096_v29 = vadd.f32 %v2095_v27, %v2094_v24  ;;  %v2097_v30 = vpop.f32.mrb[10].mxu1  ;;  %v2076_v31 = vpop.f32.mrb[11].mxu0 }
 0x13a   :  { %v1577_v32 = vadd.f32 %v2074_v26, %v1537_v22  ;;  %v2098_v33 = vpop.f32.mrb[11].mxu1 }
 0x13c   :  { %v1617_v34 = vadd.f32 %v2096_v29, %v1577_v32 }
 0x156   :  { %v2116_v35 = vpop.f32.mrb[12].mxu0 }
 0x157   :  { %v2138_v36 = vpop.f32.mrb[12].mxu1  ;;  %v2117_v37 = vpop.f32.mrb[13].mxu0 }
 0x158   :  { %v2118_v38 = vadd.f32 %v2117_v37, %v2116_v35  ;;  %v2139_v39 = vpop.f32.mrb[13].mxu1  ;;  %v2119_v40 = vpop.f32.mrb[14].mxu0 }
 0x159   :  { %v2140_v41 = vadd.f32 %v2139_v39, %v2138_v36  ;;  %v2141_v42 = vpop.f32.mrb[14].mxu1  ;;  %v2120_v43 = vpop.f32.mrb[15].mxu0 }
 0x15a   :  { %v1657_v44 = vadd.f32 %v2118_v38, %v1617_v34  ;;  %v2142_v45 = vpop.f32.mrb[15].mxu1 }
 0x15c   :  { %v1697_v46 = vadd.f32 %v2140_v41, %v1657_v44 }
 0x176   :  { %v2160_v47 = vpop.f32.mrb[16].mxu0 }
 0x177   :  { %v2182_v48 = vpop.f32.mrb[16].mxu1  ;;  %v2161_v49 = vpop.f32.mrb[17].mxu0 }
 0x178   :  { %v2183_v50 = vpop.f32.mrb[17].mxu1  ;;  %v2162_v51 = vadd.f32 %v2161_v49, %v2160_v47  ;;  %v2163_v53 = vpop.f32.mrb[18].mxu0 }
 0x179   :  { %v2184_v52 = vadd.f32 %v2183_v50, %v2182_v48  ;;  %v2185_v54 = vpop.f32.mrb[18].mxu1  ;;  %v2164_v55 = vpop.f32.mrb[19].mxu0 }
 0x17a   :  { %v2186_v56 = vpop.f32.mrb[19].mxu1  ;;  %v1737_v57 = vadd.f32 %v2162_v51, %v1697_v46 }
 0x17c   :  { %v1777_v58 = vadd.f32 %v2184_v52, %v1737_v57 }
 0x17e   :  { %1782 = vst [vmem:[%s2907_s3] sm:$0xff] %v1777_v58 }

</bundles_post_ra>
